<compile_context>
chip_gen: v5e
topology: v5e:2x2
jax: 0.10.0
libtpu: 0.0.40
codegen_flags: <defaults>
</compile_context>

<pallas_src>
import functools

import jax
import jax.numpy as jnp
import numpy as np
from jax import lax
from jax.experimental import pallas as pl
from jax.experimental.pallas import tpu as pltpu

_LANE = 128
_VMEM_LIMIT = 48 * 1024 * 1024
_DILATIONS = (1, 3, 5, 7, 9)


def _round_up(x, m):
    return (x + m - 1) // m * m


def _cdiv(a, b):
    return -(-a // b)


# ----------------------------------------------------------------------------
# Pallas kernels
# ----------------------------------------------------------------------------

def _up_conv_kernel(x_hbm, w_ref, b_ref, o_ref, xw_ref, sem, *,
                    Tq, L, stride, n_d, start_off, tap_valid, Cpo):
    """Polyphase ConvTranspose1d for one (batch, time-tile) grid point.

    x_hbm:  [B, Lpad, Cpi] in HBM (manual halo DMA).
    w_ref:  (stride, n_d, Cpi, Cpo) bf16 per-phase/per-offset tap matrices.
    b_ref:  (1, Cpo) f32 bias.   o_ref: (1, Tq, stride*Cpo) f32.
    """
    b = pl.program_id(0)
    t = pl.program_id(1)
    q0 = t * Tq
    wl = Tq + n_d - 1
    cp = pltpu.make_async_copy(
        x_hbm.at[pl.ds(b, 1), pl.ds(q0 + start_off, wl), :], xw_ref, sem.at[0])
    cp.start()
    cp.wait()

    xw = xw_ref[0].astype(jnp.bfloat16)                  # (wl, Cpi)
    bias = b_ref[...]                                    # (1, Cpo) f32
    row = q0 + lax.broadcasted_iota(jnp.int32, (Tq, 1), 0)
    in_range = row < L                                   # mask tile tail
    for r in range(stride):
        acc = jnp.zeros((Tq, Cpo), jnp.float32)
        for di in range(n_d):
            if tap_valid[r][di]:
                acc = acc + jnp.dot(xw[di:di + Tq, :], w_ref[r, di],
                                    preferred_element_type=jnp.float32)
        acc = jnp.where(in_range, acc + bias, 0.0)
        o_ref[0, :, r * Cpo:(r + 1) * Cpo] = acc


def _res_stack_kernel(y_hbm, w1_ref, b1_ref, w2_ref, b2_ref, a1_ref, a2_ref,
                      o_ref, cur_ref, col_ref, sem, *,
                      Tt, Tw, H, T_up, K, Cp, dils):
    """All 5 ResidualUnits fused; one (batch, time-tile) grid point.

    y_hbm:  [B, n_t*Tt + 2H, Cp] zero-padded activation in HBM.
    cur_ref: (1, Tw, Cp) f32 VMEM working buffer (residual stream).
    col_ref: (Tw, K*Cp) bf16 im2col scratch.
    """
    b = pl.program_id(0)
    t = pl.program_id(1)
    start = pl.multiple_of(t * Tt, 8)
    cp = pltpu.make_async_copy(
        y_hbm.at[pl.ds(b, 1), pl.ds(start, Tw), :], cur_ref, sem.at[0])
    cp.start()
    cp.wait()

    Lcur = 0
    for i, d in enumerate(dils):
        pad = (K * d - d) // 2                 # get_padding(K, d)
        Lnext = Lcur + pad
        base = Lnext
        out_len = Tw - 2 * Lnext
        # im2col: gather the K dilated taps into lane blocks of col_ref,
        # then ONE K*Cp-contraction matmul on the MXU.
        for j in range(K):
            s = Lcur + j * d
            col_ref[0:out_len, j * Cp:(j + 1) * Cp] = (
                cur_ref[0, s:s + out_len, :].astype(jnp.bfloat16))
        h = jnp.dot(col_ref[0:out_len, :], w1_ref[i],
                    preferred_element_type=jnp.float32) + b1_ref[i:i + 1, :]
        a1 = a1_ref[i]
        h = jnp.where(h > 0, h, a1 * h)                          # PReLU 1
        h2 = jnp.dot(h.astype(jnp.bfloat16), w2_ref[i],
                     preferred_element_type=jnp.float32) + b2_ref[i:i + 1, :]
        a2 = a2_ref[i]
        h2 = jnp.where(h2 > 0, h2, a2 * h2)                      # PReLU 2
        out = h2 + cur_ref[0, base:base + out_len, :]            # residual, f32
        # re-impose the per-unit zero padding outside the true sequence
        g = start + base + lax.broadcasted_iota(jnp.int32, (out_len, 1), 0)
        in_seq = (g >= H) & (g < H + T_up)
        out = jnp.where(in_seq, out, 0.0)
        cur_ref[0, base:base + out_len, :] = out
        Lcur = Lnext

    o_ref[0] = cur_ref[0, H:H + Tt, :]


# ----------------------------------------------------------------------------
# Wrappers
# ----------------------------------------------------------------------------

def upsample_polyphase(x, w_pt, bias, stride, Cpi, Cpo, tq_target=256):
    """ConvTranspose1d (padding=(K-stride)//2) as a polyphase Pallas kernel.

    x: [B, L, Cpi] channels-last, channel-padded.  w_pt: PyTorch layout
    [Cin, Cout, K].  Returns (y [B, >=L*stride, Cpo], T_up=L*stride).
    """
    B, L, _ = x.shape
    Cin, Cout, K = w_pt.shape
    assert (K - stride) % 2 == 0, "output length must equal L*stride"
    p = (K - stride) // 2
    # static tap map: out[q*stride + r] = sum_d x[q + d] @ w[:, :, r + p - d*s]
    taps = {}
    for r in range(stride):
        for k in range(K):
            if (r + p - k) % stride == 0:
                taps[(r, (r + p - k) // stride)] = k
    d_min = min(d for (_, d) in taps)
    d_max = max(d for (_, d) in taps)
    n_d = d_max - d_min + 1
    hl = max(0, -d_min)
    start_off = d_min + hl

    Tq = max(8, min(_round_up(L, 8), _round_up(tq_target, 8)))
    nqt = _cdiv(L, Tq)
    padded_len = nqt * Tq + max(d_max, 0) + hl
    x_pad = jnp.pad(x, ((0, 0), (hl, padded_len - hl - L), (0, 0)))

    w_full = jnp.zeros((stride, n_d, Cpi, Cpo), jnp.float32)
    for (r, d), k in taps.items():
        w_full = w_full.at[r, d - d_min, :Cin, :Cout].set(w_pt[:, :, k])
    w_bf16 = w_full.astype(jnp.bfloat16)
    b_pad = jnp.zeros((1, Cpo), jnp.float32).at[0, :Cout].set(bias)
    tap_valid = tuple(tuple((r, d_min + di) in taps for di in range(n_d))
                      for r in range(stride))

    wl = Tq + n_d - 1
    kernel = functools.partial(_up_conv_kernel, Tq=Tq, L=L, stride=stride,
                               n_d=n_d, start_off=start_off,
                               tap_valid=tap_valid, Cpo=Cpo)
    out = pl.pallas_call(
        kernel,
        out_shape=jax.ShapeDtypeStruct((B, nqt * Tq, stride * Cpo), jnp.float32),
        grid=(B, nqt),
        in_specs=[
            pl.BlockSpec(memory_space=pl.ANY),                      # x_pad (HBM)
            pl.BlockSpec((stride, n_d, Cpi, Cpo), lambda b, t: (0, 0, 0, 0)),
            pl.BlockSpec((1, Cpo), lambda b, t: (0, 0)),
        ],
        out_specs=pl.BlockSpec((1, Tq, stride * Cpo), lambda b, t: (b, t, 0)),
        scratch_shapes=[pltpu.VMEM((1, wl, Cpi), jnp.float32),
                        pltpu.SemaphoreType.DMA((1,))],
        compiler_params=pltpu.CompilerParams(
            dimension_semantics=("parallel", "parallel"),
            vmem_limit_bytes=_VMEM_LIMIT),
    )(x_pad, w_bf16, b_pad)
    # free row-major reshape: interleave the stride phases into the time axis
    return out.reshape(B, nqt * Tq * stride, Cpo), L * stride


def fused_res_stack(y, T_up, units, res_kernel_size, Cp, tt_target=512):
    """All 5 ResidualUnits in a single pallas_call, tiled over (batch, time)."""
    assert len(units) == len(_DILATIONS)
    B = y.shape[0]
    K = res_kernel_size
    dils = _DILATIONS
    pads = [(K * d - d) // 2 for d in dils]
    H = sum(pads)                                   # 75 for K=7
    Tt = max(8, min(_round_up(T_up, 8), _round_up(tt_target, 8)))
    n_t = _cdiv(T_up, Tt)
    T_total = n_t * Tt
    Tw = Tt + 2 * H

    # zero-padded, tile-aligned activation (zeros outside [H, H + T_up))
    y_pad = jnp.pad(y[:, :T_up, :], ((0, 0), (H, T_total + H - T_up), (0, 0)))

    C = units[0]["b1"].shape[0]
    pc = Cp - C
    w1l, w2l, b1l, b2l, a1l, a2l = [], [], [], [], [], []
    for u in units:
        w1 = jnp.transpose(u["w1"], (2, 1, 0))                  # (K, Cin, Cout)
        w1l.append(jnp.pad(w1, ((0, 0), (0, pc), (0, pc))).reshape(K * Cp, Cp))
        w2 = jnp.transpose(u["w2"][:, :, 0], (1, 0))            # (Cin, Cout)
        w2l.append(jnp.pad(w2, ((0, pc), (0, pc))))
        b1l.append(jnp.pad(u["b1"], (0, pc)))
        b2l.append(jnp.pad(u["b2"], (0, pc)))
        a1l.append(u["a1"][0])
        a2l.append(u["a2"][0])
    w1_all = jnp.stack(w1l).astype(jnp.bfloat16)    # (5, K*Cp, Cp)
    w2_all = jnp.stack(w2l).astype(jnp.bfloat16)    # (5, Cp, Cp)
    b1_all = jnp.stack(b1l)                         # (5, Cp) f32
    b2_all = jnp.stack(b2l)
    a1_all = jnp.stack(a1l)                         # (5,) f32, SMEM
    a2_all = jnp.stack(a2l)

    n_units = len(units)
    kernel = functools.partial(_res_stack_kernel, Tt=Tt, Tw=Tw, H=H, T_up=T_up,
                               K=K, Cp=Cp, dils=dils)
    out = pl.pallas_call(
        kernel,
        out_shape=jax.ShapeDtypeStruct((B, T_total, Cp), jnp.float32),
        grid=(B, n_t),
        in_specs=[
            pl.BlockSpec(memory_space=pl.ANY),                    # y_pad (HBM)
            pl.BlockSpec((n_units, K * Cp, Cp), lambda b, t: (0, 0, 0)),
            pl.BlockSpec((n_units, Cp), lambda b, t: (0, 0)),
            pl.BlockSpec((n_units, Cp, Cp), lambda b, t: (0, 0, 0)),
            pl.BlockSpec((n_units, Cp), lambda b, t: (0, 0)),
            pl.BlockSpec(memory_space=pltpu.MemorySpace.SMEM),
            pl.BlockSpec(memory_space=pltpu.MemorySpace.SMEM),
        ],
        out_specs=pl.BlockSpec((1, Tt, Cp), lambda b, t: (b, t, 0)),
        scratch_shapes=[pltpu.VMEM((1, Tw, Cp), jnp.float32),
                        pltpu.VMEM((Tw, K * Cp), jnp.bfloat16),
                        pltpu.SemaphoreType.DMA((1,))],
        compiler_params=pltpu.CompilerParams(
            dimension_semantics=("parallel", "parallel"),
            vmem_limit_bytes=_VMEM_LIMIT),
    )(y_pad, w1_all, b1_all, w2_all, b2_all, a1_all, a2_all)
    return out


def res_decoder_block(x_nct, params, stride, res_kernel_size=7):
    """ResDecoderBlock forward. x_nct: [B, n_in, T] (PyTorch NCT layout)."""
    B, n_in, L = x_nct.shape
    n_out = params["up_b"].shape[0]
    Cpi = _round_up(n_in, _LANE)
    Cpo = _round_up(n_out, _LANE)
    # TODO(synk): keep the surrounding model channels-last to drop these
    # boundary transposes / channel pads entirely.
    x = jnp.transpose(x_nct, (0, 2, 1))
    x = jnp.pad(x, ((0, 0), (0, 0), (0, Cpi - n_in)))
    y, T_up = upsample_polyphase(x, params["up_w"], params["up_b"], stride,
                                 Cpi, Cpo)
    y = fused_res_stack(y, T_up, params["res_units"], res_kernel_size, Cpo)
    y = y[:, :T_up, :n_out]
    return jnp.transpose(y, (0, 2, 1))


# ----------------------------------------------------------------------------
# Deterministic parameter init (PyTorch weight layouts)
# ----------------------------------------------------------------------------

def init_params(key, n_in, n_out, up_kernel_size, res_kernel_size=7):
    scale = 0.1
    keys = jax.random.split(key, 2 + 5 * 4)
    params = {
        "up_w": scale * jax.random.normal(
            keys[0], (n_in, n_out, up_kernel_size), jnp.float32),
        "up_b": scale * jax.random.normal(keys[1], (n_out,), jnp.float32),
        "res_units": [],
    }
    ki = 2
    for _ in range(5):
        unit = {
            "w1": scale * jax.random.normal(
                keys[ki], (n_out, n_out, res_kernel_size), jnp.float32),
            "b1": scale * jax.random.normal(keys[ki + 1], (n_out,), jnp.float32),
            "w2": scale * jax.random.normal(
                keys[ki + 2], (n_out, n_out, 1), jnp.float32),
            "b2": scale * jax.random.normal(keys[ki + 3], (n_out,), jnp.float32),
            "a1": jnp.full((1,), 0.25, jnp.float32),  # nn.PReLU() default
            "a2": jnp.full((1,), 0.25, jnp.float32),
        }
        params["res_units"].append(unit)
        ki += 4
    return params


# ----------------------------------------------------------------------------
# Pure-JAX reference (PyTorch NCT semantics) for a correctness check
# ----------------------------------------------------------------------------

def _prelu(x, a):
    return jnp.where(x > 0, x, a * x)


def ref_forward(x, params, stride, res_kernel_size=7):
    dn = ("NCH", "OIH", "NCH")
    K = params["up_w"].shape[2]
    p = (K - stride) // 2
    # ConvTranspose1d == lhs-dilated conv with flipped, in/out-swapped kernel
    w = jnp.transpose(jnp.flip(params["up_w"], axis=2), (1, 0, 2))  # [O,I,K]
    y = lax.conv_general_dilated(x, w, window_strides=(1,),
                                 padding=[(K - 1 - p, K - 1 - p)],
                                 lhs_dilation=(stride,), rhs_dilation=(1,),
                                 dimension_numbers=dn)
    y = y + params["up_b"][None, :, None]
    for unit, dil in zip(params["res_units"], _DILATIONS):
        pad = (res_kernel_size * dil - dil) // 2
        h = lax.conv_general_dilated(y, unit["w1"], (1,), [(pad, pad)],
                                     rhs_dilation=(dil,),
                                     dimension_numbers=dn)
        h = _prelu(h + unit["b1"][None, :, None], unit["a1"][0])
        h = lax.conv_general_dilated(h, unit["w2"], (1,), [(0, 0)],
                                     dimension_numbers=dn)
        h = _prelu(h + unit["b2"][None, :, None], unit["a2"][0])
        y = h + y
    return y


# ----------------------------------------------------------------------------

if __name__ == "__main__":
    B, n_in, n_out, T = 2, 16, 8, 8
    stride, up_kernel_size, res_kernel_size = 2, 4, 7

    key = jax.random.PRNGKey(0)
    kx, kp = jax.random.split(key)
    x = jax.random.normal(kx, (B, n_in, T), jnp.float32)  # PyTorch NCT input
    params = init_params(kp, n_in, n_out, up_kernel_size, res_kernel_size)

    fwd = jax.jit(functools.partial(res_decoder_block, stride=stride,
                                    res_kernel_size=res_kernel_size))
    out = jax.block_until_ready(fwd(x, params))

    assert out.shape == (B, n_out, T * stride), out.shape
    ref = jax.block_until_ready(ref_forward(x, params, stride, res_kernel_size))
    # bf16 matmul operands with f32 accumulation -> loosened tolerance
    np.testing.assert_allclose(np.asarray(out), np.asarray(ref),
                               rtol=3e-2, atol=3e-2)
    print("KERNEL_OK")
</pallas_src>

<mosaic_0001>
module attributes {stable_mosaic.version = 11 : i64} {
  func.func @_up_conv_kernel(%arg0: i32, %arg1: i32, %arg2: memref<2x10x128xf32, #tpu.memory_space<any>>, %arg3: memref<2x3x128x128xbf16, #tpu.memory_space<vmem>>, %arg4: memref<1x128xf32, #tpu.memory_space<vmem>>, %arg5: memref<1x8x256xf32, #tpu.memory_space<vmem>>, %arg6: memref<1x10x128xf32, #tpu.memory_space<vmem>>, %arg7: memref<1x!tpu.dma_semaphore, #tpu.memory_space<semaphore_mem>>) attributes {dimension_semantics = [#tpu.dimension_semantics<parallel>, #tpu.dimension_semantics<parallel>], iteration_bounds = array<i64: 2, 1>, scalar_prefetch = 0 : i64, scratch_operands = 2 : i64, tpu.core_type = #tpu.core_type<tc>, window_params = [{}, {pipeline_mode = #tpu.pipeline_mode<synchronous>, transform_indices = @transform_1, window_bounds = array<i64: 2, 3, 128, 128>}, {pipeline_mode = #tpu.pipeline_mode<synchronous>, transform_indices = @transform_2, window_bounds = array<i64: 1, 128>}, {transform_indices = @transform_3, window_bounds = array<i64: 1, 8, 256>}]} {
    %c8_i32 = arith.constant 8 : i32
    %0 = arith.muli %arg1, %c8_i32 : i32
    %c0_i32 = arith.constant 0 : i32
    %1 = arith.addi %0, %c0_i32 : i32
    %c0_i32_0 = arith.constant 0 : i32
    %c0_i32_1 = arith.constant 0 : i32
    %2 = tpu.memref_slice %arg2[%arg0, %1, %c0_i32_1] : memref<2x10x128xf32, #tpu.memory_space<any>> -> memref<1x10x128xf32, #tpu.memory_space<any>>
    %3 = tpu.memref_slice %arg7[%c0_i32_0] : memref<1x!tpu.dma_semaphore, #tpu.memory_space<semaphore_mem>> -> memref<1x!tpu.dma_semaphore, #tpu.memory_space<semaphore_mem>>
    %4 = tpu.memref_squeeze %3 : memref<1x!tpu.dma_semaphore, #tpu.memory_space<semaphore_mem>> -> memref<!tpu.dma_semaphore, #tpu.memory_space<semaphore_mem>>
    tpu.enqueue_dma source(%2 : memref<1x10x128xf32, #tpu.memory_space<any>>) target(%arg6 : memref<1x10x128xf32, #tpu.memory_space<vmem>>) target_semaphore(%4 : memref<!tpu.dma_semaphore, #tpu.memory_space<semaphore_mem>>)
    %c0_i32_2 = arith.constant 0 : i32
    %c0_i32_3 = arith.constant 0 : i32
    %5 = tpu.memref_slice %arg2[%arg0, %1, %c0_i32_3] : memref<2x10x128xf32, #tpu.memory_space<any>> -> memref<1x10x128xf32, #tpu.memory_space<any>>
    %6 = tpu.memref_slice %arg7[%c0_i32_2] : memref<1x!tpu.dma_semaphore, #tpu.memory_space<semaphore_mem>> -> memref<1x!tpu.dma_semaphore, #tpu.memory_space<semaphore_mem>>
    %7 = tpu.memref_squeeze %6 : memref<1x!tpu.dma_semaphore, #tpu.memory_space<semaphore_mem>> -> memref<!tpu.dma_semaphore, #tpu.memory_space<semaphore_mem>>
    tpu.wait_dma2 semaphore(%7 : memref<!tpu.dma_semaphore, #tpu.memory_space<semaphore_mem>>) src(%5 : memref<1x10x128xf32, #tpu.memory_space<any>>) dst(%arg6 : memref<1x10x128xf32, #tpu.memory_space<vmem>>)
    %c0 = arith.constant 0 : index
    %c0_4 = arith.constant 0 : index
    %c0_5 = arith.constant 0 : index
    %8 = vector.load %arg6[%c0, %c0_4, %c0_5] : memref<1x10x128xf32, #tpu.memory_space<vmem>>, vector<1x10x128xf32>
    %9 = vector.shape_cast %8 : vector<1x10x128xf32> to vector<10x128xf32>
    %10 = arith.truncf %9 : vector<10x128xf32> to vector<10x128xbf16>
    %c0_6 = arith.constant 0 : index
    %c0_7 = arith.constant 0 : index
    %11 = vector.load %arg4[%c0_6, %c0_7] : memref<1x128xf32, #tpu.memory_space<vmem>>, vector<1x128xf32>
    %12 = tpu.iota {dimensions = array<i32: 0>} : vector<8x1xi32>
    %13 = vector.broadcast %0 : i32 to vector<8x1xi32>
    %14 = arith.addi %13, %12 : vector<8x1xi32>
    %c8_i32_8 = arith.constant 8 : i32
    %15 = vector.broadcast %c8_i32_8 : i32 to vector<8x1xi32>
    %16 = arith.cmpi slt, %14, %15 : vector<8x1xi32>
    %cst = arith.constant 0.000000e+00 : f32
    %17 = vector.broadcast %cst : f32 to vector<8x128xf32>
    %18 = vector.extract_strided_slice %10 {offsets = [0, 0], sizes = [8, 128], strides = [1, 1]} : vector<10x128xbf16> to vector<8x128xbf16>
    %c0_9 = arith.constant 0 : index
    %c0_10 = arith.constant 0 : index
    %c0_11 = arith.constant 0 : index
    %c0_12 = arith.constant 0 : index
    %19 = vector.load %arg3[%c0_9, %c0_10, %c0_11, %c0_12] : memref<2x3x128x128xbf16, #tpu.memory_space<vmem>>, vector<1x1x128x128xbf16>
    %20 = vector.shape_cast %19 : vector<1x1x128x128xbf16> to vector<128x128xbf16>
    %cst_13 = arith.constant dense<0.000000e+00> : vector<8x128xf32>
    %21 = tpu.matmul %18, %20, %cst_13 {dimension_numbers = #tpu.dot_dimension_numbers<[1], [0], [0], [1], [0, 0, 1, 1], [], []>} : vector<8x128xbf16>, vector<128x128xbf16>, vector<8x128xf32> -> vector<8x128xf32>
    %22 = arith.addf %17, %21 : vector<8x128xf32>
    %23 = vector.extract_strided_slice %10 {offsets = [1, 0], sizes = [8, 128], strides = [1, 1]} : vector<10x128xbf16> to vector<8x128xbf16>
    %c0_14 = arith.constant 0 : index
    %c1 = arith.constant 1 : index
    %c0_15 = arith.constant 0 : index
    %c0_16 = arith.constant 0 : index
    %24 = vector.load %arg3[%c0_14, %c1, %c0_15, %c0_16] : memref<2x3x128x128xbf16, #tpu.memory_space<vmem>>, vector<1x1x128x128xbf16>
    %25 = vector.shape_cast %24 : vector<1x1x128x128xbf16> to vector<128x128xbf16>
    %cst_17 = arith.constant dense<0.000000e+00> : vector<8x128xf32>
    %26 = tpu.matmul %23, %25, %cst_17 {dimension_numbers = #tpu.dot_dimension_numbers<[1], [0], [0], [1], [0, 0, 1, 1], [], []>} : vector<8x128xbf16>, vector<128x128xbf16>, vector<8x128xf32> -> vector<8x128xf32>
    %27 = arith.addf %22, %26 : vector<8x128xf32>
    %28 = vector.broadcast %11 : vector<1x128xf32> to vector<8x128xf32>
    %29 = arith.addf %27, %28 : vector<8x128xf32>
    %cst_18 = arith.constant 0.000000e+00 : f32
    %30 = vector.shape_cast %16 : vector<8x1xi1> to vector<8x1xi1>
    %31 = vector.broadcast %30 : vector<8x1xi1> to vector<8x128xi1>
    %32 = vector.broadcast %cst_18 : f32 to vector<8x128xf32>
    %33 = arith.select %31, %29, %32 : vector<8x128xi1>, vector<8x128xf32>
    %c0_19 = arith.constant 0 : index
    %c0_20 = arith.constant 0 : index
    %c0_21 = arith.constant 0 : index
    %34 = vector.load %arg5[%c0_19, %c0_20, %c0_21] : memref<1x8x256xf32, #tpu.memory_space<vmem>>, vector<1x8x128xf32>
    %35 = vector.shape_cast %34 : vector<1x8x128xf32> to vector<8x128xf32>
    %36 = vector.shape_cast %33 : vector<8x128xf32> to vector<1x8x128xf32>
    tpu.vector_store %arg5[%c0_19, %c0_20, %c0_21], %36 {strides = array<i32>} : memref<1x8x256xf32, #tpu.memory_space<vmem>>, vector<1x8x128xf32>,
    %cst_22 = arith.constant 0.000000e+00 : f32
    %37 = vector.broadcast %cst_22 : f32 to vector<8x128xf32>
    %38 = vector.extract_strided_slice %10 {offsets = [1, 0], sizes = [8, 128], strides = [1, 1]} : vector<10x128xbf16> to vector<8x128xbf16>
    %c1_23 = arith.constant 1 : index
    %c1_24 = arith.constant 1 : index
    %c0_25 = arith.constant 0 : index
    %c0_26 = arith.constant 0 : index
    %39 = vector.load %arg3[%c1_23, %c1_24, %c0_25, %c0_26] : memref<2x3x128x128xbf16, #tpu.memory_space<vmem>>, vector<1x1x128x128xbf16>
    %40 = vector.shape_cast %39 : vector<1x1x128x128xbf16> to vector<128x128xbf16>
    %cst_27 = arith.constant dense<0.000000e+00> : vector<8x128xf32>
    %41 = tpu.matmul %38, %40, %cst_27 {dimension_numbers = #tpu.dot_dimension_numbers<[1], [0], [0], [1], [0, 0, 1, 1], [], []>} : vector<8x128xbf16>, vector<128x128xbf16>, vector<8x128xf32> -> vector<8x128xf32>
    %42 = arith.addf %37, %41 : vector<8x128xf32>
    %43 = vector.extract_strided_slice %10 {offsets = [2, 0], sizes = [8, 128], strides = [1, 1]} : vector<10x128xbf16> to vector<8x128xbf16>
    %c1_28 = arith.constant 1 : index
    %c2 = arith.constant 2 : index
    %c0_29 = arith.constant 0 : index
    %c0_30 = arith.constant 0 : index
    %44 = vector.load %arg3[%c1_28, %c2, %c0_29, %c0_30] : memref<2x3x128x128xbf16, #tpu.memory_space<vmem>>, vector<1x1x128x128xbf16>
    %45 = vector.shape_cast %44 : vector<1x1x128x128xbf16> to vector<128x128xbf16>
    %cst_31 = arith.constant dense<0.000000e+00> : vector<8x128xf32>
    %46 = tpu.matmul %43, %45, %cst_31 {dimension_numbers = #tpu.dot_dimension_numbers<[1], [0], [0], [1], [0, 0, 1, 1], [], []>} : vector<8x128xbf16>, vector<128x128xbf16>, vector<8x128xf32> -> vector<8x128xf32>
    %47 = arith.addf %42, %46 : vector<8x128xf32>
    %48 = vector.broadcast %11 : vector<1x128xf32> to vector<8x128xf32>
    %49 = arith.addf %47, %48 : vector<8x128xf32>
    %cst_32 = arith.constant 0.000000e+00 : f32
    %50 = vector.shape_cast %16 : vector<8x1xi1> to vector<8x1xi1>
    %51 = vector.broadcast %50 : vector<8x1xi1> to vector<8x128xi1>
    %52 = vector.broadcast %cst_32 : f32 to vector<8x128xf32>
    %53 = arith.select %51, %49, %52 : vector<8x128xi1>, vector<8x128xf32>
    %c0_33 = arith.constant 0 : index
    %c0_34 = arith.constant 0 : index
    %c128 = arith.constant 128 : index
    %54 = vector.load %arg5[%c0_33, %c0_34, %c128] : memref<1x8x256xf32, #tpu.memory_space<vmem>>, vector<1x8x128xf32>
    %55 = vector.shape_cast %54 : vector<1x8x128xf32> to vector<8x128xf32>
    %56 = vector.shape_cast %53 : vector<8x128xf32> to vector<1x8x128xf32>
    tpu.vector_store %arg5[%c0_33, %c0_34, %c128], %56 {strides = array<i32>} : memref<1x8x256xf32, #tpu.memory_space<vmem>>, vector<1x8x128xf32>,
    return
  }
  func.func @transform_1(%arg0: i32, %arg1: i32) -> (i32, i32, i32, i32) {
    %c0_i32 = arith.constant 0 : i32
    %c0_i32_0 = arith.constant 0 : i32
    %c0_i32_1 = arith.constant 0 : i32
    %c0_i32_2 = arith.constant 0 : i32
    %c0_i32_3 = arith.constant 0 : i32
    return %c0_i32, %c0_i32_0, %c0_i32_1, %c0_i32_2 : i32, i32, i32, i32
  }
  func.func @transform_2(%arg0: i32, %arg1: i32) -> (i32, i32) {
    %c0_i32 = arith.constant 0 : i32
    %c0_i32_0 = arith.constant 0 : i32
    %c0_i32_1 = arith.constant 0 : i32
    return %c0_i32, %c0_i32_0 : i32, i32
  }
  func.func @transform_3(%arg0: i32, %arg1: i32) -> (i32, i32, i32) {
    %c0_i32 = arith.constant 0 : i32
    %c0_i32_0 = arith.constant 0 : i32
    return %arg0, %arg1, %c0_i32 : i32, i32, i32
  }
}

module attributes {stable_mosaic.version = 11 : i64} {
  func.func @_res_stack_kernel(%arg0: i32, %arg1: i32, %arg2: memref<2x166x128xf32, #tpu.memory_space<any>>, %arg3: memref<5x896x128xbf16, #tpu.memory_space<vmem>>, %arg4: memref<5x128xf32, #tpu.memory_space<vmem>>, %arg5: memref<5x128x128xbf16, #tpu.memory_space<vmem>>, %arg6: memref<5x128xf32, #tpu.memory_space<vmem>>, %arg7: memref<5xf32, #tpu.memory_space<smem>>, %arg8: memref<5xf32, #tpu.memory_space<smem>>, %arg9: memref<1x16x128xf32, #tpu.memory_space<vmem>>, %arg10: memref<1x166x128xf32, #tpu.memory_space<vmem>>, %arg11: memref<166x896xbf16, #tpu.memory_space<vmem>>, %arg12: memref<1x!tpu.dma_semaphore, #tpu.memory_space<semaphore_mem>>) attributes {dimension_semantics = [#tpu.dimension_semantics<parallel>, #tpu.dimension_semantics<parallel>], iteration_bounds = array<i64: 2, 1>, scalar_prefetch = 0 : i64, scratch_operands = 3 : i64, tpu.core_type = #tpu.core_type<tc>, window_params = [{}, {pipeline_mode = #tpu.pipeline_mode<synchronous>, transform_indices = @transform_1, window_bounds = array<i64: 5, 896, 128>}, {pipeline_mode = #tpu.pipeline_mode<synchronous>, transform_indices = @transform_2, window_bounds = array<i64: 5, 128>}, {pipeline_mode = #tpu.pipeline_mode<synchronous>, transform_indices = @transform_3, window_bounds = array<i64: 5, 128, 128>}, {pipeline_mode = #tpu.pipeline_mode<synchronous>, transform_indices = @transform_4, window_bounds = array<i64: 5, 128>}, {transform_indices = @transform_5, window_bounds = array<i64: 5>}, {transform_indices = @transform_6, window_bounds = array<i64: 5>}, {transform_indices = @transform_7, window_bounds = array<i64: 1, 16, 128>}]} {
    %c16_i32 = arith.constant 16 : i32
    %0 = arith.muli %arg1, %c16_i32 : i32
    %1 = tpu.assume_multiple %0, 8 : i32
    %c0_i32 = arith.constant 0 : i32
    %c0_i32_0 = arith.constant 0 : i32
    %2 = tpu.memref_slice %arg2[%arg0, %1, %c0_i32_0] : memref<2x166x128xf32, #tpu.memory_space<any>> -> memref<1x166x128xf32, #tpu.memory_space<any>>
    %3 = tpu.memref_slice %arg12[%c0_i32] : memref<1x!tpu.dma_semaphore, #tpu.memory_space<semaphore_mem>> -> memref<1x!tpu.dma_semaphore, #tpu.memory_space<semaphore_mem>>
    %4 = tpu.memref_squeeze %3 : memref<1x!tpu.dma_semaphore, #tpu.memory_space<semaphore_mem>> -> memref<!tpu.dma_semaphore, #tpu.memory_space<semaphore_mem>>
    tpu.enqueue_dma source(%2 : memref<1x166x128xf32, #tpu.memory_space<any>>) target(%arg10 : memref<1x166x128xf32, #tpu.memory_space<vmem>>) target_semaphore(%4 : memref<!tpu.dma_semaphore, #tpu.memory_space<semaphore_mem>>)
    %c0_i32_1 = arith.constant 0 : i32
    %c0_i32_2 = arith.constant 0 : i32
    %5 = tpu.memref_slice %arg2[%arg0, %1, %c0_i32_2] : memref<2x166x128xf32, #tpu.memory_space<any>> -> memref<1x166x128xf32, #tpu.memory_space<any>>
    %6 = tpu.memref_slice %arg12[%c0_i32_1] : memref<1x!tpu.dma_semaphore, #tpu.memory_space<semaphore_mem>> -> memref<1x!tpu.dma_semaphore, #tpu.memory_space<semaphore_mem>>
    %7 = tpu.memref_squeeze %6 : memref<1x!tpu.dma_semaphore, #tpu.memory_space<semaphore_mem>> -> memref<!tpu.dma_semaphore, #tpu.memory_space<semaphore_mem>>
    tpu.wait_dma2 semaphore(%7 : memref<!tpu.dma_semaphore, #tpu.memory_space<semaphore_mem>>) src(%5 : memref<1x166x128xf32, #tpu.memory_space<any>>) dst(%arg10 : memref<1x166x128xf32, #tpu.memory_space<vmem>>)
    %c0 = arith.constant 0 : index
    %c0_3 = arith.constant 0 : index
    %c0_4 = arith.constant 0 : index
    %8 = vector.load %arg10[%c0, %c0_3, %c0_4] : memref<1x166x128xf32, #tpu.memory_space<vmem>>, vector<1x160x128xf32>
    %9 = vector.shape_cast %8 : vector<1x160x128xf32> to vector<160x128xf32>
    %10 = arith.truncf %9 : vector<160x128xf32> to vector<160x128xbf16>
    %c0_5 = arith.constant 0 : index
    %c0_6 = arith.constant 0 : index
    %11 = vector.load %arg11[%c0_5, %c0_6] : memref<166x896xbf16, #tpu.memory_space<vmem>>, vector<160x128xbf16>
    tpu.vector_store %arg11[%c0_5, %c0_6], %10 {strides = array<i32>} : memref<166x896xbf16, #tpu.memory_space<vmem>>, vector<160x128xbf16>,
    %c0_7 = arith.constant 0 : index
    %c1 = arith.constant 1 : index
    %c0_8 = arith.constant 0 : index
    %12 = vector.load %arg10[%c0_7, %c1, %c0_8] : memref<1x166x128xf32, #tpu.memory_space<vmem>>, vector<1x160x128xf32>
    %13 = vector.shape_cast %12 : vector<1x160x128xf32> to vector<160x128xf32>
    %14 = arith.truncf %13 : vector<160x128xf32> to vector<160x128xbf16>
    %c0_9 = arith.constant 0 : index
    %c128 = arith.constant 128 : index
    %15 = vector.load %arg11[%c0_9, %c128] : memref<166x896xbf16, #tpu.memory_space<vmem>>, vector<160x128xbf16>
    tpu.vector_store %arg11[%c0_9, %c128], %14 {strides = array<i32>} : memref<166x896xbf16, #tpu.memory_space<vmem>>, vector<160x128xbf16>,
    %c0_10 = arith.constant 0 : index
    %c2 = arith.constant 2 : index
    %c0_11 = arith.constant 0 : index
    %16 = vector.load %arg10[%c0_10, %c2, %c0_11] : memref<1x166x128xf32, #tpu.memory_space<vmem>>, vector<1x160x128xf32>
    %17 = vector.shape_cast %16 : vector<1x160x128xf32> to vector<160x128xf32>
    %18 = arith.truncf %17 : vector<160x128xf32> to vector<160x128xbf16>
    %c0_12 = arith.constant 0 : index
    %c256 = arith.constant 256 : index
    %19 = vector.load %arg11[%c0_12, %c256] : memref<166x896xbf16, #tpu.memory_space<vmem>>, vector<160x128xbf16>
    tpu.vector_store %arg11[%c0_12, %c256], %18 {strides = array<i32>} : memref<166x896xbf16, #tpu.memory_space<vmem>>, vector<160x128xbf16>,
    %c0_13 = arith.constant 0 : index
    %c3 = arith.constant 3 : index
    %c0_14 = arith.constant 0 : index
    %20 = vector.load %arg10[%c0_13, %c3, %c0_14] : memref<1x166x128xf32, #tpu.memory_space<vmem>>, vector<1x160x128xf32>
    %21 = vector.shape_cast %20 : vector<1x160x128xf32> to vector<160x128xf32>
    %22 = arith.truncf %21 : vector<160x128xf32> to vector<160x128xbf16>
    %c0_15 = arith.constant 0 : index
    %c384 = arith.constant 384 : index
    %23 = vector.load %arg11[%c0_15, %c384] : memref<166x896xbf16, #tpu.memory_space<vmem>>, vector<160x128xbf16>
    tpu.vector_store %arg11[%c0_15, %c384], %22 {strides = array<i32>} : memref<166x896xbf16, #tpu.memory_space<vmem>>, vector<160x128xbf16>,
    %c0_16 = arith.constant 0 : index
    %c4 = arith.constant 4 : index
    %c0_17 = arith.constant 0 : index
    %24 = vector.load %arg10[%c0_16, %c4, %c0_17] : memref<1x166x128xf32, #tpu.memory_space<vmem>>, vector<1x160x128xf32>
    %25 = vector.shape_cast %24 : vector<1x160x128xf32> to vector<160x128xf32>
    %26 = arith.truncf %25 : vector<160x128xf32> to vector<160x128xbf16>
    %c0_18 = arith.constant 0 : index
    %c512 = arith.constant 512 : index
    %27 = vector.load %arg11[%c0_18, %c512] : memref<166x896xbf16, #tpu.memory_space<vmem>>, vector<160x128xbf16>
    tpu.vector_store %arg11[%c0_18, %c512], %26 {strides = array<i32>} : memref<166x896xbf16, #tpu.memory_space<vmem>>, vector<160x128xbf16>,
    %c0_19 = arith.constant 0 : index
    %c5 = arith.constant 5 : index
    %c0_20 = arith.constant 0 : index
    %28 = vector.load %arg10[%c0_19, %c5, %c0_20] : memref<1x166x128xf32, #tpu.memory_space<vmem>>, vector<1x160x128xf32>
    %29 = vector.shape_cast %28 : vector<1x160x128xf32> to vector<160x128xf32>
    %30 = arith.truncf %29 : vector<160x128xf32> to vector<160x128xbf16>
    %c0_21 = arith.constant 0 : index
    %c640 = arith.constant 640 : index
    %31 = vector.load %arg11[%c0_21, %c640] : memref<166x896xbf16, #tpu.memory_space<vmem>>, vector<160x128xbf16>
    tpu.vector_store %arg11[%c0_21, %c640], %30 {strides = array<i32>} : memref<166x896xbf16, #tpu.memory_space<vmem>>, vector<160x128xbf16>,
    %c0_22 = arith.constant 0 : index
    %c6 = arith.constant 6 : index
    %c0_23 = arith.constant 0 : index
    %32 = vector.load %arg10[%c0_22, %c6, %c0_23] : memref<1x166x128xf32, #tpu.memory_space<vmem>>, vector<1x160x128xf32>
    %33 = vector.shape_cast %32 : vector<1x160x128xf32> to vector<160x128xf32>
    %34 = arith.truncf %33 : vector<160x128xf32> to vector<160x128xbf16>
    %c0_24 = arith.constant 0 : index
    %c768 = arith.constant 768 : index
    %35 = vector.load %arg11[%c0_24, %c768] : memref<166x896xbf16, #tpu.memory_space<vmem>>, vector<160x128xbf16>
    tpu.vector_store %arg11[%c0_24, %c768], %34 {strides = array<i32>} : memref<166x896xbf16, #tpu.memory_space<vmem>>, vector<160x128xbf16>,
    %c0_25 = arith.constant 0 : index
    %c0_26 = arith.constant 0 : index
    %36 = vector.load %arg11[%c0_25, %c0_26] : memref<166x896xbf16, #tpu.memory_space<vmem>>, vector<160x896xbf16>
    %c0_27 = arith.constant 0 : index
    %c0_28 = arith.constant 0 : index
    %c0_29 = arith.constant 0 : index
    %37 = vector.load %arg3[%c0_27, %c0_28, %c0_29] : memref<5x896x128xbf16, #tpu.memory_space<vmem>>, vector<1x896x128xbf16>
    %38 = vector.shape_cast %37 : vector<1x896x128xbf16> to vector<896x128xbf16>
    %cst = arith.constant dense<0.000000e+00> : vector<160x128xf32>
    %39 = tpu.matmul %36, %38, %cst {dimension_numbers = #tpu.dot_dimension_numbers<[1], [0], [0], [1], [0, 0, 1, 1], [], []>} : vector<160x896xbf16>, vector<896x128xbf16>, vector<160x128xf32> -> vector<160x128xf32>
    %c0_30 = arith.constant 0 : index
    %c0_31 = arith.constant 0 : index
    %40 = vector.load %arg4[%c0_30, %c0_31] : memref<5x128xf32, #tpu.memory_space<vmem>>, vector<1x128xf32>
    %41 = vector.broadcast %40 : vector<1x128xf32> to vector<160x128xf32>
    %42 = arith.addf %39, %41 : vector<160x128xf32>
    %c0_32 = arith.constant 0 : index
    %43 = memref.load %arg7[%c0_32] : memref<5xf32, #tpu.memory_space<smem>>
    %cst_33 = arith.constant 0.000000e+00 : f32
    %44 = vector.broadcast %cst_33 : f32 to vector<160x128xf32>
    %45 = arith.cmpf ogt, %42, %44 : vector<160x128xf32>
    %46 = vector.broadcast %43 : f32 to vector<160x128xf32>
    %47 = arith.mulf %46, %42 : vector<160x128xf32>
    %48 = arith.select %45, %42, %47 : vector<160x128xi1>, vector<160x128xf32>
    %49 = arith.truncf %48 : vector<160x128xf32> to vector<160x128xbf16>
    %c0_34 = arith.constant 0 : index
    %c0_35 = arith.constant 0 : index
    %c0_36 = arith.constant 0 : index
    %50 = vector.load %arg5[%c0_34, %c0_35, %c0_36] : memref<5x128x128xbf16, #tpu.memory_space<vmem>>, vector<1x128x128xbf16>
    %51 = vector.shape_cast %50 : vector<1x128x128xbf16> to vector<128x128xbf16>
    %cst_37 = arith.constant dense<0.000000e+00> : vector<160x128xf32>
    %52 = tpu.matmul %49, %51, %cst_37 {dimension_numbers = #tpu.dot_dimension_numbers<[1], [0], [0], [1], [0, 0, 1, 1], [], []>} : vector<160x128xbf16>, vector<128x128xbf16>, vector<160x128xf32> -> vector<160x128xf32>
    %c0_38 = arith.constant 0 : index
    %c0_39 = arith.constant 0 : index
    %53 = vector.load %arg6[%c0_38, %c0_39] : memref<5x128xf32, #tpu.memory_space<vmem>>, vector<1x128xf32>
    %54 = vector.broadcast %53 : vector<1x128xf32> to vector<160x128xf32>
    %55 = arith.addf %52, %54 : vector<160x128xf32>
    %c0_40 = arith.constant 0 : index
    %56 = memref.load %arg8[%c0_40] : memref<5xf32, #tpu.memory_space<smem>>
    %cst_41 = arith.constant 0.000000e+00 : f32
    %57 = vector.broadcast %cst_41 : f32 to vector<160x128xf32>
    %58 = arith.cmpf ogt, %55, %57 : vector<160x128xf32>
    %59 = vector.broadcast %56 : f32 to vector<160x128xf32>
    %60 = arith.mulf %59, %55 : vector<160x128xf32>
    %61 = arith.select %58, %55, %60 : vector<160x128xi1>, vector<160x128xf32>
    %c0_42 = arith.constant 0 : index
    %c3_43 = arith.constant 3 : index
    %c0_44 = arith.constant 0 : index
    %62 = vector.load %arg10[%c0_42, %c3_43, %c0_44] : memref<1x166x128xf32, #tpu.memory_space<vmem>>, vector<1x160x128xf32>
    %63 = vector.shape_cast %62 : vector<1x160x128xf32> to vector<160x128xf32>
    %64 = arith.addf %61, %63 : vector<160x128xf32>
    %c3_i32 = arith.constant 3 : i32
    %65 = arith.addi %1, %c3_i32 : i32
    %66 = tpu.iota {dimensions = array<i32: 0>} : vector<160x1xi32>
    %67 = vector.broadcast %65 : i32 to vector<160x1xi32>
    %68 = arith.addi %67, %66 : vector<160x1xi32>
    %c75_i32 = arith.constant 75 : i32
    %69 = vector.broadcast %c75_i32 : i32 to vector<160x1xi32>
    %70 = arith.cmpi sge, %68, %69 : vector<160x1xi32>
    %c91_i32 = arith.constant 91 : i32
    %71 = vector.broadcast %c91_i32 : i32 to vector<160x1xi32>
    %72 = arith.cmpi slt, %68, %71 : vector<160x1xi32>
    %73 = arith.andi %70, %72 : vector<160x1xi1>
    %cst_45 = arith.constant 0.000000e+00 : f32
    %74 = vector.shape_cast %73 : vector<160x1xi1> to vector<160x1xi1>
    %75 = vector.broadcast %74 : vector<160x1xi1> to vector<160x128xi1>
    %76 = vector.broadcast %cst_45 : f32 to vector<160x128xf32>
    %77 = arith.select %75, %64, %76 : vector<160x128xi1>, vector<160x128xf32>
    %c0_46 = arith.constant 0 : index
    %c3_47 = arith.constant 3 : index
    %c0_48 = arith.constant 0 : index
    %78 = vector.load %arg10[%c0_46, %c3_47, %c0_48] : memref<1x166x128xf32, #tpu.memory_space<vmem>>, vector<1x160x128xf32>
    %79 = vector.shape_cast %78 : vector<1x160x128xf32> to vector<160x128xf32>
    %80 = vector.shape_cast %77 : vector<160x128xf32> to vector<1x160x128xf32>
    tpu.vector_store %arg10[%c0_46, %c3_47, %c0_48], %80 {strides = array<i32>} : memref<1x166x128xf32, #tpu.memory_space<vmem>>, vector<1x160x128xf32>,
    %c0_49 = arith.constant 0 : index
    %c3_50 = arith.constant 3 : index
    %c0_51 = arith.constant 0 : index
    %81 = vector.load %arg10[%c0_49, %c3_50, %c0_51] : memref<1x166x128xf32, #tpu.memory_space<vmem>>, vector<1x142x128xf32>
    %82 = vector.shape_cast %81 : vector<1x142x128xf32> to vector<142x128xf32>
    %83 = arith.truncf %82 : vector<142x128xf32> to vector<142x128xbf16>
    %c0_52 = arith.constant 0 : index
    %c0_53 = arith.constant 0 : index
    %84 = vector.load %arg11[%c0_52, %c0_53] : memref<166x896xbf16, #tpu.memory_space<vmem>>, vector<142x128xbf16>
    tpu.vector_store %arg11[%c0_52, %c0_53], %83 {strides = array<i32>} : memref<166x896xbf16, #tpu.memory_space<vmem>>, vector<142x128xbf16>,
    %c0_54 = arith.constant 0 : index
    %c6_55 = arith.constant 6 : index
    %c0_56 = arith.constant 0 : index
    %85 = vector.load %arg10[%c0_54, %c6_55, %c0_56] : memref<1x166x128xf32, #tpu.memory_space<vmem>>, vector<1x142x128xf32>
    %86 = vector.shape_cast %85 : vector<1x142x128xf32> to vector<142x128xf32>
    %87 = arith.truncf %86 : vector<142x128xf32> to vector<142x128xbf16>
    %c0_57 = arith.constant 0 : index
    %c128_58 = arith.constant 128 : index
    %88 = vector.load %arg11[%c0_57, %c128_58] : memref<166x896xbf16, #tpu.memory_space<vmem>>, vector<142x128xbf16>
    tpu.vector_store %arg11[%c0_57, %c128_58], %87 {strides = array<i32>} : memref<166x896xbf16, #tpu.memory_space<vmem>>, vector<142x128xbf16>,
    %c0_59 = arith.constant 0 : index
    %c9 = arith.constant 9 : index
    %c0_60 = arith.constant 0 : index
    %89 = vector.load %arg10[%c0_59, %c9, %c0_60] : memref<1x166x128xf32, #tpu.memory_space<vmem>>, vector<1x142x128xf32>
    %90 = vector.shape_cast %89 : vector<1x142x128xf32> to vector<142x128xf32>
    %91 = arith.truncf %90 : vector<142x128xf32> to vector<142x128xbf16>
    %c0_61 = arith.constant 0 : index
    %c256_62 = arith.constant 256 : index
    %92 = vector.load %arg11[%c0_61, %c256_62] : memref<166x896xbf16, #tpu.memory_space<vmem>>, vector<142x128xbf16>
    tpu.vector_store %arg11[%c0_61, %c256_62], %91 {strides = array<i32>} : memref<166x896xbf16, #tpu.memory_space<vmem>>, vector<142x128xbf16>,
    %c0_63 = arith.constant 0 : index
    %c12 = arith.constant 12 : index
    %c0_64 = arith.constant 0 : index
    %93 = vector.load %arg10[%c0_63, %c12, %c0_64] : memref<1x166x128xf32, #tpu.memory_space<vmem>>, vector<1x142x128xf32>
    %94 = vector.shape_cast %93 : vector<1x142x128xf32> to vector<142x128xf32>
    %95 = arith.truncf %94 : vector<142x128xf32> to vector<142x128xbf16>
    %c0_65 = arith.constant 0 : index
    %c384_66 = arith.constant 384 : index
    %96 = vector.load %arg11[%c0_65, %c384_66] : memref<166x896xbf16, #tpu.memory_space<vmem>>, vector<142x128xbf16>
    tpu.vector_store %arg11[%c0_65, %c384_66], %95 {strides = array<i32>} : memref<166x896xbf16, #tpu.memory_space<vmem>>, vector<142x128xbf16>,
    %c0_67 = arith.constant 0 : index
    %c15 = arith.constant 15 : index
    %c0_68 = arith.constant 0 : index
    %97 = vector.load %arg10[%c0_67, %c15, %c0_68] : memref<1x166x128xf32, #tpu.memory_space<vmem>>, vector<1x142x128xf32>
    %98 = vector.shape_cast %97 : vector<1x142x128xf32> to vector<142x128xf32>
    %99 = arith.truncf %98 : vector<142x128xf32> to vector<142x128xbf16>
    %c0_69 = arith.constant 0 : index
    %c512_70 = arith.constant 512 : index
    %100 = vector.load %arg11[%c0_69, %c512_70] : memref<166x896xbf16, #tpu.memory_space<vmem>>, vector<142x128xbf16>
    tpu.vector_store %arg11[%c0_69, %c512_70], %99 {strides = array<i32>} : memref<166x896xbf16, #tpu.memory_space<vmem>>, vector<142x128xbf16>,
    %c0_71 = arith.constant 0 : index
    %c18 = arith.constant 18 : index
    %c0_72 = arith.constant 0 : index
    %101 = vector.load %arg10[%c0_71, %c18, %c0_72] : memref<1x166x128xf32, #tpu.memory_space<vmem>>, vector<1x142x128xf32>
    %102 = vector.shape_cast %101 : vector<1x142x128xf32> to vector<142x128xf32>
    %103 = arith.truncf %102 : vector<142x128xf32> to vector<142x128xbf16>
    %c0_73 = arith.constant 0 : index
    %c640_74 = arith.constant 640 : index
    %104 = vector.load %arg11[%c0_73, %c640_74] : memref<166x896xbf16, #tpu.memory_space<vmem>>, vector<142x128xbf16>
    tpu.vector_store %arg11[%c0_73, %c640_74], %103 {strides = array<i32>} : memref<166x896xbf16, #tpu.memory_space<vmem>>, vector<142x128xbf16>,
    %c0_75 = arith.constant 0 : index
    %c21 = arith.constant 21 : index
    %c0_76 = arith.constant 0 : index
    %105 = vector.load %arg10[%c0_75, %c21, %c0_76] : memref<1x166x128xf32, #tpu.memory_space<vmem>>, vector<1x142x128xf32>
    %106 = vector.shape_cast %105 : vector<1x142x128xf32> to vector<142x128xf32>
    %107 = arith.truncf %106 : vector<142x128xf32> to vector<142x128xbf16>
    %c0_77 = arith.constant 0 : index
    %c768_78 = arith.constant 768 : index
    %108 = vector.load %arg11[%c0_77, %c768_78] : memref<166x896xbf16, #tpu.memory_space<vmem>>, vector<142x128xbf16>
    tpu.vector_store %arg11[%c0_77, %c768_78], %107 {strides = array<i32>} : memref<166x896xbf16, #tpu.memory_space<vmem>>, vector<142x128xbf16>,
    %c0_79 = arith.constant 0 : index
    %c0_80 = arith.constant 0 : index
    %109 = vector.load %arg11[%c0_79, %c0_80] : memref<166x896xbf16, #tpu.memory_space<vmem>>, vector<142x896xbf16>
    %c1_81 = arith.constant 1 : index
    %c0_82 = arith.constant 0 : index
    %c0_83 = arith.constant 0 : index
    %110 = vector.load %arg3[%c1_81, %c0_82, %c0_83] : memref<5x896x128xbf16, #tpu.memory_space<vmem>>, vector<1x896x128xbf16>
    %111 = vector.shape_cast %110 : vector<1x896x128xbf16> to vector<896x128xbf16>
    %cst_84 = arith.constant dense<0.000000e+00> : vector<142x128xf32>
    %112 = tpu.matmul %109, %111, %cst_84 {dimension_numbers = #tpu.dot_dimension_numbers<[1], [0], [0], [1], [0, 0, 1, 1], [], []>} : vector<142x896xbf16>, vector<896x128xbf16>, vector<142x128xf32> -> vector<142x128xf32>
    %c1_85 = arith.constant 1 : index
    %c0_86 = arith.constant 0 : index
    %113 = vector.load %arg4[%c1_85, %c0_86] : memref<5x128xf32, #tpu.memory_space<vmem>>, vector<1x128xf32>
    %114 = vector.broadcast %113 : vector<1x128xf32> to vector<142x128xf32>
    %115 = arith.addf %112, %114 : vector<142x128xf32>
    %c1_87 = arith.constant 1 : index
    %116 = memref.load %arg7[%c1_87] : memref<5xf32, #tpu.memory_space<smem>>
    %cst_88 = arith.constant 0.000000e+00 : f32
    %117 = vector.broadcast %cst_88 : f32 to vector<142x128xf32>
    %118 = arith.cmpf ogt, %115, %117 : vector<142x128xf32>
    %119 = vector.broadcast %116 : f32 to vector<142x128xf32>
    %120 = arith.mulf %119, %115 : vector<142x128xf32>
    %121 = arith.select %118, %115, %120 : vector<142x128xi1>, vector<142x128xf32>
    %122 = arith.truncf %121 : vector<142x128xf32> to vector<142x128xbf16>
    %c1_89 = arith.constant 1 : index
    %c0_90 = arith.constant 0 : index
    %c0_91 = arith.constant 0 : index
    %123 = vector.load %arg5[%c1_89, %c0_90, %c0_91] : memref<5x128x128xbf16, #tpu.memory_space<vmem>>, vector<1x128x128xbf16>
    %124 = vector.shape_cast %123 : vector<1x128x128xbf16> to vector<128x128xbf16>
    %cst_92 = arith.constant dense<0.000000e+00> : vector<142x128xf32>
    %125 = tpu.matmul %122, %124, %cst_92 {dimension_numbers = #tpu.dot_dimension_numbers<[1], [0], [0], [1], [0, 0, 1, 1], [], []>} : vector<142x128xbf16>, vector<128x128xbf16>, vector<142x128xf32> -> vector<142x128xf32>
    %c1_93 = arith.constant 1 : index
    %c0_94 = arith.constant 0 : index
    %126 = vector.load %arg6[%c1_93, %c0_94] : memref<5x128xf32, #tpu.memory_space<vmem>>, vector<1x128xf32>
    %127 = vector.broadcast %126 : vector<1x128xf32> to vector<142x128xf32>
    %128 = arith.addf %125, %127 : vector<142x128xf32>
    %c1_95 = arith.constant 1 : index
    %129 = memref.load %arg8[%c1_95] : memref<5xf32, #tpu.memory_space<smem>>
    %cst_96 = arith.constant 0.000000e+00 : f32
    %130 = vector.broadcast %cst_96 : f32 to vector<142x128xf32>
    %131 = arith.cmpf ogt, %128, %130 : vector<142x128xf32>
    %132 = vector.broadcast %129 : f32 to vector<142x128xf32>
    %133 = arith.mulf %132, %128 : vector<142x128xf32>
    %134 = arith.select %131, %128, %133 : vector<142x128xi1>, vector<142x128xf32>
    %c0_97 = arith.constant 0 : index
    %c12_98 = arith.constant 12 : index
    %c0_99 = arith.constant 0 : index
    %135 = vector.load %arg10[%c0_97, %c12_98, %c0_99] : memref<1x166x128xf32, #tpu.memory_space<vmem>>, vector<1x142x128xf32>
    %136 = vector.shape_cast %135 : vector<1x142x128xf32> to vector<142x128xf32>
    %137 = arith.addf %134, %136 : vector<142x128xf32>
    %c12_i32 = arith.constant 12 : i32
    %138 = arith.addi %1, %c12_i32 : i32
    %139 = tpu.iota {dimensions = array<i32: 0>} : vector<142x1xi32>
    %140 = vector.broadcast %138 : i32 to vector<142x1xi32>
    %141 = arith.addi %140, %139 : vector<142x1xi32>
    %c75_i32_100 = arith.constant 75 : i32
    %142 = vector.broadcast %c75_i32_100 : i32 to vector<142x1xi32>
    %143 = arith.cmpi sge, %141, %142 : vector<142x1xi32>
    %c91_i32_101 = arith.constant 91 : i32
    %144 = vector.broadcast %c91_i32_101 : i32 to vector<142x1xi32>
    %145 = arith.cmpi slt, %141, %144 : vector<142x1xi32>
    %146 = arith.andi %143, %145 : vector<142x1xi1>
    %cst_102 = arith.constant 0.000000e+00 : f32
    %147 = vector.shape_cast %146 : vector<142x1xi1> to vector<142x1xi1>
    %148 = vector.broadcast %147 : vector<142x1xi1> to vector<142x128xi1>
    %149 = vector.broadcast %cst_102 : f32 to vector<142x128xf32>
    %150 = arith.select %148, %137, %149 : vector<142x128xi1>, vector<142x128xf32>
    %c0_103 = arith.constant 0 : index
    %c12_104 = arith.constant 12 : index
    %c0_105 = arith.constant 0 : index
    %151 = vector.load %arg10[%c0_103, %c12_104, %c0_105] : memref<1x166x128xf32, #tpu.memory_space<vmem>>, vector<1x142x128xf32>
    %152 = vector.shape_cast %151 : vector<1x142x128xf32> to vector<142x128xf32>
    %153 = vector.shape_cast %150 : vector<142x128xf32> to vector<1x142x128xf32>
    tpu.vector_store %arg10[%c0_103, %c12_104, %c0_105], %153 {strides = array<i32>} : memref<1x166x128xf32, #tpu.memory_space<vmem>>, vector<1x142x128xf32>,
    %c0_106 = arith.constant 0 : index
    %c12_107 = arith.constant 12 : index
    %c0_108 = arith.constant 0 : index
    %154 = vector.load %arg10[%c0_106, %c12_107, %c0_108] : memref<1x166x128xf32, #tpu.memory_space<vmem>>, vector<1x112x128xf32>
    %155 = vector.shape_cast %154 : vector<1x112x128xf32> to vector<112x128xf32>
    %156 = arith.truncf %155 : vector<112x128xf32> to vector<112x128xbf16>
    %c0_109 = arith.constant 0 : index
    %c0_110 = arith.constant 0 : index
    %157 = vector.load %arg11[%c0_109, %c0_110] : memref<166x896xbf16, #tpu.memory_space<vmem>>, vector<112x128xbf16>
    tpu.vector_store %arg11[%c0_109, %c0_110], %156 {strides = array<i32>} : memref<166x896xbf16, #tpu.memory_space<vmem>>, vector<112x128xbf16>,
    %c0_111 = arith.constant 0 : index
    %c17 = arith.constant 17 : index
    %c0_112 = arith.constant 0 : index
    %158 = vector.load %arg10[%c0_111, %c17, %c0_112] : memref<1x166x128xf32, #tpu.memory_space<vmem>>, vector<1x112x128xf32>
    %159 = vector.shape_cast %158 : vector<1x112x128xf32> to vector<112x128xf32>
    %160 = arith.truncf %159 : vector<112x128xf32> to vector<112x128xbf16>
    %c0_113 = arith.constant 0 : index
    %c128_114 = arith.constant 128 : index
    %161 = vector.load %arg11[%c0_113, %c128_114] : memref<166x896xbf16, #tpu.memory_space<vmem>>, vector<112x128xbf16>
    tpu.vector_store %arg11[%c0_113, %c128_114], %160 {strides = array<i32>} : memref<166x896xbf16, #tpu.memory_space<vmem>>, vector<112x128xbf16>,
    %c0_115 = arith.constant 0 : index
    %c22 = arith.constant 22 : index
    %c0_116 = arith.constant 0 : index
    %162 = vector.load %arg10[%c0_115, %c22, %c0_116] : memref<1x166x128xf32, #tpu.memory_space<vmem>>, vector<1x112x128xf32>
    %163 = vector.shape_cast %162 : vector<1x112x128xf32> to vector<112x128xf32>
    %164 = arith.truncf %163 : vector<112x128xf32> to vector<112x128xbf16>
    %c0_117 = arith.constant 0 : index
    %c256_118 = arith.constant 256 : index
    %165 = vector.load %arg11[%c0_117, %c256_118] : memref<166x896xbf16, #tpu.memory_space<vmem>>, vector<112x128xbf16>
    tpu.vector_store %arg11[%c0_117, %c256_118], %164 {strides = array<i32>} : memref<166x896xbf16, #tpu.memory_space<vmem>>, vector<112x128xbf16>,
    %c0_119 = arith.constant 0 : index
    %c27 = arith.constant 27 : index
    %c0_120 = arith.constant 0 : index
    %166 = vector.load %arg10[%c0_119, %c27, %c0_120] : memref<1x166x128xf32, #tpu.memory_space<vmem>>, vector<1x112x128xf32>
    %167 = vector.shape_cast %166 : vector<1x112x128xf32> to vector<112x128xf32>
    %168 = arith.truncf %167 : vector<112x128xf32> to vector<112x128xbf16>
    %c0_121 = arith.constant 0 : index
    %c384_122 = arith.constant 384 : index
    %169 = vector.load %arg11[%c0_121, %c384_122] : memref<166x896xbf16, #tpu.memory_space<vmem>>, vector<112x128xbf16>
    tpu.vector_store %arg11[%c0_121, %c384_122], %168 {strides = array<i32>} : memref<166x896xbf16, #tpu.memory_space<vmem>>, vector<112x128xbf16>,
    %c0_123 = arith.constant 0 : index
    %c32 = arith.constant 32 : index
    %c0_124 = arith.constant 0 : index
    %170 = vector.load %arg10[%c0_123, %c32, %c0_124] : memref<1x166x128xf32, #tpu.memory_space<vmem>>, vector<1x112x128xf32>
    %171 = vector.shape_cast %170 : vector<1x112x128xf32> to vector<112x128xf32>
    %172 = arith.truncf %171 : vector<112x128xf32> to vector<112x128xbf16>
    %c0_125 = arith.constant 0 : index
    %c512_126 = arith.constant 512 : index
    %173 = vector.load %arg11[%c0_125, %c512_126] : memref<166x896xbf16, #tpu.memory_space<vmem>>, vector<112x128xbf16>
    tpu.vector_store %arg11[%c0_125, %c512_126], %172 {strides = array<i32>} : memref<166x896xbf16, #tpu.memory_space<vmem>>, vector<112x128xbf16>,
    %c0_127 = arith.constant 0 : index
    %c37 = arith.constant 37 : index
    %c0_128 = arith.constant 0 : index
    %174 = vector.load %arg10[%c0_127, %c37, %c0_128] : memref<1x166x128xf32, #tpu.memory_space<vmem>>, vector<1x112x128xf32>
    %175 = vector.shape_cast %174 : vector<1x112x128xf32> to vector<112x128xf32>
    %176 = arith.truncf %175 : vector<112x128xf32> to vector<112x128xbf16>
    %c0_129 = arith.constant 0 : index
    %c640_130 = arith.constant 640 : index
    %177 = vector.load %arg11[%c0_129, %c640_130] : memref<166x896xbf16, #tpu.memory_space<vmem>>, vector<112x128xbf16>
    tpu.vector_store %arg11[%c0_129, %c640_130], %176 {strides = array<i32>} : memref<166x896xbf16, #tpu.memory_space<vmem>>, vector<112x128xbf16>,
    %c0_131 = arith.constant 0 : index
    %c42 = arith.constant 42 : index
    %c0_132 = arith.constant 0 : index
    %178 = vector.load %arg10[%c0_131, %c42, %c0_132] : memref<1x166x128xf32, #tpu.memory_space<vmem>>, vector<1x112x128xf32>
    %179 = vector.shape_cast %178 : vector<1x112x128xf32> to vector<112x128xf32>
    %180 = arith.truncf %179 : vector<112x128xf32> to vector<112x128xbf16>
    %c0_133 = arith.constant 0 : index
    %c768_134 = arith.constant 768 : index
    %181 = vector.load %arg11[%c0_133, %c768_134] : memref<166x896xbf16, #tpu.memory_space<vmem>>, vector<112x128xbf16>
    tpu.vector_store %arg11[%c0_133, %c768_134], %180 {strides = array<i32>} : memref<166x896xbf16, #tpu.memory_space<vmem>>, vector<112x128xbf16>,
    %c0_135 = arith.constant 0 : index
    %c0_136 = arith.constant 0 : index
    %182 = vector.load %arg11[%c0_135, %c0_136] : memref<166x896xbf16, #tpu.memory_space<vmem>>, vector<112x896xbf16>
    %c2_137 = arith.constant 2 : index
    %c0_138 = arith.constant 0 : index
    %c0_139 = arith.constant 0 : index
    %183 = vector.load %arg3[%c2_137, %c0_138, %c0_139] : memref<5x896x128xbf16, #tpu.memory_space<vmem>>, vector<1x896x128xbf16>
    %184 = vector.shape_cast %183 : vector<1x896x128xbf16> to vector<896x128xbf16>
    %cst_140 = arith.constant dense<0.000000e+00> : vector<112x128xf32>
    %185 = tpu.matmul %182, %184, %cst_140 {dimension_numbers = #tpu.dot_dimension_numbers<[1], [0], [0], [1], [0, 0, 1, 1], [], []>} : vector<112x896xbf16>, vector<896x128xbf16>, vector<112x128xf32> -> vector<112x128xf32>
    %c2_141 = arith.constant 2 : index
    %c0_142 = arith.constant 0 : index
    %186 = vector.load %arg4[%c2_141, %c0_142] : memref<5x128xf32, #tpu.memory_space<vmem>>, vector<1x128xf32>
    %187 = vector.broadcast %186 : vector<1x128xf32> to vector<112x128xf32>
    %188 = arith.addf %185, %187 : vector<112x128xf32>
    %c2_143 = arith.constant 2 : index
    %189 = memref.load %arg7[%c2_143] : memref<5xf32, #tpu.memory_space<smem>>
    %cst_144 = arith.constant 0.000000e+00 : f32
    %190 = vector.broadcast %cst_144 : f32 to vector<112x128xf32>
    %191 = arith.cmpf ogt, %188, %190 : vector<112x128xf32>
    %192 = vector.broadcast %189 : f32 to vector<112x128xf32>
    %193 = arith.mulf %192, %188 : vector<112x128xf32>
    %194 = arith.select %191, %188, %193 : vector<112x128xi1>, vector<112x128xf32>
    %195 = arith.truncf %194 : vector<112x128xf32> to vector<112x128xbf16>
    %c2_145 = arith.constant 2 : index
    %c0_146 = arith.constant 0 : index
    %c0_147 = arith.constant 0 : index
    %196 = vector.load %arg5[%c2_145, %c0_146, %c0_147] : memref<5x128x128xbf16, #tpu.memory_space<vmem>>, vector<1x128x128xbf16>
    %197 = vector.shape_cast %196 : vector<1x128x128xbf16> to vector<128x128xbf16>
    %cst_148 = arith.constant dense<0.000000e+00> : vector<112x128xf32>
    %198 = tpu.matmul %195, %197, %cst_148 {dimension_numbers = #tpu.dot_dimension_numbers<[1], [0], [0], [1], [0, 0, 1, 1], [], []>} : vector<112x128xbf16>, vector<128x128xbf16>, vector<112x128xf32> -> vector<112x128xf32>
    %c2_149 = arith.constant 2 : index
    %c0_150 = arith.constant 0 : index
    %199 = vector.load %arg6[%c2_149, %c0_150] : memref<5x128xf32, #tpu.memory_space<vmem>>, vector<1x128xf32>
    %200 = vector.broadcast %199 : vector<1x128xf32> to vector<112x128xf32>
    %201 = arith.addf %198, %200 : vector<112x128xf32>
    %c2_151 = arith.constant 2 : index
    %202 = memref.load %arg8[%c2_151] : memref<5xf32, #tpu.memory_space<smem>>
    %cst_152 = arith.constant 0.000000e+00 : f32
    %203 = vector.broadcast %cst_152 : f32 to vector<112x128xf32>
    %204 = arith.cmpf ogt, %201, %203 : vector<112x128xf32>
    %205 = vector.broadcast %202 : f32 to vector<112x128xf32>
    %206 = arith.mulf %205, %201 : vector<112x128xf32>
    %207 = arith.select %204, %201, %206 : vector<112x128xi1>, vector<112x128xf32>
    %c0_153 = arith.constant 0 : index
    %c27_154 = arith.constant 27 : index
    %c0_155 = arith.constant 0 : index
    %208 = vector.load %arg10[%c0_153, %c27_154, %c0_155] : memref<1x166x128xf32, #tpu.memory_space<vmem>>, vector<1x112x128xf32>
    %209 = vector.shape_cast %208 : vector<1x112x128xf32> to vector<112x128xf32>
    %210 = arith.addf %207, %209 : vector<112x128xf32>
    %c27_i32 = arith.constant 27 : i32
    %211 = arith.addi %1, %c27_i32 : i32
    %212 = tpu.iota {dimensions = array<i32: 0>} : vector<112x1xi32>
    %213 = vector.broadcast %211 : i32 to vector<112x1xi32>
    %214 = arith.addi %213, %212 : vector<112x1xi32>
    %c75_i32_156 = arith.constant 75 : i32
    %215 = vector.broadcast %c75_i32_156 : i32 to vector<112x1xi32>
    %216 = arith.cmpi sge, %214, %215 : vector<112x1xi32>
    %c91_i32_157 = arith.constant 91 : i32
    %217 = vector.broadcast %c91_i32_157 : i32 to vector<112x1xi32>
    %218 = arith.cmpi slt, %214, %217 : vector<112x1xi32>
    %219 = arith.andi %216, %218 : vector<112x1xi1>
    %cst_158 = arith.constant 0.000000e+00 : f32
    %220 = vector.shape_cast %219 : vector<112x1xi1> to vector<112x1xi1>
    %221 = vector.broadcast %220 : vector<112x1xi1> to vector<112x128xi1>
    %222 = vector.broadcast %cst_158 : f32 to vector<112x128xf32>
    %223 = arith.select %221, %210, %222 : vector<112x128xi1>, vector<112x128xf32>
    %c0_159 = arith.constant 0 : index
    %c27_160 = arith.constant 27 : index
    %c0_161 = arith.constant 0 : index
    %224 = vector.load %arg10[%c0_159, %c27_160, %c0_161] : memref<1x166x128xf32, #tpu.memory_space<vmem>>, vector<1x112x128xf32>
    %225 = vector.shape_cast %224 : vector<1x112x128xf32> to vector<112x128xf32>
    %226 = vector.shape_cast %223 : vector<112x128xf32> to vector<1x112x128xf32>
    tpu.vector_store %arg10[%c0_159, %c27_160, %c0_161], %226 {strides = array<i32>} : memref<1x166x128xf32, #tpu.memory_space<vmem>>, vector<1x112x128xf32>,
    %c0_162 = arith.constant 0 : index
    %c27_163 = arith.constant 27 : index
    %c0_164 = arith.constant 0 : index
    %227 = vector.load %arg10[%c0_162, %c27_163, %c0_164] : memref<1x166x128xf32, #tpu.memory_space<vmem>>, vector<1x70x128xf32>
    %228 = vector.shape_cast %227 : vector<1x70x128xf32> to vector<70x128xf32>
    %229 = arith.truncf %228 : vector<70x128xf32> to vector<70x128xbf16>
    %c0_165 = arith.constant 0 : index
    %c0_166 = arith.constant 0 : index
    %230 = vector.load %arg11[%c0_165, %c0_166] : memref<166x896xbf16, #tpu.memory_space<vmem>>, vector<70x128xbf16>
    tpu.vector_store %arg11[%c0_165, %c0_166], %229 {strides = array<i32>} : memref<166x896xbf16, #tpu.memory_space<vmem>>, vector<70x128xbf16>,
    %c0_167 = arith.constant 0 : index
    %c34 = arith.constant 34 : index
    %c0_168 = arith.constant 0 : index
    %231 = vector.load %arg10[%c0_167, %c34, %c0_168] : memref<1x166x128xf32, #tpu.memory_space<vmem>>, vector<1x70x128xf32>
    %232 = vector.shape_cast %231 : vector<1x70x128xf32> to vector<70x128xf32>
    %233 = arith.truncf %232 : vector<70x128xf32> to vector<70x128xbf16>
    %c0_169 = arith.constant 0 : index
    %c128_170 = arith.constant 128 : index
    %234 = vector.load %arg11[%c0_169, %c128_170] : memref<166x896xbf16, #tpu.memory_space<vmem>>, vector<70x128xbf16>
    tpu.vector_store %arg11[%c0_169, %c128_170], %233 {strides = array<i32>} : memref<166x896xbf16, #tpu.memory_space<vmem>>, vector<70x128xbf16>,
    %c0_171 = arith.constant 0 : index
    %c41 = arith.constant 41 : index
    %c0_172 = arith.constant 0 : index
    %235 = vector.load %arg10[%c0_171, %c41, %c0_172] : memref<1x166x128xf32, #tpu.memory_space<vmem>>, vector<1x70x128xf32>
    %236 = vector.shape_cast %235 : vector<1x70x128xf32> to vector<70x128xf32>
    %237 = arith.truncf %236 : vector<70x128xf32> to vector<70x128xbf16>
    %c0_173 = arith.constant 0 : index
    %c256_174 = arith.constant 256 : index
    %238 = vector.load %arg11[%c0_173, %c256_174] : memref<166x896xbf16, #tpu.memory_space<vmem>>, vector<70x128xbf16>
    tpu.vector_store %arg11[%c0_173, %c256_174], %237 {strides = array<i32>} : memref<166x896xbf16, #tpu.memory_space<vmem>>, vector<70x128xbf16>,
    %c0_175 = arith.constant 0 : index
    %c48 = arith.constant 48 : index
    %c0_176 = arith.constant 0 : index
    %239 = vector.load %arg10[%c0_175, %c48, %c0_176] : memref<1x166x128xf32, #tpu.memory_space<vmem>>, vector<1x70x128xf32>
    %240 = vector.shape_cast %239 : vector<1x70x128xf32> to vector<70x128xf32>
    %241 = arith.truncf %240 : vector<70x128xf32> to vector<70x128xbf16>
    %c0_177 = arith.constant 0 : index
    %c384_178 = arith.constant 384 : index
    %242 = vector.load %arg11[%c0_177, %c384_178] : memref<166x896xbf16, #tpu.memory_space<vmem>>, vector<70x128xbf16>
    tpu.vector_store %arg11[%c0_177, %c384_178], %241 {strides = array<i32>} : memref<166x896xbf16, #tpu.memory_space<vmem>>, vector<70x128xbf16>,
    %c0_179 = arith.constant 0 : index
    %c55 = arith.constant 55 : index
    %c0_180 = arith.constant 0 : index
    %243 = vector.load %arg10[%c0_179, %c55, %c0_180] : memref<1x166x128xf32, #tpu.memory_space<vmem>>, vector<1x70x128xf32>
    %244 = vector.shape_cast %243 : vector<1x70x128xf32> to vector<70x128xf32>
    %245 = arith.truncf %244 : vector<70x128xf32> to vector<70x128xbf16>
    %c0_181 = arith.constant 0 : index
    %c512_182 = arith.constant 512 : index
    %246 = vector.load %arg11[%c0_181, %c512_182] : memref<166x896xbf16, #tpu.memory_space<vmem>>, vector<70x128xbf16>
    tpu.vector_store %arg11[%c0_181, %c512_182], %245 {strides = array<i32>} : memref<166x896xbf16, #tpu.memory_space<vmem>>, vector<70x128xbf16>,
    %c0_183 = arith.constant 0 : index
    %c62 = arith.constant 62 : index
    %c0_184 = arith.constant 0 : index
    %247 = vector.load %arg10[%c0_183, %c62, %c0_184] : memref<1x166x128xf32, #tpu.memory_space<vmem>>, vector<1x70x128xf32>
    %248 = vector.shape_cast %247 : vector<1x70x128xf32> to vector<70x128xf32>
    %249 = arith.truncf %248 : vector<70x128xf32> to vector<70x128xbf16>
    %c0_185 = arith.constant 0 : index
    %c640_186 = arith.constant 640 : index
    %250 = vector.load %arg11[%c0_185, %c640_186] : memref<166x896xbf16, #tpu.memory_space<vmem>>, vector<70x128xbf16>
    tpu.vector_store %arg11[%c0_185, %c640_186], %249 {strides = array<i32>} : memref<166x896xbf16, #tpu.memory_space<vmem>>, vector<70x128xbf16>,
    %c0_187 = arith.constant 0 : index
    %c69 = arith.constant 69 : index
    %c0_188 = arith.constant 0 : index
    %251 = vector.load %arg10[%c0_187, %c69, %c0_188] : memref<1x166x128xf32, #tpu.memory_space<vmem>>, vector<1x70x128xf32>
    %252 = vector.shape_cast %251 : vector<1x70x128xf32> to vector<70x128xf32>
    %253 = arith.truncf %252 : vector<70x128xf32> to vector<70x128xbf16>
    %c0_189 = arith.constant 0 : index
    %c768_190 = arith.constant 768 : index
    %254 = vector.load %arg11[%c0_189, %c768_190] : memref<166x896xbf16, #tpu.memory_space<vmem>>, vector<70x128xbf16>
    tpu.vector_store %arg11[%c0_189, %c768_190], %253 {strides = array<i32>} : memref<166x896xbf16, #tpu.memory_space<vmem>>, vector<70x128xbf16>,
    %c0_191 = arith.constant 0 : index
    %c0_192 = arith.constant 0 : index
    %255 = vector.load %arg11[%c0_191, %c0_192] : memref<166x896xbf16, #tpu.memory_space<vmem>>, vector<70x896xbf16>
    %c3_193 = arith.constant 3 : index
    %c0_194 = arith.constant 0 : index
    %c0_195 = arith.constant 0 : index
    %256 = vector.load %arg3[%c3_193, %c0_194, %c0_195] : memref<5x896x128xbf16, #tpu.memory_space<vmem>>, vector<1x896x128xbf16>
    %257 = vector.shape_cast %256 : vector<1x896x128xbf16> to vector<896x128xbf16>
    %cst_196 = arith.constant dense<0.000000e+00> : vector<70x128xf32>
    %258 = tpu.matmul %255, %257, %cst_196 {dimension_numbers = #tpu.dot_dimension_numbers<[1], [0], [0], [1], [0, 0, 1, 1], [], []>} : vector<70x896xbf16>, vector<896x128xbf16>, vector<70x128xf32> -> vector<70x128xf32>
    %c3_197 = arith.constant 3 : index
    %c0_198 = arith.constant 0 : index
    %259 = vector.load %arg4[%c3_197, %c0_198] : memref<5x128xf32, #tpu.memory_space<vmem>>, vector<1x128xf32>
    %260 = vector.broadcast %259 : vector<1x128xf32> to vector<70x128xf32>
    %261 = arith.addf %258, %260 : vector<70x128xf32>
    %c3_199 = arith.constant 3 : index
    %262 = memref.load %arg7[%c3_199] : memref<5xf32, #tpu.memory_space<smem>>
    %cst_200 = arith.constant 0.000000e+00 : f32
    %263 = vector.broadcast %cst_200 : f32 to vector<70x128xf32>
    %264 = arith.cmpf ogt, %261, %263 : vector<70x128xf32>
    %265 = vector.broadcast %262 : f32 to vector<70x128xf32>
    %266 = arith.mulf %265, %261 : vector<70x128xf32>
    %267 = arith.select %264, %261, %266 : vector<70x128xi1>, vector<70x128xf32>
    %268 = arith.truncf %267 : vector<70x128xf32> to vector<70x128xbf16>
    %c3_201 = arith.constant 3 : index
    %c0_202 = arith.constant 0 : index
    %c0_203 = arith.constant 0 : index
    %269 = vector.load %arg5[%c3_201, %c0_202, %c0_203] : memref<5x128x128xbf16, #tpu.memory_space<vmem>>, vector<1x128x128xbf16>
    %270 = vector.shape_cast %269 : vector<1x128x128xbf16> to vector<128x128xbf16>
    %cst_204 = arith.constant dense<0.000000e+00> : vector<70x128xf32>
    %271 = tpu.matmul %268, %270, %cst_204 {dimension_numbers = #tpu.dot_dimension_numbers<[1], [0], [0], [1], [0, 0, 1, 1], [], []>} : vector<70x128xbf16>, vector<128x128xbf16>, vector<70x128xf32> -> vector<70x128xf32>
    %c3_205 = arith.constant 3 : index
    %c0_206 = arith.constant 0 : index
    %272 = vector.load %arg6[%c3_205, %c0_206] : memref<5x128xf32, #tpu.memory_space<vmem>>, vector<1x128xf32>
    %273 = vector.broadcast %272 : vector<1x128xf32> to vector<70x128xf32>
    %274 = arith.addf %271, %273 : vector<70x128xf32>
    %c3_207 = arith.constant 3 : index
    %275 = memref.load %arg8[%c3_207] : memref<5xf32, #tpu.memory_space<smem>>
    %cst_208 = arith.constant 0.000000e+00 : f32
    %276 = vector.broadcast %cst_208 : f32 to vector<70x128xf32>
    %277 = arith.cmpf ogt, %274, %276 : vector<70x128xf32>
    %278 = vector.broadcast %275 : f32 to vector<70x128xf32>
    %279 = arith.mulf %278, %274 : vector<70x128xf32>
    %280 = arith.select %277, %274, %279 : vector<70x128xi1>, vector<70x128xf32>
    %c0_209 = arith.constant 0 : index
    %c48_210 = arith.constant 48 : index
    %c0_211 = arith.constant 0 : index
    %281 = vector.load %arg10[%c0_209, %c48_210, %c0_211] : memref<1x166x128xf32, #tpu.memory_space<vmem>>, vector<1x70x128xf32>
    %282 = vector.shape_cast %281 : vector<1x70x128xf32> to vector<70x128xf32>
    %283 = arith.addf %280, %282 : vector<70x128xf32>
    %c48_i32 = arith.constant 48 : i32
    %284 = arith.addi %1, %c48_i32 : i32
    %285 = tpu.iota {dimensions = array<i32: 0>} : vector<70x1xi32>
    %286 = vector.broadcast %284 : i32 to vector<70x1xi32>
    %287 = arith.addi %286, %285 : vector<70x1xi32>
    %c75_i32_212 = arith.constant 75 : i32
    %288 = vector.broadcast %c75_i32_212 : i32 to vector<70x1xi32>
    %289 = arith.cmpi sge, %287, %288 : vector<70x1xi32>
    %c91_i32_213 = arith.constant 91 : i32
    %290 = vector.broadcast %c91_i32_213 : i32 to vector<70x1xi32>
    %291 = arith.cmpi slt, %287, %290 : vector<70x1xi32>
    %292 = arith.andi %289, %291 : vector<70x1xi1>
    %cst_214 = arith.constant 0.000000e+00 : f32
    %293 = vector.shape_cast %292 : vector<70x1xi1> to vector<70x1xi1>
    %294 = vector.broadcast %293 : vector<70x1xi1> to vector<70x128xi1>
    %295 = vector.broadcast %cst_214 : f32 to vector<70x128xf32>
    %296 = arith.select %294, %283, %295 : vector<70x128xi1>, vector<70x128xf32>
    %c0_215 = arith.constant 0 : index
    %c48_216 = arith.constant 48 : index
    %c0_217 = arith.constant 0 : index
    %297 = vector.load %arg10[%c0_215, %c48_216, %c0_217] : memref<1x166x128xf32, #tpu.memory_space<vmem>>, vector<1x70x128xf32>
    %298 = vector.shape_cast %297 : vector<1x70x128xf32> to vector<70x128xf32>
    %299 = vector.shape_cast %296 : vector<70x128xf32> to vector<1x70x128xf32>
    tpu.vector_store %arg10[%c0_215, %c48_216, %c0_217], %299 {strides = array<i32>} : memref<1x166x128xf32, #tpu.memory_space<vmem>>, vector<1x70x128xf32>,
    %c0_218 = arith.constant 0 : index
    %c48_219 = arith.constant 48 : index
    %c0_220 = arith.constant 0 : index
    %300 = vector.load %arg10[%c0_218, %c48_219, %c0_220] : memref<1x166x128xf32, #tpu.memory_space<vmem>>, vector<1x16x128xf32>
    %301 = vector.shape_cast %300 : vector<1x16x128xf32> to vector<16x128xf32>
    %302 = arith.truncf %301 : vector<16x128xf32> to vector<16x128xbf16>
    %c0_221 = arith.constant 0 : index
    %c0_222 = arith.constant 0 : index
    %303 = vector.load %arg11[%c0_221, %c0_222] : memref<166x896xbf16, #tpu.memory_space<vmem>>, vector<16x128xbf16>
    tpu.vector_store %arg11[%c0_221, %c0_222], %302 {strides = array<i32>} : memref<166x896xbf16, #tpu.memory_space<vmem>>, vector<16x128xbf16>,
    %c0_223 = arith.constant 0 : index
    %c57 = arith.constant 57 : index
    %c0_224 = arith.constant 0 : index
    %304 = vector.load %arg10[%c0_223, %c57, %c0_224] : memref<1x166x128xf32, #tpu.memory_space<vmem>>, vector<1x16x128xf32>
    %305 = vector.shape_cast %304 : vector<1x16x128xf32> to vector<16x128xf32>
    %306 = arith.truncf %305 : vector<16x128xf32> to vector<16x128xbf16>
    %c0_225 = arith.constant 0 : index
    %c128_226 = arith.constant 128 : index
    %307 = vector.load %arg11[%c0_225, %c128_226] : memref<166x896xbf16, #tpu.memory_space<vmem>>, vector<16x128xbf16>
    tpu.vector_store %arg11[%c0_225, %c128_226], %306 {strides = array<i32>} : memref<166x896xbf16, #tpu.memory_space<vmem>>, vector<16x128xbf16>,
    %c0_227 = arith.constant 0 : index
    %c66 = arith.constant 66 : index
    %c0_228 = arith.constant 0 : index
    %308 = vector.load %arg10[%c0_227, %c66, %c0_228] : memref<1x166x128xf32, #tpu.memory_space<vmem>>, vector<1x16x128xf32>
    %309 = vector.shape_cast %308 : vector<1x16x128xf32> to vector<16x128xf32>
    %310 = arith.truncf %309 : vector<16x128xf32> to vector<16x128xbf16>
    %c0_229 = arith.constant 0 : index
    %c256_230 = arith.constant 256 : index
    %311 = vector.load %arg11[%c0_229, %c256_230] : memref<166x896xbf16, #tpu.memory_space<vmem>>, vector<16x128xbf16>
    tpu.vector_store %arg11[%c0_229, %c256_230], %310 {strides = array<i32>} : memref<166x896xbf16, #tpu.memory_space<vmem>>, vector<16x128xbf16>,
    %c0_231 = arith.constant 0 : index
    %c75 = arith.constant 75 : index
    %c0_232 = arith.constant 0 : index
    %312 = vector.load %arg10[%c0_231, %c75, %c0_232] : memref<1x166x128xf32, #tpu.memory_space<vmem>>, vector<1x16x128xf32>
    %313 = vector.shape_cast %312 : vector<1x16x128xf32> to vector<16x128xf32>
    %314 = arith.truncf %313 : vector<16x128xf32> to vector<16x128xbf16>
    %c0_233 = arith.constant 0 : index
    %c384_234 = arith.constant 384 : index
    %315 = vector.load %arg11[%c0_233, %c384_234] : memref<166x896xbf16, #tpu.memory_space<vmem>>, vector<16x128xbf16>
    tpu.vector_store %arg11[%c0_233, %c384_234], %314 {strides = array<i32>} : memref<166x896xbf16, #tpu.memory_space<vmem>>, vector<16x128xbf16>,
    %c0_235 = arith.constant 0 : index
    %c84 = arith.constant 84 : index
    %c0_236 = arith.constant 0 : index
    %316 = vector.load %arg10[%c0_235, %c84, %c0_236] : memref<1x166x128xf32, #tpu.memory_space<vmem>>, vector<1x16x128xf32>
    %317 = vector.shape_cast %316 : vector<1x16x128xf32> to vector<16x128xf32>
    %318 = arith.truncf %317 : vector<16x128xf32> to vector<16x128xbf16>
    %c0_237 = arith.constant 0 : index
    %c512_238 = arith.constant 512 : index
    %319 = vector.load %arg11[%c0_237, %c512_238] : memref<166x896xbf16, #tpu.memory_space<vmem>>, vector<16x128xbf16>
    tpu.vector_store %arg11[%c0_237, %c512_238], %318 {strides = array<i32>} : memref<166x896xbf16, #tpu.memory_space<vmem>>, vector<16x128xbf16>,
    %c0_239 = arith.constant 0 : index
    %c93 = arith.constant 93 : index
    %c0_240 = arith.constant 0 : index
    %320 = vector.load %arg10[%c0_239, %c93, %c0_240] : memref<1x166x128xf32, #tpu.memory_space<vmem>>, vector<1x16x128xf32>
    %321 = vector.shape_cast %320 : vector<1x16x128xf32> to vector<16x128xf32>
    %322 = arith.truncf %321 : vector<16x128xf32> to vector<16x128xbf16>
    %c0_241 = arith.constant 0 : index
    %c640_242 = arith.constant 640 : index
    %323 = vector.load %arg11[%c0_241, %c640_242] : memref<166x896xbf16, #tpu.memory_space<vmem>>, vector<16x128xbf16>
    tpu.vector_store %arg11[%c0_241, %c640_242], %322 {strides = array<i32>} : memref<166x896xbf16, #tpu.memory_space<vmem>>, vector<16x128xbf16>,
    %c0_243 = arith.constant 0 : index
    %c102 = arith.constant 102 : index
    %c0_244 = arith.constant 0 : index
    %324 = vector.load %arg10[%c0_243, %c102, %c0_244] : memref<1x166x128xf32, #tpu.memory_space<vmem>>, vector<1x16x128xf32>
    %325 = vector.shape_cast %324 : vector<1x16x128xf32> to vector<16x128xf32>
    %326 = arith.truncf %325 : vector<16x128xf32> to vector<16x128xbf16>
    %c0_245 = arith.constant 0 : index
    %c768_246 = arith.constant 768 : index
    %327 = vector.load %arg11[%c0_245, %c768_246] : memref<166x896xbf16, #tpu.memory_space<vmem>>, vector<16x128xbf16>
    tpu.vector_store %arg11[%c0_245, %c768_246], %326 {strides = array<i32>} : memref<166x896xbf16, #tpu.memory_space<vmem>>, vector<16x128xbf16>,
    %c0_247 = arith.constant 0 : index
    %c0_248 = arith.constant 0 : index
    %328 = vector.load %arg11[%c0_247, %c0_248] : memref<166x896xbf16, #tpu.memory_space<vmem>>, vector<16x896xbf16>
    %c4_249 = arith.constant 4 : index
    %c0_250 = arith.constant 0 : index
    %c0_251 = arith.constant 0 : index
    %329 = vector.load %arg3[%c4_249, %c0_250, %c0_251] : memref<5x896x128xbf16, #tpu.memory_space<vmem>>, vector<1x896x128xbf16>
    %330 = vector.shape_cast %329 : vector<1x896x128xbf16> to vector<896x128xbf16>
    %cst_252 = arith.constant dense<0.000000e+00> : vector<16x128xf32>
    %331 = tpu.matmul %328, %330, %cst_252 {dimension_numbers = #tpu.dot_dimension_numbers<[1], [0], [0], [1], [0, 0, 1, 1], [], []>} : vector<16x896xbf16>, vector<896x128xbf16>, vector<16x128xf32> -> vector<16x128xf32>
    %c4_253 = arith.constant 4 : index
    %c0_254 = arith.constant 0 : index
    %332 = vector.load %arg4[%c4_253, %c0_254] : memref<5x128xf32, #tpu.memory_space<vmem>>, vector<1x128xf32>
    %333 = vector.broadcast %332 : vector<1x128xf32> to vector<16x128xf32>
    %334 = arith.addf %331, %333 : vector<16x128xf32>
    %c4_255 = arith.constant 4 : index
    %335 = memref.load %arg7[%c4_255] : memref<5xf32, #tpu.memory_space<smem>>
    %cst_256 = arith.constant 0.000000e+00 : f32
    %336 = vector.broadcast %cst_256 : f32 to vector<16x128xf32>
    %337 = arith.cmpf ogt, %334, %336 : vector<16x128xf32>
    %338 = vector.broadcast %335 : f32 to vector<16x128xf32>
    %339 = arith.mulf %338, %334 : vector<16x128xf32>
    %340 = arith.select %337, %334, %339 : vector<16x128xi1>, vector<16x128xf32>
    %341 = arith.truncf %340 : vector<16x128xf32> to vector<16x128xbf16>
    %c4_257 = arith.constant 4 : index
    %c0_258 = arith.constant 0 : index
    %c0_259 = arith.constant 0 : index
    %342 = vector.load %arg5[%c4_257, %c0_258, %c0_259] : memref<5x128x128xbf16, #tpu.memory_space<vmem>>, vector<1x128x128xbf16>
    %343 = vector.shape_cast %342 : vector<1x128x128xbf16> to vector<128x128xbf16>
    %cst_260 = arith.constant dense<0.000000e+00> : vector<16x128xf32>
    %344 = tpu.matmul %341, %343, %cst_260 {dimension_numbers = #tpu.dot_dimension_numbers<[1], [0], [0], [1], [0, 0, 1, 1], [], []>} : vector<16x128xbf16>, vector<128x128xbf16>, vector<16x128xf32> -> vector<16x128xf32>
    %c4_261 = arith.constant 4 : index
    %c0_262 = arith.constant 0 : index
    %345 = vector.load %arg6[%c4_261, %c0_262] : memref<5x128xf32, #tpu.memory_space<vmem>>, vector<1x128xf32>
    %346 = vector.broadcast %345 : vector<1x128xf32> to vector<16x128xf32>
    %347 = arith.addf %344, %346 : vector<16x128xf32>
    %c4_263 = arith.constant 4 : index
    %348 = memref.load %arg8[%c4_263] : memref<5xf32, #tpu.memory_space<smem>>
    %cst_264 = arith.constant 0.000000e+00 : f32
    %349 = vector.broadcast %cst_264 : f32 to vector<16x128xf32>
    %350 = arith.cmpf ogt, %347, %349 : vector<16x128xf32>
    %351 = vector.broadcast %348 : f32 to vector<16x128xf32>
    %352 = arith.mulf %351, %347 : vector<16x128xf32>
    %353 = arith.select %350, %347, %352 : vector<16x128xi1>, vector<16x128xf32>
    %c0_265 = arith.constant 0 : index
    %c75_266 = arith.constant 75 : index
    %c0_267 = arith.constant 0 : index
    %354 = vector.load %arg10[%c0_265, %c75_266, %c0_267] : memref<1x166x128xf32, #tpu.memory_space<vmem>>, vector<1x16x128xf32>
    %355 = vector.shape_cast %354 : vector<1x16x128xf32> to vector<16x128xf32>
    %356 = arith.addf %353, %355 : vector<16x128xf32>
    %c75_i32_268 = arith.constant 75 : i32
    %357 = arith.addi %1, %c75_i32_268 : i32
    %358 = tpu.iota {dimensions = array<i32: 0>} : vector<16x1xi32>
    %359 = vector.broadcast %357 : i32 to vector<16x1xi32>
    %360 = arith.addi %359, %358 : vector<16x1xi32>
    %c75_i32_269 = arith.constant 75 : i32
    %361 = vector.broadcast %c75_i32_269 : i32 to vector<16x1xi32>
    %362 = arith.cmpi sge, %360, %361 : vector<16x1xi32>
    %c91_i32_270 = arith.constant 91 : i32
    %363 = vector.broadcast %c91_i32_270 : i32 to vector<16x1xi32>
    %364 = arith.cmpi slt, %360, %363 : vector<16x1xi32>
    %365 = arith.andi %362, %364 : vector<16x1xi1>
    %cst_271 = arith.constant 0.000000e+00 : f32
    %366 = vector.shape_cast %365 : vector<16x1xi1> to vector<16x1xi1>
    %367 = vector.broadcast %366 : vector<16x1xi1> to vector<16x128xi1>
    %368 = vector.broadcast %cst_271 : f32 to vector<16x128xf32>
    %369 = arith.select %367, %356, %368 : vector<16x128xi1>, vector<16x128xf32>
    %c0_272 = arith.constant 0 : index
    %c75_273 = arith.constant 75 : index
    %c0_274 = arith.constant 0 : index
    %370 = vector.load %arg10[%c0_272, %c75_273, %c0_274] : memref<1x166x128xf32, #tpu.memory_space<vmem>>, vector<1x16x128xf32>
    %371 = vector.shape_cast %370 : vector<1x16x128xf32> to vector<16x128xf32>
    %372 = vector.shape_cast %369 : vector<16x128xf32> to vector<1x16x128xf32>
    tpu.vector_store %arg10[%c0_272, %c75_273, %c0_274], %372 {strides = array<i32>} : memref<1x166x128xf32, #tpu.memory_space<vmem>>, vector<1x16x128xf32>,
    %c0_275 = arith.constant 0 : index
    %c75_276 = arith.constant 75 : index
    %c0_277 = arith.constant 0 : index
    %373 = vector.load %arg10[%c0_275, %c75_276, %c0_277] : memref<1x166x128xf32, #tpu.memory_space<vmem>>, vector<1x16x128xf32>
    %374 = vector.shape_cast %373 : vector<1x16x128xf32> to vector<16x128xf32>
    %c0_278 = arith.constant 0 : index
    %c0_279 = arith.constant 0 : index
    %c0_280 = arith.constant 0 : index
    %375 = vector.load %arg9[%c0_278, %c0_279, %c0_280] : memref<1x16x128xf32, #tpu.memory_space<vmem>>, vector<1x16x128xf32>
    %376 = vector.shape_cast %375 : vector<1x16x128xf32> to vector<16x128xf32>
    %377 = vector.shape_cast %374 : vector<16x128xf32> to vector<1x16x128xf32>
    tpu.vector_store %arg9[%c0_278, %c0_279, %c0_280], %377 {strides = array<i32>} : memref<1x16x128xf32, #tpu.memory_space<vmem>>, vector<1x16x128xf32>,
    return
  }
  func.func @transform_1(%arg0: i32, %arg1: i32) -> (i32, i32, i32) {
    %c0_i32 = arith.constant 0 : i32
    %c0_i32_0 = arith.constant 0 : i32
    %c0_i32_1 = arith.constant 0 : i32
    %c0_i32_2 = arith.constant 0 : i32
    return %c0_i32, %c0_i32_0, %c0_i32_1 : i32, i32, i32
  }
  func.func @transform_2(%arg0: i32, %arg1: i32) -> (i32, i32) {
    %c0_i32 = arith.constant 0 : i32
    %c0_i32_0 = arith.constant 0 : i32
    %c0_i32_1 = arith.constant 0 : i32
    return %c0_i32, %c0_i32_0 : i32, i32
  }
  func.func @transform_3(%arg0: i32, %arg1: i32) -> (i32, i32, i32) {
    %c0_i32 = arith.constant 0 : i32
    %c0_i32_0 = arith.constant 0 : i32
    %c0_i32_1 = arith.constant 0 : i32
    %c0_i32_2 = arith.constant 0 : i32
    return %c0_i32, %c0_i32_0, %c0_i32_1 : i32, i32, i32
  }
  func.func @transform_4(%arg0: i32, %arg1: i32) -> (i32, i32) {
    %c0_i32 = arith.constant 0 : i32
    %c0_i32_0 = arith.constant 0 : i32
    %c0_i32_1 = arith.constant 0 : i32
    return %c0_i32, %c0_i32_0 : i32, i32
  }
  func.func @transform_5(%arg0: i32, %arg1: i32) -> i32 {
    %c0_i32 = arith.constant 0 : i32
    %c0_i32_0 = arith.constant 0 : i32
    return %c0_i32 : i32
  }
  func.func @transform_6(%arg0: i32, %arg1: i32) -> i32 {
    %c0_i32 = arith.constant 0 : i32
    %c0_i32_0 = arith.constant 0 : i32
    return %c0_i32 : i32
  }
  func.func @transform_7(%arg0: i32, %arg1: i32) -> (i32, i32, i32) {
    %c0_i32 = arith.constant 0 : i32
    %c0_i32_0 = arith.constant 0 : i32
    return %arg0, %arg1, %c0_i32 : i32, i32, i32
  }
}

</mosaic_0001>

<bundles_post_ra>
// kernel: res_decoder_block.2
= control target key start
LH: loop header
LB: loop body
LE: loop exit
PB: predicated region body
PF: predicated region fallthrough
CT: control target
= control target key end

     0   :  { %s912_s12 = smov 0   ;;  %s914_s13 = smov 0   ;;  %s1048_s0 = inlined_call_operand.vmem [shape: f32[2,10,128], index: 0, kind: input, shape index: {}]   ;;  %s1049_s1 = inlined_call_operand.vmem [shape: bf16[2,3,128,128], index: 1, kind: input, shape index: {}]   ;;  %s1050_s2 = inlined_call_operand.vmem [shape: f32[1,128], index: 2, kind: input, shape index: {}]   ;;  %s1051_s3 = inlined_call_operand.vmem [shape: f32[2,8,256], index: 3, kind: output, shape index: {}]  }
   0x1   :  { %s916_s14 = smov 0  }
   0x2 LB: > { %s25_s15 = sadd.s32 1, %s886_s13  ;;  %p624_p0 = scmp.ge.s32.totalorder %s890_s14, 1  ;;  %s890_s14 = sphi %s916_s14, %s13_s14   ;;  %s886_s13 = sphi %s914_s13, %s1053_s13   ;;  %s882_s12 = sphi %s912_s12, %s1052_s12  }
   0x3   : > { %p27_p1 = scmp.ge.s32.totalorder %s25_s15, 2  ;;  %p117_p2 = scmp.lt.s32.totalorder %s890_s14, 3 }
   0x5   : > { %s1055_s15 = smov (%p27_p1, %s25_s15), 0  ;;  %p118_p3 = pnand %p624_p0, %p117_p2 }
   0x6   : > { %p138_p4 = scmp.lt.s32.totalorder (!%p118_p3), %s882_s12, 1  ;;  %s627_s16 = sshll.u32 (!%p118_p3), %s882_s12, 4 }
   0x7   : > { %121 = sbr.rel (%p118_p3) target bundleno = 192 (0xc0), region = 28  ;;  %s150_s19 = scalar_lea.vmem (!%p118_p3), %s1048_s0, %s627_s16 }
   0xc   : > { %s1057_s12 = smov (!%p138_p4, %s882_s12), 1  ;;  %v163_v0 = vld [vmem:[%s150_s19] sm:$0xff]  ;;  %v628_v1 = vld [vmem:[%s150_s19 + $0x8] sm:$0x3] }
   0xd   : > { %164 = vst [vmem:[#allocation2] sm:$0xff] %v163_v0  ;;  %s808_s20 = sshll.u32 %s1057_s12, 4 }
   0xe   : > { %176 = vst [vmem:[#allocation2 + $0x8] sm:$0x3] %v628_v1  ;;  %s936_s23 = scalar_lea.vmem %s1051_s3, %s808_s20 }
   0xf   : > { %180 = vsyncadd [#allocation3], 160 }
  0x10   : > { %878 = dma.done.wait [#allocation3], 160 }
  0x11   : > { %879 = vsyncadd [#allocation3], 4294967136  ;;  %v824_v2 = vld [vmem:[%s1049_s1 + $0x78] sm:$0xff]  ;;  %v823_v6 = vld [vmem:[%s1049_s1 + $0x70] sm:$0xff] }
  0x12   : > { %v816_v3 = vld [vmem:[%s1049_s1 + $0x38] sm:$0xff]  ;;  %289 = vmatpush.bf16.msra.mxu0 %v824_v2  ;;  %v815_v7 = vld [vmem:[%s1049_s1 + $0x30] sm:$0xff]  ;;  %v822_v10 = vld [vmem:[%s1049_s1 + $0x68] sm:$0xff] }
  0x13   : > { %v840_v4 = vld [vmem:[%s1049_s1 + $0x178] sm:$0xff]  ;;  %350 = vmatpush.bf16.msra.mxu1 %v816_v3  ;;  %v839_v8 = vld [vmem:[%s1049_s1 + $0x170] sm:$0xff]  ;;  %v814_v11 = vld [vmem:[%s1049_s1 + $0x28] sm:$0xff] }
  0x14   : > { %v832_v5 = vld [vmem:[%s1049_s1 + $0x138] sm:$0xff]  ;;  %455 = vmatpush.bf16.msra.mxu2 %v840_v4  ;;  %v831_v9 = vld [vmem:[%s1049_s1 + $0x130] sm:$0xff]  ;;  %v838_v12 = vld [vmem:[%s1049_s1 + $0x168] sm:$0xff] }
  0x15   : > { %516 = vmatpush.bf16.msra.mxu3 %v832_v5  ;;  %v830_v13 = vld [vmem:[%s1049_s1 + $0x128] sm:$0xff]  ;;  %v821_v14 = vld [vmem:[%s1049_s1 + $0x60] sm:$0xff]  ;;  %v820_v23 = vld [vmem:[%s1049_s1 + $0x58] sm:$0xff] }
  0x16   : > { %290 = vmatpush.bf16.msra.mxu0 %v823_v6  ;;  %v813_v15 = vld [vmem:[%s1049_s1 + $0x20] sm:$0xff]  ;;  %v186_v19 = vld [vmem:[#allocation2 + $0x8] sm:$0x3]  ;;  %v812_v24 = vld [vmem:[%s1049_s1 + $0x18] sm:$0xff] }
  0x17   : > { %351 = vmatpush.bf16.msra.mxu1 %v815_v7  ;;  %v837_v16 = vld [vmem:[%s1049_s1 + $0x160] sm:$0xff]  ;;  %v188_v21 = vpack.c.bf16 %v186_v19, %v186_v19  ;;  %v836_v26 = vld [vmem:[%s1049_s1 + $0x158] sm:$0xff]  ;;  %v819_v29 = vld [vmem:[%s1049_s1 + $0x50] sm:$0xff] }
  0x18   : > { %456 = vmatpush.bf16.msra.mxu2 %v839_v8  ;;  %v185_v17 = vld [vmem:[#allocation2] sm:$0xff]  ;;  %v828_v27 = vld [vmem:[%s1049_s1 + $0x118] sm:$0xff]  ;;  %v811_v30 = vld [vmem:[%s1049_s1 + $0x10] sm:$0xff] }
  0x19   : > { %517 = vmatpush.bf16.msra.mxu3 %v831_v9  ;;  %v829_v18 = vld [vmem:[%s1049_s1 + $0x120] sm:$0xff]  ;;  %v187_v20 = vpack.c.bf16 %v185_v17, %v185_v17  ;;  %v231_v25 = vunpack.c.l.b16 %v188_v21  ;;  %v835_v31 = vld [vmem:[%s1049_s1 + $0x150] sm:$0xff]  ;;  %v818_v34 = vld [vmem:[%s1049_s1 + $0x48] sm:$0xff] }
  0x1a   : > { %291 = vmatpush.bf16.msra.mxu0 %v822_v10  ;;  %v827_v32 = vld [vmem:[%s1049_s1 + $0x110] sm:$0xff]  ;;  %v810_v35 = vld [vmem:[%s1049_s1 + $0x8] sm:$0xff]  ;;  %v817_v40 = vld [vmem:[%s1049_s1 + $0x40] sm:$0xff] }
  0x1b   : > { %352 = vmatpush.bf16.msra.mxu1 %v814_v11  ;;  %v230_v22 = vunpack.c.l.b16 %v187_v20  ;;  %v834_v36 = vld [vmem:[%s1049_s1 + $0x148] sm:$0xff]  ;;  %v809_v41 = vld [vmem:[%s1049_s1] sm:$0xff] }
  0x1c   : > { %457 = vmatpush.bf16.msra.mxu2 %v838_v12  ;;  %v826_v37 = vld [vmem:[%s1049_s1 + $0x108] sm:$0xff]  ;;  %v833_v42 = vld [vmem:[%s1049_s1 + $0x140] sm:$0xff] }
  0x1d   : > { %518 = vmatpush.bf16.msra.mxu3 %v830_v13  ;;  %v232_v28 = vpack.c.b16 %v231_v25, %v230_v22  ;;  %v825_v43 = vld [vmem:[%s1049_s1 + $0x100] sm:$0xff] }
  0x1e   : > { %292 = vmatpush.bf16.msra.mxu0 %v821_v14  ;;  %v865_v46 = vld [vmem:[%s1050_s2] ss:$0 sm:$0xff] }
  0x1f   : > { %353 = vmatpush.bf16.msra.mxu1 %v813_v15  ;;  %v236_v33 = vshll.u32 %v232_v28, 16  ;;  %v234_v38 = vshrl.u32 %v232_v28, 16  ;;  %v405_v45 = vrot.slane %v232_v28, 1 }
  0x20   : > { %458 = vmatpush.bf16.msra.mxu2 %v837_v16 }
  0x21   : > { %519 = vmatpush.bf16.msra.mxu3 %v829_v18  ;;  %v238_v39 = vrot.slane %v236_v33, 1 }
  0x22   : > { %293 = vmatpush.bf16.msra.mxu0 %v820_v23 }
  0x23   : > { %354 = vmatpush.bf16.msra.mxu1 %v812_v24  ;;  %v239_v44 = vor.u32 %v238_v39, %v234_v38 }
  0x24   : > { %459 = vmatpush.bf16.msra.mxu2 %v836_v26 }
  0x25   : > { %520 = vmatpush.bf16.msra.mxu3 %v828_v27 }
  0x26   : > { %294 = vmatpush.bf16.msra.mxu0 %v819_v29 }
  0x27   : > { %355 = vmatpush.bf16.msra.mxu1 %v811_v30 }
  0x28   : > { %460 = vmatpush.bf16.msra.mxu2 %v835_v31 }
  0x29   : > { %521 = vmatpush.bf16.msra.mxu3 %v827_v32 }
  0x2a   : > { %295 = vmatpush.bf16.msra.mxu0 %v818_v34 }
  0x2b   : > { %356 = vmatpush.bf16.msra.mxu1 %v810_v35 }
  0x2c   : > { %461 = vmatpush.bf16.msra.mxu2 %v834_v36 }
  0x2d   : > { %522 = vmatpush.bf16.msra.mxu3 %v826_v37 }
  0x2e   : > { %296 = vmatpush.bf16.msra.mxu0 %v817_v40 }
  0x2f   : > { %357 = vmatpush.bf16.msra.mxu1 %v809_v41 }
  0x30   : > { %462 = vmatpush.bf16.msra.mxu2 %v833_v42 }
  0x31   : > { %523 = vmatpush.bf16.msra.mxu3 %v825_v43  ;;  %297 = vmatmul.bf16.vlgmr.msra.gmra.mxu0 %v239_v44 }
  0x32   : > { %358 = vmatmul.bf16.vlgmr.msra.gmra.mxu1 %v187_v20 }
  0x33   : > { %463 = vmatmul.bf16.vlgmr.msra.gmra.mxu2 %v405_v45 }
  0x34   : > { %524 = vmatmul.bf16.vlgmr.msra.gmra.mxu3 %v239_v44 }
  0xae   : > { %v298_v47 = vpop.f32.mrf.mxu0 }
  0xaf   : > { %v359_v48 = vpop.f32.mrf.mxu1 }
  0xb0   : > { %v360_v49 = vadd.f32 %v359_v48, %v298_v47 }
  0xb2   : > { %v366_v50 = vadd.f32 %v865_v46, %v360_v49 }
  0xb4   : > { %370 = vst [vmem:[%s936_s23] sm:$0xff] %v366_v50 }
  0xb6   : > { %v464_v51 = vpop.f32.mrf.mxu2  ;;  %v300_v54 = vpop.f32.mrf.mxu0 }
  0xb7   : > { %v525_v52 = vpop.f32.mrf.mxu3  ;;  %v361_v55 = vpop.f32.mrf.mxu1 }
  0xb8   : > { %v526_v53 = vadd.f32 %v525_v52, %v464_v51 }
  0xba   : > { %v529_v56 = vadd.f32 %v865_v46, %v526_v53 }
  0xbc   : > { %531 = vst [vmem:[%s936_s23 + $0x8] sm:$0xff] %v529_v56 }
  0xbe   : > { %v466_v57 = vpop.f32.mrf.mxu2 }
  0xbf   : > { %v527_v58 = vpop.f32.mrf.mxu3 }
  0xc0 PF: > { %s13_s14 = sadd.s32 1, %s890_s14   ;;  %s1052_s12 = smov %s886_s13 }
  0xc1   : > { %p10_p5 = scmp.ge.s32.totalorder %s13_s14, 4   ;;  %s1053_s13 = smov %s1055_s15 }
  0xc3   :  { %12 = sbr.rel (!%p10_p5) target bundleno = 2 (0x2), region = 91 }
  0xc8   :  { %561 = vsyncmov [#allocation3] }
  0xcb   :  { %s562_s20 = vpop.sfrf %561 }
  0xcc   :  { %p807_p6 = scmp.ne.s32.totalorder %s562_s20, 0 }
  0xce   :  { %566 = shalt.err (%p807_p6)  }

// kernel: res_decoder_block.3
= control target key start
LH: loop header
LB: loop body
LE: loop exit
PB: predicated region body
PF: predicated region fallthrough
CT: control target
= control target key end

     0   :  { %12 = vsyncpa [#allocation6], 0  ;;  %s14327_s0 = inlined_call_operand.vmem [shape: f32[2,166,128], index: 0, kind: input, shape index: {}]   ;;  %s14328_s1 = inlined_call_operand.vmem [shape: bf16[5,896,128], index: 1, kind: input, shape index: {}]   ;;  %s14329_s2 = inlined_call_operand.vmem [shape: f32[5,128], index: 2, kind: input, shape index: {}]   ;;  %s14330_s3 = inlined_call_operand.vmem [shape: bf16[5,128,128], index: 3, kind: input, shape index: {}]   ;;  %s14331_s4 = inlined_call_operand.vmem [shape: f32[5,128], index: 4, kind: input, shape index: {}]   ;;  %s14332_s5 = inlined_call_operand.vmem [shape: f32[5], index: 5, kind: input, shape index: {}]   ;;  %s14333_s6 = inlined_call_operand.vmem [shape: f32[5], index: 6, kind: input, shape index: {}]   ;;  %s14334_s7 = inlined_call_operand.vmem [shape: f32[2,16,128], index: 7, kind: output, shape index: {}]  }
   0x1   :  { %13 = vsyncpa [#allocation8], 0  ;;  %s11890_s24 = smov 0   ;;  %s11892_s25 = smov 0  }
   0x2   :  { %s11894_s26 = smov 0  }
   0x3 LB: > { %s8499_s27 = sadd.s32 4294967295, %s11844_s26   ;;  %s31_s28 = sadd.s32 1, %s11840_s25  ;;  %s11844_s26 = sphi %s11894_s26, %s19_s26   ;;  %s11840_s25 = sphi %s11892_s25, %s14423_s25   ;;  %s11836_s24 = sphi %s11890_s24, %s14422_s24  }
   0x4   : > { %p33_p0 = scmp.ge.s32.totalorder %s31_s28, 2  ;;  %p8501_p1 = scmp.ge.s32.totalorder %s11844_s26, 1 }
   0x5   : > { %p190_p2 = scmp.lt.s32.totalorder %s11844_s26, 3  ;;  %p11911_p4 = scmp.eq.s32.totalorder %s8499_s27, 0 }
   0x6   : > { %s14425_s28 = smov (%p33_p0, %s31_s28), 0  ;;  %s214_s9 = sshll.u32 %s14332_s5, 4  ;;  %s215_s9 = int_to_ptr.vmem [resolvable:$true] %s214_s9 }
   0x7   : > { %p191_p3 = pnand %p8501_p1, %p190_p2  ;;  %s224_s12 = sshll.u32 %s14333_s6, 4  ;;  %s225_s12 = int_to_ptr.vmem [resolvable:$true] %s224_s12 }
   0x8   : > { %s11846_s13 = smov [#allocation5]   ;;  %s11847_s14 = smov [#allocation7]  }
   0x9   : > { %p11727_p5 = pneg %p191_p3 }
   0xa   : > { %237 = sbr.rel (%p191_p3) target bundleno = 2266 (0x8da), region = 44 }
   0xb   : > { %p11728_p6 = pnand %p11911_p4, %p11727_p5 }
   0xd   : > { %11730 = dma.vmem_to_smem (!%p11728_p6), %s215_s9, 16, %s11846_s13, [#allocation6]  }
   0xe   : > { %11733 = dma.vmem_to_smem (!%p11728_p6), %s225_s12, 16, %s11847_s14, [#allocation8]  }
   0xf   : > { %11825 = dma.done.wait (%p11911_p4), [#allocation6], 16  }
  0x10   : > { %11827 = vsyncadd (%p11911_p4), [#allocation6], 4294967280 }
  0x11   : > { %11829 = dma.done.wait (%p11911_p4), [#allocation8], 16  }
  0x12   : > { %11831 = vsyncadd (%p11911_p4), [#allocation8], 4294967280 }
  0x13   : > { %249 = sfence }
  0x14   : > { %p274_p7 = scmp.lt.s32.totalorder %s11836_s24, 1  ;;  %s284_s15 = smul.u32 168, %s11836_s24 }
  0x16   : > { %s14427_s24 = smov (!%p274_p7, %s11836_s24), 1  ;;  %s11937_s18 = scalar_lea.vmem %s14327_s0, %s284_s15 }
  0x17   : > { %s11181_s19 = sshll.u32 %s14427_s24, 4  ;;  %v299_v0 = vld [vmem:[%s11937_s18] sm:$0xff]  ;;  %v301_v1 = vld [vmem:[%s11937_s18 + $0x8] sm:$0xff]  ;;  %v303_v2 = vld [vmem:[%s11937_s18 + $0x10] sm:$0xff] }
  0x18   : > { %s11945_s22 = scalar_lea.vmem %s14334_s7, %s11181_s19  ;;  %300 = vst [vmem:[#allocation2] sm:$0xff] %v299_v0  ;;  %v305_v3 = vld [vmem:[%s11937_s18 + $0x18] sm:$0xff]  ;;  %v307_v4 = vld [vmem:[%s11937_s18 + $0x20] sm:$0xff]  ;;  %v309_v5 = vld [vmem:[%s11937_s18 + $0x28] sm:$0xff] }
  0x19   : > { %302 = vst [vmem:[#allocation2 + $0x8] sm:$0xff] %v301_v1  ;;  %v311_v6 = vld [vmem:[%s11937_s18 + $0x30] sm:$0xff]  ;;  %v313_v7 = vld [vmem:[%s11937_s18 + $0x38] sm:$0xff]  ;;  %v315_v8 = vld [vmem:[%s11937_s18 + $0x40] sm:$0xff] }
  0x1a   : > { %304 = vst [vmem:[#allocation2 + $0x10] sm:$0xff] %v303_v2  ;;  %v317_v9 = vld [vmem:[%s11937_s18 + $0x48] sm:$0xff]  ;;  %v319_v10 = vld [vmem:[%s11937_s18 + $0x50] sm:$0xff]  ;;  %v321_v11 = vld [vmem:[%s11937_s18 + $0x58] sm:$0xff] }
  0x1b   : > { %306 = vst [vmem:[#allocation2 + $0x18] sm:$0xff] %v305_v3  ;;  %v323_v12 = vld [vmem:[%s11937_s18 + $0x60] sm:$0xff]  ;;  %v325_v13 = vld [vmem:[%s11937_s18 + $0x68] sm:$0xff]  ;;  %v327_v14 = vld [vmem:[%s11937_s18 + $0x70] sm:$0xff] }
  0x1c   : > { %308 = vst [vmem:[#allocation2 + $0x20] sm:$0xff] %v307_v4  ;;  %v329_v15 = vld [vmem:[%s11937_s18 + $0x78] sm:$0xff]  ;;  %v331_v16 = vld [vmem:[%s11937_s18 + $0x80] sm:$0xff]  ;;  %v333_v17 = vld [vmem:[%s11937_s18 + $0x88] sm:$0xff] }
  0x1d   : > { %310 = vst [vmem:[#allocation2 + $0x28] sm:$0xff] %v309_v5  ;;  %v335_v18 = vld [vmem:[%s11937_s18 + $0x90] sm:$0xff]  ;;  %v337_v19 = vld [vmem:[%s11937_s18 + $0x98] sm:$0xff]  ;;  %v8509_v20 = vld [vmem:[%s11937_s18 + $0xa0] sm:$0x3f] }
  0x1e   : > { %312 = vst [vmem:[#allocation2 + $0x30] sm:$0xff] %v311_v6 }
  0x1f   : > { %314 = vst [vmem:[#allocation2 + $0x38] sm:$0xff] %v313_v7 }
  0x20   : > { %316 = vst [vmem:[#allocation2 + $0x40] sm:$0xff] %v315_v8 }
  0x21   : > { %318 = vst [vmem:[#allocation2 + $0x48] sm:$0xff] %v317_v9 }
  0x22   : > { %320 = vst [vmem:[#allocation2 + $0x50] sm:$0xff] %v319_v10 }
  0x23   : > { %322 = vst [vmem:[#allocation2 + $0x58] sm:$0xff] %v321_v11 }
  0x24   : > { %324 = vst [vmem:[#allocation2 + $0x60] sm:$0xff] %v323_v12 }
  0x25   : > { %326 = vst [vmem:[#allocation2 + $0x68] sm:$0xff] %v325_v13 }
  0x26   : > { %328 = vst [vmem:[#allocation2 + $0x70] sm:$0xff] %v327_v14 }
  0x27   : > { %330 = vst [vmem:[#allocation2 + $0x78] sm:$0xff] %v329_v15 }
  0x28   : > { %332 = vst [vmem:[#allocation2 + $0x80] sm:$0xff] %v331_v16 }
  0x29   : > { %334 = vst [vmem:[#allocation2 + $0x88] sm:$0xff] %v333_v17 }
  0x2a   : > { %336 = vst [vmem:[#allocation2 + $0x90] sm:$0xff] %v335_v18 }
  0x2b   : > { %338 = vst [vmem:[#allocation2 + $0x98] sm:$0xff] %v337_v19 }
  0x2c   : > { %350 = vst [vmem:[#allocation2 + $0xa0] sm:$0x3f] %v8509_v20 }
  0x2d   : > { %354 = vsyncadd [#allocation4], 2656 }
  0x2e   : > { %11832 = dma.done.wait [#allocation4], 2656 }
  0x2f   : > { %11833 = vsyncadd [#allocation4], 4294964640  ;;  %v11259_v21 = vld [vmem:[%s14328_s1 + $0x38] sm:$0xff]  ;;  %v11258_v25 = vld [vmem:[%s14328_s1 + $0x30] sm:$0xff]  ;;  %v14337_v17 = vmov 0.0   ;;  %s2082_s24 = sld [smem:[#allocation5]] }
  0x30   : > { %v11267_v22 = vld [vmem:[%s14328_s1 + $0x78] sm:$0xff]  ;;  %1669 = vmatpush.bf16.msra.mxu0 %v11259_v21  ;;  %v11266_v26 = vld [vmem:[%s14328_s1 + $0x70] sm:$0xff]  ;;  %v11257_v29 = vld [vmem:[%s14328_s1 + $0x28] sm:$0xff]  ;;  %s2279_s9 = sld [smem:[#allocation7]] }
  0x31   : > { %v11275_v23 = vld [vmem:[%s14328_s1 + $0xb8] sm:$0xff]  ;;  %1728 = vmatpush.bf16.msra.mxu1 %v11267_v22  ;;  %v11274_v27 = vld [vmem:[%s14328_s1 + $0xb0] sm:$0xff]  ;;  %v11265_v30 = vld [vmem:[%s14328_s1 + $0x68] sm:$0xff]  ;;  %s9634_s23 = sld [smem:[#allocation5 + $0x1]] }
  0x32   : > { %v11283_v24 = vld [vmem:[%s14328_s1 + $0xf8] sm:$0xff]  ;;  %1787 = vmatpush.bf16.msra.mxu2 %v11275_v23  ;;  %v11282_v28 = vld [vmem:[%s14328_s1 + $0xf0] sm:$0xff]  ;;  %v11273_v31 = vld [vmem:[%s14328_s1 + $0xa8] sm:$0xff]  ;;  %s9683_s19 = sld [smem:[#allocation7 + $0x1]] }
  0x33   : > { %1846 = vmatpush.bf16.msra.mxu3 %v11283_v24  ;;  %v11281_v32 = vld [vmem:[%s14328_s1 + $0xe8] sm:$0xff]  ;;  %v11256_v33 = vld [vmem:[%s14328_s1 + $0x20] sm:$0xff]  ;;  %v11255_v43 = vld [vmem:[%s14328_s1 + $0x18] sm:$0xff]  ;;  %s10216_s29 = sld [smem:[#allocation5 + $0x2]] }
  0x34   : > { %1670 = vmatpush.bf16.msra.mxu0 %v11258_v25  ;;  %v11264_v34 = vld [vmem:[%s14328_s1 + $0x60] sm:$0xff]  ;;  %v360_v38 = vld [vmem:[#allocation2 + $0x8] sm:$0xff]  ;;  %v11263_v46 = vld [vmem:[%s14328_s1 + $0x58] sm:$0xff]  ;;  %s13955_s30 = sld [smem:[#allocation7 + $0x2]] }
  0x35   : > { %1729 = vmatpush.bf16.msra.mxu1 %v11266_v26  ;;  %v359_v35 = vld [vmem:[#allocation2] sm:$0xff]  ;;  %v380_v40 = vpack.c.bf16 %v360_v38, %v360_v38  ;;  %v420_v42 = vld [vmem:[#allocation2 + $0x9] sm:$0xff]  ;;  %v11271_v49 = vld [vmem:[%s14328_s1 + $0x98] sm:$0xff]  ;;  %s11128_s8 = sld [smem:[#allocation5 + $0x4]] }
  0x36   : > { %1788 = vmatpush.bf16.msra.mxu2 %v11274_v27  ;;  %v11272_v36 = vld [vmem:[%s14328_s1 + $0xa0] sm:$0xff]  ;;  %v379_v39 = vpack.c.bf16 %v359_v35, %v359_v35  ;;  %v440_v45 = vpack.c.bf16 %v420_v42, %v420_v42  ;;  %v480_v48 = vld [vmem:[#allocation2 + $0xa] sm:$0xff]  ;;  %v11279_v50 = vld [vmem:[%s14328_s1 + $0xd8] sm:$0xff]  ;;  %v14335_v35 = vmov 0.0|0.0   ;;  %s11177_s10 = sld [smem:[#allocation7 + $0x4]] }
  0x37   : > { %1847 = vmatpush.bf16.msra.mxu3 %v11282_v28  ;;  %v11280_v37 = vld [vmem:[%s14328_s1 + $0xe0] sm:$0xff]  ;;  %400 = vst [vmem:[#allocation3 + $0x1c] sm:$0xf] %v380_v40  ;;  %v500_v53 = vpack.c.bf16 %v480_v48, %v480_v48  ;;  %v11254_v54 = vld [vmem:[%s14328_s1 + $0x10] sm:$0xff]  ;;  %v12049_v1 = vld [vmem:[#allocation2 + $0x18] sm:$0xff] }
  0x38   : > { %1671 = vmatpush.bf16.msra.mxu0 %v11257_v29  ;;  %v419_v41 = vld [vmem:[#allocation2 + $0x1] sm:$0xff]  ;;  %399 = vst [vmem:[#allocation3] sm:$0xf] %v379_v39  ;;  %v11262_v56 = vld [vmem:[%s14328_s1 + $0x50] sm:$0xff]  ;;  %v12051_v2 = vld [vmem:[#allocation2 + $0x19] sm:$0xff] }
  0x39   : > { %1730 = vmatpush.bf16.msra.mxu1 %v11265_v30  ;;  %v439_v44 = vpack.c.bf16 %v419_v41, %v419_v41  ;;  %v479_v47 = vld [vmem:[#allocation2 + $0x2] sm:$0xff]  ;;  %460 = vst [vmem:[#allocation3 + $0x20] sm:$0xf] %v440_v45  ;;  %v11270_v57 = vld [vmem:[%s14328_s1 + $0x90] sm:$0xff]  ;;  %v12053_v3 = vld [vmem:[#allocation2 + $0x1a] sm:$0xff] }
  0x3a   : > { %1789 = vmatpush.bf16.msra.mxu2 %v11273_v31  ;;  %v539_v51 = vld [vmem:[#allocation2 + $0x3] sm:$0xff]  ;;  %v499_v52 = vpack.c.bf16 %v479_v47, %v479_v47  ;;  %v11278_v58 = vld [vmem:[%s14328_s1 + $0xd0] sm:$0xff]  ;;  %520 = vst [vmem:[#allocation3 + $0x24] sm:$0xf] %v500_v53  ;;  %v12075_v13 = vld [vmem:[#allocation2 + $0x1b] sm:$0xff] }
  0x3b   : > { %1848 = vmatpush.bf16.msra.mxu3 %v11281_v32  ;;  %459 = vst [vmem:[#allocation3 + $0x4] sm:$0xf] %v439_v44  ;;  %v559_v55 = vpack.c.bf16 %v539_v51, %v539_v51  ;;  %v12037_v59 = vld [vmem:[#allocation2 + $0x10] sm:$0xff]  ;;  %v12045_v63 = vld [vmem:[#allocation2 + $0x4] sm:$0xff]  ;;  %v12077_v14 = vld [vmem:[#allocation2 + $0x1c] sm:$0xff] }
  0x3c   : > { %1672 = vmatpush.bf16.msra.mxu0 %v11256_v33  ;;  %519 = vst [vmem:[#allocation3 + $0x8] sm:$0xf] %v499_v52  ;;  %v12039_v60 = vld [vmem:[#allocation2 + $0x11] sm:$0xff]  ;;  %v12059_v6 = vld [vmem:[#allocation2 + $0x5] sm:$0xff]  ;;  %v12092_v21 = vld [vmem:[#allocation2 + $0x1d] sm:$0xff]  ;;  %v381_v47 = vpack.c.bf16 %v12037_v59, %v12037_v59 }
  0x3d   : > { %1731 = vmatpush.bf16.msra.mxu1 %v11264_v34  ;;  %v12041_v61 = vld [vmem:[#allocation2 + $0x12] sm:$0xff]  ;;  %v12061_v7 = vld [vmem:[#allocation2 + $0x6] sm:$0xff]  ;;  %579 = vst [vmem:[#allocation3 + $0xc] sm:$0xf] %v559_v55  ;;  %v12097_v23 = vld [vmem:[#allocation2 + $0x1e] sm:$0xff] }
  0x3e   : > { %1790 = vmatpush.bf16.msra.mxu2 %v11272_v36  ;;  %v12043_v62 = vld [vmem:[#allocation2 + $0xb] sm:$0xff]  ;;  %v12055_v4 = vld [vmem:[#allocation2 + $0x13] sm:$0xff]  ;;  %v12069_v10 = vld [vmem:[#allocation2 + $0x20] sm:$0xff]  ;;  %2544 = vst [vmem:[#allocation2 + $0x3] sm:$0xff] %v14337_v17 }
  0x3f   : > { %1849 = vmatpush.bf16.msra.mxu3 %v11280_v37  ;;  %v12047_v0 = vld [vmem:[#allocation2 + $0xc] sm:$0xff]  ;;  %v12057_v5 = vld [vmem:[#allocation2 + $0x14] sm:$0xff]  ;;  %v12071_v11 = vld [vmem:[#allocation2 + $0x21] sm:$0xff]  ;;  %401 = vst [vmem:[#allocation3 + $0x38] sm:$0xf] %v381_v47 }
  0x40   : > { %1673 = vmatpush.bf16.msra.mxu0 %v11255_v43  ;;  %v11253_v8 = vld [vmem:[%s14328_s1 + $0x8] sm:$0xff]  ;;  %v12090_v20 = vld [vmem:[#allocation2 + $0x15] sm:$0xff]  ;;  %v12101_v25 = vld [vmem:[#allocation3 + $0x18] sm:$0xf0]  ;;  %v560_v43 = vpack.c.bf16 %v12043_v62, %v12043_v62 }
  0x41   : > { %1732 = vmatpush.bf16.msra.mxu1 %v11263_v46  ;;  %v11261_v9 = vld [vmem:[%s14328_s1 + $0x48] sm:$0xff]  ;;  %v12094_v22 = vld [vmem:[#allocation2 + $0x16] sm:$0xff]  ;;  %v11252_v33 = vld [vmem:[%s14328_s1] sm:$0xff]  ;;  %2601 = vst [vmem:[#allocation3 + $0x1c] sm:$0xf] %v14335_v35 }
  0x42   : > { %1791 = vmatpush.bf16.msra.mxu2 %v11271_v49  ;;  %v12073_v12 = vld [vmem:[#allocation2 + $0x22] sm:$0xff]  ;;  %v12079_v15 = vld [vmem:[#allocation2 + $0xd] sm:$0xff]  ;;  %v11307_v52 = vld [vmem:[%s14328_s1 + $0x1b8] sm:$0xff]  ;;  %580 = vst [vmem:[#allocation3 + $0x28] sm:$0xf] %v560_v43 }
  0x43   : > { %1850 = vmatpush.bf16.msra.mxu3 %v11279_v50  ;;  %v12081_v16 = vld [vmem:[#allocation2 + $0xe] sm:$0xff]  ;;  %v12099_v24 = vld [vmem:[#allocation3] sm:$0xf]  ;;  %2547 = vst [vmem:[#allocation2 + $0x1b] sm:$0xff] %v14337_v17  ;;  %v11260_v34 = vld [vmem:[%s14328_s1 + $0x40] sm:$0xff] }
  0x44   : > { %v11269_v18 = vld [vmem:[%s14328_s1 + $0x88] sm:$0xff]  ;;  %2545 = vst [vmem:[#allocation2 + $0xb] sm:$0xff] %v14337_v17  ;;  %1674 = vmatpush.bf16.msra.mxu0 %v11254_v54  ;;  %v11268_v38 = vld [vmem:[%s14328_s1 + $0x80] sm:$0xff]  ;;  %v12133_v40 = vld [vmem:[#allocation2 + $0x30] sm:$0xff]  ;;  %v8513_v53 = vor.u32 %v12101_v25, %v12099_v24 }
  0x45   : > { %v11277_v19 = vld [vmem:[%s14328_s1 + $0xc8] sm:$0xff]  ;;  %1733 = vmatpush.bf16.msra.mxu1 %v11262_v56  ;;  %2546 = vst [vmem:[#allocation2 + $0x13] sm:$0xff] %v14337_v17  ;;  %v11276_v39 = vld [vmem:[%s14328_s1 + $0xc0] sm:$0xff]  ;;  %v12135_v41 = vld [vmem:[#allocation2 + $0x31] sm:$0xff] }
  0x46   : > { %1792 = vmatpush.bf16.msra.mxu2 %v11270_v57  ;;  %v12105_v26 = vld [vmem:[#allocation2 + $0x28] sm:$0xff]  ;;  %2600 = vst [vmem:[#allocation3] sm:$0xf] %v14335_v35  ;;  %v12137_v42 = vld [vmem:[#allocation2 + $0x32] sm:$0xff] }
  0x47   : > { %1851 = vmatpush.bf16.msra.mxu3 %v11278_v58  ;;  %v12107_v27 = vld [vmem:[#allocation2 + $0x29] sm:$0xff] }
  0x48   : > { %v12109_v28 = vld [vmem:[#allocation2 + $0x2a] sm:$0xff]  ;;  %1675 = vmatpush.bf16.msra.mxu0 %v11253_v8 }
  0x49   : > { %v12111_v29 = vld [vmem:[#allocation2 + $0x23] sm:$0xff]  ;;  %v11182_v36 = vld [vmem:[#allocation3 + $0x4] sm:$0xf]  ;;  %1734 = vmatpush.bf16.msra.mxu1 %v11261_v9  ;;  %v8520_v49 = vld [vmem:[#allocation3 + $0x8] sm:$0xf] }
  0x4a   : > { %v12113_v30 = vld [vmem:[#allocation2 + $0x24] sm:$0xff]  ;;  %v12144_v45 = vld [vmem:[#allocation2 + $0x2c] sm:$0xff]  ;;  %1793 = vmatpush.bf16.msra.mxu2 %v11269_v18 }
  0x4b   : > { %v12115_v31 = vld [vmem:[#allocation2 + $0x25] sm:$0xff]  ;;  %14342 = vst [vmem:[#allocation15_spill] sm:$0xff] %v12144_v45  ;;  %v12146_v46 = vld [vmem:[#allocation2 + $0x2d] sm:$0xff]  ;;  %1852 = vmatpush.bf16.msra.mxu3 %v11277_v19 }
  0x4c   : > { %14340 = vst [vmem:[#allocation13_spill] sm:$0xff] %v12115_v31  ;;  %v12117_v32 = vld [vmem:[#allocation2 + $0x26] sm:$0xff]  ;;  %v12150_v48 = vld [vmem:[#allocation2 + $0x2e] sm:$0xff]  ;;  %1676 = vmatpush.bf16.msra.mxu0 %v11252_v33  ;;  %v12158_v59 = vld [vmem:[#allocation2 + $0x16] sm:$0xff]  ;;  %v14353_v31 = vmov 0.0|0.0  }
  0x4d   : > { %14341 = vst [vmem:[#allocation14_spill] sm:$0xff] %v12117_v32  ;;  %v8514_v37 = vld [vmem:[#allocation3 + $0x1c] sm:$0xf0]  ;;  %v11186_v50 = vld [vmem:[#allocation3 + $0x20] sm:$0xf0]  ;;  %v2673_v56 = vld [vmem:[#allocation2 + $0x11] sm:$0xff]  ;;  %1735 = vmatpush.bf16.msra.mxu1 %v11260_v34 }
  0x4e   : > { %2548 = vst [vmem:[#allocation2 + $0x23] sm:$0xff] %v14337_v17  ;;  %v12142_v44 = vld [vmem:[#allocation2 + $0x2b] sm:$0xff]  ;;  %v8517_v57 = vor.u32 %v11182_v36, %v8514_v37  ;;  %v12160_v62 = vld [vmem:[#allocation2 + $0x19] sm:$0xff]  ;;  %v8521_v9 = vor.u32 %v11186_v50, %v8520_v49  ;;  %1794 = vmatpush.bf16.msra.mxu2 %v11268_v38  ;;  %v12176_v38 = vld [vmem:[#allocation3 + $0x18] sm:$0xf0]  ;;  %v2691_v50 = vpack.c.bf16 %v2673_v56, %v2673_v56 }
  0x4f   : > { %14343 = vst [vmem:[#allocation16_spill] sm:$0xff] %v12146_v46  ;;  %v2618_v51 = vld [vmem:[#allocation2 + $0x6] sm:$0xff]  ;;  %v2619_v54 = vld [vmem:[#allocation2 + $0xe] sm:$0xff]  ;;  %1853 = vmatpush.bf16.msra.mxu3 %v11276_v39  ;;  %v12166_v25 = vld [vmem:[#allocation2 + $0x17] sm:$0xff]  ;;  %1677 = vmatmul.bf16.vlgmr.msra.gmra.mxu0 %v8513_v53 }
  0x50   : > { %14344 = vst [vmem:[#allocation17_spill] sm:$0xff] %v12150_v48  ;;  %v2672_v55 = vld [vmem:[#allocation2 + $0x9] sm:$0xff]  ;;  %v2636_v58 = vpack.c.bf16 %v2618_v51, %v2618_v51  ;;  %v2727_v18 = vld [vmem:[#allocation2 + $0x14] sm:$0xff]  ;;  %v2637_v34 = vpack.c.bf16 %v2619_v54, %v2619_v54  ;;  %1736 = vmatmul.bf16.vlgmr.msra.gmra.mxu1 %v8517_v57 }
  0x51   : > { %2549 = vst [vmem:[#allocation2 + $0x2b] sm:$0xff] %v14337_v17  ;;  %v2726_v8 = vld [vmem:[#allocation2 + $0xc] sm:$0xff]  ;;  %v12168_v36 = vld [vmem:[#allocation2 + $0x1a] sm:$0xff]  ;;  %v12173_v37 = vld [vmem:[#allocation3] sm:$0xf]  ;;  %1795 = vmatmul.bf16.vlgmr.msra.gmra.mxu2 %v8521_v9  ;;  %v2690_v39 = vpack.c.bf16 %v2672_v55, %v2672_v55 }
  0x52   : > { %v12162_v19 = vld [vmem:[#allocation2 + $0xf] sm:$0xff]  ;;  %2654 = vst [vmem:[#allocation3 + $0x4] sm:$0xf] %v2636_v58  ;;  %2023 = vmatpush.bf16.msrb.mxu2 %v11307_v52 }
  0x53   : > { %v12164_v24 = vld [vmem:[#allocation2 + $0x12] sm:$0xff]  ;;  %14345 = vst [vmem:[#allocation18_spill] sm:$0xff] %v12173_v37 }
  0x54   : > { %v12170_v33 = vld [vmem:[#allocation2 + $0x15] sm:$0xff]  ;;  %4573 = vst [vmem:[#allocation2 + $0xc] sm:$0xff] %v14337_v17  ;;  %v8522_v9 = vld [vmem:[#allocation3 + $0x24] sm:$0xf0] }
  0x55   : > { %4574 = vst [vmem:[#allocation2 + $0x14] sm:$0xff] %v14337_v17  ;;  %v12180_v43 = vld [vmem:[#allocation2 + $0x1e] sm:$0xff]  ;;  %v11183_v58 = vld [vmem:[#allocation3 + $0xc] sm:$0xf] }
  0x56   : > { %14346 = vst [vmem:[#allocation19_spill] sm:$0xff] %v12176_v38  ;;  %v12182_v47 = vld [vmem:[#allocation2 + $0x21] sm:$0xff]  ;;  %v2745_v38 = vpack.c.bf16 %v2727_v18, %v2727_v18  ;;  %v11291_v37 = vld [vmem:[%s14328_s1 + $0x138] sm:$0xff]  ;;  %v382_v18 = vpack.c.bf16 %v12049_v1, %v12049_v1 }
  0x57   : > { %4619 = vst [vmem:[#allocation3] sm:$0xf] %v14335_v35  ;;  %v12184_v49 = vld [vmem:[#allocation2 + $0x1c] sm:$0xff]  ;;  %1905 = vmatpush.bf16.msrb.mxu0 %v11291_v37  ;;  %v441_v37 = vpack.c.bf16 %v12039_v60, %v12039_v60 }
  0x58   : > { %4620 = vst [vmem:[#allocation3 + $0x1c] sm:$0xf] %v14335_v35  ;;  %v12186_v51 = vld [vmem:[#allocation2 + $0x1f] sm:$0xff]  ;;  %v12195_v55 = vld [vmem:[#allocation2 + $0x29] sm:$0xff]  ;;  %v2744_v35 = vpack.c.bf16 %v2726_v8, %v2726_v8 }
  0x59   : > { %2655 = vst [vmem:[#allocation3 + $0x20] sm:$0xf] %v2637_v34  ;;  %v12188_v52 = vld [vmem:[#allocation2 + $0x22] sm:$0xff]  ;;  %v8525_v34 = vor.u32 %v11183_v58, %v8522_v9  ;;  %v12207_v48 = vld [vmem:[#allocation2 + $0x2a] sm:$0xff]  ;;  %v14350_v58 = vmov 0.0  }
  0x5a   : > { %14347 = vst [vmem:[#allocation20_spill] sm:$0xff] %v12188_v52  ;;  %v12190_v53 = vld [vmem:[#allocation2 + $0x1d] sm:$0xff]  ;;  %v12193_v54 = vld [vmem:[#allocation2 + $0x26] sm:$0xff]  ;;  %v11306_v8 = vld [vmem:[%s14328_s1 + $0x1b0] sm:$0xff] }
  0x5b   : > { %4575 = vst [vmem:[#allocation2 + $0x1c] sm:$0xff] %v14337_v17  ;;  %v12197_v57 = vld [vmem:[#allocation2 + $0x24] sm:$0xff]  ;;  %v11299_v17 = vld [vmem:[%s14328_s1 + $0x178] sm:$0xff]  ;;  %1854 = vmatmul.bf16.vlgmr.msra.gmra.mxu3 %v8525_v34  ;;  %2024 = vmatpush.bf16.msrb.mxu2 %v11306_v8  ;;  %v8540_v1 = vld [vmem:[#allocation3 + $0x38] sm:$0xf] }
  0x5c   : > { %2708 = vst [vmem:[#allocation3 + $0x8] sm:$0xf] %v2690_v39  ;;  %v12199_v56 = vld [vmem:[#allocation2 + $0x27] sm:$0xff]  ;;  %v4633_v39 = vld [vmem:[#allocation2 + $0x11] sm:$0xff]  ;;  %1964 = vmatpush.bf16.msrb.mxu1 %v11299_v17 }
  0x5d   : > { %2709 = vst [vmem:[#allocation3 + $0x24] sm:$0xf] %v2691_v50  ;;  %v12209_v32 = vld [vmem:[#allocation2 + $0x25] sm:$0xff]  ;;  %v11290_v50 = vld [vmem:[%s14328_s1 + $0x130] sm:$0xff]  ;;  %v4647_v9 = vpack.c.bf16 %v4633_v39, %v4633_v39 }
  0x5e   : > { %14348 = vst [vmem:[#allocation21_spill] sm:$0xff] %v12207_v48  ;;  %v12223_v48 = vld [vmem:[#allocation3 + $0x4] sm:$0xf]  ;;  %1906 = vmatpush.bf16.msrb.mxu0 %v11290_v50 }
  0x5f   : > { %14349 = vst [vmem:[#allocation22_spill] sm:$0xff] %v12209_v32  ;;  %v11298_v32 = vld [vmem:[%s14328_s1 + $0x170] sm:$0xff] }
  0x60   : > { %4576 = vst [vmem:[#allocation2 + $0x24] sm:$0xff] %v14350_v58  ;;  %1965 = vmatpush.bf16.msrb.mxu1 %v11298_v32  ;;  %v2638_v32 = vpack.c.bf16 %v12158_v59, %v12158_v59  ;;  %v11289_v59 = vld [vmem:[%s14328_s1 + $0x128] sm:$0xff] }
  0x61   : > { %2762 = vst [vmem:[#allocation3 + $0xc] sm:$0xf] %v2744_v35  ;;  %v12227_v35 = vld [vmem:[#allocation3 + $0x1c] sm:$0xf0] }
  0x62   : > { %14351 = vst [vmem:[#allocation23_spill] sm:$0xff] %v12223_v48  ;;  %v4634_v34 = vld [vmem:[#allocation2 + $0x19] sm:$0xff]  ;;  %1907 = vmatpush.bf16.msrb.mxu0 %v11289_v59 }
  0x63   : > { %2763 = vst [vmem:[#allocation3 + $0x28] sm:$0xf] %v2745_v38  ;;  %v4675_v52 = vld [vmem:[#allocation2 + $0x16] sm:$0xff]  ;;  %v4648_v17 = vpack.c.bf16 %v4634_v34, %v4634_v34  ;;  %v12230_v48 = vld [vmem:[#allocation3 + $0x8] sm:$0xf] }
  0x64   : > { %4661 = vst [vmem:[#allocation3 + $0x4] sm:$0xf] %v4647_v9  ;;  %v4717_v46 = vld [vmem:[#allocation2 + $0x1b] sm:$0xff]  ;;  %v4689_v8 = vpack.c.bf16 %v4675_v52, %v4675_v52  ;;  %v12232_v60 = vld [vmem:[#allocation3 + $0x20] sm:$0xf0] }
  0x65   : > { %402 = vst [vmem:[#allocation3 + $0x54] sm:$0xf] %v382_v18  ;;  %v4731_v39 = vpack.c.bf16 %v4717_v46, %v4717_v46  ;;  %v442_v46 = vpack.c.bf16 %v12051_v2, %v12051_v2  ;;  %v561_v2 = vpack.c.bf16 %v12055_v4, %v12055_v4  ;;  %v383_v4 = vpack.c.bf16 %v12069_v10, %v12069_v10  ;;  %v12290_v59 = vld [vmem:[#allocation2 + $0x34] sm:$0xff] }
  0x66   : > { %14352 = vst [vmem:[#allocation24_spill] sm:$0xff] %v12227_v35 }
  0x67   : > { %2602 = vst [vmem:[#allocation3 + $0x38] sm:$0xf] %v14353_v31  ;;  %v4676_v38 = vld [vmem:[#allocation2 + $0x1e] sm:$0xff] }
  0x68   : > { %14354 = vst [vmem:[#allocation25_spill] sm:$0xff] %v12230_v48  ;;  %v4718_v9 = vld [vmem:[#allocation2 + $0x23] sm:$0xff]  ;;  %v4690_v45 = vpack.c.bf16 %v4676_v38, %v4676_v38  ;;  %v12234_v18 = vld [vmem:[#allocation3 + $0xc] sm:$0xf]  ;;  %v2692_v38 = vpack.c.bf16 %v12160_v62, %v12160_v62 }
  0x69   : > { %461 = vst [vmem:[#allocation3 + $0x3c] sm:$0xf] %v441_v37  ;;  %v4732_v50 = vpack.c.bf16 %v4718_v9, %v4718_v9  ;;  %v501_v37 = vpack.c.bf16 %v12041_v61, %v12041_v61  ;;  %v11305_v61 = vld [vmem:[%s14328_s1 + $0x1a8] sm:$0xff]  ;;  %v2693_v9 = vpack.c.bf16 %v12182_v47, %v12182_v47  ;;  %v444_v47 = vpack.c.bf16 %v12107_v27, %v12107_v27  ;;  %v12286_v27 = vld [vmem:[#allocation2 + $0x33] sm:$0xff] }
  0x6a   : > { %4662 = vst [vmem:[#allocation3 + $0x20] sm:$0xf] %v4648_v17  ;;  %v12236_v35 = vld [vmem:[#allocation3 + $0x24] sm:$0xf0]  ;;  %v502_v17 = vpack.c.bf16 %v12053_v3, %v12053_v3  ;;  %v11297_v3 = vld [vmem:[%s14328_s1 + $0x168] sm:$0xff]  ;;  %2025 = vmatpush.bf16.msrb.mxu2 %v11305_v61  ;;  %v503_v61 = vpack.c.bf16 %v12073_v12, %v12073_v12  ;;  %v564_v12 = vpack.c.bf16 %v12142_v44, %v12142_v44 }
  0x6b   : > { %14355 = vst [vmem:[#allocation26_spill] sm:$0xff] %v12232_v60  ;;  %1966 = vmatpush.bf16.msrb.mxu1 %v11297_v3  ;;  %v12292_v3 = vld [vmem:[#allocation2 + $0x35] sm:$0xff]  ;;  %v12315_v44 = vld [vmem:[#allocation2 + $0x42] sm:$0xff] }
  0x6c   : > { %4703 = vst [vmem:[#allocation3 + $0x8] sm:$0xf] %v4689_v8  ;;  %v11192_v52 = vld [vmem:[#allocation3 + $0x50] sm:$0xf0] }
  0x6d   : > { %14356 = vst [vmem:[#allocation27_spill] sm:$0xff] %v12234_v18  ;;  %v8541_v34 = vor.u32 %v11192_v52, %v8540_v1  ;;  %v2639_v1 = vpack.c.bf16 %v12180_v43, %v12180_v43  ;;  %v2746_v43 = vpack.c.bf16 %v12184_v49, %v12184_v49 }
  0x6e   : > { %14357 = vst [vmem:[#allocation28_spill] sm:$0xff] %v12236_v35 }
  0x6f   : > { %4745 = vst [vmem:[#allocation3 + $0xc] sm:$0xf] %v4731_v39  ;;  %1682 = vmatmul.bf16.gmra.mxu0 %v8541_v34  ;;  %v443_v39 = vpack.c.bf16 %v12071_v11, %v12071_v11 }
  0x70   : > { %4704 = vst [vmem:[#allocation3 + $0x24] sm:$0xf] %v4690_v45  ;;  %v11189_v8 = vld [vmem:[#allocation3 + $0x3c] sm:$0xf]  ;;  %v562_v45 = vpack.c.bf16 %v12075_v13, %v12075_v13  ;;  %v384_v13 = vpack.c.bf16 %v12105_v26, %v12105_v26 }
  0x71   : > { %4746 = vst [vmem:[#allocation3 + $0x28] sm:$0xf] %v4732_v50 }
  0x72   : > { %2603 = vst [vmem:[#allocation3 + $0x54] sm:$0xf] %v14353_v31 }
  0x73   : > { %462 = vst [vmem:[#allocation3 + $0x58] sm:$0xf] %v442_v46  ;;  %v2747_v46 = vpack.c.bf16 %v12197_v57, %v12197_v57  ;;  %v366_v57 = vld [vmem:[#allocation2 + $0x38] sm:$0xff] }
  0x74   : > { %2656 = vst [vmem:[#allocation3 + $0x3c] sm:$0xf] %v2638_v32 }
  0x75   : > { %521 = vst [vmem:[#allocation3 + $0x40] sm:$0xf] %v501_v37 }
  0x76   : > { %522 = vst [vmem:[#allocation3 + $0x5c] sm:$0xf] %v502_v17  ;;  %v2640_v17 = vpack.c.bf16 %v12193_v54, %v12193_v54  ;;  %v504_v54 = vpack.c.bf16 %v12109_v28, %v12109_v28  ;;  %v12309_v28 = vld [vmem:[#allocation2 + $0x40] sm:$0xff] }
  0x77   : > { %581 = vst [vmem:[#allocation3 + $0x44] sm:$0xf] %v561_v2  ;;  %v12282_v2 = vld [vmem:[#allocation2 + $0x39] sm:$0xff] }
  0x78   : > { %582 = vst [vmem:[#allocation3 + $0x60] sm:$0xf] %v562_v45  ;;  %v12284_v45 = vld [vmem:[#allocation2 + $0x3a] sm:$0xff] }
  0x79   : > { %403 = vst [vmem:[#allocation3 + $0x70] sm:$0xf] %v383_v4  ;;  %v12294_v4 = vld [vmem:[#allocation2 + $0x36] sm:$0xff] }
  0x7a   : > { %v8542_v10 = vld [vmem:[#allocation3 + $0x54] sm:$0xf0]  ;;  %404 = vst [vmem:[#allocation3 + $0x8c] sm:$0xf] %v384_v13 }
  0x7b   : > { %v8545_v26 = vor.u32 %v11189_v8, %v8542_v10  ;;  %2657 = vst [vmem:[#allocation3 + $0x58] sm:$0xf] %v2639_v1  ;;  %v563_v1 = vpack.c.bf16 %v12111_v29, %v12111_v29  ;;  %v385_v10 = vpack.c.bf16 %v12133_v40, %v12133_v40  ;;  %v12313_v29 = vld [vmem:[#allocation2 + $0x41] sm:$0xff]  ;;  %v445_v40 = vpack.c.bf16 %v12135_v41, %v12135_v41 }
  0x7c   : > { %v8548_v50 = vld [vmem:[#allocation3 + $0x40] sm:$0xf]  ;;  %463 = vst [vmem:[#allocation3 + $0x74] sm:$0xf] %v443_v39  ;;  %v11304_v39 = vld [vmem:[%s14328_s1 + $0x1a0] sm:$0xff] }
  0x7d   : > { %1741 = vmatmul.bf16.gmra.mxu1 %v8545_v26  ;;  %v11193_v11 = vld [vmem:[#allocation3 + $0x58] sm:$0xf0]  ;;  %2710 = vst [vmem:[#allocation3 + $0x40] sm:$0xf] %v2692_v38  ;;  %2026 = vmatpush.bf16.msrb.mxu2 %v11304_v39  ;;  %v386_v26 = vpack.c.bf16 %v366_v57, %v366_v57 }
  0x7e   : > { %v8549_v62 = vor.u32 %v11193_v11, %v8548_v50  ;;  %2711 = vst [vmem:[#allocation3 + $0x5c] sm:$0xf] %v2693_v9  ;;  %v11190_v32 = vld [vmem:[#allocation3 + $0x44] sm:$0xf]  ;;  %v11288_v38 = vld [vmem:[%s14328_s1 + $0x120] sm:$0xff] }
  0x7f   : > { %v8550_v52 = vld [vmem:[#allocation3 + $0x5c] sm:$0xf0]  ;;  %2764 = vst [vmem:[#allocation3 + $0x44] sm:$0xf] %v2746_v43  ;;  %1908 = vmatpush.bf16.msrb.mxu0 %v11288_v38  ;;  %v12317_v9 = vld [vmem:[#allocation2 + $0x3b] sm:$0xff] }
  0x80   : > { %1800 = vmatmul.bf16.gmra.mxu2 %v8549_v62  ;;  %v8553_v37 = vor.u32 %v11190_v32, %v8550_v52  ;;  %2765 = vst [vmem:[#allocation3 + $0x60] sm:$0xf] %v2747_v46  ;;  %v8568_v49 = vld [vmem:[#allocation3 + $0x70] sm:$0xf]  ;;  %v12319_v43 = vld [vmem:[#allocation2 + $0x3c] sm:$0xff] }
  0x81   : > { %v11199_v34 = vld [vmem:[#allocation3 + $0x88] sm:$0xf0]  ;;  %2604 = vst [vmem:[#allocation3 + $0x70] sm:$0xf] %v14353_v31  ;;  %v12321_v50 = vld [vmem:[#allocation2 + $0x3d] sm:$0xff] }
  0x82   : > { %1859 = vmatmul.bf16.gmra.mxu3 %v8553_v37  ;;  %v8569_v8 = vor.u32 %v11199_v34, %v8568_v49  ;;  %2605 = vst [vmem:[#allocation3 + $0x8c] sm:$0xf] %v14353_v31  ;;  %v12323_v46 = vld [vmem:[#allocation2 + $0x3e] sm:$0xff] }
  0x83   : > { %464 = vst [vmem:[#allocation3 + $0x90] sm:$0xf] %v444_v47  ;;  %v11196_v13 = vld [vmem:[#allocation3 + $0x74] sm:$0xf]  ;;  %v2694_v47 = vpack.c.bf16 %v12195_v55, %v12195_v55 }
  0x84   : > { %1687 = vmatmul.bf16.gmra.mxu0 %v8569_v8  ;;  %2550 = vst [vmem:[#allocation2 + $0x33] sm:$0xff] %v14350_v58  ;;  %v446_v8 = vpack.c.bf16 %v12282_v2, %v12282_v2  ;;  %v11296_v2 = vld [vmem:[%s14328_s1 + $0x160] sm:$0xff] }
  0x85   : > { %2658 = vst [vmem:[#allocation3 + $0x74] sm:$0xf] %v2640_v17  ;;  %1967 = vmatpush.bf16.msrb.mxu1 %v11296_v2 }
  0x86   : > { %523 = vst [vmem:[#allocation3 + $0x78] sm:$0xf] %v503_v61 }
  0x87   : > { %524 = vst [vmem:[#allocation3 + $0x94] sm:$0xf] %v504_v54 }
  0x88   : > { %583 = vst [vmem:[#allocation3 + $0x7c] sm:$0xf] %v563_v1 }
  0x89   : > { %584 = vst [vmem:[#allocation3 + $0x98] sm:$0xf] %v564_v12 }
  0x8a   : > { %v8570_v11 = vld [vmem:[#allocation3 + $0x8c] sm:$0xf0]  ;;  %2551 = vst [vmem:[#allocation2 + $0x3b] sm:$0xff] %v14350_v58 }
  0x8b   : > { %v8573_v62 = vor.u32 %v11196_v13, %v8570_v11  ;;  %v2623_v32 = vld [vmem:[#allocation2 + $0x2e] sm:$0xff]  ;;  %405 = vst [vmem:[#allocation3 + $0xa8] sm:$0xf] %v385_v10 }
  0x8c   : > { %v2677_v52 = vld [vmem:[#allocation2 + $0x31] sm:$0xff]  ;;  %v2641_v49 = vpack.c.bf16 %v2623_v32, %v2623_v32  ;;  %406 = vst [vmem:[#allocation3 + $0xc4] sm:$0xf] %v386_v26  ;;  %v368_v26 = vld [vmem:[#allocation2 + $0x48] sm:$0xff] }
  0x8d   : > { %v2730_v37 = vld [vmem:[#allocation2 + $0x2c] sm:$0xff]  ;;  %v2695_v34 = vpack.c.bf16 %v2677_v52, %v2677_v52  ;;  %1746 = vmatmul.bf16.gmra.mxu1 %v8573_v62  ;;  %v8576_v57 = vld [vmem:[#allocation3 + $0x78] sm:$0xf]  ;;  %465 = vst [vmem:[#allocation3 + $0xac] sm:$0xf] %v445_v40 }
  0x8e   : > { %v2748_v17 = vpack.c.bf16 %v2730_v37, %v2730_v37  ;;  %2659 = vst [vmem:[#allocation3 + $0x90] sm:$0xf] %v2641_v49  ;;  %v11200_v41 = vld [vmem:[#allocation3 + $0x90] sm:$0xf0]  ;;  %v428_v62 = vld [vmem:[#allocation2 + $0x49] sm:$0xff] }
  0x8f   : > { %v8577_v61 = vor.u32 %v11200_v41, %v8576_v57  ;;  %2712 = vst [vmem:[#allocation3 + $0x78] sm:$0xf] %v2694_v47  ;;  %v11197_v54 = vld [vmem:[#allocation3 + $0x7c] sm:$0xf]  ;;  %v12336_v32 = vld [vmem:[#allocation2 + $0x4a] sm:$0xff]  ;;  %v505_v47 = vpack.c.bf16 %v12137_v42, %v12137_v42  ;;  %v506_v57 = vpack.c.bf16 %v12284_v45, %v12284_v45  ;;  %v565_v41 = vpack.c.bf16 %v12286_v27, %v12286_v27 }
  0x90   : > { %2713 = vst [vmem:[#allocation3 + $0x94] sm:$0xf] %v2695_v34  ;;  %v8578_v13 = vld [vmem:[#allocation3 + $0x94] sm:$0xf0]  ;;  %v12343_v37 = vld [vmem:[#allocation2 + $0x44] sm:$0xff]  ;;  %v566_v42 = vpack.c.bf16 %v12317_v9, %v12317_v9 }
  0x91   : > { %1805 = vmatmul.bf16.gmra.mxu2 %v8577_v61  ;;  %v8581_v55 = vor.u32 %v11197_v54, %v8578_v13  ;;  %v2731_v1 = vld [vmem:[#allocation2 + $0x34] sm:$0xff]  ;;  %2766 = vst [vmem:[#allocation3 + $0x7c] sm:$0xf] %v2748_v17  ;;  %v12338_v52 = vld [vmem:[#allocation2 + $0x43] sm:$0xff]  ;;  %v388_v54 = vpack.c.bf16 %v368_v26, %v368_v26 }
  0x92   : > { %v2624_v12 = vld [vmem:[#allocation2 + $0x36] sm:$0xff]  ;;  %v2749_v39 = vpack.c.bf16 %v2731_v1, %v2731_v1  ;;  %v8596_v38 = vld [vmem:[#allocation3 + $0xa8] sm:$0xf]  ;;  %466 = vst [vmem:[#allocation3 + $0xc8] sm:$0xf] %v446_v8  ;;  %v12345_v49 = vld [vmem:[#allocation2 + $0x45] sm:$0xff]  ;;  %v387_v8 = vpack.c.bf16 %v12309_v28, %v12309_v28  ;;  %v448_v1 = vpack.c.bf16 %v428_v62, %v428_v62 }
  0x93   : > { %1864 = vmatmul.bf16.gmra.mxu3 %v8581_v55  ;;  %v11206_v10 = vld [vmem:[#allocation3 + $0xc0] sm:$0xf0]  ;;  %2606 = vst [vmem:[#allocation3 + $0xa8] sm:$0xf] %v14353_v31  ;;  %v2642_v40 = vpack.c.bf16 %v2624_v12, %v2624_v12  ;;  %v2678_v13 = vld [vmem:[#allocation2 + $0x39] sm:$0xff]  ;;  %v447_v55 = vpack.c.bf16 %v12313_v29, %v12313_v29 }
  0x94   : > { %2767 = vst [vmem:[#allocation3 + $0x98] sm:$0xf] %v2749_v39  ;;  %v8597_v11 = vor.u32 %v11206_v10, %v8596_v38  ;;  %v12347_v34 = vld [vmem:[#allocation2 + $0x46] sm:$0xff]  ;;  %v11203_v17 = vld [vmem:[#allocation3 + $0xac] sm:$0xf]  ;;  %v2696_v9 = vpack.c.bf16 %v2678_v13, %v2678_v13 }
  0x95   : > { %2607 = vst [vmem:[#allocation3 + $0xc4] sm:$0xf] %v14353_v31  ;;  %v548_v62 = vld [vmem:[#allocation2 + $0x4b] sm:$0xff] }
  0x96   : > { %1692 = vmatmul.bf16.gmra.mxu0 %v8597_v11  ;;  %2552 = vst [vmem:[#allocation2 + $0x43] sm:$0xff] %v14350_v58  ;;  %v507_v11 = vpack.c.bf16 %v12315_v44, %v12315_v44 }
  0x97   : > { %2660 = vst [vmem:[#allocation3 + $0xac] sm:$0xf] %v2642_v40 }
  0x98   : > { %525 = vst [vmem:[#allocation3 + $0xb0] sm:$0xf] %v505_v47 }
  0x99   : > { %v8598_v61 = vld [vmem:[#allocation3 + $0xc4] sm:$0xf0]  ;;  %526 = vst [vmem:[#allocation3 + $0xcc] sm:$0xf] %v506_v57  ;;  %v508_v57 = vpack.c.bf16 %v12336_v32, %v12336_v32 }
  0x9a   : > { %v8601_v45 = vor.u32 %v11203_v17, %v8598_v61  ;;  %585 = vst [vmem:[#allocation3 + $0xb4] sm:$0xf] %v565_v41  ;;  %v369_v17 = vld [vmem:[#allocation2 + $0x50] sm:$0xff]  ;;  %v370_v61 = vld [vmem:[#allocation2 + $0x58] sm:$0xff] }
  0x9b   : > { %586 = vst [vmem:[#allocation3 + $0xd0] sm:$0xf] %v566_v42  ;;  %v389_v32 = vpack.c.bf16 %v369_v17, %v369_v17  ;;  %v12388_v17 = vld [vmem:[#allocation2 + $0x5d] sm:$0xff] }
  0x9c   : > { %407 = vst [vmem:[#allocation3 + $0xe0] sm:$0xf] %v387_v8  ;;  %v567_v8 = vpack.c.bf16 %v12338_v52, %v12338_v52  ;;  %v390_v52 = vpack.c.bf16 %v370_v61, %v370_v61  ;;  %v549_v61 = vld [vmem:[#allocation2 + $0x53] sm:$0xff] }
  0x9d   : > { %1751 = vmatmul.bf16.gmra.mxu1 %v8601_v45  ;;  %v2625_v27 = vld [vmem:[#allocation2 + $0x3e] sm:$0xff]  ;;  %408 = vst [vmem:[#allocation3 + $0xfc] sm:$0xf] %v388_v54  ;;  %v568_v45 = vpack.c.bf16 %v548_v62, %v548_v62 }
  0x9e   : > { %v2679_v12 = vld [vmem:[#allocation2 + $0x41] sm:$0xff]  ;;  %v2643_v38 = vpack.c.bf16 %v2625_v27, %v2625_v27  ;;  %467 = vst [vmem:[#allocation3 + $0xe4] sm:$0xf] %v447_v55  ;;  %v11303_v54 = vld [vmem:[%s14328_s1 + $0x198] sm:$0xff] }
  0x9f   : > { %v2732_v39 = vld [vmem:[#allocation2 + $0x3c] sm:$0xff]  ;;  %v2697_v28 = vpack.c.bf16 %v2679_v12, %v2679_v12  ;;  %v8604_v10 = vld [vmem:[#allocation3 + $0xb0] sm:$0xf]  ;;  %468 = vst [vmem:[#allocation3 + $0x100] sm:$0xf] %v448_v1  ;;  %2027 = vmatpush.bf16.msrb.mxu2 %v11303_v54  ;;  %v372_v54 = vld [vmem:[#allocation2 + $0x68] sm:$0xff] }
  0xa0   : > { %v2750_v26 = vpack.c.bf16 %v2732_v39, %v2732_v39  ;;  %2661 = vst [vmem:[#allocation3 + $0xc8] sm:$0xf] %v2643_v38  ;;  %v11207_v40 = vld [vmem:[#allocation3 + $0xc8] sm:$0xf0]  ;;  %v430_v55 = vld [vmem:[#allocation2 + $0x59] sm:$0xff] }
  0xa1   : > { %v8605_v2 = vor.u32 %v11207_v40, %v8604_v10  ;;  %2714 = vst [vmem:[#allocation3 + $0xb0] sm:$0xf] %v2696_v9  ;;  %v11204_v29 = vld [vmem:[#allocation3 + $0xb4] sm:$0xf]  ;;  %v429_v1 = vld [vmem:[#allocation2 + $0x51] sm:$0xff]  ;;  %v12378_v10 = vld [vmem:[#allocation2 + $0x61] sm:$0xff] }
  0xa2   : > { %2715 = vst [vmem:[#allocation3 + $0xcc] sm:$0xf] %v2697_v28  ;;  %v8606_v47 = vld [vmem:[#allocation3 + $0xcc] sm:$0xf0]  ;;  %v12376_v28 = vld [vmem:[#allocation2 + $0x60] sm:$0xff] }
  0xa3   : > { %1810 = vmatmul.bf16.gmra.mxu2 %v8605_v2  ;;  %v8609_v41 = vor.u32 %v11204_v29, %v8606_v47  ;;  %2768 = vst [vmem:[#allocation3 + $0xb4] sm:$0xf] %v2750_v26  ;;  %v8624_v42 = vld [vmem:[#allocation3 + $0xe0] sm:$0xf]  ;;  %v490_v9 = vld [vmem:[#allocation2 + $0x5a] sm:$0xff]  ;;  %v449_v29 = vpack.c.bf16 %v429_v1, %v429_v1 }
  0xa4   : > { %v11213_v44 = vld [vmem:[#allocation3 + $0xf8] sm:$0xf0]  ;;  %2608 = vst [vmem:[#allocation3 + $0xe0] sm:$0xf] %v14353_v31  ;;  %v11287_v39 = vld [vmem:[%s14328_s1 + $0x118] sm:$0xff] }
  0xa5   : > { %1869 = vmatmul.bf16.gmra.mxu3 %v8609_v41  ;;  %v8625_v13 = vor.u32 %v11213_v44, %v8624_v42  ;;  %527 = vst [vmem:[#allocation3 + $0xe8] sm:$0xf] %v507_v11  ;;  %v11210_v27 = vld [vmem:[#allocation3 + $0xe4] sm:$0xf]  ;;  %v11295_v38 = vld [vmem:[%s14328_s1 + $0x158] sm:$0xff]  ;;  %v12380_v26 = vld [vmem:[#allocation2 + $0x62] sm:$0xff]  ;;  %v450_v41 = vpack.c.bf16 %v430_v55, %v430_v55  ;;  %1909 = vmatpush.bf16.msrb.mxu0 %v11287_v39 }
  0xa6   : > { %v8626_v12 = vld [vmem:[#allocation3 + $0xfc] sm:$0xf0]  ;;  %528 = vst [vmem:[#allocation3 + $0x104] sm:$0xf] %v508_v57  ;;  %v550_v40 = vld [vmem:[#allocation2 + $0x5b] sm:$0xff]  ;;  %v489_v11 = vld [vmem:[#allocation2 + $0x52] sm:$0xff]  ;;  %1968 = vmatpush.bf16.msrb.mxu1 %v11295_v38  ;;  %v569_v38 = vpack.c.bf16 %v549_v61, %v549_v61 }
  0xa7   : > { %1697 = vmatmul.bf16.gmra.mxu0 %v8625_v13  ;;  %587 = vst [vmem:[#allocation3 + $0xec] sm:$0xf] %v567_v8  ;;  %v12382_v2 = vld [vmem:[#allocation2 + $0x54] sm:$0xff]  ;;  %v8629_v62 = vor.u32 %v11210_v27, %v8626_v12  ;;  %v12384_v47 = vld [vmem:[#allocation2 + $0x5c] sm:$0xff]  ;;  %v12395_v44 = vld [vmem:[#allocation2 + $0x69] sm:$0xff]  ;;  %v509_v13 = vpack.c.bf16 %v489_v11, %v489_v11  ;;  %v510_v27 = vpack.c.bf16 %v490_v9, %v490_v9 }
  0xa8   : > { %588 = vst [vmem:[#allocation3 + $0x108] sm:$0xf] %v568_v45  ;;  %v12386_v57 = vld [vmem:[#allocation2 + $0x55] sm:$0xff]  ;;  %v12392_v8 = vld [vmem:[#allocation2 + $0x5e] sm:$0xff]  ;;  %v12397_v45 = vld [vmem:[#allocation2 + $0x6a] sm:$0xff] }
  0xa9   : > { %14358 = vst [vmem:[#allocation29_spill] sm:$0xff] %v12382_v2  ;;  %v12390_v42 = vld [vmem:[#allocation2 + $0x56] sm:$0xff]  ;;  %v12399_v1 = vld [vmem:[#allocation2 + $0x63] sm:$0xff] }
  0xaa   : > { %409 = vst [vmem:[#allocation3 + $0x118] sm:$0xf] %v389_v32  ;;  %v12401_v55 = vld [vmem:[#allocation2 + $0x64] sm:$0xff]  ;;  %v12408_v9 = vld [vmem:[#allocation2 + $0x70] sm:$0xff] }
  0xab   : > { %14359 = vst [vmem:[#allocation30_spill] sm:$0xff] %v12384_v47  ;;  %v12405_v39 = vld [vmem:[#allocation2 + $0x66] sm:$0xff]  ;;  %v12415_v61 = vld [vmem:[#allocation2 + $0x72] sm:$0xff] }
  0xac   : > { %14360 = vst [vmem:[#allocation31_spill] sm:$0xff] %v12386_v57  ;;  %v8632_v32 = vld [vmem:[#allocation3 + $0xe8] sm:$0xf] }
  0xad   : > { %14361 = vst [vmem:[#allocation32_spill] sm:$0xff] %v12388_v17  ;;  %1756 = vmatmul.bf16.gmra.mxu1 %v8629_v62  ;;  %v11214_v12 = vld [vmem:[#allocation3 + $0x100] sm:$0xf0]  ;;  %v391_v62 = vpack.c.bf16 %v12376_v28, %v12376_v28  ;;  %v451_v28 = vpack.c.bf16 %v12378_v10, %v12378_v10  ;;  %v11302_v10 = vld [vmem:[%s14328_s1 + $0x190] sm:$0xff] }
  0xae   : > { %410 = vst [vmem:[#allocation3 + $0x134] sm:$0xf] %v390_v52  ;;  %v12403_v52 = vld [vmem:[#allocation2 + $0x65] sm:$0xff]  ;;  %v11211_v18 = vld [vmem:[#allocation3 + $0xec] sm:$0xf]  ;;  %v8633_v35 = vor.u32 %v11214_v12, %v8632_v32  ;;  %2028 = vmatpush.bf16.msrb.mxu2 %v11302_v10 }
  0xaf   : > { %14362 = vst [vmem:[#allocation33_spill] sm:$0xff] %v12390_v42  ;;  %v8634_v11 = vld [vmem:[#allocation3 + $0x104] sm:$0xf0]  ;;  %v12574_v17 = vld [vmem:[#allocation2 + $0x96] sm:$0xff] }
  0xb0   : > { %14363 = vst [vmem:[#allocation34_spill] sm:$0xff] %v12392_v8  ;;  %v8637_v48 = vor.u32 %v11211_v18, %v8634_v11  ;;  %v12417_v32 = vld [vmem:[#allocation2 + $0x6b] sm:$0xff] }
  0xb1   : > { %2555 = vst [vmem:[#allocation2 + $0x5b] sm:$0xff] %v14350_v58  ;;  %v8652_v60 = vld [vmem:[#allocation3 + $0x118] sm:$0xf]  ;;  %v12419_v18 = vld [vmem:[#allocation2 + $0x6c] sm:$0xff] }
  0xb2   : > { %469 = vst [vmem:[#allocation3 + $0x11c] sm:$0xf] %v449_v29  ;;  %v570_v29 = vpack.c.bf16 %v550_v40, %v550_v40  ;;  %v12423_v12 = vld [vmem:[#allocation2 + $0x6e] sm:$0xff] }
  0xb3   : > { %14364 = vst [vmem:[#allocation35_spill] sm:$0xff] %v12401_v55  ;;  %1815 = vmatmul.bf16.gmra.mxu2 %v8633_v35 }
  0xb4   : > { %470 = vst [vmem:[#allocation3 + $0x138] sm:$0xf] %v450_v41  ;;  %v12413_v41 = vld [vmem:[#allocation2 + $0x71] sm:$0xff] }
  0xb5   : > { %14365 = vst [vmem:[#allocation36_spill] sm:$0xff] %v12403_v52  ;;  %v11220_v55 = vld [vmem:[#allocation3 + $0x130] sm:$0xf0]  ;;  %1874 = vmatmul.bf16.gmra.mxu3 %v8637_v48 }
  0xb6   : > { %14366 = vst [vmem:[#allocation37_spill] sm:$0xff] %v12405_v39  ;;  %v8653_v40 = vor.u32 %v11220_v55, %v8652_v60 }
  0xb7   : > { %2556 = vst [vmem:[#allocation2 + $0x63] sm:$0xff] %v14350_v58 }
  0xb8   : > { %529 = vst [vmem:[#allocation3 + $0x120] sm:$0xf] %v509_v13  ;;  %v392_v13 = vpack.c.bf16 %v372_v54, %v372_v54  ;;  %1702 = vmatmul.bf16.gmra.mxu0 %v8653_v40 }
  0xb9   : > { %530 = vst [vmem:[#allocation3 + $0x13c] sm:$0xf] %v510_v27  ;;  %v12421_v27 = vld [vmem:[#allocation2 + $0x6d] sm:$0xff]  ;;  %v11217_v54 = vld [vmem:[#allocation3 + $0x11c] sm:$0xf] }
  0xba   : > { %589 = vst [vmem:[#allocation3 + $0x124] sm:$0xf] %v569_v38 }
  0xbb   : > { %2611 = vst [vmem:[#allocation3 + $0x134] sm:$0xf] %v14353_v31  ;;  %v8654_v35 = vld [vmem:[#allocation3 + $0x134] sm:$0xf0] }
  0xbc   : > { %590 = vst [vmem:[#allocation3 + $0x140] sm:$0xf] %v570_v29 }
  0xbd   : > { %14367 = vst [vmem:[#allocation38_spill] sm:$0xff] %v12419_v18 }
  0xbe   : > { %14368 = vst [vmem:[#allocation39_spill] sm:$0xff] %v12421_v27  ;;  %v2629_v38 = vld [vmem:[#allocation2 + $0x5e] sm:$0xff]  ;;  %v452_v27 = vpack.c.bf16 %v12395_v44, %v12395_v44 }
  0xbf   : > { %14369 = vst [vmem:[#allocation40_spill] sm:$0xff] %v12423_v12  ;;  %v2683_v11 = vld [vmem:[#allocation2 + $0x61] sm:$0xff]  ;;  %v2647_v60 = vpack.c.bf16 %v2629_v38, %v2629_v38  ;;  %v12439_v38 = vld [vmem:[#allocation2 + $0x78] sm:$0xff] }
  0xc0   : > { %2557 = vst [vmem:[#allocation2 + $0x6b] sm:$0xff] %v14350_v58  ;;  %v2736_v52 = vld [vmem:[#allocation2 + $0x5c] sm:$0xff]  ;;  %v2701_v55 = vpack.c.bf16 %v2683_v11, %v2683_v11  ;;  %v11221_v48 = vld [vmem:[#allocation3 + $0x138] sm:$0xf0]  ;;  %v12445_v11 = vld [vmem:[#allocation2 + $0x73] sm:$0xff]  ;;  %v394_v42 = vpack.c.bf16 %v12439_v38, %v12439_v38 }
  0xc1   : > { %411 = vst [vmem:[#allocation3 + $0x150] sm:$0xf] %v391_v62  ;;  %v2754_v29 = vpack.c.bf16 %v2736_v52, %v2736_v52  ;;  %v11286_v62 = vld [vmem:[%s14328_s1 + $0x110] sm:$0xff]  ;;  %v11218_v40 = vld [vmem:[#allocation3 + $0x124] sm:$0xf]  ;;  %v12441_v44 = vld [vmem:[#allocation2 + $0x79] sm:$0xff] }
  0xc2   : > { %412 = vst [vmem:[#allocation3 + $0x16c] sm:$0xf] %v392_v13  ;;  %v11294_v52 = vld [vmem:[%s14328_s1 + $0x150] sm:$0xff]  ;;  %v8657_v13 = vor.u32 %v11217_v54, %v8654_v35  ;;  %1910 = vmatpush.bf16.msrb.mxu0 %v11286_v62  ;;  %v11293_v38 = vld [vmem:[%s14328_s1 + $0x148] sm:$0xff] }
  0xc3   : > { %471 = vst [vmem:[#allocation3 + $0x154] sm:$0xf] %v451_v28  ;;  %v12443_v28 = vld [vmem:[#allocation2 + $0x7a] sm:$0xff]  ;;  %1969 = vmatpush.bf16.msrb.mxu1 %v11294_v52 }
  0xc4   : > { %2665 = vst [vmem:[#allocation3 + $0x138] sm:$0xf] %v2647_v60  ;;  %v12447_v60 = vld [vmem:[#allocation2 + $0x74] sm:$0xff]  ;;  %1761 = vmatmul.bf16.gmra.mxu1 %v8657_v13  ;;  %v572_v13 = vpack.c.bf16 %v12417_v32, %v12417_v32  ;;  %v393_v32 = vpack.c.bf16 %v12408_v9, %v12408_v9  ;;  %v11301_v9 = vld [vmem:[%s14328_s1 + $0x188] sm:$0xff] }
  0xc5   : > { %2719 = vst [vmem:[#allocation3 + $0x13c] sm:$0xf] %v2701_v55  ;;  %v12449_v12 = vld [vmem:[#allocation2 + $0x75] sm:$0xff]  ;;  %v8660_v55 = vld [vmem:[#allocation3 + $0x120] sm:$0xf]  ;;  %2029 = vmatpush.bf16.msrb.mxu2 %v11301_v9 }
  0xc6   : > { %2772 = vst [vmem:[#allocation3 + $0x124] sm:$0xf] %v2754_v29  ;;  %v12451_v54 = vld [vmem:[#allocation2 + $0x76] sm:$0xff]  ;;  %v8662_v29 = vld [vmem:[#allocation3 + $0x13c] sm:$0xf0]  ;;  %v8661_v52 = vor.u32 %v11221_v48, %v8660_v55 }
  0xc7   : > { %14370 = vst [vmem:[#allocation41_spill] sm:$0xff] %v12447_v60  ;;  %v2737_v39 = vld [vmem:[#allocation2 + $0x64] sm:$0xff]  ;;  %v12470_v48 = vld [vmem:[#allocation2 + $0x7b] sm:$0xff]  ;;  %1970 = vmatpush.bf16.msrb.mxu1 %v11293_v38  ;;  %v513_v38 = vpack.c.bf16 %v12415_v61, %v12415_v61 }
  0xc8   : > { %14371 = vst [vmem:[#allocation42_spill] sm:$0xff] %v12449_v12  ;;  %v2630_v35 = vld [vmem:[#allocation2 + $0x66] sm:$0xff]  ;;  %v2755_v18 = vpack.c.bf16 %v2737_v39, %v2737_v39  ;;  %v8680_v8 = vld [vmem:[#allocation3 + $0x150] sm:$0xf]  ;;  %v511_v12 = vpack.c.bf16 %v12380_v26, %v12380_v26  ;;  %1820 = vmatmul.bf16.gmra.mxu2 %v8661_v52  ;;  %v574_v61 = vpack.c.bf16 %v12470_v48, %v12470_v48 }
  0xc9   : > { %472 = vst [vmem:[#allocation3 + $0x170] sm:$0xf] %v452_v27  ;;  %v2648_v10 = vpack.c.bf16 %v2630_v35, %v2630_v35  ;;  %v11227_v62 = vld [vmem:[#allocation3 + $0x168] sm:$0xf0]  ;;  %v512_v27 = vpack.c.bf16 %v12397_v45, %v12397_v45  ;;  %v8665_v35 = vor.u32 %v11218_v40, %v8662_v29  ;;  %v2684_v26 = vld [vmem:[#allocation2 + $0x69] sm:$0xff]  ;;  %v12466_v60 = vld [vmem:[#allocation2 + $0x81] sm:$0xff] }
  0xca   : > { %14372 = vst [vmem:[#allocation43_spill] sm:$0xff] %v12451_v54  ;;  %v11224_v39 = vld [vmem:[#allocation3 + $0x154] sm:$0xf]  ;;  %v571_v54 = vpack.c.bf16 %v12399_v1, %v12399_v1  ;;  %v12468_v45 = vld [vmem:[#allocation2 + $0x82] sm:$0xff] }
  0xcb   : > { %2558 = vst [vmem:[#allocation2 + $0x73] sm:$0xff] %v14350_v58  ;;  %v12476_v40 = vld [vmem:[#allocation2 + $0x7d] sm:$0xff]  ;;  %1879 = vmatmul.bf16.gmra.mxu3 %v8665_v35  ;;  %v11285_v52 = vld [vmem:[%s14328_s1 + $0x108] sm:$0xff]  ;;  %v515_v47 = vpack.c.bf16 %v12468_v45, %v12468_v45 }
  0xcc   : > { %2612 = vst [vmem:[#allocation3 + $0x150] sm:$0xf] %v14353_v31  ;;  %v12478_v29 = vld [vmem:[#allocation2 + $0x7e] sm:$0xff]  ;;  %1911 = vmatpush.bf16.msrb.mxu0 %v11285_v52  ;;  %v12514_v9 = vld [vmem:[#allocation2 + $0x86] sm:$0xff] }
  0xcd   : > { %2773 = vst [vmem:[#allocation3 + $0x140] sm:$0xf] %v2755_v18  ;;  %v12464_v18 = vld [vmem:[#allocation2 + $0x80] sm:$0xff] }
  0xce   : > { %2613 = vst [vmem:[#allocation3 + $0x16c] sm:$0xf] %v14353_v31  ;;  %v8681_v31 = vor.u32 %v11227_v62, %v8680_v8  ;;  %v2702_v62 = vpack.c.bf16 %v2684_v26, %v2684_v26  ;;  %v11292_v45 = vld [vmem:[%s14328_s1 + $0x140] sm:$0xff] }
  0xcf   : > { %2666 = vst [vmem:[#allocation3 + $0x154] sm:$0xf] %v2648_v10  ;;  %v12472_v10 = vld [vmem:[#allocation2 + $0x7c] sm:$0xff]  ;;  %1971 = vmatpush.bf16.msrb.mxu1 %v11292_v45 }
  0xd0   : > { %531 = vst [vmem:[#allocation3 + $0x158] sm:$0xf] %v511_v12  ;;  %v8682_v8 = vld [vmem:[#allocation3 + $0x16c] sm:$0xf0]  ;;  %1707 = vmatmul.bf16.gmra.mxu0 %v8681_v31 }
  0xd1   : > { %532 = vst [vmem:[#allocation3 + $0x174] sm:$0xf] %v512_v27  ;;  %v8685_v26 = vor.u32 %v11224_v39, %v8682_v8  ;;  %v12508_v8 = vld [vmem:[#allocation2 + $0x83] sm:$0xff] }
  0xd2   : > { %v2631_v55 = vld [vmem:[#allocation2 + $0x6e] sm:$0xff]  ;;  %591 = vst [vmem:[#allocation3 + $0x15c] sm:$0xf] %v571_v54 }
  0xd3   : > { %v2685_v1 = vld [vmem:[#allocation2 + $0x71] sm:$0xff]  ;;  %14373 = vst [vmem:[#allocation44_spill] sm:$0xff] %v12472_v10  ;;  %v2649_v12 = vpack.c.bf16 %v2631_v55, %v2631_v55 }
  0xd4   : > { %592 = vst [vmem:[#allocation3 + $0x178] sm:$0xf] %v572_v13  ;;  %v2738_v27 = vld [vmem:[#allocation2 + $0x6c] sm:$0xff]  ;;  %v2703_v54 = vpack.c.bf16 %v2685_v1, %v2685_v1  ;;  %v454_v1 = vpack.c.bf16 %v12441_v44, %v12441_v44  ;;  %v12510_v44 = vld [vmem:[#allocation2 + $0x84] sm:$0xff]  ;;  %1766 = vmatmul.bf16.gmra.mxu1 %v8685_v26  ;;  %v12570_v10 = vld [vmem:[#allocation2 + $0x94] sm:$0xff] }
  0xd5   : > { %14374 = vst [vmem:[#allocation45_spill] sm:$0xff] %v12476_v40  ;;  %v2756_v13 = vpack.c.bf16 %v2738_v27, %v2738_v27 }
  0xd6   : > { %14375 = vst [vmem:[#allocation46_spill] sm:$0xff] %v12478_v29 }
  0xd7   : > { %2559 = vst [vmem:[#allocation2 + $0x7b] sm:$0xff] %v14350_v58  ;;  %v8688_v35 = vld [vmem:[#allocation3 + $0x158] sm:$0xf]  ;;  %v453_v58 = vpack.c.bf16 %v12413_v41, %v12413_v41 }
  0xd8   : > { %2667 = vst [vmem:[#allocation3 + $0x170] sm:$0xf] %v2649_v12  ;;  %v11228_v55 = vld [vmem:[#allocation3 + $0x170] sm:$0xf0]  ;;  %v12498_v12 = vld [vmem:[#allocation2 + $0x89] sm:$0xff] }
  0xd9   : > { %413 = vst [vmem:[#allocation3 + $0x188] sm:$0xf] %v393_v32  ;;  %v11225_v31 = vld [vmem:[#allocation3 + $0x15c] sm:$0xf]  ;;  %v12496_v32 = vld [vmem:[#allocation2 + $0x88] sm:$0xff]  ;;  %v8689_v40 = vor.u32 %v11228_v55, %v8688_v35 }
  0xda   : > { %414 = vst [vmem:[#allocation3 + $0x1a4] sm:$0xf] %v394_v42  ;;  %v12500_v42 = vld [vmem:[#allocation2 + $0x8a] sm:$0xff] }
  0xdb   : > { %2720 = vst [vmem:[#allocation3 + $0x158] sm:$0xf] %v2702_v62  ;;  %v12502_v41 = vld [vmem:[#allocation2 + $0x3] sm:$0xff]  ;;  %1825 = vmatmul.bf16.gmra.mxu2 %v8689_v40 }
  0xdc   : > { %2721 = vst [vmem:[#allocation3 + $0x174] sm:$0xf] %v2703_v54  ;;  %v12506_v39 = vpack.c.bf16 %v12502_v41, %v12502_v41  ;;  %v12512_v54 = vld [vmem:[#allocation2 + $0x85] sm:$0xff] }
  0xdd   : > { %2774 = vst [vmem:[#allocation3 + $0x15c] sm:$0xf] %v2756_v13  ;;  %v8690_v13 = vld [vmem:[#allocation3 + $0x174] sm:$0xf0] }
  0xde   : > { %v2739_v27 = vld [vmem:[#allocation2 + $0x74] sm:$0xff]  ;;  %473 = vst [vmem:[#allocation3 + $0x18c] sm:$0xf] %v453_v58 }
  0xdf   : > { %14376 = vst [vmem:[#allocation47_spill] sm:$0xff] %v12510_v44  ;;  %v2757_v62 = vpack.c.bf16 %v2739_v27, %v2739_v27  ;;  %v2632_v52 = vld [vmem:[#allocation2 + $0x76] sm:$0xff]  ;;  %v514_v44 = vpack.c.bf16 %v12443_v28, %v12443_v28  ;;  %v8693_v27 = vor.u32 %v11225_v31, %v8690_v13  ;;  %v12535_v13 = vld [vmem:[#allocation2 + $0x8c] sm:$0xff] }
  0xe0   : > { %474 = vst [vmem:[#allocation3 + $0x1a8] sm:$0xf] %v454_v1  ;;  %v8708_v58 = vld [vmem:[#allocation3 + $0x188] sm:$0xf]  ;;  %v2650_v1 = vpack.c.bf16 %v2632_v52, %v2632_v52 }
  0xe1   : > { %14377 = vst [vmem:[#allocation48_spill] sm:$0xff] %v12512_v54  ;;  %v11234_v26 = vld [vmem:[#allocation3 + $0x1a0] sm:$0xf0]  ;;  %v573_v54 = vpack.c.bf16 %v12445_v11, %v12445_v11  ;;  %v12527_v28 = vld [vmem:[#allocation2 + $0x90] sm:$0xff]  ;;  %1884 = vmatmul.bf16.gmra.mxu3 %v8693_v27 }
  0xe2   : > { %14378 = vst [vmem:[#allocation49_spill] sm:$0xff] %v12514_v9  ;;  %v8709_v35 = vor.u32 %v11234_v26, %v8708_v58  ;;  %v12529_v9 = vld [vmem:[#allocation2 + $0x91] sm:$0xff] }
  0xe3   : > { %2560 = vst [vmem:[#allocation2 + $0x83] sm:$0xff] %v12502_v41  ;;  %v12531_v31 = vld [vmem:[#allocation2 + $0x92] sm:$0xff] }
  0xe4   : > { %2775 = vst [vmem:[#allocation3 + $0x178] sm:$0xf] %v2757_v62  ;;  %v2686_v62 = vld [vmem:[#allocation2 + $0x79] sm:$0xff]  ;;  %v12533_v52 = vld [vmem:[#allocation2 + $0x8b] sm:$0xff]  ;;  %1712 = vmatmul.bf16.gmra.mxu0 %v8709_v35  ;;  %v455_v35 = vpack.c.bf16 %v12466_v60, %v12466_v60 }
  0xe5   : > { %2614 = vst [vmem:[#allocation3 + $0x188] sm:$0xf] %v12506_v39  ;;  %v11231_v55 = vld [vmem:[#allocation3 + $0x18c] sm:$0xf]  ;;  %v12566_v60 = vld [vmem:[#allocation2 + $0x9a] sm:$0xff] }
  0xe6   : > { %2615 = vst [vmem:[#allocation3 + $0x1a4] sm:$0xf] %v12506_v39  ;;  %v12537_v11 = vld [vmem:[#allocation2 + $0x8d] sm:$0xff] }
  0xe7   : > { %533 = vst [vmem:[#allocation3 + $0x190] sm:$0xf] %v513_v38  ;;  %v12539_v38 = vld [vmem:[#allocation2 + $0x8e] sm:$0xff] }
  0xe8   : > { %534 = vst [vmem:[#allocation3 + $0x1ac] sm:$0xf] %v514_v44  ;;  %v395_v44 = vpack.c.bf16 %v12464_v18, %v12464_v18  ;;  %v8710_v58 = vld [vmem:[#allocation3 + $0x1a4] sm:$0xf0] }
  0xe9   : > { %2668 = vst [vmem:[#allocation3 + $0x18c] sm:$0xf] %v2650_v1  ;;  %v2704_v1 = vpack.c.bf16 %v2686_v62, %v2686_v62  ;;  %v8713_v27 = vor.u32 %v11231_v55, %v8710_v58  ;;  %v1678_v55 = vpop.f32.mrf.mxu0  ;;  %v12564_v58 = vld [vmem:[#allocation2 + $0x99] sm:$0xff] }
  0xea   : > { %14379 = vst [vmem:[#allocation50_spill] sm:$0xff] %v12535_v13  ;;  %v2633_v48 = vld [vmem:[#allocation2 + $0x7e] sm:$0xff] }
  0xeb   : > { %14380 = vst [vmem:[#allocation51_spill] sm:$0xff] %v12537_v11  ;;  %v2687_v40 = vld [vmem:[#allocation2 + $0x81] sm:$0xff]  ;;  %v2651_v26 = vpack.c.bf16 %v2633_v48, %v2633_v48  ;;  %v456_v48 = vpack.c.bf16 %v12498_v12, %v12498_v12  ;;  %1771 = vmatmul.bf16.gmra.mxu1 %v8713_v27 }
  0xec   : > { %593 = vst [vmem:[#allocation3 + $0x194] sm:$0xf] %v573_v54  ;;  %v2740_v29 = vld [vmem:[#allocation2 + $0x7c] sm:$0xff]  ;;  %v2705_v11 = vpack.c.bf16 %v2687_v40, %v2687_v40  ;;  %v396_v54 = vpack.c.bf16 %v12496_v32, %v12496_v32 }
  0xed   : > { %14381 = vst [vmem:[#allocation52_spill] sm:$0xff] %v12539_v38  ;;  %v11300_v13 = vld [vmem:[%s14328_s1 + $0x180] sm:$0xff]  ;;  %v2758_v38 = vpack.c.bf16 %v2740_v29, %v2740_v29 }
  0xee   : > { %594 = vst [vmem:[#allocation3 + $0x1b0] sm:$0xf] %v574_v61  ;;  %2030 = vmatpush.bf16.msrb.mxu2 %v11300_v13  ;;  %v8716_v18 = vld [vmem:[#allocation3 + $0x190] sm:$0xf]  ;;  %v12552_v61 = vld [vmem:[%s14329_s2] ss:$0 sm:$0xff] }
  0xef   : > { %2561 = vst [vmem:[#allocation2 + $0x8b] sm:$0xff] %v12502_v41  ;;  %v11235_v62 = vld [vmem:[#allocation3 + $0x1a8] sm:$0xf0]  ;;  %v11284_v32 = vld [vmem:[%s14328_s1 + $0x100] sm:$0xff]  ;;  %v1679_v40 = vadd.f32 %v12552_v61, %v1678_v55 }
  0xf0   : > { %2669 = vst [vmem:[#allocation3 + $0x1a8] sm:$0xf] %v2651_v26  ;;  %1912 = vmatpush.bf16.msrb.mxu0 %v11284_v32  ;;  %v1737_v26 = vpop.f32.mrf.mxu1  ;;  %v12572_v55 = vld [vmem:[#allocation2 + $0x95] sm:$0xff] }
  0xf1   : > { %415 = vst [vmem:[#allocation3 + $0x1c0] sm:$0xf] %v395_v44  ;;  %v12562_v44 = vld [vmem:[#allocation2 + $0x98] sm:$0xff] }
  0xf2   : > { %2722 = vst [vmem:[#allocation3 + $0x190] sm:$0xf] %v2704_v1 }
  0xf3   : > { %2723 = vst [vmem:[#allocation3 + $0x1ac] sm:$0xf] %v2705_v11  ;;  %v11232_v29 = vld [vmem:[#allocation3 + $0x194] sm:$0xf]  ;;  %v12568_v11 = vld [vmem:[#allocation2 + $0x93] sm:$0xff] }
  0xf4   : > { %416 = vst [vmem:[#allocation3 + $0x1dc] sm:$0xf] %v396_v54  ;;  %v8717_v54 = vor.u32 %v11235_v62, %v8716_v18  ;;  %v516_v18 = vpack.c.bf16 %v12500_v42, %v12500_v42  ;;  %v576_v42 = vpack.c.bf16 %v12533_v52, %v12533_v52  ;;  %v12596_v52 = vpop.f32.mrf.mxu0 }
  0xf5   : > { %v8718_v13 = vld [vmem:[#allocation3 + $0x1ac] sm:$0xf0]  ;;  %2776 = vst [vmem:[#allocation3 + $0x194] sm:$0xf] %v2758_v38  ;;  %v1738_v38 = vadd.f32 %v1737_v26, %v1679_v40  ;;  %v575_v40 = vpack.c.bf16 %v12508_v8, %v12508_v8 }
  0xf6   : > { %v2741_v12 = vld [vmem:[#allocation2 + $0x84] sm:$0xff]  ;;  %475 = vst [vmem:[#allocation3 + $0x1c4] sm:$0xf] %v455_v35  ;;  %v8721_v32 = vor.u32 %v11232_v29, %v8718_v13  ;;  %1830 = vmatmul.bf16.gmra.mxu2 %v8717_v54 }
  0xf7   : > { %v2581_v1 = vld [vmem:[#allocation2 + $0x8b] sm:$0x3f]  ;;  %v2759_v27 = vpack.c.bf16 %v2741_v12, %v2741_v12  ;;  %476 = vst [vmem:[#allocation3 + $0x1e0] sm:$0xf] %v456_v48  ;;  %v1796_v12 = vpop.f32.mrf.mxu2 }
  0xf8   : > { %v2634_v57 = vld [vmem:[#allocation2 + $0x86] sm:$0xff]  ;;  %v2599_v2 = vpack.c.bf16 %v2581_v1, %v2581_v1  ;;  %2562 = vst [vmem:[#allocation2 + $0x93] sm:$0xff] %v12502_v41  ;;  %v12589_v26 = vadd.f32 %v1796_v12, %v1738_v38  ;;  %1889 = vmatmul.bf16.gmra.mxu3 %v8721_v32 }
  0xf9   : > { %2777 = vst [vmem:[#allocation3 + $0x1b0] sm:$0xf] %v2759_v27  ;;  %v8736_v35 = vld [vmem:[#allocation3 + $0x1c0] sm:$0xf]  ;;  %v2652_v62 = vpack.c.bf16 %v2634_v57, %v2634_v57 }
  0xfa   : > { %2616 = vst [vmem:[#allocation3 + $0x1c0] sm:$0xf] %v12506_v39  ;;  %v2688_v13 = vld [vmem:[#allocation2 + $0x89] sm:$0xff]  ;;  %v11315_v39 = vld [vmem:[%s14330_s3 + $0x38] sm:$0xff] }
  0xfb   : > { %v11241_v48 = vld [vmem:[#allocation3 + $0x1d8] sm:$0xf0]  ;;  %535 = vst [vmem:[#allocation3 + $0x1c8] sm:$0xf] %v515_v47  ;;  %v397_v47 = vpack.c.bf16 %v12527_v28, %v12527_v28  ;;  %v2706_v54 = vpack.c.bf16 %v2688_v13, %v2688_v13  ;;  %2220 = vmatpush.bf16.msrb.mxu3 %v11315_v39  ;;  %v398_v28 = vpack.c.bf16 %v12562_v44, %v12562_v44  ;;  %v12608_v39 = vpop.f32.mrf.mxu1 }
  0xfc   : > { %v8737_v29 = vor.u32 %v11241_v48, %v8736_v35  ;;  %2617 = vst [vmem:[#allocation3 + $0x1dc] sm:$0x7] %v2599_v2  ;;  %v457_v48 = vpack.c.bf16 %v12529_v9, %v12529_v9  ;;  %v517_v13 = vpack.c.bf16 %v12531_v31, %v12531_v31  ;;  %v518_v9 = vpack.c.bf16 %v12566_v60, %v12566_v60 }
  0xfd   : > { %v11238_v57 = vld [vmem:[#allocation3 + $0x1c4] sm:$0xf]  ;;  %536 = vst [vmem:[#allocation3 + $0x1e4] sm:$0xf] %v516_v18  ;;  %v619_v31 = vpack.c.bf16 %v12045_v63, %v12045_v63  ;;  %v620_v60 = vpack.c.bf16 %v12047_v0, %v12047_v0  ;;  %v739_v63 = vpack.c.bf16 %v12061_v7, %v12061_v7  ;;  %v740_v0 = vpack.c.bf16 %v12081_v16, %v12081_v16 }
  0xfe   : > { %v8738_v8 = vld [vmem:[#allocation3 + $0x1dc] sm:$0xf0]  ;;  %2670 = vst [vmem:[#allocation3 + $0x1c4] sm:$0xf] %v2652_v62  ;;  %1717 = vmatmul.bf16.gmra.mxu0 %v8737_v29  ;;  %v458_v29 = vpack.c.bf16 %v12564_v58, %v12564_v58  ;;  %v1683_v58 = vpop.f32.mrf.mxu0  ;;  %v2798_v16 = vpack.c.bf16 %v12162_v19, %v12162_v19 }
  0xff   : > { %v2635_v2 = vld [vmem:[#allocation2 + $0x8e] sm:$0x3f]  ;;  %595 = vst [vmem:[#allocation3 + $0x1cc] sm:$0xf] %v575_v40  ;;  %v8741_v32 = vor.u32 %v11238_v57, %v8738_v8  ;;  %v2743_v18 = vld [vmem:[#allocation2 + $0x94] sm:$0x3f]  ;;  %v577_v8 = vpack.c.bf16 %v12568_v11, %v12568_v11  ;;  %v679_v11 = vpack.c.bf16 %v12059_v6, %v12059_v6 }
 0x100   : > { %v2689_v1 = vld [vmem:[#allocation2 + $0x91] sm:$0x3f]  ;;  %v2653_v27 = vpack.c.bf16 %v2635_v2, %v2635_v2  ;;  %596 = vst [vmem:[#allocation3 + $0x1e8] sm:$0xf] %v576_v42  ;;  %v2761_v45 = vpack.c.bf16 %v2743_v18, %v2743_v18  ;;  %v558_v42 = vld [vmem:[#allocation2 + $0x9b] sm:$0xff] }
 0x101   : > { %v2742_v38 = vld [vmem:[#allocation2 + $0x8c] sm:$0xff]  ;;  %v2707_v35 = vpack.c.bf16 %v2689_v1, %v2689_v1  ;;  %417 = vst [vmem:[#allocation3 + $0x1f8] sm:$0xf] %v397_v47  ;;  %1776 = vmatmul.bf16.gmra.mxu1 %v8741_v32 }
 0x102   : > { %2671 = vst [vmem:[#allocation3 + $0x1e0] sm:$0x7] %v2653_v27  ;;  %v8744_v62 = vld [vmem:[#allocation3 + $0x1c8] sm:$0xf]  ;;  %v2760_v40 = vpack.c.bf16 %v2742_v38, %v2742_v38 }
 0x103   : > { %2724 = vst [vmem:[#allocation3 + $0x1c8] sm:$0xf] %v2706_v54  ;;  %v578_v54 = vpack.c.bf16 %v558_v42, %v558_v42  ;;  %v11314_v6 = vld [vmem:[%s14330_s3 + $0x30] sm:$0xff] }
 0x104   : > { %v11242_v12 = vld [vmem:[#allocation3 + $0x1e0] sm:$0xf0]  ;;  %418 = vst [vmem:[#allocation3 + $0x214] sm:$0xf] %v398_v28  ;;  %v680_v28 = vpack.c.bf16 %v12079_v15, %v12079_v15  ;;  %v621_v15 = vpack.c.bf16 %v12057_v5, %v12057_v5  ;;  %2221 = vmatpush.bf16.msrb.mxu3 %v11314_v6  ;;  %v14382_v6 = vld [vmem:[#allocation15_spill] sm:$0xff] }
 0x105   : > { %2725 = vst [vmem:[#allocation3 + $0x1e4] sm:$0x7] %v2707_v35  ;;  %v8745_v57 = vor.u32 %v11242_v12, %v8744_v62  ;;  %v1684_v35 = vadd.f32 %v12552_v61, %v1683_v58  ;;  %v12630_v62 = vpop.f32.mrf.mxu2  ;;  %v1742_v12 = vpop.f32.mrf.mxu1 }
 0x106   : > { %v11239_v44 = vld [vmem:[#allocation3 + $0x1cc] sm:$0xf]  ;;  %477 = vst [vmem:[#allocation3 + $0x1fc] sm:$0xf] %v457_v48  ;;  %v1685_v7 = vpop.f32.mrf.mxu0 }
 0x107   : > { %v8746_v47 = vld [vmem:[#allocation3 + $0x1e4] sm:$0xf0]  ;;  %2778 = vst [vmem:[#allocation3 + $0x1cc] sm:$0xf] %v2760_v40  ;;  %1835 = vmatmul.bf16.gmra.mxu2 %v8745_v57  ;;  %v622_v40 = vpack.c.bf16 %v12077_v14, %v12077_v14  ;;  %v2853_v14 = vpack.c.bf16 %v12168_v36, %v12168_v36  ;;  %v2800_v36 = vpack.c.bf16 %v12186_v51, %v12186_v51 }
 0x108   : > { %2779 = vst [vmem:[#allocation3 + $0x1e8] sm:$0x7] %v2761_v45  ;;  %v8749_v2 = vor.u32 %v11239_v44, %v8746_v47  ;;  %v8764_v1 = vld [vmem:[#allocation3 + $0x1f8] sm:$0xf]  ;;  %v1743_v45 = vadd.f32 %v1742_v12, %v1684_v35  ;;  %v741_v35 = vpack.c.bf16 %v12094_v22, %v12094_v22 }
 0x109   : > { %478 = vst [vmem:[#allocation3 + $0x218] sm:$0xf] %v458_v29  ;;  %v2799_v29 = vpack.c.bf16 %v12166_v25, %v12166_v25  ;;  %v2906_v25 = vpack.c.bf16 %v12170_v33, %v12170_v33  ;;  %v2801_v33 = vpack.c.bf16 %v12199_v56, %v12199_v56 }
 0x10a   : > { %537 = vst [vmem:[#allocation3 + $0x200] sm:$0xf] %v517_v13  ;;  %1894 = vmatmul.bf16.gmra.mxu3 %v8749_v2  ;;  %v2852_v13 = vpack.c.bf16 %v12164_v24, %v12164_v24  ;;  %v2907_v24 = vpack.c.bf16 %v12190_v53, %v12190_v53  ;;  %v681_v53 = vpack.c.bf16 %v12090_v20, %v12090_v20 }
 0x10b   : > { %v11248_v27 = vld [vmem:[#allocation3 + $0x210] sm:$0xf0]  ;;  %538 = vst [vmem:[#allocation3 + $0x21c] sm:$0xf] %v518_v9  ;;  %v742_v20 = vpack.c.bf16 %v12097_v23, %v12097_v23 }
 0x10c   : > { %v8765_v38 = vor.u32 %v11248_v27, %v8764_v1  ;;  %597 = vst [vmem:[#allocation3 + $0x204] sm:$0xf] %v577_v8  ;;  %v1686_v8 = vadd.f32 %v12552_v61, %v1685_v7 }
 0x10d   : > { %598 = vst [vmem:[#allocation3 + $0x220] sm:$0xf] %v578_v54  ;;  %v11245_v32 = vld [vmem:[#allocation3 + $0x1fc] sm:$0xf]  ;;  %v1744_v27 = vpop.f32.mrf.mxu1 }
 0x10e   : > { %639 = vst [vmem:[#allocation3 + $0x10] sm:$0xf] %v619_v31  ;;  %1722 = vmatmul.bf16.gmra.mxu0 %v8765_v38  ;;  %v1688_v54 = vpop.f32.mrf.mxu0  ;;  %v1801_v38 = vpop.f32.mrf.mxu2 }
 0x10f   : > { %640 = vst [vmem:[#allocation3 + $0x2c] sm:$0xf] %v620_v60 }
 0x110   : > { %v8766_v18 = vld [vmem:[#allocation3 + $0x214] sm:$0xf0]  ;;  %699 = vst [vmem:[#allocation3 + $0x14] sm:$0xf] %v679_v11  ;;  %v1745_v11 = vadd.f32 %v1744_v27, %v1686_v8 }
 0x111   : > { %v8769_v48 = vor.u32 %v11245_v32, %v8766_v18  ;;  %700 = vst [vmem:[#allocation3 + $0x30] sm:$0xf] %v680_v28  ;;  %v8772_v5 = vld [vmem:[#allocation3 + $0x200] sm:$0xf]  ;;  %v682_v32 = vpack.c.bf16 %v12092_v21, %v12092_v21  ;;  %v623_v21 = vpack.c.bf16 %v12113_v30, %v12113_v30  ;;  %v624_v18 = vpack.c.bf16 %v14382_v6, %v14382_v6 }
 0x112   : > { %759 = vst [vmem:[#allocation3 + $0x18] sm:$0xf] %v739_v63  ;;  %v11249_v44 = vld [vmem:[#allocation3 + $0x218] sm:$0xf0]  ;;  %v12661_v63 = vadd.f32 %v1801_v38, %v1743_v45 }
 0x113   : > { %760 = vst [vmem:[#allocation3 + $0x34] sm:$0xf] %v740_v0  ;;  %1781 = vmatmul.bf16.gmra.mxu1 %v8769_v48  ;;  %v11246_v42 = vld [vmem:[#allocation3 + $0x204] sm:$0xf]  ;;  %v8773_v9 = vor.u32 %v11249_v44, %v8772_v5  ;;  %v1689_v0 = vadd.f32 %v12552_v61, %v1688_v54  ;;  %v14386_v44 = vld [vmem:[#allocation21_spill] sm:$0xff] }
 0x114   : > { %641 = vst [vmem:[#allocation3 + $0x48] sm:$0xf] %v621_v15  ;;  %v8774_v19 = vld [vmem:[#allocation3 + $0x21c] sm:$0xf0]  ;;  %v14383_v15 = vld [vmem:[#allocation13_spill] sm:$0xff] }
 0x115   : > { %v8528_v57 = vld [vmem:[#allocation3 + $0x10] sm:$0xf]  ;;  %642 = vst [vmem:[#allocation3 + $0x64] sm:$0xf] %v622_v40  ;;  %v8777_v1 = vor.u32 %v11246_v42, %v8774_v19  ;;  %v683_v22 = vpack.c.bf16 %v14383_v15, %v14383_v15  ;;  %v14384_v40 = vld [vmem:[#allocation16_spill] sm:$0xff]  ;;  %v1747_v12 = vpop.f32.mrf.mxu1 }
 0x116   : > { %v11187_v47 = vld [vmem:[#allocation3 + $0x28] sm:$0xf0]  ;;  %2816 = vst [vmem:[#allocation3 + $0x10] sm:$0xf] %v2798_v16  ;;  %v1690_v7 = vpop.f32.mrf.mxu0  ;;  %v684_v23 = vpack.c.bf16 %v14384_v40, %v14384_v40  ;;  %v14385_v16 = vld [vmem:[#allocation20_spill] sm:$0xff]  ;;  %v1803_v30 = vpop.f32.mrf.mxu2  ;;  %v1748_v5 = vadd.f32 %v1747_v12, %v1689_v0 }
 0x117   : > { %2817 = vst [vmem:[#allocation3 + $0x2c] sm:$0xf] %v2799_v29  ;;  %v11184_v2 = vld [vmem:[#allocation3 + $0x14] sm:$0xf]  ;;  %1840 = vmatmul.bf16.gmra.mxu2 %v8773_v9  ;;  %v8529_v28 = vor.u32 %v11187_v47, %v8528_v57  ;;  %v2854_v45 = vpack.c.bf16 %v14385_v16, %v14385_v16  ;;  %v2891_v29 = vld [vmem:[#allocation2 + $0x2d] sm:$0xff]  ;;  %v12682_v42 = vadd.f32 %v1803_v30, %v1745_v11 }
 0x118   : > { %v8530_v58 = vld [vmem:[#allocation3 + $0x2c] sm:$0xf0]  ;;  %2870 = vst [vmem:[#allocation3 + $0x14] sm:$0xf] %v2852_v13  ;;  %v2855_v13 = vpack.c.bf16 %v14386_v44, %v14386_v44  ;;  %v14387_v57 = vld [vmem:[#allocation22_spill] sm:$0xff]  ;;  %v2909_v47 = vpack.c.bf16 %v2891_v29, %v2891_v29  ;;  %v2784_v54 = vld [vmem:[#allocation2 + $0x2f] sm:$0xff] }
 0x119   : > { %2871 = vst [vmem:[#allocation3 + $0x30] sm:$0xf] %v2853_v14  ;;  %v12649_v31 = vld [vmem:[#allocation3 + $0x18] sm:$0xf]  ;;  %v8533_v48 = vor.u32 %v11184_v2, %v8530_v58  ;;  %v2908_v14 = vpack.c.bf16 %v14387_v57, %v14387_v57 }
 0x11a   : > { %v12653_v60 = vld [vmem:[#allocation3 + $0x30] sm:$0xf0]  ;;  %2924 = vst [vmem:[#allocation3 + $0x18] sm:$0xf] %v2906_v25  ;;  %1899 = vmatmul.bf16.gmra.mxu3 %v8777_v1 }
 0x11b   : > { %2925 = vst [vmem:[#allocation3 + $0x34] sm:$0xf] %v2907_v24  ;;  %v12657_v51 = vld [vmem:[#allocation3 + $0x48] sm:$0xf]  ;;  %v14388_v9 = vld [vmem:[#allocation14_spill] sm:$0xff]  ;;  %v8537_v2 = vor.u32 %v12653_v60, %v12649_v31  ;;  %v1691_v24 = vadd.f32 %v12552_v61, %v1690_v7 }
 0x11c   : > { %v12663_v56 = vld [vmem:[#allocation3 + $0x60] sm:$0xf0]  ;;  %2818 = vst [vmem:[#allocation3 + $0x48] sm:$0xf] %v2800_v36  ;;  %v743_v8 = vpack.c.bf16 %v14388_v9, %v14388_v9  ;;  %v2838_v31 = vld [vmem:[#allocation2 + $0x32] sm:$0xff]  ;;  %v2839_v60 = vld [vmem:[#allocation2 + $0x3a] sm:$0xff] }
 0x11d   : > { %2819 = vst [vmem:[#allocation3 + $0x64] sm:$0xf] %v2801_v33  ;;  %v11313_v36 = vld [vmem:[%s14330_s3 + $0x28] sm:$0xff]  ;;  %v2785_v33 = vld [vmem:[#allocation2 + $0x37] sm:$0xff]  ;;  %v1749_v27 = vpop.f32.mrf.mxu1  ;;  %v2857_v0 = vpack.c.bf16 %v2839_v60, %v2839_v60  ;;  %v2786_v9 = vld [vmem:[#allocation2 + $0x3f] sm:$0xff] }
 0x11e   : > { %701 = vst [vmem:[#allocation3 + $0x4c] sm:$0xf] %v681_v53  ;;  %1913 = vmatmul.bf16.vlgmr.msrb.gmra.mxu0 %v8529_v28  ;;  %2222 = vmatpush.bf16.msrb.mxu3 %v11313_v36  ;;  %v2802_v53 = vpack.c.bf16 %v2784_v54, %v2784_v54  ;;  %v2803_v38 = vpack.c.bf16 %v2785_v33, %v2785_v33  ;;  %v1693_v28 = vpop.f32.mrf.mxu0  ;;  %v1806_v6 = vpop.f32.mrf.mxu2  ;;  %v2893_v30 = vld [vmem:[#allocation2 + $0x3d] sm:$0xff] }
 0x11f   : > { %702 = vst [vmem:[#allocation3 + $0x68] sm:$0xf] %v682_v32  ;;  %v1750_v11 = vadd.f32 %v1749_v27, %v1691_v24  ;;  %v8557_v32 = vor.u32 %v12663_v56, %v12657_v51  ;;  %v12704_v15 = vadd.f32 %v1806_v6, %v1748_v5  ;;  %v1694_v56 = vadd.f32 %v12552_v61, %v1693_v28 }
 0x120   : > { %761 = vst [vmem:[#allocation3 + $0x50] sm:$0xf] %v741_v35  ;;  %v685_v5 = vpack.c.bf16 %v12292_v3, %v12292_v3  ;;  %v2804_v24 = vpack.c.bf16 %v2786_v9, %v2786_v9 }
 0x121   : > { %762 = vst [vmem:[#allocation3 + $0x6c] sm:$0xf] %v742_v20  ;;  %v2856_v20 = vpack.c.bf16 %v2838_v31, %v2838_v31 }
 0x122   : > { %643 = vst [vmem:[#allocation3 + $0x80] sm:$0xf] %v623_v21  ;;  %v2892_v21 = vld [vmem:[#allocation2 + $0x35] sm:$0xff] }
 0x123   : > { %644 = vst [vmem:[#allocation3 + $0x9c] sm:$0xf] %v624_v18  ;;  %1972 = vmatmul.bf16.vlgmr.msrb.gmra.mxu1 %v8533_v48  ;;  %v14389_v48 = vld [vmem:[#allocation17_spill] sm:$0xff]  ;;  %v2910_v51 = vpack.c.bf16 %v2892_v21, %v2892_v21  ;;  %v747_v21 = vpack.c.bf16 %v12347_v34, %v12347_v34 }
 0x124   : > { %703 = vst [vmem:[#allocation3 + $0x84] sm:$0xf] %v683_v22  ;;  %v744_v7 = vpack.c.bf16 %v14389_v48, %v14389_v48 }
 0x125   : > { %v11191_v19 = vld [vmem:[#allocation3 + $0x4c] sm:$0xf]  ;;  %704 = vst [vmem:[#allocation3 + $0xa0] sm:$0xf] %v684_v23  ;;  %v625_v23 = vpack.c.bf16 %v12290_v59, %v12290_v59  ;;  %v1752_v29 = vpop.f32.mrf.mxu1  ;;  %v686_v59 = vpack.c.bf16 %v12321_v50, %v12321_v50  ;;  %v746_v50 = vpack.c.bf16 %v12323_v46, %v12323_v46 }
 0x126   : > { %v8558_v25 = vld [vmem:[#allocation3 + $0x64] sm:$0xf0]  ;;  %2872 = vst [vmem:[#allocation3 + $0x4c] sm:$0xf] %v2854_v45  ;;  %v626_v45 = vpack.c.bf16 %v12319_v43, %v12319_v43  ;;  %v1753_v44 = vadd.f32 %v1752_v29, %v1694_v56  ;;  %v1808_v57 = vpop.f32.mrf.mxu2  ;;  %v2911_v43 = vpack.c.bf16 %v2893_v30, %v2893_v30 }
 0x127   : > { %2873 = vst [vmem:[#allocation3 + $0x68] sm:$0xf] %v2855_v13  ;;  %v12691_v58 = vld [vmem:[#allocation3 + $0x50] sm:$0xf]  ;;  %2031 = vmatmul.bf16.vlgmr.msrb.gmra.mxu2 %v8537_v2  ;;  %v8561_v12 = vor.u32 %v11191_v19, %v8558_v25  ;;  %v1695_v13 = vpop.f32.mrf.mxu0  ;;  %v12727_v19 = vadd.f32 %v1808_v57, %v1750_v11  ;;  %v627_v11 = vpack.c.bf16 %v12343_v37, %v12343_v37 }
 0x128   : > { %v12696_v1 = vld [vmem:[#allocation3 + $0x68] sm:$0xf0]  ;;  %2926 = vst [vmem:[#allocation3 + $0x50] sm:$0xf] %v2908_v14  ;;  %v745_v14 = vpack.c.bf16 %v12294_v4, %v12294_v4  ;;  %v11312_v4 = vld [vmem:[%s14330_s3 + $0x20] sm:$0xff] }
 0x129   : > { %2927 = vst [vmem:[#allocation3 + $0x6c] sm:$0xf] %v2909_v47  ;;  %v12700_v35 = vld [vmem:[#allocation3 + $0x80] sm:$0xf]  ;;  %v8565_v3 = vor.u32 %v12696_v1, %v12691_v58  ;;  %v1696_v47 = vadd.f32 %v12552_v61, %v1695_v13  ;;  %2223 = vmatpush.bf16.msrb.mxu3 %v11312_v4  ;;  %v14390_v57 = vld [vmem:[#allocation29_spill] sm:$0xff] }
 0x12a   : > { %763 = vst [vmem:[#allocation3 + $0x88] sm:$0xf] %v743_v8  ;;  %v12702_v18 = vld [vmem:[#allocation3 + $0x98] sm:$0xf0] }
 0x12b   : > { %2820 = vst [vmem:[#allocation3 + $0x80] sm:$0xf] %v2802_v53  ;;  %v12706_v22 = vld [vmem:[#allocation3 + $0x84] sm:$0xf]  ;;  %v2840_v8 = vld [vmem:[#allocation2 + $0x42] sm:$0xff]  ;;  %v8585_v1 = vor.u32 %v12702_v18, %v12700_v35  ;;  %v687_v35 = vpack.c.bf16 %v12345_v49, %v12345_v49 }
 0x12c   : > { %2821 = vst [vmem:[#allocation3 + $0x9c] sm:$0xf] %v2803_v38  ;;  %v12710_v40 = vld [vmem:[#allocation3 + $0x9c] sm:$0xf0]  ;;  %v2858_v36 = vpack.c.bf16 %v2840_v8, %v2840_v8  ;;  %v608_v53 = vld [vmem:[#allocation2 + $0x4c] sm:$0xff]  ;;  %v14394_v8 = vld [vmem:[#allocation33_spill] sm:$0xff] }
 0x12d   : > { %2874 = vst [vmem:[#allocation3 + $0x84] sm:$0xf] %v2856_v20  ;;  %v1754_v2 = vpop.f32.mrf.mxu1  ;;  %v668_v38 = vld [vmem:[#allocation2 + $0x4d] sm:$0xff]  ;;  %v628_v28 = vpack.c.bf16 %v608_v53, %v608_v53 }
 0x12e   : > { %1918 = vmatmul.bf16.gmra.mxu0 %v8557_v32  ;;  %2875 = vst [vmem:[#allocation3 + $0xa0] sm:$0xf] %v2857_v0  ;;  %v1755_v58 = vadd.f32 %v1754_v2, %v1696_v47  ;;  %v1811_v27 = vpop.f32.mrf.mxu2  ;;  %v728_v32 = vld [vmem:[#allocation2 + $0x4e] sm:$0xff]  ;;  %v688_v20 = vpack.c.bf16 %v668_v38, %v668_v38  ;;  %v8589_v0 = vor.u32 %v12706_v22, %v12710_v40  ;;  %v14392_v47 = vld [vmem:[#allocation31_spill] sm:$0xff] }
 0x12f   : > { %4577 = vst [vmem:[#allocation2 + $0x2c] sm:$0xff] %v12502_v41  ;;  %v1698_v54 = vpop.f32.mrf.mxu0  ;;  %v12742_v31 = vadd.f32 %v1811_v27, %v1753_v44  ;;  %v748_v18 = vpack.c.bf16 %v728_v32, %v728_v32  ;;  %v749_v2 = vpack.c.bf16 %v14394_v8, %v14394_v8  ;;  %v2790_v32 = vld [vmem:[#allocation2 + $0x5f] sm:$0xff]  ;;  %v11310_v8 = vld [vmem:[%s14330_s3 + $0x10] sm:$0xff] }
 0x130   : > { %764 = vst [vmem:[#allocation3 + $0xa4] sm:$0xf] %v744_v7  ;;  %v1699_v60 = vadd.f32 %v12552_v61, %v1698_v54 }
 0x131   : > { %v12716_v16 = vld [vmem:[#allocation3 + $0x88] sm:$0xf]  ;;  %4578 = vst [vmem:[#allocation2 + $0x34] sm:$0xff] %v12502_v41 }
 0x132   : > { %2928 = vst [vmem:[#allocation3 + $0x88] sm:$0xf] %v2910_v51 }
 0x133   : > { %645 = vst [vmem:[#allocation3 + $0xb8] sm:$0xf] %v625_v23  ;;  %1977 = vmatmul.bf16.gmra.mxu1 %v8561_v12  ;;  %v2897_v12 = vld [vmem:[#allocation2 + $0x5d] sm:$0xff] }
 0x134   : > { %646 = vst [vmem:[#allocation3 + $0xd4] sm:$0xf] %v626_v45  ;;  %v2915_v29 = vpack.c.bf16 %v2897_v12, %v2897_v12 }
 0x135   : > { %705 = vst [vmem:[#allocation3 + $0xbc] sm:$0xf] %v685_v5  ;;  %v1757_v6 = vpop.f32.mrf.mxu1 }
 0x136   : > { %706 = vst [vmem:[#allocation3 + $0xd8] sm:$0xf] %v686_v59  ;;  %v1758_v48 = vadd.f32 %v1757_v6, %v1699_v60  ;;  %v1813_v37 = vpop.f32.mrf.mxu2  ;;  %v2844_v6 = vld [vmem:[#allocation2 + $0x62] sm:$0xff] }
 0x137   : > { %v11202_v25 = vld [vmem:[#allocation3 + $0xa0] sm:$0xf0]  ;;  %765 = vst [vmem:[#allocation3 + $0xc0] sm:$0xf] %v745_v14  ;;  %2036 = vmatmul.bf16.gmra.mxu2 %v8565_v3  ;;  %v1700_v7 = vpop.f32.mrf.mxu0  ;;  %v12753_v49 = vadd.f32 %v1813_v37, %v1755_v58  ;;  %v629_v14 = vpack.c.bf16 %v14390_v57, %v14390_v57 }
 0x138   : > { %2929 = vst [vmem:[#allocation3 + $0xa4] sm:$0xf] %v2911_v43  ;;  %v8593_v51 = vor.u32 %v11202_v25, %v12716_v16  ;;  %v1701_v22 = vadd.f32 %v12552_v61, %v1700_v7  ;;  %v11311_v16 = vld [vmem:[%s14330_s3 + $0x18] sm:$0xff]  ;;  %v14393_v25 = vld [vmem:[#allocation32_spill] sm:$0xff] }
 0x139   : > { %4579 = vst [vmem:[#allocation2 + $0x3c] sm:$0xff] %v12502_v41  ;;  %v14391_v43 = vld [vmem:[#allocation30_spill] sm:$0xff]  ;;  %v690_v4 = vpack.c.bf16 %v14393_v25, %v14393_v25  ;;  %2224 = vmatpush.bf16.msrb.mxu3 %v11311_v16 }
 0x13a   : > { %v8612_v46 = vld [vmem:[#allocation3 + $0xb8] sm:$0xf]  ;;  %766 = vst [vmem:[#allocation3 + $0xdc] sm:$0xf] %v746_v50  ;;  %v630_v3 = vpack.c.bf16 %v14391_v43, %v14391_v43  ;;  %v689_v50 = vpack.c.bf16 %v14392_v47, %v14392_v47 }
 0x13b   : > { %2822 = vst [vmem:[#allocation3 + $0xb8] sm:$0xf] %v2804_v24  ;;  %v11208_v40 = vld [vmem:[#allocation3 + $0xd0] sm:$0xf0] }
 0x13c   : > { %v12740_v33 = vld [vmem:[#allocation3 + $0xbc] sm:$0xf]  ;;  %647 = vst [vmem:[#allocation3 + $0xf0] sm:$0xf] %v627_v11  ;;  %v8613_v23 = vor.u32 %v11208_v40, %v8612_v46  ;;  %v14397_v25 = vld [vmem:[#allocation38_spill] sm:$0xff] }
 0x13d   : > { %2876 = vst [vmem:[#allocation3 + $0xbc] sm:$0xf] %v2858_v36  ;;  %v1759_v56 = vpop.f32.mrf.mxu1  ;;  %v8614_v13 = vld [vmem:[#allocation3 + $0xd4] sm:$0xf0]  ;;  %v2898_v40 = vld [vmem:[#allocation2 + $0x65] sm:$0xff]  ;;  %2225 = vmatpush.bf16.msrb.mxu3 %v11310_v8 }
 0x13e   : > { %1923 = vmatmul.bf16.gmra.mxu0 %v8585_v1  ;;  %648 = vst [vmem:[#allocation3 + $0x10c] sm:$0xf] %v628_v28  ;;  %v1760_v34 = vadd.f32 %v1759_v56, %v1701_v22  ;;  %v1816_v5 = vpop.f32.mrf.mxu2  ;;  %v8617_v9 = vor.u32 %v12740_v33, %v8614_v13  ;;  %v14395_v36 = vld [vmem:[#allocation34_spill] sm:$0xff]  ;;  %v8620_v46 = vld [vmem:[#allocation3 + $0xc0] sm:$0xf]  ;;  %v2899_v56 = vld [vmem:[#allocation2 + $0x6d] sm:$0xff]  ;;  %v2916_v12 = vpack.c.bf16 %v2898_v40, %v2898_v40 }
 0x13f   : > { %707 = vst [vmem:[#allocation3 + $0xf4] sm:$0xf] %v687_v35  ;;  %v1703_v45 = vpop.f32.mrf.mxu0  ;;  %v12760_v59 = vadd.f32 %v1816_v5, %v1758_v48  ;;  %v750_v58 = vpack.c.bf16 %v14395_v36, %v14395_v36  ;;  %v2791_v35 = vld [vmem:[#allocation2 + $0x67] sm:$0xff]  ;;  %v2917_v5 = vpack.c.bf16 %v2899_v56, %v2899_v56  ;;  %v2901_v40 = vld [vmem:[#allocation2 + $0x7d] sm:$0xff] }
 0x140   : > { %708 = vst [vmem:[#allocation3 + $0x110] sm:$0xf] %v688_v20  ;;  %v1704_v44 = vadd.f32 %v12552_v61, %v1703_v45 }
 0x141   : > { %767 = vst [vmem:[#allocation3 + $0xf8] sm:$0xf] %v747_v21  ;;  %v11209_v54 = vld [vmem:[#allocation3 + $0xd8] sm:$0xf0]  ;;  %v2809_v21 = vpack.c.bf16 %v2791_v35, %v2791_v35 }
 0x142   : > { %768 = vst [vmem:[#allocation3 + $0x114] sm:$0xf] %v748_v18  ;;  %v8621_v38 = vor.u32 %v11209_v54, %v8620_v46  ;;  %v2845_v18 = vld [vmem:[#allocation2 + $0x6a] sm:$0xff] }
 0x143   : > { %1982 = vmatmul.bf16.gmra.mxu1 %v8589_v0  ;;  %649 = vst [vmem:[#allocation3 + $0x128] sm:$0xf] %v629_v14  ;;  %v8640_v11 = vld [vmem:[#allocation3 + $0xf0] sm:$0xf]  ;;  %v2808_v0 = vpack.c.bf16 %v2790_v32, %v2790_v32  ;;  %v2863_v22 = vpack.c.bf16 %v2845_v18, %v2845_v18  ;;  %v14400_v54 = vld [vmem:[#allocation36_spill] sm:$0xff] }
 0x144   : > { %650 = vst [vmem:[#allocation3 + $0x144] sm:$0xf] %v630_v3  ;;  %v14396_v3 = vld [vmem:[#allocation35_spill] sm:$0xff] }
 0x145   : > { %v1762_v24 = vpop.f32.mrf.mxu1  ;;  %709 = vst [vmem:[#allocation3 + $0x12c] sm:$0xf] %v689_v50  ;;  %v11215_v28 = vld [vmem:[#allocation3 + $0x108] sm:$0xf0]  ;;  %v631_v47 = vpack.c.bf16 %v14396_v3, %v14396_v3 }
 0x146   : > { %v1763_v1 = vadd.f32 %v1762_v24, %v1704_v44  ;;  %710 = vst [vmem:[#allocation3 + $0x148] sm:$0xf] %v690_v4  ;;  %v1818_v53 = vpop.f32.mrf.mxu2  ;;  %v8641_v7 = vor.u32 %v11215_v28, %v8640_v11  ;;  %v11212_v45 = vld [vmem:[#allocation3 + $0xf4] sm:$0xf]  ;;  %v632_v4 = vpack.c.bf16 %v14397_v25, %v14397_v25 }
 0x147   : > { %2041 = vmatmul.bf16.gmra.mxu2 %v8593_v51  ;;  %v1705_v27 = vpop.f32.mrf.mxu0  ;;  %769 = vst [vmem:[#allocation3 + $0x130] sm:$0xf] %v749_v2  ;;  %v12778_v33 = vadd.f32 %v1818_v53, %v1760_v34  ;;  %v2862_v51 = vpack.c.bf16 %v2844_v6, %v2844_v6  ;;  %v8642_v13 = vld [vmem:[#allocation3 + $0x10c] sm:$0xf0] }
 0x148   : > { %770 = vst [vmem:[#allocation3 + $0x14c] sm:$0xf] %v750_v58  ;;  %v1706_v60 = vadd.f32 %v12552_v61, %v1705_v27  ;;  %v14398_v2 = vld [vmem:[#allocation37_spill] sm:$0xff]  ;;  %v14399_v58 = vld [vmem:[#allocation40_spill] sm:$0xff]  ;;  %v691_v27 = vpack.c.bf16 %v14400_v54, %v14400_v54  ;;  %v8648_v53 = vld [vmem:[#allocation3 + $0xf8] sm:$0xf] }
 0x149   : > { %v12757_v30 = vld [vmem:[#allocation3 + $0x110] sm:$0xf0]  ;;  %v751_v24 = vpack.c.bf16 %v14398_v2, %v14398_v2  ;;  %4584 = vst [vmem:[#allocation2 + $0x64] sm:$0xff] %v12502_v41 }
 0x14a   : > { %2933 = vst [vmem:[#allocation3 + $0x114] sm:$0xf] %v2915_v29  ;;  %v12781_v37 = vld [vmem:[#allocation3 + $0x128] sm:$0xf]  ;;  %v8649_v32 = vor.u32 %v12757_v30, %v8648_v53  ;;  %v14405_v53 = vld [vmem:[#allocation46_spill] sm:$0xff] }
 0x14b   : > { %2826 = vst [vmem:[#allocation3 + $0x128] sm:$0xf] %v2808_v0  ;;  %v2793_v0 = vld [vmem:[#allocation2 + $0x77] sm:$0xff] }
 0x14c   : > { %v12785_v29 = vld [vmem:[#allocation3 + $0x12c] sm:$0xf]  ;;  %651 = vst [vmem:[#allocation3 + $0x160] sm:$0xf] %v631_v47  ;;  %v2811_v18 = vpack.c.bf16 %v2793_v0, %v2793_v0 }
 0x14d   : > { %v1764_v20 = vpop.f32.mrf.mxu1  ;;  %v12787_v16 = vld [vmem:[#allocation3 + $0x144] sm:$0xf0]  ;;  %2880 = vst [vmem:[#allocation3 + $0x12c] sm:$0xf] %v2862_v51 }
 0x14e   : > { %1928 = vmatmul.bf16.gmra.mxu0 %v8613_v23  ;;  %v1765_v48 = vadd.f32 %v1764_v20, %v1706_v60  ;;  %v12783_v23 = vld [vmem:[#allocation3 + $0x140] sm:$0xf0]  ;;  %v1821_v44 = vpop.f32.mrf.mxu2  ;;  %2881 = vst [vmem:[#allocation3 + $0x148] sm:$0xf] %v2863_v22  ;;  %v12792_v43 = vld [vmem:[#allocation3 + $0x130] sm:$0xf]  ;;  %v8673_v2 = vor.u32 %v12785_v29, %v12787_v16 }
 0x14f   : > { %v1708_v34 = vpop.f32.mrf.mxu0  ;;  %2827 = vst [vmem:[#allocation3 + $0x144] sm:$0xf] %v2809_v21  ;;  %v12789_v57 = vadd.f32 %v1821_v44, %v1763_v1  ;;  %v12796_v50 = vld [vmem:[#allocation3 + $0x148] sm:$0xf0]  ;;  %v752_v1 = vpack.c.bf16 %v14399_v58, %v14399_v58  ;;  %v14401_v60 = vld [vmem:[#allocation39_spill] sm:$0xff]  ;;  %v8669_v51 = vor.u32 %v12783_v23, %v12781_v37  ;;  %v14406_v29 = vld [vmem:[#allocation42_spill] sm:$0xff] }
 0x150   : > { %v1709_v14 = vadd.f32 %v12552_v61, %v1708_v34  ;;  %2934 = vst [vmem:[#allocation3 + $0x130] sm:$0xf] %v2916_v12  ;;  %v692_v11 = vpack.c.bf16 %v14401_v60, %v14401_v60  ;;  %v2792_v20 = vld [vmem:[#allocation2 + $0x6f] sm:$0xff]  ;;  %v2919_v12 = vpack.c.bf16 %v2901_v40, %v2901_v40  ;;  %v693_v16 = vpack.c.bf16 %v14406_v29, %v14406_v29 }
 0x151   : > { %2935 = vst [vmem:[#allocation3 + $0x14c] sm:$0xf] %v2917_v5  ;;  %v2810_v6 = vpack.c.bf16 %v2792_v20, %v2792_v20  ;;  %v2847_v5 = vld [vmem:[#allocation2 + $0x7a] sm:$0xff]  ;;  %v8677_v20 = vor.u32 %v12796_v50, %v12792_v43 }
 0x152   : > { %652 = vst [vmem:[#allocation3 + $0x17c] sm:$0xf] %v632_v4 }
 0x153   : > { %1987 = vmatmul.bf16.gmra.mxu1 %v8617_v9  ;;  %v8645_v9 = vor.u32 %v11212_v45, %v8642_v13  ;;  %771 = vst [vmem:[#allocation3 + $0x168] sm:$0xf] %v751_v24  ;;  %v12818_v22 = vld [vmem:[#allocation3 + $0x160] sm:$0xf]  ;;  %v2846_v45 = vld [vmem:[#allocation2 + $0x72] sm:$0xff] }
 0x154   : > { %772 = vst [vmem:[#allocation3 + $0x184] sm:$0xf] %v752_v1  ;;  %v2864_v13 = vpack.c.bf16 %v2846_v45, %v2846_v45  ;;  %v14403_v24 = vld [vmem:[#allocation44_spill] sm:$0xff]  ;;  %v12839_v1 = vld [vmem:[#allocation2 + $0x3] sm:$0xff] }
 0x155   : > { %v1767_v36 = vpop.f32.mrf.mxu1  ;;  %711 = vst [vmem:[#allocation3 + $0x164] sm:$0xf] %v691_v27 }
 0x156   : > { %v1768_v46 = vadd.f32 %v1767_v36, %v1709_v14  ;;  %v1823_v28 = vpop.f32.mrf.mxu2  ;;  %712 = vst [vmem:[#allocation3 + $0x180] sm:$0xf] %v692_v11  ;;  %v2865_v14 = vpack.c.bf16 %v2847_v5, %v2847_v5  ;;  %v634_v36 = vpack.c.bf16 %v14403_v24, %v14403_v24  ;;  %v14407_v11 = vld [vmem:[#allocation45_spill] sm:$0xff] }
 0x157   : > { %2046 = vmatmul.bf16.gmra.mxu2 %v8621_v38  ;;  %v1710_v38 = vpop.f32.mrf.mxu0  ;;  %v12812_v41 = vadd.f32 %v1823_v28, %v1765_v48  ;;  %v2900_v48 = vld [vmem:[#allocation2 + $0x75] sm:$0xff]  ;;  %2828 = vst [vmem:[#allocation3 + $0x160] sm:$0xf] %v2810_v6  ;;  %v694_v28 = vpack.c.bf16 %v14407_v11, %v14407_v11  ;;  %v2794_v6 = vld [vmem:[#allocation2 + $0x7f] sm:$0xff] }
 0x158   : > { %v1711_v35 = vadd.f32 %v12552_v61, %v1710_v38  ;;  %v2918_v34 = vpack.c.bf16 %v2900_v48, %v2900_v48  ;;  %4585 = vst [vmem:[#allocation2 + $0x6c] sm:$0xff] %v12839_v1  ;;  %v754_v38 = vpack.c.bf16 %v14405_v53, %v14405_v53  ;;  %v2812_v48 = vpack.c.bf16 %v2794_v6, %v2794_v6 }
 0x159   : > { %v12820_v30 = vld [vmem:[#allocation3 + $0x178] sm:$0xf0]  ;;  %4586 = vst [vmem:[#allocation2 + $0x74] sm:$0xff] %v12839_v1 }
 0x15a   : > { %2829 = vst [vmem:[#allocation3 + $0x17c] sm:$0xf] %v2811_v18  ;;  %v12822_v44 = vld [vmem:[#allocation3 + $0x168] sm:$0xf]  ;;  %v2795_v18 = vld [vmem:[#allocation2 + $0x87] sm:$0xff]  ;;  %v8697_v43 = vor.u32 %v12820_v30, %v12818_v22 }
 0x15b   : > { %v12824_v47 = vld [vmem:[#allocation3 + $0x180] sm:$0xf0]  ;;  %2936 = vst [vmem:[#allocation3 + $0x168] sm:$0xf] %v2918_v34  ;;  %v2813_v40 = vpack.c.bf16 %v2795_v18, %v2795_v18 }
 0x15c   : > { %2937 = vst [vmem:[#allocation3 + $0x184] sm:$0xf] %v2919_v12  ;;  %v12829_v25 = vld [vmem:[#allocation3 + $0x164] sm:$0xf] }
 0x15d   : > { %v1769_v21 = vpop.f32.mrf.mxu1  ;;  %v12831_v4 = vld [vmem:[#allocation3 + $0x17c] sm:$0xf0]  ;;  %2882 = vst [vmem:[#allocation3 + $0x164] sm:$0xf] %v2864_v13  ;;  %v2903_v12 = vld [vmem:[#allocation2 + $0x8d] sm:$0xff] }
 0x15e   : > { %1933 = vmatmul.bf16.gmra.mxu0 %v8641_v7  ;;  %v1770_v7 = vadd.f32 %v1769_v21, %v1711_v35  ;;  %v1826_v3 = vpop.f32.mrf.mxu2  ;;  %2883 = vst [vmem:[#allocation3 + $0x180] sm:$0xf] %v2865_v14  ;;  %v11309_v21 = vld [vmem:[%s14330_s3 + $0x8] sm:$0xff]  ;;  %v2921_v14 = vpack.c.bf16 %v2903_v12, %v2903_v12  ;;  %v678_v12 = vld [vmem:[#allocation2 + $0x9d] sm:$0xff] }
 0x15f   : > { %v12826_v37 = vadd.f32 %v1826_v3, %v1768_v46  ;;  %v14404_v46 = vld [vmem:[#allocation43_spill] sm:$0xff]  ;;  %654 = vst [vmem:[#allocation3 + $0x1b4] sm:$0xf] %v634_v36  ;;  %2226 = vmatpush.bf16.msrb.mxu3 %v11309_v21 }
 0x160   : > { %v753_v54 = vpack.c.bf16 %v14404_v46, %v14404_v46  ;;  %774 = vst [vmem:[#allocation3 + $0x1bc] sm:$0xf] %v754_v38  ;;  %v2902_v34 = vld [vmem:[#allocation2 + $0x85] sm:$0xff]  ;;  %v8701_v38 = vor.u32 %v12829_v25, %v12831_v4 }
 0x161   : > { %v1713_v56 = vpop.f32.mrf.mxu0  ;;  %713 = vst [vmem:[#allocation3 + $0x19c] sm:$0xf] %v693_v16  ;;  %v2920_v13 = vpack.c.bf16 %v2902_v34, %v2902_v34  ;;  %v2848_v3 = vld [vmem:[#allocation2 + $0x82] sm:$0xff]  ;;  %v14412_v25 = vld [vmem:[#allocation48_spill] sm:$0xff] }
 0x162   : > { %v1714_v23 = vadd.f32 %v12552_v61, %v1713_v56  ;;  %773 = vst [vmem:[#allocation3 + $0x1a0] sm:$0xf] %v753_v54  ;;  %v14408_v54 = vld [vmem:[#allocation47_spill] sm:$0xff]  ;;  %v695_v4 = vpack.c.bf16 %v14412_v25, %v14412_v25 }
 0x163   : > { %1992 = vmatmul.bf16.gmra.mxu1 %v8645_v9  ;;  %v14402_v9 = vld [vmem:[#allocation41_spill] sm:$0xff]  ;;  %714 = vst [vmem:[#allocation3 + $0x1b8] sm:$0xf] %v694_v28  ;;  %v635_v53 = vpack.c.bf16 %v14408_v54, %v14408_v54  ;;  %v14411_v28 = vld [vmem:[#allocation52_spill] sm:$0xff]  ;;  %v14413_v21 = vld [vmem:[#allocation51_spill] sm:$0xff]  ;;  %v637_v54 = vpack.c.bf16 %v12570_v10, %v12570_v10 }
 0x164   : > { %v633_v8 = vpack.c.bf16 %v14402_v9, %v14402_v9  ;;  %4587 = vst [vmem:[#allocation2 + $0x7c] sm:$0xff] %v12839_v1  ;;  %v696_v6 = vpack.c.bf16 %v14413_v21, %v14413_v21 }
 0x165   : > { %655 = vst [vmem:[#allocation3 + $0x1d0] sm:$0xf] %v635_v53 }
 0x166   : > { %653 = vst [vmem:[#allocation3 + $0x198] sm:$0xf] %v633_v8  ;;  %v12865_v5 = vld [vmem:[#allocation3 + $0x1b0] sm:$0xf0]  ;;  %v2866_v8 = vpack.c.bf16 %v2848_v3, %v2848_v3 }
 0x167   : > { %2051 = vmatmul.bf16.gmra.mxu2 %v8649_v32  ;;  %v1828_v32 = vpop.f32.mrf.mxu2  ;;  %2831 = vst [vmem:[#allocation3 + $0x1b4] sm:$0xf] %v2813_v40  ;;  %v12869_v36 = vld [vmem:[#allocation3 + $0x1b8] sm:$0xf0] }
 0x168   : > { %v1772_v58 = vpop.f32.mrf.mxu1  ;;  %v12851_v35 = vadd.f32 %v1828_v32, %v1770_v7  ;;  %v12859_v7 = vpop.f32.mrf.mxu3  ;;  %2939 = vst [vmem:[#allocation3 + $0x1bc] sm:$0xf] %v2921_v14  ;;  %v756_v32 = vpack.c.bf16 %v14411_v28, %v14411_v28  ;;  %v11308_v40 = vld [vmem:[%s14330_s3] sm:$0xff] }
 0x169   : > { %v1773_v27 = vadd.f32 %v1772_v58, %v1714_v23  ;;  %v1715_v60 = vpop.f32.mrf.mxu0  ;;  %v2849_v23 = vld [vmem:[#allocation2 + $0x8a] sm:$0xff]  ;;  %v12874_v58 = vld [vmem:[#allocation3 + $0x19c] sm:$0xf]  ;;  %715 = vst [vmem:[#allocation3 + $0x1d4] sm:$0xf] %v695_v4  ;;  %2227 = vmatpush.bf16.msrb.mxu3 %v11308_v40 }
 0x16a   : > { %v1716_v0 = vadd.f32 %v12552_v61, %v1715_v60  ;;  %v12867_v9 = vld [vmem:[#allocation3 + $0x1a0] sm:$0xf]  ;;  %v12876_v46 = vld [vmem:[#allocation3 + $0x1b4] sm:$0xf0]  ;;  %2884 = vst [vmem:[#allocation3 + $0x19c] sm:$0xf] %v2866_v8 }
 0x16b   : > { %2938 = vst [vmem:[#allocation3 + $0x1a0] sm:$0xf] %v2920_v13  ;;  %v14409_v60 = vld [vmem:[#allocation50_spill] sm:$0xff]  ;;  %v2796_v13 = vld [vmem:[#allocation2 + $0x8f] sm:$0xff]  ;;  %v8733_v40 = vor.u32 %v12869_v36, %v12867_v9 }
 0x16c   : > { %4588 = vst [vmem:[#allocation2 + $0x84] sm:$0xff] %v12839_v1  ;;  %v8752_v3 = vld [vmem:[#allocation3 + $0x1d0] sm:$0xf] }
 0x16d   : > { %v12863_v50 = vld [vmem:[#allocation3 + $0x198] sm:$0xf]  ;;  %776 = vst [vmem:[#allocation3 + $0x1f4] sm:$0xf] %v756_v32 }
 0x16e   : > { %1938 = vmatmul.bf16.gmra.mxu0 %v8669_v51  ;;  %2830 = vst [vmem:[#allocation3 + $0x198] sm:$0xf] %v2812_v48  ;;  %v8705_v48 = vor.u32 %v12824_v47, %v12822_v44  ;;  %v2814_v44 = vpack.c.bf16 %v2796_v13, %v2796_v13  ;;  %v2850_v47 = vld [vmem:[#allocation2 + $0x92] sm:$0xff]  ;;  %v697_v13 = vpack.c.bf16 %v12572_v55, %v12572_v55 }
 0x16f   : > { %716 = vst [vmem:[#allocation3 + $0x1f0] sm:$0xf] %v696_v6 }
 0x170   : > { %v1774_v51 = vpop.f32.mrf.mxu1  ;;  %4589 = vst [vmem:[#allocation2 + $0x8c] sm:$0xff] %v12839_v1 }
 0x171   : > { %v1775_v56 = vadd.f32 %v1774_v51, %v1716_v0  ;;  %v12894_v0 = vpop.f32.mrf.mxu3  ;;  %2832 = vst [vmem:[#allocation3 + $0x1d0] sm:$0xf] %v2814_v44 }
 0x172   : > { %657 = vst [vmem:[#allocation3 + $0x208] sm:$0xf] %v637_v54 }
 0x173   : > { %1997 = vmatmul.bf16.gmra.mxu1 %v8673_v2  ;;  %v2867_v2 = vpack.c.bf16 %v2849_v23, %v2849_v23  ;;  %v2868_v23 = vpack.c.bf16 %v2850_v47, %v2850_v47  ;;  %717 = vst [vmem:[#allocation3 + $0x20c] sm:$0xf] %v697_v13 }
 0x175   : > { %2885 = vst [vmem:[#allocation3 + $0x1b8] sm:$0xf] %v2867_v2 }
 0x177   : > { %2056 = vmatmul.bf16.gmra.mxu2 %v8677_v20 }
 0x179   : > { %v1831_v24 = vpop.f32.mrf.mxu2  ;;  %v12911_v2 = vpop.f32.mrf.mxu3 }
 0x17a   : > { %v12871_v22 = vadd.f32 %v1831_v24, %v1773_v27  ;;  %v636_v27 = vpack.c.bf16 %v14409_v60, %v14409_v60 }
 0x17b   : > { %v1718_v45 = vpop.f32.mrf.mxu0 }
 0x17c   : > { %v1719_v30 = vadd.f32 %v12552_v61, %v1718_v45  ;;  %v14410_v61 = vld [vmem:[#allocation49_spill] sm:$0xff]  ;;  %656 = vst [vmem:[#allocation3 + $0x1ec] sm:$0xf] %v636_v27  ;;  %v738_v45 = vld [vmem:[#allocation2 + $0x9e] sm:$0xff] }
 0x17d   : > { %v755_v16 = vpack.c.bf16 %v14410_v61, %v14410_v61 }
 0x17e   : > { %1943 = vmatmul.bf16.gmra.mxu0 %v8697_v43  ;;  %v1777_v29 = vpop.f32.mrf.mxu1  ;;  %v618_v43 = vld [vmem:[#allocation2 + $0x9c] sm:$0xff] }
 0x17f   : > { %v1778_v11 = vadd.f32 %v1777_v29, %v1719_v30  ;;  %775 = vst [vmem:[#allocation3 + $0x1d8] sm:$0xf] %v755_v16  ;;  %v11240_v30 = vld [vmem:[#allocation3 + $0x1d4] sm:$0xf]  ;;  %v638_v53 = vpack.c.bf16 %v618_v43, %v618_v43  ;;  %v8754_v43 = vld [vmem:[#allocation3 + $0x1ec] sm:$0xf0] }
 0x180   : > { %2563 = vst [vmem:[#allocation2 + $0x9b] sm:$0xff] %v12839_v1  ;;  %v8757_v36 = vor.u32 %v11240_v30, %v8754_v43 }
 0x181   : > { %v1833_v18 = vpop.f32.mrf.mxu2  ;;  %2886 = vst [vmem:[#allocation3 + $0x1d4] sm:$0xf] %v2868_v23  ;;  %v12936_v44 = vpop.f32.mrf.mxu3 }
 0x182   : > { %v12898_v51 = vadd.f32 %v1833_v18, %v1775_v56  ;;  %v8725_v56 = vor.u32 %v12865_v5, %v12863_v50  ;;  %v12918_v50 = vld [vmem:[%s14329_s2] ss:$0 sm:$0xff]  ;;  %658 = vst [vmem:[#allocation3 + $0x224] sm:$0xf] %v638_v53  ;;  %v11244_v18 = vld [vmem:[#allocation3 + $0x1f0] sm:$0xf0] }
 0x183   : > { %v12890_v20 = vpop.f32.mrf.mxu0  ;;  %2002 = vmatmul.bf16.gmra.mxu1 %v8701_v38  ;;  %v8729_v38 = vor.u32 %v12874_v58, %v12876_v46  ;;  %v11243_v10 = vld [vmem:[#allocation3 + $0x1e8] sm:$0xf0]  ;;  %v757_v46 = vpack.c.bf16 %v12574_v17, %v12574_v17 }
 0x184   : > { %v8753_v17 = vor.u32 %v11243_v10, %v8752_v3  ;;  %v8780_v3 = vld [vmem:[#allocation3 + $0x208] sm:$0xf] }
 0x185   : > { %777 = vst [vmem:[#allocation3 + $0x210] sm:$0xf] %v757_v46 }
 0x186   : > { %v12905_v34 = vpop.f32.mrf.mxu1  ;;  %v8760_v58 = vld [vmem:[#allocation3 + $0x1d8] sm:$0xf] }
 0x187   : > { %2061 = vmatmul.bf16.gmra.mxu2 %v8705_v48  ;;  %v2797_v27 = vld [vmem:[#allocation2 + $0x97] sm:$0x3f]  ;;  %v2905_v61 = vld [vmem:[#allocation2 + $0x9d] sm:$0x3f]  ;;  %v758_v48 = vpack.c.bf16 %v738_v45, %v738_v45  ;;  %v8761_v54 = vor.u32 %v11244_v18, %v8760_v58  ;;  %v12964_v18 = vstv %s2082_s24 }
 0x188   : > { %v2904_v29 = vld [vmem:[#allocation2 + $0x95] sm:$0xff]  ;;  %v2923_v32 = vpack.c.bf16 %v2905_v61, %v2905_v61 }
 0x189   : > { %v2922_v28 = vpack.c.bf16 %v2904_v29, %v2904_v29  ;;  %v2851_v25 = vld [vmem:[#allocation2 + $0x9a] sm:$0x3f]  ;;  %4590 = vst [vmem:[#allocation2 + $0x94] sm:$0x3f] %v12839_v1  ;;  %v12942_v55 = vpop.f32.mrf.mxu3  ;;  %v11250_v53 = vld [vmem:[#allocation3 + $0x220] sm:$0xf0] }
 0x18a   : > { %v1836_v8 = vpop.f32.mrf.mxu2  ;;  %v2869_v21 = vpack.c.bf16 %v2851_v25, %v2851_v25  ;;  %2941 = vst [vmem:[#allocation3 + $0x1f4] sm:$0x7] %v2923_v32 }
 0x18b   : > { %v1723_v14 = vpop.f32.mrf.mxu0  ;;  %v12913_v24 = vadd.f32 %v1836_v8, %v1778_v11  ;;  %v2815_v11 = vpack.c.bf16 %v2797_v27, %v2797_v27  ;;  %2940 = vst [vmem:[#allocation3 + $0x1d8] sm:$0xf] %v2922_v28  ;;  %v1681_v8 = vadd.f32 %v12918_v50, %v12596_v52  ;;  %v1856_v27 = vadd.f32 %v12859_v7, %v12589_v26  ;;  %v11386_v26 = vld [vmem:[%s14328_s1 + $0x1f8] sm:$0xff] }
 0x18c   : > { %v1724_v5 = vadd.f32 %v12918_v50, %v1723_v14  ;;  %2887 = vst [vmem:[#allocation3 + $0x1f0] sm:$0x7] %v2869_v21  ;;  %v8781_v52 = vor.u32 %v11250_v53, %v8780_v3  ;;  %3789 = vmatpush.bf16.msra.mxu0 %v11386_v26 }
 0x18d   : > { %2833 = vst [vmem:[#allocation3 + $0x1ec] sm:$0x7] %v2815_v11 }
 0x18e   : > { %1948 = vmatmul.bf16.gmra.mxu0 %v8725_v56  ;;  %v698_v56 = vpack.c.bf16 %v678_v12, %v678_v12  ;;  %778 = vst [vmem:[#allocation3 + $0x22c] sm:$0xf] %v758_v48  ;;  %v8788_v48 = vld [vmem:[#allocation3 + $0x210] sm:$0xf] }
 0x190   : > { %v1782_v60 = vpop.f32.mrf.mxu1  ;;  %718 = vst [vmem:[#allocation3 + $0x228] sm:$0xf] %v698_v56 }
 0x191   : > { %v1783_v16 = vadd.f32 %v1782_v60, %v1724_v5  ;;  %v11402_v60 = vld [vmem:[%s14328_s1 + $0x278] sm:$0xff] }
 0x192   : > { %v12930_v6 = vpop.f32.mrf.mxu2  ;;  %3897 = vmatpush.bf16.msra.mxu2 %v11402_v60 }
 0x193   : > { %v12926_v4 = vpop.f32.mrf.mxu0  ;;  %2007 = vmatmul.bf16.gmra.mxu1 %v8729_v38  ;;  %v1740_v38 = vadd.f32 %v12608_v39, %v1681_v8  ;;  %v11247_v39 = vld [vmem:[#allocation3 + $0x20c] sm:$0xf] }
 0x195   : > { %v1799_v29 = vadd.f32 %v12630_v62, %v1740_v38  ;;  %v11394_v62 = vld [vmem:[%s14328_s1 + $0x238] sm:$0xff] }
 0x196   : > { %3843 = vmatpush.bf16.msra.mxu1 %v11394_v62 }
 0x197   : > { %2066 = vmatmul.bf16.gmra.mxu2 %v8733_v40  ;;  %v8782_v32 = vld [vmem:[#allocation3 + $0x224] sm:$0xf0]  ;;  %v1858_v25 = vadd.f32 %v12894_v0, %v1799_v29  ;;  %v11251_v0 = vld [vmem:[#allocation3 + $0x228] sm:$0xf0] }
 0x198   : > { %v12938_v47 = vpop.f32.mrf.mxu1  ;;  %v8785_v58 = vor.u32 %v11247_v39, %v8782_v32 }
 0x19a   : > { %v1841_v14 = vpop.f32.mrf.mxu2 }
 0x19b   : > { %v1914_v45 = vpop.f32.mrf.mxu0  ;;  %v12940_v9 = vadd.f32 %v1841_v14, %v1783_v16  ;;  %v12955_v16 = vpop.f32.mrf.mxu3  ;;  %v8789_v14 = vor.u32 %v11251_v0, %v8788_v48 }
 0x19c   : > { %v1915_v11 = vadd.f32 %v1914_v45, %v1856_v27 }
 0x19e   : > { %1953 = vmatmul.bf16.gmra.mxu0 %v8753_v17 }
 0x1a0   : > { %v1973_v23 = vpop.f32.mrf.mxu1 }
 0x1a1   : > { %v1974_v10 = vadd.f32 %v1973_v23, %v1915_v11  ;;  %v11401_v11 = vld [vmem:[%s14328_s1 + $0x270] sm:$0xff] }
 0x1a2   : > { %v12946_v5 = vpop.f32.mrf.mxu2  ;;  %3898 = vmatpush.bf16.msra.mxu2 %v11401_v11 }
 0x1a3   : > { %v1916_v12 = vpop.f32.mrf.mxu0  ;;  %2012 = vmatmul.bf16.gmra.mxu1 %v8757_v36  ;;  %v12966_v56 = vpop.f32.mrf.mxu3 }
 0x1a4   : > { %v1917_v21 = vadd.f32 %v1916_v12, %v1858_v25  ;;  %v1861_v12 = vadd.f32 %v12911_v2, %v12661_v63  ;;  %v11385_v63 = vld [vmem:[%s14328_s1 + $0x1f0] sm:$0xff] }
 0x1a5   : > { %v11393_v2 = vld [vmem:[%s14328_s1 + $0x230] sm:$0xff]  ;;  %3790 = vmatpush.bf16.msra.mxu0 %v11385_v63 }
 0x1a6   : > { %3844 = vmatpush.bf16.msra.mxu1 %v11393_v2 }
 0x1a7   : > { %2071 = vmatmul.bf16.gmra.mxu2 %v8761_v54 }
 0x1a8   : > { %v1975_v30 = vpop.f32.mrf.mxu1 }
 0x1a9   : > { %v1976_v43 = vadd.f32 %v1975_v30, %v1917_v21  ;;  %v1863_v30 = vadd.f32 %v12936_v44, %v12682_v42 }
 0x1aa   : > { %v2032_v28 = vpop.f32.mrf.mxu2 }
 0x1ab   : > { %v1919_v61 = vpop.f32.mrf.mxu0  ;;  %v2033_v46 = vadd.f32 %v2032_v28, %v1974_v10  ;;  %v1872_v27 = vpop.f32.mrf.mxu3 }
 0x1ac   : > { %v1920_v38 = vadd.f32 %v1919_v61, %v1861_v12  ;;  %v1873_v2 = vadd.f32 %v1872_v27, %v12753_v49  ;;  %v11399_v49 = vld [vmem:[%s14328_s1 + $0x260] sm:$0xff] }
 0x1ad   : > { %v2104_v17 = vmul.f32 %v12964_v18, %v2033_v46  ;;  %vm2083_vm0 = vcmp.gt.f32.partialorder %v2033_v46, 0.0  ;;  %v11383_v27 = vld [vmem:[%s14328_s1 + $0x1e0] sm:$0xff] }
 0x1ae   : > { %1958 = vmatmul.bf16.gmra.mxu0 %v8781_v52 }
 0x1af   : > { %v2124_v8 = vsel %vm2083_vm0, %v2033_v46, %v2104_v17 }
 0x1b0   : > { %v1978_v7 = vpop.f32.mrf.mxu1 }
 0x1b1   : > { %v1979_v29 = vadd.f32 %v1978_v7, %v1920_v38  ;;  %v1871_v38 = vadd.f32 %v12966_v56, %v12742_v31 }
 0x1b2   : > { %v2034_v13 = vpop.f32.mrf.mxu2 }
 0x1b3   : > { %v1921_v40 = vpop.f32.mrf.mxu0  ;;  %2017 = vmatmul.bf16.gmra.mxu1 %v8785_v58  ;;  %v2035_v45 = vadd.f32 %v2034_v13, %v1976_v43  ;;  %v1866_v58 = vadd.f32 %v12942_v55, %v12704_v15  ;;  %v1875_v26 = vpop.f32.mrf.mxu3  ;;  %v1868_v43 = vadd.f32 %v12955_v16, %v12727_v19  ;;  %v11384_v16 = vld [vmem:[%s14328_s1 + $0x1e8] sm:$0xff] }
 0x1b4   : > { %v1922_v52 = vadd.f32 %v1921_v40, %v1863_v30  ;;  %3791 = vmatpush.bf16.msra.mxu0 %v11384_v16 }
 0x1b5   : > { %vm2084_vm1 = vcmp.gt.f32.partialorder %v2035_v45, 0.0  ;;  %v2105_v36 = vmul.f32 %v12964_v18, %v2035_v45 }
 0x1b7   : > { %2076 = vmatmul.bf16.gmra.mxu2 %v8789_v14  ;;  %v2125_v54 = vsel %vm2084_vm1, %v2035_v45, %v2105_v36  ;;  %v11400_v45 = vld [vmem:[%s14328_s1 + $0x268] sm:$0xff] }
 0x1b8   : > { %v1980_v23 = vpop.f32.mrf.mxu1  ;;  %v2144_v3 = vpack.c.bf16 %v2125_v54, %v2124_v8  ;;  %3899 = vmatpush.bf16.msra.mxu2 %v11400_v45  ;;  %3792 = vmatpush.bf16.msra.mxu0 %v11383_v27 }
 0x1b9   : > { %v1981_v44 = vadd.f32 %v1980_v23, %v1922_v52 }
 0x1ba   : > { %v2037_v60 = vpop.f32.mrf.mxu2  ;;  %2228 = vmatmul.bf16.vlgmr.msrb.gmra.mxu3 %v2144_v3  ;;  %v11392_v3 = vld [vmem:[%s14328_s1 + $0x228] sm:$0xff] }
 0x1bb   : > { %v1924_v53 = vpop.f32.mrf.mxu0  ;;  %v2038_v28 = vadd.f32 %v2037_v60, %v1979_v29  ;;  %v1877_v55 = vpop.f32.mrf.mxu3  ;;  %3845 = vmatpush.bf16.msra.mxu1 %v11392_v3  ;;  %v11398_v3 = vld [vmem:[%s14328_s1 + $0x258] sm:$0xff] }
 0x1bc   : > { %v1925_v0 = vadd.f32 %v1924_v53, %v1866_v58  ;;  %3900 = vmatpush.bf16.msra.mxu2 %v11399_v49  ;;  %v1878_v45 = vadd.f32 %v1877_v55, %v12778_v33 }
 0x1bd   : > { %v2106_v32 = vmul.f32 %v12964_v18, %v2038_v28  ;;  %vm2085_vm2 = vcmp.gt.f32.partialorder %v2038_v28, 0.0 }
 0x1bf   : > { %v2126_v62 = vsel %vm2085_vm2, %v2038_v28, %v2106_v32 }
 0x1c0   : > { %v1983_v61 = vpop.f32.mrf.mxu1  ;;  %3901 = vmatpush.bf16.msra.mxu2 %v11398_v3 }
 0x1c1   : > { %v1984_v13 = vadd.f32 %v1983_v61, %v1925_v0 }
 0x1c2   : > { %v2039_v39 = vpop.f32.mrf.mxu2 }
 0x1c3   : > { %v1926_v42 = vpop.f32.mrf.mxu0  ;;  %v2040_v25 = vadd.f32 %v2039_v39, %v1981_v44  ;;  %v1880_v61 = vpop.f32.mrf.mxu3 }
 0x1c4   : > { %v1927_v17 = vadd.f32 %v1926_v42, %v1868_v43  ;;  %v1881_v55 = vadd.f32 %v1880_v61, %v12789_v57  ;;  %v11390_v57 = vld [vmem:[%s14328_s1 + $0x218] sm:$0xff] }
 0x1c5   : > { %v2107_v10 = vmul.f32 %v12964_v18, %v2040_v25  ;;  %vm2086_vm3 = vcmp.gt.f32.partialorder %v2040_v25, 0.0 }
 0x1c7   : > { %v2127_v7 = vsel %vm2086_vm3, %v2040_v25, %v2107_v10 }
 0x1c8   : > { %v1985_v21 = vpop.f32.mrf.mxu1  ;;  %v2145_v46 = vpack.c.bf16 %v2127_v7, %v2126_v62  ;;  %v11391_v62 = vld [vmem:[%s14328_s1 + $0x220] sm:$0xff] }
 0x1c9   : > { %v1986_v23 = vadd.f32 %v1985_v21, %v1927_v17  ;;  %3846 = vmatpush.bf16.msra.mxu1 %v11391_v62 }
 0x1ca   : > { %v2042_v40 = vpop.f32.mrf.mxu2  ;;  %2233 = vmatmul.bf16.gmra.mxu3 %v2145_v46  ;;  %v1876_v46 = vadd.f32 %v1875_v26, %v12760_v59 }
 0x1cb   : > { %v1929_v48 = vpop.f32.mrf.mxu0  ;;  %v2043_v36 = vadd.f32 %v2042_v40, %v1984_v13  ;;  %v1882_v21 = vpop.f32.mrf.mxu3 }
 0x1cc   : > { %v1930_v11 = vadd.f32 %v1929_v48, %v1871_v38 }
 0x1cd   : > { %v2108_v8 = vmul.f32 %v12964_v18, %v2043_v36  ;;  %vm2087_vm4 = vcmp.gt.f32.partialorder %v2043_v36, 0.0  ;;  %3847 = vmatpush.bf16.msra.mxu1 %v11390_v57 }
 0x1cf   : > { %v2128_v60 = vsel %vm2087_vm4, %v2043_v36, %v2108_v8 }
 0x1d0   : > { %v1988_v14 = vpop.f32.mrf.mxu1 }
 0x1d1   : > { %v1989_v28 = vadd.f32 %v1988_v14, %v1930_v11 }
 0x1d2   : > { %v2044_v12 = vpop.f32.mrf.mxu2 }
 0x1d3   : > { %v1931_v15 = vpop.f32.mrf.mxu0  ;;  %v2045_v54 = vadd.f32 %v2044_v12, %v1986_v23  ;;  %v1885_v23 = vpop.f32.mrf.mxu3 }
 0x1d4   : > { %v1932_v42 = vadd.f32 %v1931_v15, %v1873_v2 }
 0x1d5   : > { %vm2088_vm5 = vcmp.gt.f32.partialorder %v2045_v54, 0.0  ;;  %v2109_v19 = vmul.f32 %v12964_v18, %v2045_v54 }
 0x1d7   : > { %v2129_v30 = vsel %vm2088_vm5, %v2045_v54, %v2109_v19 }
 0x1d8   : > { %v1990_v53 = vpop.f32.mrf.mxu1  ;;  %v2146_v29 = vpack.c.bf16 %v2129_v30, %v2128_v60 }
 0x1d9   : > { %v1991_v25 = vadd.f32 %v1990_v53, %v1932_v42  ;;  %v11382_v42 = vld [vmem:[%s14328_s1 + $0x1d8] sm:$0xff] }
 0x1da   : > { %v2047_v63 = vpop.f32.mrf.mxu2  ;;  %2238 = vmatmul.bf16.gmra.mxu3 %v2146_v29  ;;  %3793 = vmatpush.bf16.msra.mxu0 %v11382_v42 }
 0x1db   : > { %v1934_v52 = vpop.f32.mrf.mxu0  ;;  %v2048_v39 = vadd.f32 %v2047_v63, %v1989_v28  ;;  %v1887_v29 = vpop.f32.mrf.mxu3  ;;  %v1883_v63 = vadd.f32 %v1882_v21, %v12812_v41 }
 0x1dc   : > { %v1935_v13 = vadd.f32 %v1934_v52, %v1876_v46 }
 0x1dd   : > { %v2110_v31 = vmul.f32 %v12964_v18, %v2048_v39  ;;  %vm2089_vm6 = vcmp.gt.f32.partialorder %v2048_v39, 0.0 }
 0x1df   : > { %v2130_v48 = vsel %vm2089_vm6, %v2048_v39, %v2110_v31 }
 0x1e0   : > { %v1993_v44 = vpop.f32.mrf.mxu1 }
 0x1e1   : > { %v1994_v14 = vadd.f32 %v1993_v44, %v1935_v13 }
 0x1e2   : > { %v2049_v10 = vpop.f32.mrf.mxu2 }
 0x1e3   : > { %v1936_v32 = vpop.f32.mrf.mxu0  ;;  %v2050_v56 = vadd.f32 %v2049_v10, %v1991_v25  ;;  %v1890_v10 = vpop.f32.mrf.mxu3 }
 0x1e4   : > { %v1937_v36 = vadd.f32 %v1936_v32, %v1878_v45  ;;  %v11389_v45 = vld [vmem:[%s14328_s1 + $0x210] sm:$0xff] }
 0x1e5   : > { %vm2090_vm7 = vcmp.gt.f32.partialorder %v2050_v56, 0.0  ;;  %v2111_v58 = vmul.f32 %v12964_v18, %v2050_v56  ;;  %3848 = vmatpush.bf16.msra.mxu1 %v11389_v45 }
 0x1e7   : > { %v2131_v0 = vsel %vm2090_vm7, %v2050_v56, %v2111_v58  ;;  %v1886_v58 = vadd.f32 %v1885_v23, %v12826_v37  ;;  %v11381_v37 = vld [vmem:[%s14328_s1 + $0x1d0] sm:$0xff] }
 0x1e8   : > { %v1995_v7 = vpop.f32.mrf.mxu1  ;;  %v2147_v40 = vpack.c.bf16 %v2131_v0, %v2130_v48  ;;  %v1888_v0 = vadd.f32 %v1887_v29, %v12851_v35  ;;  %3794 = vmatpush.bf16.msra.mxu0 %v11381_v37 }
 0x1e9   : > { %v1996_v54 = vadd.f32 %v1995_v7, %v1937_v36 }
 0x1ea   : > { %v2052_v17 = vpop.f32.mrf.mxu2  ;;  %2243 = vmatmul.bf16.gmra.mxu3 %v2147_v40 }
 0x1eb   : > { %v1939_v43 = vpop.f32.mrf.mxu0  ;;  %v2053_v12 = vadd.f32 %v2052_v17, %v1994_v14  ;;  %v1892_v40 = vpop.f32.mrf.mxu3  ;;  %v11397_v17 = vld [vmem:[%s14328_s1 + $0x250] sm:$0xff] }
 0x1ec   : > { %v1940_v52 = vadd.f32 %v1939_v43, %v1881_v55  ;;  %3902 = vmatpush.bf16.msra.mxu2 %v11397_v17 }
 0x1ed   : > { %v2112_v26 = vmul.f32 %v12964_v18, %v2053_v12  ;;  %vm2091_vm8 = vcmp.gt.f32.partialorder %v2053_v12, 0.0 }
 0x1ef   : > { %v2132_v53 = vsel %vm2091_vm8, %v2053_v12, %v2112_v26  ;;  %v1891_v26 = vadd.f32 %v1890_v10, %v12871_v22  ;;  %v1721_v22 = vadd.f32 %v12918_v50, %v12890_v20  ;;  %v11380_v20 = vld [vmem:[%s14328_s1 + $0x1c8] sm:$0xff] }
 0x1f0   : > { %v1998_v15 = vpop.f32.mrf.mxu1  ;;  %3795 = vmatpush.bf16.msra.mxu0 %v11380_v20 }
 0x1f1   : > { %v1999_v2 = vadd.f32 %v1998_v15, %v1940_v52  ;;  %v11396_v52 = vld [vmem:[%s14328_s1 + $0x248] sm:$0xff] }
 0x1f2   : > { %v2054_v59 = vpop.f32.mrf.mxu2  ;;  %3903 = vmatpush.bf16.msra.mxu2 %v11396_v52  ;;  %v11403_v52 = vld [vmem:[%s14328_s1 + $0x280] sm:$0xff] }
 0x1f3   : > { %v1941_v8 = vpop.f32.mrf.mxu0  ;;  %v2055_v19 = vadd.f32 %v2054_v59, %v1996_v54 }
 0x1f4   : > { %v1942_v28 = vadd.f32 %v1941_v8, %v1883_v63 }
 0x1f5   : > { %vm2092_vm9 = vcmp.gt.f32.partialorder %v2055_v19, 0.0  ;;  %v2113_v16 = vmul.f32 %v12964_v18, %v2055_v19 }
 0x1f7   : > { %v2133_v38 = vsel %vm2092_vm9, %v2055_v19, %v2113_v16  ;;  %v1895_v19 = vpop.f32.mrf.mxu3 }
 0x1f8   : > { %v2000_v33 = vpop.f32.mrf.mxu1  ;;  %v2148_v60 = vpack.c.bf16 %v2133_v38, %v2132_v53  ;;  %v1893_v38 = vadd.f32 %v1892_v40, %v12898_v51  ;;  %v11410_v51 = vld [vmem:[%s14328_s1 + $0x2b8] sm:$0xff]  ;;  %v1896_v10 = vadd.f32 %v1895_v19, %v12913_v24  ;;  %v1726_v40 = vadd.f32 %v12918_v50, %v12926_v4  ;;  %v11379_v50 = vld [vmem:[%s14328_s1 + $0x1c0] sm:$0xff] }
 0x1f9   : > { %v2001_v32 = vadd.f32 %v2000_v33, %v1942_v28  ;;  %3951 = vmatpush.bf16.msra.mxu3 %v11410_v51  ;;  %3796 = vmatpush.bf16.msra.mxu0 %v11379_v50  ;;  %v14414_v19 = vld [vmem:[#allocation18_spill] sm:$0xff] }
 0x1fa   : > { %v2057_v11 = vpop.f32.mrf.mxu2  ;;  %2248 = vmatmul.bf16.gmra.mxu3 %v2148_v60 }
 0x1fb   : > { %v1944_v30 = vpop.f32.mrf.mxu0  ;;  %v2058_v44 = vadd.f32 %v2057_v11, %v1999_v2 }
 0x1fc   : > { %v1945_v46 = vadd.f32 %v1944_v30, %v1886_v58 }
 0x1fd   : > { %v2114_v41 = vmul.f32 %v12964_v18, %v2058_v44  ;;  %vm2093_vm10 = vcmp.gt.f32.partialorder %v2058_v44, 0.0 }
 0x1ff   : > { %v2134_v49 = vsel %vm2093_vm10, %v2058_v44, %v2114_v41  ;;  %v1897_v2 = vpop.f32.mrf.mxu3  ;;  %v1780_v44 = vadd.f32 %v12905_v34, %v1721_v22 }
 0x200   : > { %v2003_v61 = vpop.f32.mrf.mxu1 }
 0x201   : > { %v2004_v43 = vadd.f32 %v2003_v61, %v1945_v46  ;;  %v1839_v34 = vadd.f32 %v12930_v6, %v1780_v44  ;;  %v11407_v6 = vld [vmem:[%s14328_s1 + $0x2a0] sm:$0xff]  ;;  %v14418_v44 = vld [vmem:[#allocation24_spill] sm:$0xff] }
 0x202   : > { %v2059_v25 = vpop.f32.mrf.mxu2 }
 0x203   : > { %v1946_v39 = vpop.f32.mrf.mxu0  ;;  %v2060_v31 = vadd.f32 %v2059_v25, %v2001_v32  ;;  %v11388_v32 = vld [vmem:[%s14328_s1 + $0x208] sm:$0xff]  ;;  %v11409_v25 = vld [vmem:[%s14328_s1 + $0x2b0] sm:$0xff] }
 0x204   : > { %v1947_v13 = vadd.f32 %v1946_v39, %v1888_v0  ;;  %3849 = vmatpush.bf16.msra.mxu1 %v11388_v32  ;;  %3952 = vmatpush.bf16.msra.mxu3 %v11409_v25 }
 0x205   : > { %vm2094_vm11 = vcmp.gt.f32.partialorder %v2060_v31, 0.0  ;;  %v2115_v56 = vmul.f32 %v12964_v18, %v2060_v31 }
 0x207   : > { %v2135_v27 = vsel %vm2094_vm11, %v2060_v31, %v2115_v56  ;;  %v1900_v46 = vpop.f32.mrf.mxu3 }
 0x208   : > { %v2005_v21 = vpop.f32.mrf.mxu1  ;;  %v2149_v62 = vpack.c.bf16 %v2135_v27, %v2134_v49 }
 0x209   : > { %v2006_v35 = vadd.f32 %v2005_v21, %v1947_v13  ;;  %v11406_v13 = vld [vmem:[%s14328_s1 + $0x298] sm:$0xff] }
 0x20a   : > { %v2062_v48 = vpop.f32.mrf.mxu2  ;;  %2253 = vmatmul.bf16.gmra.mxu3 %v2149_v62  ;;  %v11408_v62 = vld [vmem:[%s14328_s1 + $0x2a8] sm:$0xff] }
 0x20b   : > { %v1949_v7 = vpop.f32.mrf.mxu0  ;;  %v2063_v36 = vadd.f32 %v2062_v48, %v2004_v43  ;;  %3953 = vmatpush.bf16.msra.mxu3 %v11408_v62  ;;  %v13121_v62 = vpack.c.bf16 %v12839_v1, %v12839_v1  ;;  %v11324_v1 = vld [vmem:[#allocation3 + $0x44] sm:$0xf] }
 0x20c   : > { %v1950_v55 = vadd.f32 %v1949_v7, %v1891_v26  ;;  %v1898_v7 = vadd.f32 %v1897_v2, %v1839_v34  ;;  %v9188_v34 = vld [vmem:[#allocation3 + $0x38] sm:$0xf] }
 0x20d   : > { %v2116_v12 = vmul.f32 %v12964_v18, %v2063_v36  ;;  %vm2095_vm12 = vcmp.gt.f32.partialorder %v2063_v36, 0.0  ;;  %4621 = vst [vmem:[#allocation3 + $0x38] sm:$0xf] %v13121_v62 }
 0x20f   : > { %v2136_v16 = vsel %vm2095_vm12, %v2063_v36, %v2116_v12  ;;  %3954 = vmatpush.bf16.msra.mxu3 %v11407_v6  ;;  %v1785_v36 = vadd.f32 %v12938_v47, %v1726_v40  ;;  %v1902_v4 = vpop.f32.mrf.mxu3  ;;  %v11405_v12 = vld [vmem:[%s14328_s1 + $0x290] sm:$0xff]  ;;  %v11387_v47 = vld [vmem:[%s14328_s1 + $0x200] sm:$0xff] }
 0x210   : > { %v2008_v14 = vpop.f32.mrf.mxu1  ;;  %3850 = vmatpush.bf16.msra.mxu1 %v11387_v47  ;;  %v4678_v6 = vld [vmem:[#allocation2 + $0x2e] sm:$0xff]  ;;  %v14421_v47 = vld [vmem:[#allocation27_spill] sm:$0xff] }
 0x211   : > { %v2009_v30 = vadd.f32 %v2008_v14, %v1950_v55  ;;  %v11404_v55 = vld [vmem:[%s14328_s1 + $0x288] sm:$0xff]  ;;  %v4692_v40 = vpack.c.bf16 %v4678_v6, %v4678_v6  ;;  %v11423_v6 = vld [vmem:[%s14328_s1 + $0x320] sm:$0xff] }
 0x212   : > { %v2064_v15 = vpop.f32.mrf.mxu2 }
 0x213   : > { %v1951_v23 = vpop.f32.mrf.mxu0  ;;  %v2065_v8 = vadd.f32 %v2064_v15, %v2006_v35  ;;  %3955 = vmatpush.bf16.msra.mxu3 %v11406_v13  ;;  %v4720_v13 = vld [vmem:[#allocation2 + $0x33] sm:$0xff] }
 0x214   : > { %v1952_v29 = vadd.f32 %v1951_v23, %v1893_v38  ;;  %v11395_v23 = vld [vmem:[%s14328_s1 + $0x240] sm:$0xff] }
 0x215   : > { %vm2096_vm13 = vcmp.gt.f32.partialorder %v2065_v8, 0.0  ;;  %v2117_v54 = vmul.f32 %v12964_v18, %v2065_v8  ;;  %3904 = vmatpush.bf16.msra.mxu2 %v11395_v23  ;;  %v11433_v23 = vld [vmem:[%s14328_s1 + $0x370] sm:$0xff] }
 0x217   : > { %v2137_v3 = vsel %vm2096_vm13, %v2065_v8, %v2117_v54  ;;  %v1901_v8 = vadd.f32 %v1900_v46, %v12940_v9  ;;  %v1844_v54 = vadd.f32 %v12946_v5, %v1785_v36  ;;  %3956 = vmatpush.bf16.msra.mxu3 %v11405_v12  ;;  %v11327_v46 = vld [vmem:[#allocation3 + $0x58] sm:$0xf0]  ;;  %v9198_v36 = vld [vmem:[#allocation3 + $0x5c] sm:$0xf0]  ;;  %v14420_v12 = vld [vmem:[#allocation28_spill] sm:$0xff] }
 0x218   : > { %v2010_v59 = vpop.f32.mrf.mxu1  ;;  %v2150_v33 = vpack.c.bf16 %v2137_v3, %v2136_v16  ;;  %v14415_v16 = vld [vmem:[#allocation19_spill] sm:$0xff]  ;;  %4706 = vst [vmem:[#allocation3 + $0x5c] sm:$0xf] %v4692_v40  ;;  %v11766_v40 = vld [vmem:[%s14331_s4] ss:$0 sm:$0xff] }
 0x219   : > { %v2011_v28 = vadd.f32 %v2010_v59, %v1952_v29  ;;  %v9161_v3 = vor.u32 %v14415_v16, %v14414_v19  ;;  %v1903_v5 = vadd.f32 %v1902_v4, %v1844_v54  ;;  %v4635_v4 = vld [vmem:[#allocation2 + $0x21] sm:$0xff]  ;;  %v11333_v19 = vld [vmem:[#allocation3 + $0x88] sm:$0xf0] }
 0x21a   : > { %v2067_v53 = vpop.f32.mrf.mxu2  ;;  %2258 = vmatmul.bf16.gmra.mxu3 %v2150_v33  ;;  %v4649_v54 = vpack.c.bf16 %v4635_v4, %v4635_v4  ;;  %4624 = vst [vmem:[#allocation3 + $0x8c] sm:$0xf] %v13121_v62 }
 0x21b   : > { %v1954_v60 = vpop.f32.mrf.mxu0  ;;  %v2068_v11 = vadd.f32 %v2067_v53, %v2009_v30  ;;  %3797 = vmatmul.bf16.vlgmr.msra.gmra.mxu0 %v9161_v3  ;;  %3957 = vmatpush.bf16.msra.mxu3 %v11404_v55  ;;  %v11425_v55 = vld [vmem:[%s14328_s1 + $0x330] sm:$0xff] }
 0x21c   : > { %v1955_v58 = vadd.f32 %v1954_v60, %v1896_v10  ;;  %v11434_v10 = vld [vmem:[%s14328_s1 + $0x378] sm:$0xff] }
 0x21d   : > { %v2118_v57 = vmul.f32 %v12964_v18, %v2068_v11  ;;  %vm2097_vm14 = vcmp.gt.f32.partialorder %v2068_v11, 0.0  ;;  %4113 = vmatpush.bf16.msrb.mxu2 %v11434_v10  ;;  %v11341_v10 = vld [vmem:[#allocation3 + $0xc8] sm:$0xf0] }
 0x21f   : > { %v2138_v31 = vsel %vm2097_vm14, %v2068_v11, %v2118_v57  ;;  %v14416_v11 = vld [vmem:[#allocation25_spill] sm:$0xff]  ;;  %3958 = vmatpush.bf16.msra.mxu3 %v11403_v52  ;;  %v11331_v52 = vld [vmem:[#allocation3 + $0x7c] sm:$0xf] }
 0x220   : > { %v2013_v63 = vpop.f32.mrf.mxu1 }
 0x221   : > { %v2014_v24 = vadd.f32 %v2013_v63, %v1955_v58  ;;  %v14417_v63 = vld [vmem:[#allocation26_spill] sm:$0xff]  ;;  %4114 = vmatpush.bf16.msrb.mxu2 %v11433_v23 }
 0x222   : > { %v2069_v42 = vpop.f32.mrf.mxu2  ;;  %v9169_v22 = vor.u32 %v14417_v63, %v14416_v11  ;;  %v11330_v11 = vld [vmem:[#allocation3 + $0x74] sm:$0xf]  ;;  %v9218_v63 = vld [vmem:[#allocation3 + $0x8c] sm:$0xf0] }
 0x223   : > { %v2070_v61 = vadd.f32 %v2069_v42, %v2011_v28  ;;  %v1956_v41 = vpop.f32.mrf.mxu0  ;;  %v11430_v23 = vld [vmem:[%s14328_s1 + $0x358] sm:$0xff] }
 0x224   : > { %v1957_v48 = vadd.f32 %v1956_v41, %v1898_v7  ;;  %3905 = vmatmul.bf16.vlgmr.msra.gmra.mxu2 %v9169_v22  ;;  %v11418_v41 = vld [vmem:[%s14328_s1 + $0x2f8] sm:$0xff]  ;;  %v9196_v7 = vld [vmem:[#allocation3 + $0x40] sm:$0xf]  ;;  %v9221_v22 = vor.u32 %v11330_v11, %v9218_v63  ;;  %v4686_v63 = vld [vmem:[#allocation2 + $0x6e] sm:$0xff] }
 0x225   : > { %vm2098_vm15 = vcmp.gt.f32.partialorder %v2070_v61, 0.0  ;;  %v2119_v39 = vmul.f32 %v12964_v18, %v2070_v61  ;;  %4005 = vmatpush.bf16.msrb.mxu0 %v11418_v41 }
 0x227   : > { %v2139_v56 = vsel %vm2098_vm15, %v2070_v61, %v2119_v39  ;;  %v14419_v39 = vld [vmem:[#allocation23_spill] sm:$0xff] }
 0x228   : > { %v2151_v21 = vpack.c.bf16 %v2139_v56, %v2138_v31  ;;  %v2015_v27 = vpop.f32.mrf.mxu1  ;;  %v9165_v20 = vor.u32 %v14419_v39, %v14418_v44  ;;  %v11326_v31 = vld [vmem:[#allocation3 + $0x50] sm:$0xf0] }
 0x229   : > { %v2016_v17 = vadd.f32 %v2015_v27, %v1957_v48  ;;  %v9189_v58 = vor.u32 %v11326_v31, %v9188_v34  ;;  %v11426_v27 = vld [vmem:[%s14328_s1 + $0x338] sm:$0xff]  ;;  %v4677_v48 = vld [vmem:[#allocation2 + $0x26] sm:$0xff]  ;;  %4622 = vst [vmem:[#allocation3 + $0x54] sm:$0xf] %v13121_v62  ;;  %v11337_v34 = vld [vmem:[#allocation3 + $0xac] sm:$0xf] }
 0x22a   : > { %v2072_v49 = vpop.f32.mrf.mxu2  ;;  %2263 = vmatmul.bf16.gmra.mxu3 %v2151_v21  ;;  %3851 = vmatmul.bf16.vlgmr.msra.gmra.mxu1 %v9165_v20  ;;  %v4638_v44 = vld [vmem:[#allocation2 + $0x39] sm:$0xff]  ;;  %v9246_v31 = vld [vmem:[#allocation3 + $0xc4] sm:$0xf0] }
 0x22b   : > { %v2073_v0 = vadd.f32 %v2072_v49, %v2014_v24  ;;  %v1959_v43 = vpop.f32.mrf.mxu0  ;;  %3802 = vmatmul.bf16.gmra.mxu0 %v9189_v58  ;;  %v9197_v24 = vor.u32 %v11327_v46, %v9196_v7  ;;  %4059 = vmatpush.bf16.msrb.mxu1 %v11426_v27  ;;  %v4652_v20 = vpack.c.bf16 %v4638_v44, %v4638_v44  ;;  %v11424_v27 = vld [vmem:[%s14328_s1 + $0x328] sm:$0xff] }
 0x22c   : > { %v1960_v53 = vadd.f32 %v1959_v43, %v1901_v8  ;;  %v4719_v43 = vld [vmem:[#allocation2 + $0x2b] sm:$0xff]  ;;  %v9173_v8 = vor.u32 %v14421_v47, %v14420_v12  ;;  %v11414_v12 = vld [vmem:[%s14328_s1 + $0x2d8] sm:$0xff] }
 0x22d   : > { %v2120_v45 = vmul.f32 %v12964_v18, %v2073_v0  ;;  %vm2099_vm0 = vcmp.gt.f32.partialorder %v2073_v0, 0.0  ;;  %4666 = vst [vmem:[#allocation3 + $0x90] sm:$0xf] %v4652_v20 }
 0x22f   : > { %v2140_v59 = vsel %vm2099_vm0, %v2073_v0, %v2120_v45  ;;  %v4691_v0 = vpack.c.bf16 %v4677_v48, %v4677_v48  ;;  %v11323_v45 = vld [vmem:[#allocation3 + $0x3c] sm:$0xf]  ;;  %4060 = vmatpush.bf16.msrb.mxu1 %v11425_v55 }
 0x230   : > { %v2018_v35 = vpop.f32.mrf.mxu1  ;;  %4663 = vst [vmem:[#allocation3 + $0x3c] sm:$0xf] %v4649_v54  ;;  %v11415_v48 = vld [vmem:[%s14328_s1 + $0x2e0] sm:$0xff]  ;;  %v9272_v54 = vld [vmem:[#allocation3 + $0xe0] sm:$0xf] }
 0x231   : > { %v2019_v60 = vadd.f32 %v2018_v35, %v1960_v53  ;;  %4705 = vst [vmem:[#allocation3 + $0x40] sm:$0xf] %v4691_v0  ;;  %v9224_v53 = vld [vmem:[#allocation3 + $0x78] sm:$0xf]  ;;  %v13157_v0 = vld [vmem:[#allocation3 + $0x130] sm:$0xf0] }
 0x232   : > { %v2074_v37 = vpop.f32.mrf.mxu2  ;;  %4630 = vst [vmem:[#allocation3 + $0x134] sm:$0xf] %v13121_v62 }
 0x233   : > { %v2075_v14 = vadd.f32 %v2074_v37, %v2016_v17  ;;  %v1961_v9 = vpop.f32.mrf.mxu0  ;;  %v4733_v17 = vpack.c.bf16 %v4719_v43, %v4719_v43  ;;  %v4734_v37 = vpack.c.bf16 %v4720_v13, %v4720_v13  ;;  %4061 = vmatpush.bf16.msrb.mxu1 %v11424_v27  ;;  %v2300_v13 = vstv %s2279_s9  ;;  %v13182_v27 = vld [vmem:[#allocation2 + $0x3] sm:$0xff]  ;;  %s10763_s9 = sld [smem:[#allocation7 + $0x3]] }
 0x234   : > { %v1962_v30 = vadd.f32 %v1961_v9, %v1903_v5  ;;  %3910 = vmatmul.bf16.gmra.mxu2 %v9197_v24  ;;  %v4679_v9 = vld [vmem:[#allocation2 + $0x36] sm:$0xff]  ;;  %v11431_v24 = vld [vmem:[%s14328_s1 + $0x360] sm:$0xff] }
 0x235   : > { %vm2100_vm1 = vcmp.gt.f32.partialorder %v2075_v14, 0.0  ;;  %v2121_v15 = vmul.f32 %v12964_v18, %v2075_v14  ;;  %4747 = vst [vmem:[#allocation3 + $0x44] sm:$0xf] %v4733_v17 }
 0x236   : > { %4748 = vst [vmem:[#allocation3 + $0x60] sm:$0xf] %v4734_v37 }
 0x237   : > { %v2141_v26 = vsel %vm2100_vm1, %v2075_v14, %v2121_v15  ;;  %v9190_v14 = vld [vmem:[#allocation3 + $0x54] sm:$0xf0]  ;;  %v4636_v15 = vld [vmem:[#allocation2 + $0x29] sm:$0xff]  ;;  %4062 = vmatpush.bf16.msrb.mxu1 %v11423_v6  ;;  %v4728_v6 = vld [vmem:[#allocation2 + $0x73] sm:$0xff] }
 0x238   : > { %v2152_v33 = vpack.c.bf16 %v2141_v26, %v2140_v59  ;;  %v2020_v2 = vpop.f32.mrf.mxu1  ;;  %v9193_v35 = vor.u32 %v11323_v45, %v9190_v14  ;;  %v4650_v59 = vpack.c.bf16 %v4636_v15, %v4636_v15  ;;  %v9216_v26 = vld [vmem:[#allocation3 + $0x70] sm:$0xf] }
 0x239   : > { %v2021_v42 = vadd.f32 %v2020_v2, %v1962_v30  ;;  %v9217_v16 = vor.u32 %v11333_v19, %v9216_v26  ;;  %4623 = vst [vmem:[#allocation3 + $0x70] sm:$0xf] %v13121_v62  ;;  %v4721_v30 = vld [vmem:[#allocation2 + $0x3b] sm:$0xff]  ;;  %v2351_v15 = vld [vmem:[#allocation2 + $0x53] sm:$0xff] }
 0x23a   : > { %v2077_v38 = vpop.f32.mrf.mxu2  ;;  %2268 = vmatmul.bf16.gmra.mxu3 %v2152_v33  ;;  %3856 = vmatmul.bf16.gmra.mxu1 %v9193_v35  ;;  %4664 = vst [vmem:[#allocation3 + $0x58] sm:$0xf] %v4650_v59  ;;  %v11417_v33 = vld [vmem:[%s14328_s1 + $0x2f0] sm:$0xff] }
 0x23b   : > { %v2078_v28 = vadd.f32 %v2077_v38, %v2019_v60  ;;  %3807 = vmatmul.bf16.gmra.mxu0 %v9217_v16  ;;  %v11334_v38 = vld [vmem:[#allocation3 + $0x90] sm:$0xf0]  ;;  %v4693_v60 = vpack.c.bf16 %v4679_v9, %v4679_v9 }
 0x23c   : > { %4006 = vmatpush.bf16.msrb.mxu0 %v11417_v33  ;;  %v9225_v5 = vor.u32 %v11334_v38, %v9224_v53  ;;  %v11422_v53 = vld [vmem:[%s14328_s1 + $0x318] sm:$0xff] }
 0x23d   : > { %v2229_v29 = vpop.f32.mrf.mxu3  ;;  %v2122_v57 = vmul.f32 %v12964_v18, %v2078_v28  ;;  %vm2101_vm2 = vcmp.gt.f32.partialorder %v2078_v28, 0.0  ;;  %4707 = vst [vmem:[#allocation3 + $0x78] sm:$0xf] %v4693_v60  ;;  %4063 = vmatpush.bf16.msrb.mxu1 %v11422_v53 }
 0x23e   : > { %v4735_v29 = vpack.c.bf16 %v4721_v30, %v4721_v30 }
 0x23f   : > { %v2142_v56 = vsel %vm2101_vm2, %v2078_v28, %v2122_v57  ;;  %v9201_v28 = vor.u32 %v11324_v1, %v9198_v36  ;;  %v2350_v1 = vld [vmem:[#allocation2 + $0x4b] sm:$0xff] }
 0x240   : > { %4749 = vst [vmem:[#allocation3 + $0x7c] sm:$0xf] %v4735_v29 }
 0x242   : > { %v2079_v51 = vpop.f32.mrf.mxu2 }
 0x243   : > { %v2080_v61 = vadd.f32 %v2079_v51, %v2021_v42  ;;  %v9244_v42 = vld [vmem:[#allocation3 + $0xa8] sm:$0xf]  ;;  %v11340_v51 = vld [vmem:[#allocation3 + $0xc0] sm:$0xf0] }
 0x244   : > { %3915 = vmatmul.bf16.gmra.mxu2 %v9225_v5  ;;  %v9245_v57 = vor.u32 %v11340_v51, %v9244_v42  ;;  %4625 = vst [vmem:[#allocation3 + $0xa8] sm:$0xf] %v13121_v62  ;;  %v4700_v42 = vpack.c.bf16 %v4686_v63, %v4686_v63 }
 0x245   : > { %vm2102_vm3 = vcmp.gt.f32.partialorder %v2080_v61, 0.0  ;;  %v2123_v32 = vmul.f32 %v12964_v18, %v2080_v61  ;;  %v2231_v25 = vpop.f32.mrf.mxu3 }
 0x246   : > { %v9252_v25 = vld [vmem:[#allocation3 + $0xb0] sm:$0xf] }
 0x247   : > { %v2143_v21 = vsel %vm2102_vm3, %v2080_v61, %v2123_v32  ;;  %v4637_v61 = vld [vmem:[#allocation2 + $0x31] sm:$0xff]  ;;  %v9253_v41 = vor.u32 %v11341_v10, %v9252_v25 }
 0x248   : > { %v2153_v49 = vpack.c.bf16 %v2143_v21, %v2142_v56  ;;  %v4651_v39 = vpack.c.bf16 %v4637_v61, %v4637_v61  ;;  %v9226_v56 = vld [vmem:[#allocation3 + $0x94] sm:$0xf0]  ;;  %v9249_v21 = vor.u32 %v11337_v34, %v9246_v31  ;;  %v13174_v61 = vld [vmem:[#allocation3 + $0x138] sm:$0xf0] }
 0x249   : > { %v9229_v7 = vor.u32 %v11331_v52, %v9226_v56  ;;  %v4644_v52 = vld [vmem:[#allocation2 + $0x69] sm:$0xff]  ;;  %4714 = vst [vmem:[#allocation3 + $0x13c] sm:$0xf] %v4700_v42 }
 0x24a   : > { %2273 = vmatmul.bf16.gmra.mxu3 %v2153_v49  ;;  %3861 = vmatmul.bf16.gmra.mxu1 %v9221_v22  ;;  %4665 = vst [vmem:[#allocation3 + $0x74] sm:$0xf] %v4651_v39  ;;  %v11432_v49 = vld [vmem:[%s14328_s1 + $0x368] sm:$0xff]  ;;  %v4658_v11 = vpack.c.bf16 %v4644_v52, %v4644_v52 }
 0x24b   : > { %3812 = vmatmul.bf16.gmra.mxu0 %v9245_v57  ;;  %4115 = vmatpush.bf16.msrb.mxu2 %v11432_v49 }
 0x24d   : > { %v2234_v18 = vpop.f32.mrf.mxu3 }
 0x24e   : > { %v11416_v18 = vld [vmem:[%s14328_s1 + $0x2e8] sm:$0xff] }
 0x24f   : > { %4007 = vmatpush.bf16.msrb.mxu0 %v11416_v18  ;;  %4116 = vmatpush.bf16.msrb.mxu2 %v11431_v24 }
 0x253   : > { %4008 = vmatpush.bf16.msrb.mxu0 %v11415_v48  ;;  %4117 = vmatpush.bf16.msrb.mxu2 %v11430_v23  ;;  %v4727_v48 = vld [vmem:[#allocation2 + $0x6b] sm:$0xff] }
 0x254   : > { %3920 = vmatmul.bf16.gmra.mxu2 %v9253_v41 }
 0x255   : > { %v2236_v50 = vpop.f32.mrf.mxu3 }
 0x257   : > { %4009 = vmatpush.bf16.msrb.mxu0 %v11414_v12 }
 0x25a   : > { %3959 = vmatmul.bf16.vlgmr.msra.gmra.mxu3 %v9173_v8  ;;  %3866 = vmatmul.bf16.gmra.mxu1 %v9249_v21 }
 0x25d   : > { %v2239_v3 = vpop.f32.mrf.mxu3 }
 0x265   : > { %v2241_v2 = vpop.f32.mrf.mxu3 }
 0x266   : > { %v11338_v2 = vld [vmem:[#allocation3 + $0xb4] sm:$0xf] }
 0x26a   : > { %3964 = vmatmul.bf16.gmra.mxu3 %v9201_v28  ;;  %v13172_v28 = vld [vmem:[#allocation3 + $0x134] sm:$0xf0] }
 0x26b   : > { %4672 = vst [vmem:[#allocation3 + $0x138] sm:$0xf] %v4658_v11 }
 0x26d   : > { %v2244_v32 = vpop.f32.mrf.mxu3 }
 0x275   : > { %v2246_v58 = vpop.f32.mrf.mxu3 }
 0x27a   : > { %3969 = vmatmul.bf16.gmra.mxu3 %v9229_v7 }
 0x27d   : > { %v2249_v46 = vpop.f32.mrf.mxu3 }
 0x285   : > { %v2251_v43 = vpop.f32.mrf.mxu3 }
 0x286   : > { %v2252_v17 = vadd.f32 %v11766_v40, %v2251_v43 }
 0x288   : > { %vm2289_vm4 = vcmp.gt.f32.partialorder %v2252_v17, 0.0  ;;  %v2310_v37 = vmul.f32 %v2300_v13, %v2252_v17 }
 0x28a   : > { %v2330_v45 = vsel %vm2289_vm4, %v2252_v17, %v2310_v37  ;;  %v4685_v37 = vld [vmem:[#allocation2 + $0x66] sm:$0xff] }
 0x28b   : > { %v2370_v14 = vadd.f32 %v2350_v1, %v2330_v45  ;;  %v13189_v1 = vld [vmem:[#allocation3 + $0x150] sm:$0xf]  ;;  %v4741_v45 = vpack.c.bf16 %v4727_v48, %v4727_v48  ;;  %v4699_v53 = vpack.c.bf16 %v4685_v37, %v4685_v37 }
 0x28c   : > { %4631 = vst [vmem:[#allocation3 + $0x150] sm:$0xf] %v13121_v62 }
 0x28d   : > { %v2254_v36 = vpop.f32.mrf.mxu3  ;;  %2553 = vst [vmem:[#allocation2 + $0x4b] sm:$0xff] %v2370_v14  ;;  %v2591_v35 = vpack.c.bf16 %v2370_v14, %v2370_v14  ;;  %v11413_v14 = vld [vmem:[%s14328_s1 + $0x2d0] sm:$0xff] }
 0x28e   : > { %v2255_v50 = vadd.f32 %v11766_v40, %v2254_v36  ;;  %v11429_v40 = vld [vmem:[%s14328_s1 + $0x350] sm:$0xff]  ;;  %4010 = vmatpush.bf16.msrb.mxu0 %v11413_v14 }
 0x28f   : > { %2609 = vst [vmem:[#allocation3 + $0xfc] sm:$0xf] %v2591_v35  ;;  %4118 = vmatpush.bf16.msrb.mxu2 %v11429_v40  ;;  %v11421_v36 = vld [vmem:[%s14328_s1 + $0x310] sm:$0xff] }
 0x290   : > { %vm2290_vm5 = vcmp.gt.f32.partialorder %v2255_v50, 0.0  ;;  %v2311_v4 = vmul.f32 %v2300_v13, %v2255_v50  ;;  %4064 = vmatpush.bf16.msrb.mxu1 %v11421_v36 }
 0x292   : > { %v2331_v47 = vsel %vm2290_vm5, %v2255_v50, %v2311_v4  ;;  %v13197_v50 = vld [vmem:[#allocation3 + $0x168] sm:$0xf0]  ;;  %v4742_v4 = vpack.c.bf16 %v4728_v6, %v4728_v6 }
 0x293   : > { %v2371_v8 = vadd.f32 %v2351_v15, %v2331_v47  ;;  %v13201_v47 = vld [vmem:[#allocation3 + $0x124] sm:$0xf]  ;;  %4632 = vst [vmem:[#allocation3 + $0x16c] sm:$0xf] %v13121_v62  ;;  %v9329_v40 = vor.u32 %v13197_v50, %v13189_v1  ;;  %v9356_v50 = vld [vmem:[#allocation3 + $0x188] sm:$0xf] }
 0x294   : > { %v2733_v59 = vld [vmem:[#allocation2 + $0x44] sm:$0xff]  ;;  %4755 = vst [vmem:[#allocation3 + $0x124] sm:$0xf] %v4741_v45 }
 0x295   : > { %v2626_v26 = vld [vmem:[#allocation2 + $0x46] sm:$0xff]  ;;  %2554 = vst [vmem:[#allocation2 + $0x53] sm:$0xff] %v2371_v8  ;;  %v2256_v16 = vpop.f32.mrf.mxu3  ;;  %v2751_v3 = vpack.c.bf16 %v2733_v59, %v2733_v59  ;;  %v2592_v5 = vpack.c.bf16 %v2371_v8, %v2371_v8 }
 0x296   : > { %v2680_v19 = vld [vmem:[#allocation2 + $0x49] sm:$0xff]  ;;  %v2644_v33 = vpack.c.bf16 %v2626_v26, %v2626_v26  ;;  %v11347_v9 = vld [vmem:[#allocation3 + $0xf8] sm:$0xf0] }
 0x297   : > { %v2698_v55 = vpack.c.bf16 %v2680_v19, %v2680_v19  ;;  %v2787_v38 = vld [vmem:[#allocation2 + $0x47] sm:$0xff]  ;;  %v9273_v60 = vor.u32 %v11347_v9, %v9272_v54  ;;  %2769 = vst [vmem:[#allocation3 + $0xd0] sm:$0xf] %v2751_v3 }
 0x298   : > { %v2805_v30 = vpack.c.bf16 %v2787_v38, %v2787_v38  ;;  %v2841_v29 = vld [vmem:[#allocation2 + $0x4a] sm:$0xff]  ;;  %2662 = vst [vmem:[#allocation3 + $0xe4] sm:$0xf] %v2644_v33  ;;  %v3798_v14 = vpop.f32.mrf.mxu0 }
 0x299   : > { %3817 = vmatmul.bf16.gmra.mxu0 %v9273_v60  ;;  %2716 = vst [vmem:[#allocation3 + $0xe8] sm:$0xf] %v2698_v55  ;;  %v2859_v22 = vpack.c.bf16 %v2841_v29, %v2841_v29  ;;  %v13204_v33 = vld [vmem:[#allocation3 + $0x13c] sm:$0xf0]  ;;  %v4646_v55 = vld [vmem:[#allocation2 + $0x79] sm:$0xff] }
 0x29a   : > { %2610 = vst [vmem:[#allocation3 + $0x118] sm:$0xf] %v2592_v5  ;;  %v2894_v38 = vld [vmem:[#allocation2 + $0x45] sm:$0xff]  ;;  %v4687_v60 = vld [vmem:[#allocation2 + $0x76] sm:$0xff]  ;;  %v4660_v52 = vpack.c.bf16 %v4646_v55, %v4646_v55  ;;  %v9313_v36 = vor.u32 %v13201_v47, %v13204_v33 }
 0x29b   : > { %2823 = vst [vmem:[#allocation3 + $0xd4] sm:$0xf] %v2805_v30  ;;  %v4688_v30 = vld [vmem:[#allocation2 + $0x7e] sm:$0xff] }
 0x29c   : > { %v2627_v51 = vld [vmem:[#allocation2 + $0x4e] sm:$0xff]  ;;  %v2628_v25 = vld [vmem:[#allocation2 + $0x56] sm:$0xff]  ;;  %2877 = vst [vmem:[#allocation3 + $0xd8] sm:$0xf] %v2859_v22  ;;  %v4701_v22 = vpack.c.bf16 %v4687_v60, %v4687_v60  ;;  %v4702_v42 = vpack.c.bf16 %v4688_v30, %v4688_v30  ;;  %v11419_v33 = vld [vmem:[%s14328_s1 + $0x300] sm:$0xff] }
 0x29d   : > { %v2681_v57 = vld [vmem:[#allocation2 + $0x51] sm:$0xff]  ;;  %v2259_v44 = vpop.f32.mrf.mxu3  ;;  %v2645_v39 = vpack.c.bf16 %v2627_v51, %v2627_v51  ;;  %v2682_v34 = vld [vmem:[#allocation2 + $0x59] sm:$0xff]  ;;  %v2646_v46 = vpack.c.bf16 %v2628_v25, %v2628_v25  ;;  %4756 = vst [vmem:[#allocation3 + $0x140] sm:$0xf] %v4742_v4  ;;  %v11368_v4 = vld [vmem:[#allocation3 + $0x1a0] sm:$0xf0] }
 0x29e   : > { %v2699_v20 = vpack.c.bf16 %v2681_v57, %v2681_v57  ;;  %v9254_v32 = vld [vmem:[#allocation3 + $0xcc] sm:$0xf0]  ;;  %v2734_v10 = vld [vmem:[#allocation2 + $0x4c] sm:$0xff]  ;;  %v2700_v24 = vpack.c.bf16 %v2682_v34, %v2682_v34  ;;  %v11362_v25 = vld [vmem:[#allocation3 + $0x170] sm:$0xf0] }
 0x29f   : > { %v9257_v41 = vor.u32 %v11338_v2, %v9254_v32  ;;  %2663 = vst [vmem:[#allocation3 + $0x100] sm:$0xf] %v2645_v39  ;;  %v2735_v31 = vld [vmem:[#allocation2 + $0x54] sm:$0xff]  ;;  %v2752_v56 = vpack.c.bf16 %v2734_v10, %v2734_v10  ;;  %v11344_v43 = vld [vmem:[#allocation3 + $0xe4] sm:$0xf]  ;;  %v2912_v39 = vpack.c.bf16 %v2894_v38, %v2894_v38  ;;  %v4759_v30 = vld [vmem:[#allocation2 + $0x20] sm:$0xff] }
 0x2a0   : > { %2717 = vst [vmem:[#allocation3 + $0x104] sm:$0xf] %v2699_v20  ;;  %v13176_v21 = vld [vmem:[#allocation2 + $0x57] sm:$0xff]  ;;  %v2753_v18 = vpack.c.bf16 %v2735_v31, %v2735_v31  ;;  %v9280_v17 = vld [vmem:[#allocation3 + $0xe8] sm:$0xf] }
 0x2a1   : > { %v13178_v58 = vld [vmem:[#allocation2 + $0x5a] sm:$0xff]  ;;  %3974 = vmatmul.bf16.gmra.mxu3 %v9257_v41  ;;  %2770 = vst [vmem:[#allocation3 + $0xec] sm:$0xf] %v2752_v56  ;;  %v2895_v44 = vld [vmem:[#allocation2 + $0x4d] sm:$0xff]  ;;  %v4730_v41 = vld [vmem:[#allocation2 + $0x83] sm:$0xff]  ;;  %v2807_v48 = vpack.c.bf16 %v13176_v21, %v13176_v21 }
 0x2a2   : > { %v13180_v49 = vld [vmem:[#allocation2 + $0x55] sm:$0xff]  ;;  %v9300_v7 = vld [vmem:[#allocation3 + $0x118] sm:$0xf]  ;;  %2771 = vst [vmem:[#allocation3 + $0x108] sm:$0xf] %v2753_v18  ;;  %v4744_v31 = vpack.c.bf16 %v4730_v41, %v4730_v41  ;;  %v2913_v56 = vpack.c.bf16 %v2895_v44, %v2895_v44  ;;  %v2861_v1 = vpack.c.bf16 %v13178_v58, %v13178_v58 }
 0x2a3   : > { %4583 = vst [vmem:[#allocation2 + $0x5c] sm:$0xff] %v13182_v27  ;;  %v9301_v12 = vor.u32 %v13157_v0, %v9300_v7  ;;  %v4645_v0 = vld [vmem:[#allocation2 + $0x71] sm:$0xff]  ;;  %v13206_v2 = vld [vmem:[#allocation3 + $0x154] sm:$0xf]  ;;  %v9336_v20 = vld [vmem:[#allocation3 + $0x158] sm:$0xf]  ;;  %v2914_v45 = vpack.c.bf16 %v13180_v49, %v13180_v49 }
 0x2a4   : > { %4629 = vst [vmem:[#allocation3 + $0x118] sm:$0xf] %v13121_v62  ;;  %v4659_v5 = vpack.c.bf16 %v4645_v0, %v4645_v0  ;;  %v13208_v57 = vld [vmem:[#allocation3 + $0x16c] sm:$0xf0]  ;;  %v2788_v32 = vld [vmem:[#allocation2 + $0x4f] sm:$0xff] }
 0x2a5   : > { %v2261_v13 = vpop.f32.mrf.mxu3  ;;  %2664 = vst [vmem:[#allocation3 + $0x11c] sm:$0xf] %v2646_v46  ;;  %v4729_v10 = vld [vmem:[#allocation2 + $0x7b] sm:$0xff]  ;;  %v2842_v18 = vld [vmem:[#allocation2 + $0x52] sm:$0xff]  ;;  %v11359_v7 = vld [vmem:[#allocation3 + $0x15c] sm:$0xf]  ;;  %v2806_v46 = vpack.c.bf16 %v2788_v32, %v2788_v32  ;;  %v9333_v47 = vor.u32 %v13206_v2, %v13208_v57 }
 0x2a6   : > { %v9274_v35 = vld [vmem:[#allocation3 + $0xfc] sm:$0xf0]  ;;  %2718 = vst [vmem:[#allocation3 + $0x120] sm:$0xf] %v2700_v24  ;;  %v4743_v34 = vpack.c.bf16 %v4729_v10, %v4729_v10  ;;  %v9338_v24 = vld [vmem:[#allocation3 + $0x174] sm:$0xf0] }
 0x2a7   : > { %v9277_v15 = vor.u32 %v11344_v43, %v9274_v35  ;;  %v11348_v23 = vld [vmem:[#allocation3 + $0x100] sm:$0xf0]  ;;  %4673 = vst [vmem:[#allocation3 + $0x154] sm:$0xf] %v4659_v5  ;;  %v11427_v35 = vld [vmem:[%s14328_s1 + $0x340] sm:$0xff]  ;;  %v9341_v38 = vor.u32 %v11359_v7, %v9338_v24 }
 0x2a8   : > { %v9281_v8 = vor.u32 %v11348_v23, %v9280_v17  ;;  %v11345_v62 = vld [vmem:[#allocation3 + $0xec] sm:$0xf]  ;;  %4674 = vst [vmem:[#allocation3 + $0x170] sm:$0xf] %v4660_v52  ;;  %v11428_v43 = vld [vmem:[%s14328_s1 + $0x348] sm:$0xff]  ;;  %v2860_v17 = vpack.c.bf16 %v2842_v18, %v2842_v18  ;;  %v3906_v23 = vpop.f32.mrf.mxu2 }
 0x2a9   : > { %3871 = vmatmul.bf16.gmra.mxu1 %v9277_v15  ;;  %3822 = vmatmul.bf16.gmra.mxu0 %v9301_v12  ;;  %v9282_v9 = vld [vmem:[#allocation3 + $0x104] sm:$0xf0]  ;;  %4715 = vst [vmem:[#allocation3 + $0x158] sm:$0xf] %v4701_v22  ;;  %v11412_v13 = vld [vmem:[%s14328_s1 + $0x2c8] sm:$0xff]  ;;  %v3852_v15 = vpop.f32.mrf.mxu1 }
 0x2aa   : > { %v4684_v54 = vld [vmem:[#allocation2 + $0x5e] sm:$0xff]  ;;  %3925 = vmatmul.bf16.gmra.mxu2 %v9281_v8  ;;  %v9285_v51 = vor.u32 %v11345_v62, %v9282_v9  ;;  %4716 = vst [vmem:[#allocation3 + $0x174] sm:$0xf] %v4702_v42  ;;  %4011 = vmatpush.bf16.msrb.mxu0 %v11412_v13  ;;  %v13240_v8 = vpop.f32.mrf.mxu0  ;;  %v11365_v5 = vld [vmem:[#allocation3 + $0x18c] sm:$0xf]  ;;  %v4760_v62 = vld [vmem:[#allocation2 + $0x28] sm:$0xff] }
 0x2ab   : > { %v4726_v59 = vld [vmem:[#allocation2 + $0x63] sm:$0xff]  ;;  %v4698_v19 = vpack.c.bf16 %v4684_v54, %v4684_v54  ;;  %2930 = vst [vmem:[#allocation3 + $0xc0] sm:$0xf] %v2912_v39  ;;  %4119 = vmatpush.bf16.msrb.mxu2 %v11428_v43  ;;  %v9358_v60 = vld [vmem:[#allocation3 + $0x1a4] sm:$0xf0] }
 0x2ac   : > { %v4643_v26 = vld [vmem:[#allocation2 + $0x61] sm:$0xff]  ;;  %v4740_v16 = vpack.c.bf16 %v4726_v59, %v4726_v59  ;;  %4757 = vst [vmem:[#allocation3 + $0x15c] sm:$0xf] %v4743_v34  ;;  %v9357_v59 = vor.u32 %v11368_v4, %v9356_v50  ;;  %v9364_v2 = vld [vmem:[#allocation3 + $0x190] sm:$0xf]  ;;  %v4802_v18 = vld [vmem:[#allocation2 + $0x2d] sm:$0xff] }
 0x2ad   : > { %v4657_v3 = vpack.c.bf16 %v4643_v26, %v4643_v26  ;;  %4712 = vst [vmem:[#allocation3 + $0x104] sm:$0xf] %v4698_v19  ;;  %v11351_v29 = vld [vmem:[#allocation3 + $0x11c] sm:$0xf]  ;;  %v2264_v11 = vpop.f32.mrf.mxu3  ;;  %v9308_v63 = vld [vmem:[#allocation3 + $0x120] sm:$0xf]  ;;  %v9337_v19 = vor.u32 %v11362_v25, %v9336_v20  ;;  %v9361_v25 = vor.u32 %v11365_v5, %v9358_v60  ;;  %v4816_v24 = vpack.c.bf16 %v4802_v18, %v4802_v18 }
 0x2ae   : > { %4754 = vst [vmem:[#allocation3 + $0x108] sm:$0xf] %v4740_v16  ;;  %v9305_v37 = vor.u32 %v11351_v29, %v13172_v28  ;;  %v9309_v21 = vor.u32 %v13174_v61, %v9308_v63  ;;  %v11420_v28 = vld [vmem:[%s14328_s1 + $0x308] sm:$0xff]  ;;  %v13232_v61 = vld [vmem:[%s14329_s2 + $0x1] ss:$0 sm:$0xff]  ;;  %v4773_v11 = vpack.c.bf16 %v4759_v30, %v4759_v30  ;;  %v4774_v63 = vpack.c.bf16 %v4760_v62, %v4760_v62  ;;  %v4803_v30 = vld [vmem:[#allocation2 + $0x35] sm:$0xff] }
 0x2af   : > { %4671 = vst [vmem:[#allocation3 + $0x11c] sm:$0xf] %v4657_v3  ;;  %4065 = vmatpush.bf16.msrb.mxu1 %v11420_v28  ;;  %v3799_v49 = vadd.f32 %v13232_v61, %v3798_v14  ;;  %4120 = vmatpush.bf16.msrb.mxu2 %v11427_v35  ;;  %v11411_v16 = vld [vmem:[%s14328_s1 + $0x2c0] sm:$0xff]  ;;  %v9384_v29 = vld [vmem:[#allocation3 + $0x1c0] sm:$0xf]  ;;  %v4761_v28 = vld [vmem:[#allocation2 + $0x30] sm:$0xff] }
 0x2b0   : > { %4713 = vst [vmem:[#allocation3 + $0x120] sm:$0xf] %v4699_v53  ;;  %v13254_v0 = vpop.f32.mrf.mxu2  ;;  %4012 = vmatpush.bf16.msrb.mxu0 %v11411_v16  ;;  %v11375_v52 = vld [vmem:[#allocation3 + $0x1d8] sm:$0x70]  ;;  %v11369_v42 = vld [vmem:[#allocation3 + $0x1a8] sm:$0xf0] }
 0x2b1   : > { %3979 = vmatmul.bf16.gmra.mxu3 %v9285_v51  ;;  %4758 = vst [vmem:[#allocation3 + $0x178] sm:$0xf] %v4744_v31  ;;  %v3853_v12 = vadd.f32 %v3852_v15, %v3799_v49  ;;  %v13249_v3 = vpop.f32.mrf.mxu1  ;;  %v13258_v51 = vld [vmem:[#allocation3 + $0x10] sm:$0xf]  ;;  %v11321_v20 = vld [vmem:[#allocation3 + $0x28] sm:$0xf0]  ;;  %v9385_v10 = vor.u32 %v11375_v52, %v9384_v29  ;;  %v9365_v34 = vor.u32 %v11369_v42, %v9364_v2 }
 0x2b2   : > { %2931 = vst [vmem:[#allocation3 + $0xdc] sm:$0xf] %v2913_v56  ;;  %v3803_v55 = vpop.f32.mrf.mxu0  ;;  %v11366_v31 = vld [vmem:[#allocation3 + $0x194] sm:$0xf]  ;;  %v4801_v56 = vld [vmem:[#allocation2 + $0x25] sm:$0xff]  ;;  %v4775_v49 = vpack.c.bf16 %v4761_v28, %v4761_v28  ;;  %v4817_v29 = vpack.c.bf16 %v4803_v30, %v4803_v30 }
 0x2b3   : > { %2824 = vst [vmem:[#allocation3 + $0xf0] sm:$0xf] %v2806_v46  ;;  %v13244_v26 = vadd.f32 %v3906_v23, %v3853_v12  ;;  %4066 = vmatpush.bf16.msrb.mxu1 %v11419_v33  ;;  %v3804_v9 = vadd.f32 %v13232_v61, %v3803_v55  ;;  %v9366_v7 = vld [vmem:[#allocation3 + $0x1ac] sm:$0xf0]  ;;  %v4815_v46 = vpack.c.bf16 %v4801_v56, %v4801_v56  ;;  %v13266_v43 = vld [vmem:[#allocation3 + $0x14] sm:$0xf] }
 0x2b4   : > { %2825 = vst [vmem:[#allocation3 + $0x10c] sm:$0xf] %v2807_v48  ;;  %v4843_v48 = vld [vmem:[#allocation2 + $0x2a] sm:$0xff]  ;;  %v4762_v14 = vld [vmem:[#allocation2 + $0x38] sm:$0xff]  ;;  %v11373_v60 = vld [vmem:[#allocation3 + $0x1cc] sm:$0xf] }
 0x2b5   : > { %v2266_v6 = vpop.f32.mrf.mxu3  ;;  %2878 = vst [vmem:[#allocation3 + $0xf4] sm:$0xf] %v2860_v17  ;;  %v4857_v13 = vpack.c.bf16 %v4843_v48, %v4843_v48  ;;  %v4776_v35 = vpack.c.bf16 %v4762_v14, %v4762_v14  ;;  %v11322_v50 = vld [vmem:[#allocation3 + $0x30] sm:$0xf0]  ;;  %v9204_v15 = vld [vmem:[#allocation3 + $0x48] sm:$0xf] }
 0x2b6   : > { %2879 = vst [vmem:[#allocation3 + $0x110] sm:$0xf] %v2861_v1  ;;  %v4844_v6 = vld [vmem:[#allocation2 + $0x32] sm:$0xff]  ;;  %v11328_v23 = vld [vmem:[#allocation3 + $0x60] sm:$0xf0]  ;;  %v4845_v52 = vld [vmem:[#allocation2 + $0x3a] sm:$0xff] }
 0x2b7   : > { %2932 = vst [vmem:[#allocation3 + $0xf8] sm:$0xf] %v2914_v45  ;;  %v4858_v17 = vpack.c.bf16 %v4844_v6, %v4844_v6  ;;  %v9178_v45 = vld [vmem:[#allocation3 + $0x2c] sm:$0xf0]  ;;  %v11372_v12 = vld [vmem:[#allocation3 + $0x1c4] sm:$0xf]  ;;  %v4859_v2 = vpack.c.bf16 %v4845_v52, %v4845_v52 }
 0x2b8   : > { %6286 = vst [vmem:[#allocation2 + $0x1b] sm:$0xff] %v13182_v27  ;;  %v3911_v44 = vpop.f32.mrf.mxu2  ;;  %v9394_v62 = vld [vmem:[#allocation3 + $0x1e4] sm:$0x70]  ;;  %v9212_v42 = vld [vmem:[#allocation3 + $0x50] sm:$0xf]  ;;  %v4809_v30 = vld [vmem:[#allocation2 + $0x65] sm:$0xff] }
 0x2b9   : > { %3876 = vmatmul.bf16.gmra.mxu1 %v9305_v37  ;;  %3827 = vmatmul.bf16.gmra.mxu0 %v9329_v40  ;;  %v3857_v22 = vpop.f32.mrf.mxu1  ;;  %4787 = vst [vmem:[#allocation3 + $0x10] sm:$0xf] %v4773_v11  ;;  %v11335_v48 = vld [vmem:[#allocation3 + $0x98] sm:$0xf0]  ;;  %v11329_v6 = vld [vmem:[#allocation3 + $0x68] sm:$0xf0] }
 0x2ba   : > { %3930 = vmatmul.bf16.gmra.mxu2 %v9309_v21  ;;  %v3858_v57 = vadd.f32 %v3857_v22, %v3804_v9  ;;  %v13260_v39 = vpop.f32.mrf.mxu0  ;;  %4788 = vst [vmem:[#allocation3 + $0x2c] sm:$0xf] %v4774_v63  ;;  %v11442_v21 = vld [vmem:[%s14330_s3 + $0x78] sm:$0xff]  ;;  %v11441_v63 = vld [vmem:[%s14330_s3 + $0x70] sm:$0xff]  ;;  %v13296_v28 = vld [vmem:[#allocation3 + $0xd4] sm:$0xf0] }
 0x2bb   : > { %6287 = vst [vmem:[#allocation2 + $0x23] sm:$0xff] %v13182_v27  ;;  %4299 = vmatpush.bf16.msrb.mxu3 %v11442_v21  ;;  %v11325_v22 = vld [vmem:[#allocation3 + $0x4c] sm:$0xf]  ;;  %v9213_v21 = vor.u32 %v11329_v6, %v9212_v42 }
 0x2bc   : > { %v13262_v41 = vadd.f32 %v3911_v44, %v3858_v57  ;;  %4829 = vst [vmem:[#allocation3 + $0x14] sm:$0xf] %v4815_v46  ;;  %v9397_v57 = vor.u32 %v11373_v60, %v9394_v62  ;;  %v9206_v46 = vld [vmem:[#allocation3 + $0x64] sm:$0xf0] }
 0x2bd   : > { %v2269_v58 = vpop.f32.mrf.mxu3  ;;  %4830 = vst [vmem:[#allocation3 + $0x30] sm:$0xf] %v4816_v24  ;;  %v9232_v24 = vld [vmem:[#allocation3 + $0x80] sm:$0xf]  ;;  %v4810_v62 = vld [vmem:[#allocation2 + $0x6d] sm:$0xff] }
 0x2be   : > { %v9369_v58 = vor.u32 %v11366_v31, %v9366_v7  ;;  %4872 = vst [vmem:[#allocation3 + $0x34] sm:$0xf] %v4858_v17  ;;  %v9205_v31 = vor.u32 %v11328_v23, %v9204_v15  ;;  %v11440_v7 = vld [vmem:[%s14330_s3 + $0x68] sm:$0xff]  ;;  %v9233_v17 = vor.u32 %v11335_v48, %v9232_v24  ;;  %v9288_v23 = vld [vmem:[#allocation3 + $0xf0] sm:$0xf]  ;;  %v4824_v52 = vpack.c.bf16 %v4810_v62, %v4810_v62  ;;  %v4771_v62 = vld [vmem:[#allocation2 + $0x80] sm:$0xff] }
 0x2bf   : > { %4789 = vst [vmem:[#allocation3 + $0x48] sm:$0xf] %v4775_v49  ;;  %4300 = vmatpush.bf16.msrb.mxu3 %v11441_v63  ;;  %v4767_v49 = vld [vmem:[#allocation2 + $0x60] sm:$0xff]  ;;  %v4851_v63 = vld [vmem:[#allocation2 + $0x6a] sm:$0xff] }
 0x2c0   : > { %v13269_v37 = vpop.f32.mrf.mxu2  ;;  %4790 = vst [vmem:[#allocation3 + $0x64] sm:$0xf] %v4776_v35  ;;  %v4768_v35 = vld [vmem:[#allocation2 + $0x68] sm:$0xff]  ;;  %v4865_v42 = vpack.c.bf16 %v4851_v63, %v4851_v63  ;;  %v11339_v48 = vld [vmem:[#allocation3 + $0xbc] sm:$0xf] }
 0x2c1   : > { %3984 = vmatmul.bf16.gmra.mxu3 %v9313_v36  ;;  %v13264_v40 = vpop.f32.mrf.mxu1  ;;  %v9184_v36 = vld [vmem:[#allocation3 + $0x18] sm:$0xf]  ;;  %6288 = vst [vmem:[#allocation2 + $0x2b] sm:$0xff] %v13182_v27  ;;  %v4782_v15 = vpack.c.bf16 %v4768_v35, %v4768_v35  ;;  %v11356_v24 = vld [vmem:[#allocation3 + $0x140] sm:$0xf0] }
 0x2c2   : > { %v3808_v1 = vpop.f32.mrf.mxu0  ;;  %4871 = vst [vmem:[#allocation3 + $0x18] sm:$0xf] %v4857_v13  ;;  %v9185_v18 = vor.u32 %v11322_v50, %v9184_v36  ;;  %v9209_v13 = vor.u32 %v11325_v22, %v9206_v46  ;;  %v13300_v36 = vld [vmem:[#allocation3 + $0xd8] sm:$0xf0]  ;;  %v4852_v22 = vld [vmem:[#allocation2 + $0x72] sm:$0xff] }
 0x2c3   : > { %v3809_v4 = vadd.f32 %v13232_v61, %v3808_v1  ;;  %6289 = vst [vmem:[#allocation2 + $0x33] sm:$0xff] %v13182_v27  ;;  %4301 = vmatpush.bf16.msrb.mxu3 %v11440_v7  ;;  %v11439_v50 = vld [vmem:[%s14330_s3 + $0x60] sm:$0xff]  ;;  %v9316_v46 = vld [vmem:[#allocation3 + $0x128] sm:$0xf] }
 0x2c4   : > { %4831 = vst [vmem:[#allocation3 + $0x4c] sm:$0xf] %v4817_v29  ;;  %v4823_v29 = vpack.c.bf16 %v4809_v30, %v4809_v30 }
 0x2c5   : > { %v2271_v54 = vpop.f32.mrf.mxu3  ;;  %4873 = vst [vmem:[#allocation3 + $0x50] sm:$0xf] %v4859_v2  ;;  %v13305_v2 = vld [vmem:[#allocation3 + $0xf4] sm:$0xf] }
 0x2c6   : > { %v9386_v54 = vld [vmem:[#allocation3 + $0x1dc] sm:$0x70]  ;;  %4837 = vst [vmem:[#allocation3 + $0xf4] sm:$0xf] %v4823_v29 }
 0x2c7   : > { %4302 = vmatpush.bf16.msrb.mxu3 %v11439_v50  ;;  %v4811_v50 = vld [vmem:[#allocation2 + $0x75] sm:$0xff]  ;;  %v4772_v29 = vld [vmem:[#allocation2 + $0x88] sm:$0xff] }
 0x2c8   : > { %v3916_v33 = vpop.f32.mrf.mxu2  ;;  %v4786_v63 = vpack.c.bf16 %v4772_v29, %v4772_v29  ;;  %v11436_v29 = vld [vmem:[%s14330_s3 + $0x48] sm:$0xff] }
 0x2c9   : > { %3881 = vmatmul.bf16.gmra.mxu1 %v9333_v47  ;;  %3832 = vmatmul.bf16.gmra.mxu0 %v9357_v59  ;;  %v3862_v47 = vpop.f32.mrf.mxu1  ;;  %v9392_v59 = vld [vmem:[#allocation3 + $0x1c8] sm:$0xf] }
 0x2ca   : > { %3935 = vmatmul.bf16.gmra.mxu2 %v9337_v19  ;;  %v11376_v19 = vld [vmem:[#allocation3 + $0x1e0] sm:$0x70]  ;;  %v3863_v16 = vadd.f32 %v3862_v47, %v3809_v4  ;;  %v13276_v55 = vpop.f32.mrf.mxu0  ;;  %v4781_v4 = vpack.c.bf16 %v4767_v49, %v4767_v49  ;;  %v9234_v47 = vld [vmem:[#allocation3 + $0x9c] sm:$0xf0] }
 0x2cb   : > { %v9393_v5 = vor.u32 %v11376_v19, %v9392_v59  ;;  %v9240_v59 = vld [vmem:[#allocation3 + $0x88] sm:$0xf]  ;;  %v11336_v19 = vld [vmem:[#allocation3 + $0xa0] sm:$0xf0] }
 0x2cc   : > { %v13279_v9 = vadd.f32 %v3916_v33, %v3863_v16  ;;  %4795 = vst [vmem:[#allocation3 + $0xf0] sm:$0xf] %v4781_v4  ;;  %v9260_v16 = vld [vmem:[#allocation3 + $0xb8] sm:$0xf]  ;;  %v11342_v33 = vld [vmem:[#allocation3 + $0xd0] sm:$0xf0] }
 0x2cd   : > { %v2274_v53 = vpop.f32.mrf.mxu3  ;;  %v9261_v60 = vor.u32 %v11342_v33, %v9260_v16  ;;  %v4812_v4 = vld [vmem:[#allocation2 + $0x7d] sm:$0xff] }
 0x2ce   : > { %v9389_v53 = vor.u32 %v11372_v12, %v9386_v54  ;;  %v11349_v12 = vld [vmem:[#allocation3 + $0x108] sm:$0xf0]  ;;  %v11332_v54 = vld [vmem:[#allocation3 + $0x84] sm:$0xf] }
 0x2cf   : > { %4796 = vst [vmem:[#allocation3 + $0x10c] sm:$0xf] %v4782_v15  ;;  %v9289_v49 = vor.u32 %v11349_v12, %v9288_v23  ;;  %v4825_v15 = vpack.c.bf16 %v4811_v50, %v4811_v50  ;;  %v13331_v12 = vld [vmem:[#allocation3 + $0x130] sm:$0xf] }
 0x2d1   : > { %3989 = vmatmul.bf16.gmra.mxu3 %v9341_v38  ;;  %v9177_v38 = vor.u32 %v11321_v20, %v13258_v51  ;;  %v13281_v11 = vpop.f32.mrf.mxu1  ;;  %v13287_v51 = vpop.f32.mrf.mxu2 }
 0x2d2   : > { %v3813_v44 = vpop.f32.mrf.mxu0 }
 0x2d3   : > { %v3814_v20 = vadd.f32 %v13232_v61, %v3813_v44  ;;  %v13308_v44 = vld [vmem:[#allocation3 + $0x10c] sm:$0xf0] }
 0x2d4   : > { %4838 = vst [vmem:[#allocation3 + $0x110] sm:$0xf] %v4824_v52  ;;  %v4785_v52 = vpack.c.bf16 %v4771_v62, %v4771_v62 }
 0x2d5   : > { %v2276_v32 = vpop.f32.mrf.mxu3 }
 0x2d9   : > { %3886 = vmatmul.bf16.gmra.mxu1 %v9361_v25  ;;  %3837 = vmatmul.bf16.gmra.mxu0 %v9385_v10  ;;  %v3867_v32 = vpop.f32.mrf.mxu1  ;;  %v3921_v10 = vpop.f32.mrf.mxu2 }
 0x2da   : > { %3940 = vmatmul.bf16.gmra.mxu2 %v9365_v34  ;;  %v3868_v25 = vadd.f32 %v3867_v32, %v3814_v20  ;;  %v9181_v34 = vor.u32 %v13266_v43, %v9178_v45  ;;  %v4808_v43 = vld [vmem:[#allocation2 + $0x5d] sm:$0xff] }
 0x2db   : > { %v4822_v1 = vpack.c.bf16 %v4808_v43, %v4808_v43  ;;  %v4850_v45 = vld [vmem:[#allocation2 + $0x62] sm:$0xff]  ;;  %v11438_v43 = vld [vmem:[%s14330_s3 + $0x58] sm:$0xff] }
 0x2dc   : > { %v13291_v56 = vadd.f32 %v3921_v10, %v3868_v25  ;;  %v4864_v14 = vpack.c.bf16 %v4850_v45, %v4850_v45  ;;  %6295 = vst [vmem:[#allocation2 + $0x63] sm:$0xff] %v13182_v27  ;;  %v13310_v20 = vld [vmem:[#allocation3 + $0xf8] sm:$0xf]  ;;  %v13314_v10 = vld [vmem:[#allocation3 + $0x110] sm:$0xf0]  ;;  %v9265_v45 = vor.u32 %v11339_v48, %v13296_v28  ;;  %4303 = vmatpush.bf16.msrb.mxu3 %v11438_v43 }
 0x2dd   : > { %4836 = vst [vmem:[#allocation3 + $0xd8] sm:$0xf] %v4822_v1  ;;  %v13328_v28 = vld [vmem:[#allocation3 + $0x144] sm:$0xf0]  ;;  %v9297_v43 = vor.u32 %v13314_v10, %v13310_v20 }
 0x2de   : > { %4878 = vst [vmem:[#allocation3 + $0xdc] sm:$0xf] %v4864_v14  ;;  %v9268_v14 = vld [vmem:[#allocation3 + $0xc0] sm:$0xf]  ;;  %v9352_v10 = vld [vmem:[#allocation3 + $0x168] sm:$0xf] }
 0x2df   : > { %4879 = vst [vmem:[#allocation3 + $0xf8] sm:$0xf] %v4865_v42  ;;  %v9269_v35 = vor.u32 %v13300_v36, %v9268_v14  ;;  %v11363_v42 = vld [vmem:[#allocation3 + $0x178] sm:$0xf0]  ;;  %v4856_v14 = vld [vmem:[#allocation2 + $0x92] sm:$0xff] }
 0x2e0   : > { %4800 = vst [vmem:[#allocation3 + $0x17c] sm:$0xf] %v4786_v63 }
 0x2e1   : > { %3994 = vmatmul.bf16.gmra.mxu3 %v9369_v58  ;;  %v13298_v58 = vpop.f32.mrf.mxu0  ;;  %v13312_v32 = vpop.f32.mrf.mxu1 }
 0x2e2   : > { %v13317_v6 = vpop.f32.mrf.mxu2 }
 0x2e9   : > { %3891 = vmatmul.bf16.gmra.mxu1 %v9389_v53  ;;  %4013 = vmatmul.bf16.vlgmr.msrb.gmra.mxu0 %v9177_v38  ;;  %v9237_v53 = vor.u32 %v11332_v54, %v9234_v47  ;;  %v9241_v38 = vor.u32 %v11336_v19, %v9240_v59  ;;  %v4826_v54 = vpack.c.bf16 %v4812_v4, %v4812_v4  ;;  %v4853_v47 = vld [vmem:[#allocation2 + $0x7a] sm:$0xff]  ;;  %v4854_v59 = vld [vmem:[#allocation2 + $0x82] sm:$0xff]  ;;  %v13325_v19 = vld [vmem:[#allocation3 + $0x12c] sm:$0xf] }
 0x2ea   : > { %3945 = vmatmul.bf16.gmra.mxu2 %v9393_v5  ;;  %v4867_v16 = vpack.c.bf16 %v4853_v47, %v4853_v47  ;;  %v4868_v33 = vpack.c.bf16 %v4854_v59, %v4854_v59  ;;  %4839 = vst [vmem:[#allocation3 + $0x12c] sm:$0xf] %v4825_v15  ;;  %v11364_v47 = vld [vmem:[#allocation3 + $0x180] sm:$0xf0] }
 0x2eb   : > { %4840 = vst [vmem:[#allocation3 + $0x148] sm:$0xf] %v4826_v54 }
 0x2ec   : > { %4881 = vst [vmem:[#allocation3 + $0x130] sm:$0xf] %v4867_v16 }
 0x2f1   : > { %3999 = vmatmul.bf16.gmra.mxu3 %v9397_v57  ;;  %v4866_v57 = vpack.c.bf16 %v4852_v22, %v4852_v22  ;;  %v9344_v22 = vld [vmem:[#allocation3 + $0x160] sm:$0xf] }
 0x2f2   : > { %4799 = vst [vmem:[#allocation3 + $0x160] sm:$0xf] %v4785_v52 }
 0x2f3   : > { %4880 = vst [vmem:[#allocation3 + $0x114] sm:$0xf] %v4866_v57 }
 0x2f9   : > { %4067 = vmatmul.bf16.vlgmr.msrb.gmra.mxu1 %v9181_v34  ;;  %4018 = vmatmul.bf16.gmra.mxu0 %v9205_v31  ;;  %v4769_v34 = vld [vmem:[#allocation2 + $0x70] sm:$0xff]  ;;  %v4770_v31 = vld [vmem:[#allocation2 + $0x78] sm:$0xff] }
 0x2fa   : > { %4121 = vmatmul.bf16.vlgmr.msrb.gmra.mxu2 %v9185_v18  ;;  %v4783_v18 = vpack.c.bf16 %v4769_v34, %v4769_v34  ;;  %v4784_v7 = vpack.c.bf16 %v4770_v31, %v4770_v31  ;;  %6296 = vst [vmem:[#allocation2 + $0x6b] sm:$0xff] %v13182_v27  ;;  %v9317_v34 = vor.u32 %v11356_v24, %v9316_v46 }
 0x2fb   : > { %6297 = vst [vmem:[#allocation2 + $0x73] sm:$0xff] %v13182_v27 }
 0x2fc   : > { %4797 = vst [vmem:[#allocation3 + $0x128] sm:$0xf] %v4783_v18 }
 0x2fd   : > { %4798 = vst [vmem:[#allocation3 + $0x144] sm:$0xf] %v4784_v7 }
 0x2fe   : > { %6298 = vst [vmem:[#allocation2 + $0x7b] sm:$0xff] %v13182_v27 }
 0x309   : > { %4072 = vmatmul.bf16.gmra.mxu1 %v9209_v13  ;;  %4023 = vmatmul.bf16.gmra.mxu0 %v9233_v17 }
 0x30a   : > { %4126 = vmatmul.bf16.gmra.mxu2 %v9213_v21 }
 0x316   : > { %v3818_v5 = vpop.f32.mrf.mxu0 }
 0x317   : > { %v3819_v13 = vadd.f32 %v13232_v61, %v3818_v5 }
 0x319   : > { %4077 = vmatmul.bf16.gmra.mxu1 %v9237_v53  ;;  %4028 = vmatmul.bf16.gmra.mxu0 %v9261_v60  ;;  %v11357_v60 = vld [vmem:[#allocation3 + $0x148] sm:$0xf0] }
 0x31a   : > { %4131 = vmatmul.bf16.gmra.mxu2 %v9241_v38  ;;  %4882 = vst [vmem:[#allocation3 + $0x14c] sm:$0xf] %v4868_v33 }
 0x31e   : > { %v3820_v25 = vpop.f32.mrf.mxu0 }
 0x31f   : > { %v3821_v36 = vadd.f32 %v13232_v61, %v3820_v25 }
 0x326   : > { %v3872_v17 = vpop.f32.mrf.mxu1  ;;  %v3823_v21 = vpop.f32.mrf.mxu0 }
 0x327   : > { %v3873_v1 = vadd.f32 %v3872_v17, %v3819_v13  ;;  %v3824_v57 = vadd.f32 %v13232_v61, %v3823_v21  ;;  %v9293_v13 = vor.u32 %v13305_v2, %v13308_v44  ;;  %v11437_v17 = vld [vmem:[%s14330_s3 + $0x50] sm:$0xff]  ;;  %v4813_v21 = vld [vmem:[#allocation2 + $0x85] sm:$0xff]  ;;  %v4870_v2 = vpack.c.bf16 %v4856_v14, %v4856_v14  ;;  %v9374_v14 = vld [vmem:[#allocation3 + $0x1b4] sm:$0xf0] }
 0x328   : > { %4304 = vmatpush.bf16.msrb.mxu3 %v11437_v17  ;;  %v4827_v46 = vpack.c.bf16 %v4813_v21, %v4813_v21  ;;  %v9346_v44 = vld [vmem:[#allocation3 + $0x17c] sm:$0xf0]  ;;  %v11435_v17 = vld [vmem:[%s14330_s3 + $0x40] sm:$0xff] }
 0x329   : > { %4082 = vmatmul.bf16.gmra.mxu1 %v9265_v45  ;;  %4033 = vmatmul.bf16.gmra.mxu0 %v9289_v49  ;;  %v4855_v45 = vld [vmem:[#allocation2 + $0x8a] sm:$0xff]  ;;  %4884 = vst [vmem:[#allocation3 + $0x184] sm:$0xf] %v4870_v2 }
 0x32a   : > { %4136 = vmatmul.bf16.gmra.mxu2 %v9269_v35  ;;  %v11360_v49 = vld [vmem:[#allocation3 + $0x164] sm:$0xf]  ;;  %v4869_v35 = vpack.c.bf16 %v4855_v45, %v4855_v45  ;;  %6299 = vst [vmem:[#allocation2 + $0x83] sm:$0xff] %v13182_v27  ;;  %v9321_v27 = vor.u32 %v13325_v19, %v13328_v28  ;;  %v11367_v45 = vld [vmem:[#allocation3 + $0x19c] sm:$0xf] }
 0x32b   : > { %4841 = vst [vmem:[#allocation3 + $0x164] sm:$0xf] %v4827_v46 }
 0x32c   : > { %4883 = vst [vmem:[#allocation3 + $0x168] sm:$0xf] %v4869_v35  ;;  %4305 = vmatpush.bf16.msrb.mxu3 %v11436_v29  ;;  %v11377_v35 = vld [vmem:[#allocation3 + $0x1e8] sm:$0x70]  ;;  %v9402_v29 = vld [vmem:[#allocation3 + $0x1ec] sm:$0x70] }
 0x32d   : > { %v3926_v23 = vpop.f32.mrf.mxu2 }
 0x32e   : > { %v13333_v53 = vadd.f32 %v3926_v23, %v3873_v1  ;;  %v3874_v38 = vpop.f32.mrf.mxu1  ;;  %v3825_v5 = vpop.f32.mrf.mxu0  ;;  %v4814_v1 = vld [vmem:[#allocation2 + $0x8d] sm:$0xff] }
 0x32f   : > { %v3875_v30 = vadd.f32 %v3874_v38, %v3821_v36  ;;  %v4828_v24 = vpack.c.bf16 %v4814_v1, %v4814_v1  ;;  %v3826_v50 = vadd.f32 %v13232_v61, %v3825_v5  ;;  %v9345_v36 = vor.u32 %v11363_v42, %v9344_v22  ;;  %v9372_v22 = vld [vmem:[#allocation3 + $0x198] sm:$0xf]  ;;  %v11370_v42 = vld [vmem:[#allocation3 + $0x1b0] sm:$0xf0] }
 0x330   : > { %v9325_v5 = vor.u32 %v11357_v60, %v13331_v12  ;;  %v3960_v60 = vpop.f32.mrf.mxu3  ;;  %4306 = vmatpush.bf16.msrb.mxu3 %v11435_v17 }
 0x331   : > { %4842 = vst [vmem:[#allocation3 + $0x180] sm:$0xf] %v4828_v24  ;;  %v3961_v17 = vadd.f32 %v3960_v60, %v13244_v26 }
 0x335   : > { %v3928_v25 = vpop.f32.mrf.mxu2 }
 0x336   : > { %v13337_v31 = vadd.f32 %v3928_v25, %v3875_v30  ;;  %v3877_v18 = vpop.f32.mrf.mxu1  ;;  %v3828_v7 = vpop.f32.mrf.mxu0  ;;  %v9349_v25 = vor.u32 %v11360_v49, %v9346_v44  ;;  %v9400_v49 = vld [vmem:[#allocation3 + $0x1d0] sm:$0xf]  ;;  %v9380_v44 = vld [vmem:[#allocation3 + $0x1a0] sm:$0xf] }
 0x337   : > { %v3878_v48 = vadd.f32 %v3877_v18, %v3824_v57  ;;  %v3829_v16 = vadd.f32 %v13232_v61, %v3828_v7  ;;  %v9353_v7 = vor.u32 %v11364_v47, %v9352_v10  ;;  %v9377_v10 = vor.u32 %v11367_v45, %v9374_v14 }
 0x338   : > { %v3962_v24 = vpop.f32.mrf.mxu3 }
 0x339   : > { %4087 = vmatmul.bf16.gmra.mxu1 %v9293_v13  ;;  %4038 = vmatmul.bf16.gmra.mxu0 %v9317_v34  ;;  %v9373_v34 = vor.u32 %v11370_v42, %v9372_v22  ;;  %v9408_v22 = vld [vmem:[#allocation3 + $0x1d8] sm:$0xf]  ;;  %v11378_v42 = vld [vmem:[#allocation3 + $0x1f0] sm:$0x70] }
 0x33a   : > { %4141 = vmatmul.bf16.gmra.mxu2 %v9297_v43 }
 0x33d   : > { %v3931_v20 = vpop.f32.mrf.mxu2 }
 0x33e   : > { %v13348_v4 = vadd.f32 %v3931_v20, %v3878_v48  ;;  %v3879_v15 = vpop.f32.mrf.mxu1  ;;  %v13350_v54 = vpop.f32.mrf.mxu0 }
 0x33f   : > { %v3880_v59 = vadd.f32 %v3879_v15, %v3826_v50  ;;  %v11371_v50 = vld [vmem:[#allocation3 + $0x1b8] sm:$0xf0]  ;;  %v9401_v15 = vor.u32 %v11377_v35, %v9400_v49 }
 0x345   : > { %v3933_v33 = vpop.f32.mrf.mxu2 }
 0x346   : > { %v13355_v23 = vadd.f32 %v3933_v33, %v3880_v59  ;;  %v3882_v38 = vpop.f32.mrf.mxu1  ;;  %v3833_v30 = vpop.f32.mrf.mxu0  ;;  %v9381_v59 = vor.u32 %v11371_v50, %v9380_v44 }
 0x347   : > { %v3883_v62 = vadd.f32 %v3882_v38, %v3829_v16  ;;  %v3834_v12 = vadd.f32 %v13232_v61, %v3833_v30 }
 0x349   : > { %4092 = vmatmul.bf16.gmra.mxu1 %v9321_v27  ;;  %4043 = vmatmul.bf16.gmra.mxu0 %v9345_v36  ;;  %v3965_v27 = vpop.f32.mrf.mxu3 }
 0x34a   : > { %4146 = vmatmul.bf16.gmra.mxu2 %v9325_v5 }
 0x34d   : > { %v3936_v52 = vpop.f32.mrf.mxu2 }
 0x34e   : > { %v13361_v63 = vadd.f32 %v3936_v52, %v3883_v62  ;;  %v13363_v19 = vpop.f32.mrf.mxu1  ;;  %v13365_v28 = vpop.f32.mrf.mxu0  ;;  %v11374_v62 = vld [vmem:[#allocation3 + $0x1d4] sm:$0xf] }
 0x351   : > { %v3967_v52 = vpop.f32.mrf.mxu3 }
 0x355   : > { %v13368_v57 = vpop.f32.mrf.mxu2 }
 0x356   : > { %v3887_v18 = vpop.f32.mrf.mxu1  ;;  %v3838_v48 = vpop.f32.mrf.mxu0 }
 0x357   : > { %v3888_v13 = vadd.f32 %v3887_v18, %v3834_v12  ;;  %v3839_v2 = vadd.f32 %v13232_v61, %v3838_v48  ;;  %v3801_v12 = vadd.f32 %v13232_v61, %v13240_v8 }
 0x359   : > { %4097 = vmatmul.bf16.gmra.mxu1 %v9349_v25  ;;  %4048 = vmatmul.bf16.gmra.mxu0 %v9373_v34  ;;  %v9405_v34 = vor.u32 %v11374_v62, %v9402_v29  ;;  %v3970_v45 = vpop.f32.mrf.mxu3 }
 0x35a   : > { %4151 = vmatmul.bf16.gmra.mxu2 %v9353_v7  ;;  %v9409_v7 = vor.u32 %v11378_v42, %v9408_v22  ;;  %v3966_v22 = vadd.f32 %v3965_v27, %v13262_v41 }
 0x35d   : > { %v3941_v43 = vpop.f32.mrf.mxu2 }
 0x35e   : > { %v13373_v21 = vadd.f32 %v3941_v43, %v3888_v13  ;;  %v13375_v1 = vpop.f32.mrf.mxu1  ;;  %v13377_v46 = vpop.f32.mrf.mxu0  ;;  %v3855_v13 = vadd.f32 %v13249_v3, %v3801_v12  ;;  %v3806_v3 = vadd.f32 %v13232_v61, %v13260_v39 }
 0x360   : > { %v3909_v43 = vadd.f32 %v13254_v0, %v3855_v13 }
 0x365   : > { %v13380_v20 = vpop.f32.mrf.mxu2 }
 0x366   : > { %v3892_v47 = vpop.f32.mrf.mxu1  ;;  %v4014_v16 = vpop.f32.mrf.mxu0 }
 0x367   : > { %v3893_v33 = vadd.f32 %v3892_v47, %v3839_v2  ;;  %v4015_v49 = vadd.f32 %v4014_v16, %v3961_v17  ;;  %v3963_v2 = vadd.f32 %v3962_v24, %v3909_v43  ;;  %v3860_v16 = vadd.f32 %v13264_v40, %v3806_v3 }
 0x369   : > { %4102 = vmatmul.bf16.gmra.mxu1 %v9377_v10  ;;  %4053 = vmatmul.bf16.gmra.mxu0 %v9401_v15  ;;  %v13393_v15 = vstv %s9634_s23  ;;  %v3914_v39 = vadd.f32 %v13269_v37, %v3860_v16 }
 0x36a   : > { %4156 = vmatmul.bf16.gmra.mxu2 %v9381_v59 }
 0x36b   : > { %v3968_v13 = vadd.f32 %v3967_v52, %v3914_v39  ;;  %v11515_v52 = vld [vmem:[%s14328_s1 + $0x438] sm:$0xff] }
 0x36c   : > { %5732 = vmatpush.bf16.msra.mxu2 %v11515_v52 }
 0x36d   : > { %v3946_v36 = vpop.f32.mrf.mxu2 }
 0x36e   : > { %v13382_v38 = vadd.f32 %v3946_v36, %v3893_v33  ;;  %v13384_v5 = vpop.f32.mrf.mxu1  ;;  %v4016_v30 = vpop.f32.mrf.mxu0 }
 0x36f   : > { %v4017_v50 = vadd.f32 %v4016_v30, %v3963_v2  ;;  %v3972_v36 = vpop.f32.mrf.mxu3 }
 0x375   : > { %v13388_v25 = vpop.f32.mrf.mxu2 }
 0x376   : > { %v4068_v18 = vpop.f32.mrf.mxu1  ;;  %v4019_v48 = vpop.f32.mrf.mxu0 }
 0x377   : > { %v4069_v44 = vadd.f32 %v4068_v18, %v4015_v49  ;;  %v4020_v12 = vadd.f32 %v4019_v48, %v3966_v22 }
 0x379   : > { %4107 = vmatmul.bf16.gmra.mxu1 %v9405_v34 }
 0x37a   : > { %4161 = vmatmul.bf16.gmra.mxu2 %v9409_v7  ;;  %v3975_v7 = vpop.f32.mrf.mxu3 }
 0x37d   : > { %v4122_v14 = vpop.f32.mrf.mxu2 }
 0x37e   : > { %v4070_v35 = vpop.f32.mrf.mxu1  ;;  %v4021_v8 = vpop.f32.mrf.mxu0  ;;  %v4123_v10 = vadd.f32 %v4122_v14, %v4069_v44  ;;  %v3811_v14 = vadd.f32 %v13232_v61, %v13276_v55  ;;  %v11499_v55 = vld [vmem:[%s14328_s1 + $0x3b8] sm:$0xff] }
 0x37f   : > { %v4071_v47 = vadd.f32 %v4070_v35, %v4017_v50  ;;  %v4022_v43 = vadd.f32 %v4021_v8, %v3968_v13  ;;  %v11507_v8 = vld [vmem:[%s14328_s1 + $0x3f8] sm:$0xff]  ;;  %5644 = vmatpush.bf16.msra.mxu0 %v11499_v55 }
 0x380   : > { %v4187_v26 = vmul.f32 %v13393_v15, %v4123_v10  ;;  %vm4168_vm6 = vcmp.gt.f32.partialorder %v4123_v10, 0.0  ;;  %v3865_v48 = vadd.f32 %v13281_v11, %v3811_v14  ;;  %5688 = vmatpush.bf16.msra.mxu1 %v11507_v8 }
 0x382   : > { %v4205_v30 = vsel %vm4168_vm6, %v4123_v10, %v4187_v26  ;;  %v3977_v50 = vpop.f32.mrf.mxu3 }
 0x385   : > { %v4124_v59 = vpop.f32.mrf.mxu2 }
 0x386   : > { %v4125_v60 = vadd.f32 %v4124_v59, %v4071_v47  ;;  %v4073_v0 = vpop.f32.mrf.mxu1  ;;  %v4024_v33 = vpop.f32.mrf.mxu0  ;;  %v3971_v47 = vadd.f32 %v3970_v45, %v13279_v9  ;;  %v3919_v59 = vadd.f32 %v13287_v51, %v3865_v48 }
 0x387   : > { %v4074_v17 = vadd.f32 %v4073_v0, %v4020_v12  ;;  %v3816_v12 = vadd.f32 %v13232_v61, %v13298_v58  ;;  %v11506_v61 = vld [vmem:[%s14328_s1 + $0x3f0] sm:$0xff] }
 0x388   : > { %vm4169_vm7 = vcmp.gt.f32.partialorder %v4125_v60, 0.0  ;;  %v4188_v24 = vmul.f32 %v13393_v15, %v4125_v60  ;;  %5689 = vmatpush.bf16.msra.mxu1 %v11506_v61 }
 0x389   : > { %v3870_v58 = vadd.f32 %v13312_v32, %v3816_v12 }
 0x38a   : > { %v4206_v62 = vsel %vm4169_vm7, %v4125_v60, %v4188_v24  ;;  %v4025_v60 = vadd.f32 %v4024_v33, %v3971_v47  ;;  %v3973_v24 = vadd.f32 %v3972_v36, %v3919_v59  ;;  %v3980_v22 = vpop.f32.mrf.mxu3  ;;  %v11514_v36 = vld [vmem:[%s14328_s1 + $0x430] sm:$0xff] }
 0x38b   : > { %v4223_v29 = vpack.c.bf16 %v4206_v62, %v4205_v30  ;;  %5733 = vmatpush.bf16.msra.mxu2 %v11514_v36 }
 0x38d   : > { %v4127_v42 = vpop.f32.mrf.mxu2  ;;  %4307 = vmatmul.bf16.vlgmr.msrb.gmra.mxu3 %v4223_v29 }
 0x38e   : > { %v4075_v34 = vpop.f32.mrf.mxu1  ;;  %v4026_v18 = vpop.f32.mrf.mxu0  ;;  %v4128_v40 = vadd.f32 %v4127_v42, %v4074_v17 }
 0x38f   : > { %v4076_v49 = vadd.f32 %v4075_v34, %v4022_v43  ;;  %v4027_v62 = vadd.f32 %v4026_v18, %v3973_v24  ;;  %v11498_v18 = vld [vmem:[%s14328_s1 + $0x3b0] sm:$0xff] }
 0x390   : > { %v4189_v2 = vmul.f32 %v13393_v15, %v4128_v40  ;;  %vm4170_vm8 = vcmp.gt.f32.partialorder %v4128_v40, 0.0  ;;  %5645 = vmatpush.bf16.msra.mxu0 %v11498_v18 }
 0x392   : > { %v4207_v10 = vsel %vm4170_vm8, %v4128_v40, %v4189_v2  ;;  %v3976_v40 = vadd.f32 %v3975_v7, %v13291_v56  ;;  %v3982_v14 = vpop.f32.mrf.mxu3  ;;  %v11497_v7 = vld [vmem:[%s14328_s1 + $0x3a8] sm:$0xff] }
 0x394   : > { %5646 = vmatpush.bf16.msra.mxu0 %v11497_v7 }
 0x395   : > { %v4129_v35 = vpop.f32.mrf.mxu2 }
 0x396   : > { %v4130_v41 = vadd.f32 %v4129_v35, %v4076_v49  ;;  %v4078_v27 = vpop.f32.mrf.mxu1  ;;  %v4029_v37 = vpop.f32.mrf.mxu0  ;;  %v3924_v35 = vadd.f32 %v13317_v6, %v3870_v58  ;;  %v11513_v6 = vld [vmem:[%s14328_s1 + $0x428] sm:$0xff] }
 0x397   : > { %v4079_v30 = vadd.f32 %v4078_v27, %v4025_v60  ;;  %v4030_v2 = vadd.f32 %v4029_v37, %v3976_v40  ;;  %5734 = vmatpush.bf16.msra.mxu2 %v11513_v6  ;;  %v3981_v60 = vadd.f32 %v3980_v22, %v13333_v53 }
 0x398   : > { %vm4171_vm9 = vcmp.gt.f32.partialorder %v4130_v41, 0.0  ;;  %v4190_v44 = vmul.f32 %v13393_v15, %v4130_v41  ;;  %v3978_v48 = vadd.f32 %v3977_v50, %v3924_v35 }
 0x39a   : > { %v4208_v3 = vsel %vm4171_vm9, %v4130_v41, %v4190_v44  ;;  %v3985_v47 = vpop.f32.mrf.mxu3 }
 0x39b   : > { %v4224_v11 = vpack.c.bf16 %v4208_v3, %v4207_v10 }
 0x39d   : > { %v4132_v26 = vpop.f32.mrf.mxu2  ;;  %4312 = vmatmul.bf16.gmra.mxu3 %v4224_v11 }
 0x39e   : > { %v4080_v0 = vpop.f32.mrf.mxu1  ;;  %v4031_v16 = vpop.f32.mrf.mxu0  ;;  %v4133_v29 = vadd.f32 %v4132_v26, %v4079_v30  ;;  %v3983_v30 = vadd.f32 %v3982_v14, %v13337_v31 }
 0x39f   : > { %v4081_v39 = vadd.f32 %v4080_v0, %v4027_v62  ;;  %v4032_v52 = vadd.f32 %v4031_v16, %v3978_v48 }
 0x3a0   : > { %v4191_v34 = vmul.f32 %v13393_v15, %v4133_v29  ;;  %vm4172_vm10 = vcmp.gt.f32.partialorder %v4133_v29, 0.0 }
 0x3a2   : > { %v4209_v13 = vsel %vm4172_vm10, %v4133_v29, %v4191_v34  ;;  %v11505_v29 = vld [vmem:[%s14328_s1 + $0x3e8] sm:$0xff] }
 0x3a3   : > { %5690 = vmatpush.bf16.msra.mxu1 %v11505_v29 }
 0x3a5   : > { %v4134_v42 = vpop.f32.mrf.mxu2 }
 0x3a6   : > { %v4135_v9 = vadd.f32 %v4134_v42, %v4081_v39  ;;  %v4083_v45 = vpop.f32.mrf.mxu1  ;;  %v4034_v51 = vpop.f32.mrf.mxu0 }
 0x3a7   : > { %v4084_v44 = vadd.f32 %v4083_v45, %v4030_v2  ;;  %v4035_v16 = vadd.f32 %v4034_v51, %v3981_v60  ;;  %v3987_v39 = vpop.f32.mrf.mxu3  ;;  %v11512_v51 = vld [vmem:[%s14328_s1 + $0x420] sm:$0xff] }
 0x3a8   : > { %vm4173_vm11 = vcmp.gt.f32.partialorder %v4135_v9, 0.0  ;;  %v4192_v33 = vmul.f32 %v13393_v15, %v4135_v9  ;;  %5735 = vmatpush.bf16.msra.mxu2 %v11512_v51  ;;  %v11496_v2 = vld [vmem:[%s14328_s1 + $0x3a0] sm:$0xff] }
 0x3a9   : > { %5647 = vmatpush.bf16.msra.mxu0 %v11496_v2 }
 0x3aa   : > { %v4210_v17 = vsel %vm4173_vm11, %v4135_v9, %v4192_v33 }
 0x3ab   : > { %v4225_v43 = vpack.c.bf16 %v4210_v17, %v4209_v13  ;;  %v3986_v13 = vadd.f32 %v3985_v47, %v13348_v4 }
 0x3ad   : > { %v4137_v49 = vpop.f32.mrf.mxu2  ;;  %4317 = vmatmul.bf16.gmra.mxu3 %v4225_v43 }
 0x3ae   : > { %v4085_v41 = vpop.f32.mrf.mxu1  ;;  %v4036_v27 = vpop.f32.mrf.mxu0  ;;  %v4138_v32 = vadd.f32 %v4137_v49, %v4084_v44  ;;  %v3988_v49 = vadd.f32 %v3987_v39, %v13355_v23 }
 0x3af   : > { %v4086_v55 = vadd.f32 %v4085_v41, %v4032_v52  ;;  %v4037_v42 = vadd.f32 %v4036_v27, %v3983_v30  ;;  %v3990_v61 = vpop.f32.mrf.mxu3  ;;  %v11504_v41 = vld [vmem:[%s14328_s1 + $0x3e0] sm:$0xff]  ;;  %v11495_v30 = vld [vmem:[%s14328_s1 + $0x398] sm:$0xff] }
 0x3b0   : > { %v4193_v10 = vmul.f32 %v13393_v15, %v4138_v32  ;;  %vm4174_vm12 = vcmp.gt.f32.partialorder %v4138_v32, 0.0  ;;  %5691 = vmatpush.bf16.msra.mxu1 %v11504_v41  ;;  %5648 = vmatpush.bf16.msra.mxu0 %v11495_v30 }
 0x3b2   : > { %v4211_v50 = vsel %vm4174_vm12, %v4138_v32, %v4193_v10 }
 0x3b5   : > { %v4139_v8 = vpop.f32.mrf.mxu2 }
 0x3b6   : > { %v4140_v3 = vadd.f32 %v4139_v8, %v4086_v55  ;;  %v4088_v11 = vpop.f32.mrf.mxu1  ;;  %v4039_v37 = vpop.f32.mrf.mxu0 }
 0x3b7   : > { %v4089_v62 = vadd.f32 %v4088_v11, %v4035_v16  ;;  %v4040_v40 = vadd.f32 %v4039_v37, %v3986_v13  ;;  %v3992_v44 = vpop.f32.mrf.mxu3  ;;  %v3991_v37 = vadd.f32 %v3990_v61, %v13361_v63  ;;  %v11503_v63 = vld [vmem:[%s14328_s1 + $0x3d8] sm:$0xff] }
 0x3b8   : > { %vm4175_vm13 = vcmp.gt.f32.partialorder %v4140_v3, 0.0  ;;  %v4194_v56 = vmul.f32 %v13393_v15, %v4140_v3  ;;  %5692 = vmatpush.bf16.msra.mxu1 %v11503_v63  ;;  %v11521_v63 = vld [vmem:[%s14328_s1 + $0x468] sm:$0xff] }
 0x3ba   : > { %v4212_v59 = vsel %vm4175_vm13, %v4140_v3, %v4194_v56  ;;  %v13465_v3 = vld [vmem:[%s14329_s2 + $0x1] ss:$0 sm:$0xff] }
 0x3bb   : > { %v4226_v26 = vpack.c.bf16 %v4212_v59, %v4211_v50  ;;  %v3831_v11 = vadd.f32 %v13465_v3, %v13350_v54  ;;  %v11511_v54 = vld [vmem:[%s14328_s1 + $0x418] sm:$0xff] }
 0x3bc   : > { %5736 = vmatpush.bf16.msra.mxu2 %v11511_v54 }
 0x3bd   : > { %v4142_v0 = vpop.f32.mrf.mxu2  ;;  %4322 = vmatmul.bf16.gmra.mxu3 %v4226_v26  ;;  %v3885_v7 = vadd.f32 %v13363_v19, %v3831_v11 }
 0x3be   : > { %v4090_v24 = vpop.f32.mrf.mxu1  ;;  %v4143_v12 = vadd.f32 %v4142_v0, %v4089_v62  ;;  %v4041_v34 = vpop.f32.mrf.mxu0 }
 0x3bf   : > { %v4091_v9 = vadd.f32 %v4090_v24, %v4037_v42  ;;  %v4042_v27 = vadd.f32 %v4041_v34, %v3988_v49  ;;  %v3939_v59 = vadd.f32 %v13368_v57, %v3885_v7  ;;  %v3995_v0 = vpop.f32.mrf.mxu3 }
 0x3c0   : > { %v4195_v53 = vmul.f32 %v13393_v15, %v4143_v12  ;;  %vm4176_vm14 = vcmp.gt.f32.partialorder %v4143_v12, 0.0 }
 0x3c1   : > { %v3993_v16 = vadd.f32 %v3992_v44, %v3939_v59 }
 0x3c2   : > { %v4213_v36 = vsel %vm4176_vm14, %v4143_v12, %v4195_v53  ;;  %v3836_v53 = vadd.f32 %v13465_v3, %v13365_v28 }
 0x3c5   : > { %v4144_v45 = vpop.f32.mrf.mxu2 }
 0x3c6   : > { %v4145_v22 = vadd.f32 %v4144_v45, %v4091_v9  ;;  %v4093_v33 = vpop.f32.mrf.mxu1  ;;  %v4044_v43 = vpop.f32.mrf.mxu0 }
 0x3c7   : > { %v4094_v35 = vadd.f32 %v4093_v33, %v4040_v40  ;;  %v4045_v26 = vadd.f32 %v4044_v43, %v3991_v37  ;;  %v3997_v45 = vpop.f32.mrf.mxu3 }
 0x3c8   : > { %vm4177_vm15 = vcmp.gt.f32.partialorder %v4145_v22, 0.0  ;;  %v4196_v31 = vmul.f32 %v13393_v15, %v4145_v22 }
 0x3ca   : > { %v4214_v18 = vsel %vm4177_vm15, %v4145_v22, %v4196_v31 }
 0x3cb   : > { %v4227_v58 = vpack.c.bf16 %v4214_v18, %v4213_v36  ;;  %v3890_v36 = vadd.f32 %v13375_v1, %v3836_v53  ;;  %v3996_v18 = vadd.f32 %v3995_v0, %v13373_v21  ;;  %v11502_v21 = vld [vmem:[%s14328_s1 + $0x3d0] sm:$0xff]  ;;  %v11446_v53 = vld [vmem:[#allocation3 + $0x18] sm:$0xf0] }
 0x3cc   : > { %5693 = vmatpush.bf16.msra.mxu1 %v11502_v21  ;;  %v11447_v21 = vld [vmem:[#allocation3 + $0x20] sm:$0xf0] }
 0x3cd   : > { %v4147_v17 = vpop.f32.mrf.mxu2  ;;  %4327 = vmatmul.bf16.gmra.mxu3 %v4227_v58  ;;  %v11510_v58 = vld [vmem:[%s14328_s1 + $0x410] sm:$0xff]  ;;  %v3944_v13 = vadd.f32 %v13380_v20, %v3890_v36  ;;  %v11517_v36 = vld [vmem:[%s14328_s1 + $0x448] sm:$0xff] }
 0x3ce   : > { %v4095_v14 = vpop.f32.mrf.mxu1  ;;  %v4148_v48 = vadd.f32 %v4147_v17, %v4094_v35  ;;  %v4046_v8 = vpop.f32.mrf.mxu0  ;;  %5737 = vmatpush.bf16.msra.mxu2 %v11510_v58 }
 0x3cf   : > { %v4096_v4 = vadd.f32 %v4095_v14, %v4042_v27  ;;  %v4047_v62 = vadd.f32 %v4046_v8, %v3993_v16  ;;  %v3998_v28 = vadd.f32 %v3997_v45, %v3944_v13  ;;  %v11494_v14 = vld [vmem:[%s14328_s1 + $0x390] sm:$0xff]  ;;  %v4000_v35 = vpop.f32.mrf.mxu3  ;;  %v9798_v45 = vld [vmem:[#allocation3] sm:$0xf] }
 0x3d0   : > { %v4197_v32 = vmul.f32 %v13393_v15, %v4148_v48  ;;  %vm4178_vm0 = vcmp.gt.f32.partialorder %v4148_v48, 0.0  ;;  %5649 = vmatpush.bf16.msra.mxu0 %v11494_v14  ;;  %v4001_v11 = vadd.f32 %v4000_v35, %v13382_v38  ;;  %v11522_v38 = vld [vmem:[%s14328_s1 + $0x470] sm:$0xff]  ;;  %v6327_v13 = vld [vmem:[#allocation2 + $0x22] sm:$0xff] }
 0x3d1   : > { %v9806_v14 = vld [vmem:[#allocation3 + $0x8] sm:$0xf] }
 0x3d2   : > { %v4215_v47 = vsel %vm4178_vm0, %v4148_v48, %v4197_v32  ;;  %v3841_v32 = vadd.f32 %v13465_v3, %v13377_v46  ;;  %v11509_v46 = vld [vmem:[%s14328_s1 + $0x408] sm:$0xff]  ;;  %v6355_v35 = vld [vmem:[#allocation2 + $0x31] sm:$0xff] }
 0x3d3   : > { %v11493_v3 = vld [vmem:[%s14328_s1 + $0x388] sm:$0xff]  ;;  %5738 = vmatpush.bf16.msra.mxu2 %v11509_v46  ;;  %v6329_v46 = vld [vmem:[#allocation2 + $0x32] sm:$0xff] }
 0x3d4   : > { %5650 = vmatpush.bf16.msra.mxu0 %v11493_v3 }
 0x3d5   : > { %v4149_v52 = vpop.f32.mrf.mxu2 }
 0x3d6   : > { %v4150_v55 = vadd.f32 %v4149_v52, %v4096_v4  ;;  %v4098_v23 = vpop.f32.mrf.mxu1  ;;  %v4049_v19 = vpop.f32.mrf.mxu0  ;;  %v11523_v52 = vld [vmem:[%s14328_s1 + $0x478] sm:$0xff] }
 0x3d7   : > { %v4099_v24 = vadd.f32 %v4098_v23, %v4045_v26  ;;  %v4050_v17 = vadd.f32 %v4049_v19, %v3996_v18  ;;  %5776 = vmatpush.bf16.msra.mxu3 %v11523_v52  ;;  %v11443_v18 = vld [vmem:[#allocation3 + $0x4] sm:$0xf] }
 0x3d8   : > { %vm4179_vm1 = vcmp.gt.f32.partialorder %v4150_v55, 0.0  ;;  %v4198_v10 = vmul.f32 %v13393_v15, %v4150_v55 }
 0x3da   : > { %v4216_v56 = vsel %vm4179_vm1, %v4150_v55, %v4198_v10  ;;  %v3895_v10 = vadd.f32 %v13384_v5, %v3841_v32  ;;  %v9826_v32 = vld [vmem:[#allocation3 + $0x38] sm:$0xf] }
 0x3db   : > { %v4228_v6 = vpack.c.bf16 %v4216_v56, %v4215_v47  ;;  %v4002_v47 = vpop.f32.mrf.mxu3  ;;  %5777 = vmatpush.bf16.msra.mxu3 %v11522_v38 }
 0x3dd   : > { %v4152_v50 = vpop.f32.mrf.mxu2  ;;  %4332 = vmatmul.bf16.gmra.mxu3 %v4228_v6  ;;  %v3949_v6 = vadd.f32 %v13388_v25, %v3895_v10  ;;  %v11501_v25 = vld [vmem:[%s14328_s1 + $0x3c8] sm:$0xff]  ;;  %v11531_v10 = vld [vmem:[%s14328_s1 + $0x4b8] sm:$0xff] }
 0x3de   : > { %v4100_v60 = vpop.f32.mrf.mxu1  ;;  %v4153_v57 = vadd.f32 %v4152_v50, %v4099_v24  ;;  %v4051_v31 = vpop.f32.mrf.mxu0  ;;  %5694 = vmatpush.bf16.msra.mxu1 %v11501_v25  ;;  %v13572_v25 = vld [vmem:[%s14331_s4 + $0x1] ss:$0 sm:$0xff] }
 0x3df   : > { %v4101_v29 = vadd.f32 %v4100_v60, %v4047_v62  ;;  %v4052_v1 = vadd.f32 %v4051_v31, %v3998_v28  ;;  %v4003_v50 = vadd.f32 %v4002_v47, %v3949_v6  ;;  %5778 = vmatpush.bf16.msra.mxu3 %v11521_v63  ;;  %v11500_v31 = vld [vmem:[%s14328_s1 + $0x3c0] sm:$0xff]  ;;  %v6336_v28 = vpack.c.bf16 %v6327_v13, %v6327_v13 }
 0x3e0   : > { %v4199_v42 = vmul.f32 %v13393_v15, %v4153_v57  ;;  %vm4180_vm2 = vcmp.gt.f32.partialorder %v4153_v57, 0.0 }
 0x3e1   : > { %6345 = vst [vmem:[#allocation3 + $0x4] sm:$0xf] %v6336_v28  ;;  %v11528_v28 = vld [vmem:[%s14328_s1 + $0x4a0] sm:$0xff] }
 0x3e2   : > { %v4217_v22 = vsel %vm4180_vm2, %v4153_v57, %v4199_v42  ;;  %v11520_v57 = vld [vmem:[%s14328_s1 + $0x460] sm:$0xff]  ;;  %v11519_v42 = vld [vmem:[%s14328_s1 + $0x458] sm:$0xff]  ;;  %5695 = vmatpush.bf16.msra.mxu1 %v11500_v31 }
 0x3e3   : > { %5779 = vmatpush.bf16.msra.mxu3 %v11520_v57  ;;  %v11530_v57 = vld [vmem:[%s14328_s1 + $0x4b0] sm:$0xff] }
 0x3e5   : > { %v4154_v39 = vpop.f32.mrf.mxu2 }
 0x3e6   : > { %v4155_v12 = vadd.f32 %v4154_v39, %v4101_v29  ;;  %v4103_v34 = vpop.f32.mrf.mxu1  ;;  %v4054_v20 = vpop.f32.mrf.mxu0 }
 0x3e7   : > { %v4104_v40 = vadd.f32 %v4103_v34, %v4050_v17  ;;  %v4055_v7 = vadd.f32 %v4054_v20, %v4001_v11  ;;  %v13536_v34 = vld [vmem:[#allocation2 + $0x3] sm:$0xff]  ;;  %5780 = vmatpush.bf16.msra.mxu3 %v11519_v42  ;;  %v11444_v20 = vld [vmem:[#allocation3 + $0xc] sm:$0xf]  ;;  %v11457_v42 = vld [vmem:[#allocation3 + $0x74] sm:$0xf] }
 0x3e8   : > { %vm4181_vm3 = vcmp.gt.f32.partialorder %v4155_v12, 0.0  ;;  %v4200_v9 = vmul.f32 %v13393_v15, %v4155_v12  ;;  %v6328_v17 = vld [vmem:[#allocation2 + $0x2a] sm:$0xff] }
 0x3ea   : > { %v4218_v33 = vsel %vm4181_vm3, %v4155_v12, %v4200_v9  ;;  %v11508_v12 = vld [vmem:[%s14328_s1 + $0x400] sm:$0xff]  ;;  %v13540_v9 = vpack.c.bf16 %v13536_v34, %v13536_v34 }
 0x3eb   : > { %v4229_v51 = vpack.c.bf16 %v4218_v33, %v4217_v22  ;;  %v11518_v22 = vld [vmem:[%s14328_s1 + $0x450] sm:$0xff]  ;;  %v9799_v33 = vor.u32 %v11446_v53, %v9798_v45  ;;  %5739 = vmatpush.bf16.msra.mxu2 %v11508_v12  ;;  %v4372_v12 = vstv %s9683_s19  ;;  %v9856_v45 = vld [vmem:[#allocation3 + $0x8c] sm:$0xf0] }
 0x3ec   : > { %6318 = vst [vmem:[#allocation3] sm:$0xf] %v13540_v9  ;;  %5781 = vmatpush.bf16.msra.mxu3 %v11518_v22 }
 0x3ed   : > { %v4157_v61 = vpop.f32.mrf.mxu2  ;;  %4337 = vmatmul.bf16.gmra.mxu3 %v4229_v51  ;;  %6319 = vst [vmem:[#allocation3 + $0x1c] sm:$0xf] %v13540_v9 }
 0x3ee   : > { %v4105_v43 = vpop.f32.mrf.mxu1  ;;  %v4158_v49 = vadd.f32 %v4157_v61, %v4104_v40  ;;  %v4056_v37 = vpop.f32.mrf.mxu0  ;;  %v9800_v61 = vld [vmem:[#allocation3 + $0x1c] sm:$0xf0]  ;;  %v6337_v40 = vpack.c.bf16 %v6328_v17, %v6328_v17  ;;  %6320 = vst [vmem:[#allocation3 + $0x38] sm:$0xf] %v13540_v9 }
 0x3ef   : > { %v4106_v2 = vadd.f32 %v4105_v43, %v4052_v1  ;;  %v4057_v26 = vadd.f32 %v4056_v37, %v4003_v50  ;;  %v9803_v58 = vor.u32 %v11443_v18, %v9800_v61  ;;  %v11516_v43 = vld [vmem:[%s14328_s1 + $0x440] sm:$0xff]  ;;  %v6354_v1 = vld [vmem:[#allocation2 + $0x29] sm:$0xff] }
 0x3f0   : > { %v4201_v27 = vmul.f32 %v13393_v15, %v4158_v49  ;;  %vm4182_vm4 = vcmp.gt.f32.partialorder %v4158_v49, 0.0  ;;  %5782 = vmatpush.bf16.msra.mxu3 %v11517_v36  ;;  %6346 = vst [vmem:[#allocation3 + $0x20] sm:$0xf] %v6337_v40  ;;  %v9828_v37 = vld [vmem:[#allocation3 + $0x54] sm:$0xf0]  ;;  %v11529_v36 = vld [vmem:[%s14328_s1 + $0x4a8] sm:$0xff] }
 0x3f1   : > { %5696 = vmatmul.bf16.vlgmr.msra.gmra.mxu1 %v9803_v58  ;;  %v4416_v61 = vld [vmem:[#allocation2 + $0x44] sm:$0xff] }
 0x3f2   : > { %v4219_v55 = vsel %vm4182_vm4, %v4158_v49, %v4201_v27  ;;  %v9807_v49 = vor.u32 %v11447_v21, %v9806_v14  ;;  %v6364_v27 = vpack.c.bf16 %v6355_v35, %v6355_v35  ;;  %v11544_v58 = vld [vmem:[%s14328_s1 + $0x520] sm:$0xff]  ;;  %v4417_v35 = vld [vmem:[#allocation2 + $0x4c] sm:$0xff] }
 0x3f3   : > { %v11536_v40 = vld [vmem:[%s14328_s1 + $0x4e0] sm:$0xff] }
 0x3f4   : > { %5740 = vmatmul.bf16.vlgmr.msra.gmra.mxu2 %v9807_v49  ;;  %5783 = vmatpush.bf16.msra.mxu3 %v11516_v43  ;;  %6373 = vst [vmem:[#allocation3 + $0x24] sm:$0xf] %v6364_v27 }
 0x3f5   : > { %v4159_v41 = vpop.f32.mrf.mxu2 }
 0x3f6   : > { %v4160_v48 = vadd.f32 %v4159_v41, %v4106_v2  ;;  %v4108_v4 = vpop.f32.mrf.mxu1  ;;  %v6363_v2 = vpack.c.bf16 %v6354_v1, %v6354_v1  ;;  %v9808_v41 = vld [vmem:[#allocation3 + $0x24] sm:$0xf0] }
 0x3f7   : > { %v4109_v59 = vadd.f32 %v4108_v4, %v4055_v7  ;;  %v9811_v4 = vor.u32 %v11444_v20, %v9808_v41  ;;  %v11450_v7 = vld [vmem:[#allocation3 + $0x3c] sm:$0xf]  ;;  %v9882_v41 = vld [vmem:[#allocation3 + $0xa8] sm:$0xf] }
 0x3f8   : > { %vm4183_vm5 = vcmp.gt.f32.partialorder %v4160_v48, 0.0  ;;  %v4202_v44 = vmul.f32 %v13393_v15, %v4160_v48  ;;  %6372 = vst [vmem:[#allocation3 + $0x8] sm:$0xf] %v6363_v2  ;;  %v9831_v50 = vor.u32 %v11450_v7, %v9828_v37 }
 0x3fa   : > { %v4220_v23 = vsel %vm4183_vm5, %v4160_v48, %v4202_v44  ;;  %v6381_v48 = vld [vmem:[#allocation2 + $0x30] sm:$0xff] }
 0x3fb   : > { %v4230_v8 = vpack.c.bf16 %v4220_v23, %v4219_v55  ;;  %v6390_v44 = vpack.c.bf16 %v6381_v48, %v6381_v48  ;;  %v11453_v55 = vld [vmem:[#allocation3 + $0x50] sm:$0xf0] }
 0x3fc   : > { %v9827_v23 = vor.u32 %v11453_v55, %v9826_v32  ;;  %6321 = vst [vmem:[#allocation3 + $0x54] sm:$0xf] %v13540_v9 }
 0x3fd   : > { %v4162_v56 = vpop.f32.mrf.mxu2  ;;  %4342 = vmatmul.bf16.gmra.mxu3 %v4230_v8  ;;  %6399 = vst [vmem:[#allocation3 + $0xc] sm:$0xf] %v6390_v44  ;;  %v11547_v8 = vld [vmem:[%s14328_s1 + $0x538] sm:$0xff] }
 0x3fe   : > { %v4110_v5 = vpop.f32.mrf.mxu1  ;;  %v4163_v60 = vadd.f32 %v4162_v56, %v4109_v59  ;;  %5908 = vmatpush.bf16.msrb.mxu2 %v11547_v8  ;;  %v11539_v56 = vld [vmem:[%s14328_s1 + $0x4f8] sm:$0xff]  ;;  %v2382_v59 = vlaneseq }
 0x3ff   : > { %v4111_v0 = vadd.f32 %v4110_v5, %v4057_v26  ;;  %5864 = vmatpush.bf16.msrb.mxu1 %v11539_v56  ;;  %v6338_v5 = vpack.c.bf16 %v6329_v46, %v6329_v46  ;;  %v9834_v26 = vld [vmem:[#allocation3 + $0x40] sm:$0xf] }
 0x400   : > { %v4203_v24 = vmul.f32 %v13393_v15, %v4163_v60  ;;  %vm4184_vm6 = vcmp.gt.f32.partialorder %v4163_v60, 0.0  ;;  %v13567_v38 = vshrl.u32 %v2382_v59, 7 }
 0x401   : > { %5701 = vmatmul.bf16.gmra.mxu1 %v9831_v50  ;;  %6347 = vst [vmem:[#allocation3 + $0x3c] sm:$0xf] %v6338_v5  ;;  %v11543_v5 = vld [vmem:[%s14328_s1 + $0x518] sm:$0xff] }
 0x402   : > { %v4221_v19 = vsel %vm4184_vm6, %v4163_v60, %v4203_v24  ;;  %v11454_v60 = vld [vmem:[#allocation3 + $0x58] sm:$0xf0]  ;;  %v11451_v24 = vld [vmem:[#allocation3 + $0x44] sm:$0xf]  ;;  %v2392_v2 = vadd.s32 72, %v13567_v38 }
 0x404   : > { %v4456_v8 = vadd.s32 12, %v2392_v2 }
 0x405   : > { %v4164_v16 = vpop.f32.mrf.mxu2 }
 0x406   : > { %v4165_v54 = vadd.f32 %v4164_v16, %v4111_v0  ;;  %v2390_v0 = vadd.s32 56, %v13567_v38  ;;  %v9835_v16 = vor.u32 %v11454_v60, %v9834_v26  ;;  %vm4492_vm12 = vcmp.lt.s32.totalorder %v4456_v8, 91  ;;  %v9862_v60 = vld [vmem:[#allocation3 + $0x78] sm:$0xf]  ;;  %v11542_v8 = vld [vmem:[%s14328_s1 + $0x510] sm:$0xff] }
 0x408   : > { %vm4185_vm7 = vcmp.gt.f32.partialorder %v4165_v54, 0.0  ;;  %v4204_v30 = vmul.f32 %v13393_v15, %v4165_v54  ;;  %v11492_v15 = vld [vmem:[%s14328_s1 + $0x380] sm:$0xff]  ;;  %5745 = vmatmul.bf16.gmra.mxu2 %v9835_v16  ;;  %v4454_v22 = vadd.s32 12, %v2390_v0 }
 0x409   : > { %5651 = vmatpush.bf16.msra.mxu0 %v11492_v15 }
 0x40a   : > { %v4222_v62 = vsel %vm4185_vm7, %v4165_v54, %v4204_v30  ;;  %v9836_v54 = vld [vmem:[#allocation3 + $0x5c] sm:$0xf0]  ;;  %v11546_v30 = vld [vmem:[%s14328_s1 + $0x530] sm:$0xff]  ;;  %vm4472_vm9 = vcmp.ge.s32.totalorder %v4454_v22, 75 }
 0x40b   : > { %v4231_v29 = vpack.c.bf16 %v4222_v62, %v4221_v19  ;;  %v9839_v63 = vor.u32 %v11451_v24, %v9836_v54  ;;  %v9854_v19 = vld [vmem:[#allocation3 + $0x70] sm:$0xf]  ;;  %v11460_v62 = vld [vmem:[#allocation3 + $0x88] sm:$0xf0]  ;;  %5909 = vmatpush.bf16.msrb.mxu2 %v11546_v30  ;;  %v11458_v54 = vld [vmem:[#allocation3 + $0x7c] sm:$0xf] }
 0x40c   : > { %5652 = vmatmul.bf16.vlgmr.msra.gmra.mxu0 %v9799_v33  ;;  %6322 = vst [vmem:[#allocation3 + $0x70] sm:$0xf] %v13540_v9  ;;  %v9859_v33 = vor.u32 %v11457_v42, %v9856_v45 }
 0x40d   : > { %4347 = vmatmul.bf16.gmra.mxu3 %v4231_v29  ;;  %5820 = vmatpush.bf16.msrb.mxu0 %v11531_v10  ;;  %v9855_v29 = vor.u32 %v11460_v62, %v9854_v19  ;;  %6323 = vst [vmem:[#allocation3 + $0x8c] sm:$0xf] %v13540_v9  ;;  %v11537_v9 = vld [vmem:[%s14328_s1 + $0x4e8] sm:$0xff] }
 0x410   : > { %v4308_v39 = vpop.f32.mrf.mxu3 }
 0x411   : > { %v11538_v39 = vld [vmem:[%s14328_s1 + $0x4f0] sm:$0xff]  ;;  %5821 = vmatpush.bf16.msrb.mxu0 %v11530_v57  ;;  %5706 = vmatmul.bf16.gmra.mxu1 %v9859_v33 }
 0x412   : > { %5865 = vmatpush.bf16.msrb.mxu1 %v11538_v39 }
 0x415   : > { %5822 = vmatpush.bf16.msrb.mxu0 %v11529_v36 }
 0x416   : > { %5866 = vmatpush.bf16.msrb.mxu1 %v11537_v9 }
 0x418   : > { %v4310_v51 = vpop.f32.mrf.mxu3 }
 0x419   : > { %v11545_v51 = vld [vmem:[%s14328_s1 + $0x528] sm:$0xff]  ;;  %5823 = vmatpush.bf16.msrb.mxu0 %v11528_v28 }
 0x41a   : > { %5910 = vmatpush.bf16.msrb.mxu2 %v11545_v51  ;;  %5867 = vmatpush.bf16.msrb.mxu1 %v11536_v40 }
 0x41c   : > { %5657 = vmatmul.bf16.gmra.mxu0 %v9827_v23 }
 0x41d   : > { %5784 = vmatmul.bf16.vlgmr.msra.gmra.mxu3 %v9811_v4 }
 0x41e   : > { %5911 = vmatpush.bf16.msrb.mxu2 %v11544_v58 }
 0x420   : > { %v4313_v52 = vpop.f32.mrf.mxu3 }
 0x422   : > { %5912 = vmatpush.bf16.msrb.mxu2 %v11543_v5 }
 0x426   : > { %5913 = vmatpush.bf16.msrb.mxu2 %v11542_v8 }
 0x428   : > { %v4315_v11 = vpop.f32.mrf.mxu3 }
 0x42c   : > { %5662 = vmatmul.bf16.gmra.mxu0 %v9855_v29 }
 0x42d   : > { %5789 = vmatmul.bf16.gmra.mxu3 %v9839_v63 }
 0x430   : > { %v4318_v47 = vpop.f32.mrf.mxu3 }
 0x438   : > { %v4320_v6 = vpop.f32.mrf.mxu3 }
 0x440   : > { %v4323_v3 = vpop.f32.mrf.mxu3 }
 0x441   : > { %v4418_v3 = vld [vmem:[#allocation2 + $0x54] sm:$0xff] }
 0x448   : > { %v4325_v15 = vpop.f32.mrf.mxu3 }
 0x449   : > { %v4326_v53 = vadd.f32 %v13572_v25, %v4325_v15  ;;  %v11535_v15 = vld [vmem:[%s14328_s1 + $0x4d8] sm:$0xff] }
 0x44a   : > { %5868 = vmatpush.bf16.msrb.mxu1 %v11535_v15 }
 0x44b   : > { %vm4361_vm8 = vcmp.gt.f32.partialorder %v4326_v53, 0.0  ;;  %v4380_v31 = vmul.f32 %v4372_v12, %v4326_v53 }
 0x44d   : > { %v4398_v18 = vsel %vm4361_vm8, %v4326_v53, %v4380_v31 }
 0x44e   : > { %v4434_v13 = vadd.f32 %v4416_v61, %v4398_v18 }
 0x450   : > { %v4562_v17 = vsel %vm4472_vm9, %v4434_v13, 0.0  ;;  %v4328_v43 = vpop.f32.mrf.mxu3 }
 0x451   : > { %4580 = vst [vmem:[#allocation2 + $0x44] sm:$0xff] %v4562_v17  ;;  %v4329_v14 = vadd.f32 %v13572_v25, %v4328_v43  ;;  %v4612_v21 = vpack.c.bf16 %v4562_v17, %v4562_v17 }
 0x453   : > { %vm4362_vm10 = vcmp.gt.f32.partialorder %v4329_v14, 0.0  ;;  %v4381_v1 = vmul.f32 %v4372_v12, %v4329_v14  ;;  %4626 = vst [vmem:[#allocation3 + $0xc4] sm:$0xf] %v4612_v21 }
 0x455   : > { %v4399_v49 = vsel %vm4362_vm10, %v4329_v14, %v4381_v1 }
 0x456   : > { %v4435_v20 = vadd.f32 %v4417_v35, %v4399_v49 }
 0x458   : > { %v4639_v27 = vld [vmem:[#allocation2 + $0x41] sm:$0xff]  ;;  %4581 = vst [vmem:[#allocation2 + $0x4c] sm:$0xff] %v4435_v20  ;;  %v4330_v44 = vpop.f32.mrf.mxu3  ;;  %v4613_v6 = vpack.c.bf16 %v4435_v20, %v4435_v20 }
 0x459   : > { %v4680_v48 = vld [vmem:[#allocation2 + $0x3e] sm:$0xff]  ;;  %v4331_v23 = vadd.f32 %v13572_v25, %v4330_v44  ;;  %v4653_v11 = vpack.c.bf16 %v4639_v27, %v4639_v27 }
 0x45a   : > { %v4763_v4 = vld [vmem:[#allocation2 + $0x40] sm:$0xff]  ;;  %v4694_v10 = vpack.c.bf16 %v4680_v48, %v4680_v48  ;;  %v11467_v47 = vld [vmem:[#allocation3 + $0xc0] sm:$0xf0]  ;;  %v11527_v25 = vld [vmem:[%s14328_s1 + $0x498] sm:$0xff]  ;;  %4627 = vst [vmem:[#allocation3 + $0xe0] sm:$0xf] %v4613_v6 }
 0x45b   : > { %v4804_v52 = vld [vmem:[#allocation2 + $0x3d] sm:$0xff]  ;;  %vm4363_vm11 = vcmp.gt.f32.partialorder %v4331_v23, 0.0  ;;  %v4382_v7 = vmul.f32 %v4372_v12, %v4331_v23  ;;  %v9883_v37 = vor.u32 %v11467_v47, %v9882_v41  ;;  %v4777_v59 = vpack.c.bf16 %v4763_v4, %v4763_v4  ;;  %4667 = vst [vmem:[#allocation3 + $0xac] sm:$0xf] %v4653_v11  ;;  %5824 = vmatpush.bf16.msrb.mxu0 %v11527_v25 }
 0x45c   : > { %v13607_v32 = vld [vmem:[#allocation2 + $0x42] sm:$0xff]  ;;  %4708 = vst [vmem:[#allocation3 + $0x94] sm:$0xf] %v4694_v10  ;;  %v4818_v50 = vpack.c.bf16 %v4804_v52, %v4804_v52  ;;  %v11526_v10 = vld [vmem:[%s14328_s1 + $0x490] sm:$0xff] }
 0x45d   : > { %v4722_v55 = vld [vmem:[#allocation2 + $0x43] sm:$0xff]  ;;  %6290 = vst [vmem:[#allocation2 + $0x3b] sm:$0xff] %v13536_v34  ;;  %v4400_v46 = vsel %vm4363_vm11, %v4331_v23, %v4382_v7  ;;  %5667 = vmatmul.bf16.gmra.mxu0 %v9883_v37  ;;  %v4860_v61 = vpack.c.bf16 %v13607_v32, %v13607_v32  ;;  %v11534_v7 = vld [vmem:[%s14328_s1 + $0x4d0] sm:$0xff] }
 0x45e   : > { %v4736_v56 = vpack.c.bf16 %v4722_v55, %v4722_v55  ;;  %v4436_v26 = vadd.f32 %v4418_v3, %v4400_v46  ;;  %4832 = vst [vmem:[#allocation3 + $0x68] sm:$0xf] %v4818_v50  ;;  %v6362_v46 = vld [vmem:[#allocation2 + $0x69] sm:$0x3f]  ;;  %5869 = vmatpush.bf16.msrb.mxu1 %v11534_v7  ;;  %v11448_v7 = vld [vmem:[#allocation3 + $0x28] sm:$0xf0] }
 0x45f   : > { %v4640_v0 = vld [vmem:[#allocation2 + $0x49] sm:$0xff]  ;;  %4791 = vst [vmem:[#allocation3 + $0x80] sm:$0xf] %v4777_v59  ;;  %5825 = vmatpush.bf16.msrb.mxu0 %v11526_v10 }
 0x460   : > { %4750 = vst [vmem:[#allocation3 + $0x98] sm:$0xf] %v4736_v56  ;;  %v4681_v16 = vld [vmem:[#allocation2 + $0x46] sm:$0xff]  ;;  %v4564_v19 = vsel %vm4492_vm12, %v4436_v26, 0.0  ;;  %v4333_v62 = vpop.f32.mrf.mxu3  ;;  %v4654_v57 = vpack.c.bf16 %v4640_v0, %v4640_v0 }
 0x461   : > { %v4764_v24 = vld [vmem:[#allocation2 + $0x48] sm:$0xff]  ;;  %4582 = vst [vmem:[#allocation2 + $0x54] sm:$0xff] %v4564_v19  ;;  %v4614_v22 = vpack.c.bf16 %v4564_v19, %v4564_v19  ;;  %v4695_v51 = vpack.c.bf16 %v4681_v16, %v4681_v16 }
 0x462   : > { %v13617_v30 = vld [vmem:[#allocation2 + $0x45] sm:$0xff]  ;;  %4668 = vst [vmem:[#allocation3 + $0xc8] sm:$0xf] %v4654_v57  ;;  %v4778_v18 = vpack.c.bf16 %v4764_v24, %v4764_v24  ;;  %v11464_v17 = vld [vmem:[#allocation3 + $0xac] sm:$0xf] }
 0x463   : > { %v13619_v63 = vld [vmem:[#allocation2 + $0x4a] sm:$0xff]  ;;  %v11461_v53 = vld [vmem:[#allocation3 + $0x90] sm:$0xf0]  ;;  %4628 = vst [vmem:[#allocation3 + $0xfc] sm:$0xf] %v4614_v22  ;;  %v4819_v56 = vpack.c.bf16 %v13617_v30, %v13617_v30 }
 0x464   : > { %v4723_v29 = vld [vmem:[#allocation2 + $0x4b] sm:$0xff]  ;;  %v6330_v39 = vld [vmem:[#allocation2 + $0x3a] sm:$0xff]  ;;  %6291 = vst [vmem:[#allocation2 + $0x43] sm:$0xff] %v13536_v34  ;;  %v9863_v33 = vor.u32 %v11461_v53, %v9862_v60 }
 0x465   : > { %v6356_v42 = vld [vmem:[#allocation2 + $0x39] sm:$0xff]  ;;  %v6339_v12 = vpack.c.bf16 %v6330_v39, %v6330_v39  ;;  %v4737_v9 = vpack.c.bf16 %v4723_v29, %v4723_v29  ;;  %4709 = vst [vmem:[#allocation3 + $0xb0] sm:$0xf] %v4695_v51  ;;  %v9910_v48 = vld [vmem:[#allocation3 + $0xe0] sm:$0xf] }
 0x466   : > { %v6365_v45 = vpack.c.bf16 %v6356_v42, %v6356_v42  ;;  %5750 = vmatmul.bf16.gmra.mxu2 %v9863_v33  ;;  %4792 = vst [vmem:[#allocation3 + $0x9c] sm:$0xf] %v4778_v18  ;;  %v6388_v59 = vld [vmem:[#allocation2 + $0x68] sm:$0xff]  ;;  %v11481_v51 = vld [vmem:[#allocation3 + $0x130] sm:$0xf0] }
 0x467   : > { %v9864_v31 = vld [vmem:[#allocation3 + $0x94] sm:$0xf0]  ;;  %6348 = vst [vmem:[#allocation3 + $0x58] sm:$0xf] %v6339_v12  ;;  %v6397_v62 = vpack.c.bf16 %v6388_v59, %v6388_v59 }
 0x468   : > { %v9867_v36 = vor.u32 %v11458_v54, %v9864_v31  ;;  %6374 = vst [vmem:[#allocation3 + $0x40] sm:$0xf] %v6365_v45  ;;  %v4335_v13 = vpop.f32.mrf.mxu3  ;;  %v4642_v28 = vld [vmem:[#allocation2 + $0x59] sm:$0xff]  ;;  %v4682_v41 = vld [vmem:[#allocation2 + $0x4e] sm:$0xff]  ;;  %v6371_v45 = vpack.c.bf16 %v6362_v46, %v6362_v46 }
 0x469   : > { %4751 = vst [vmem:[#allocation3 + $0xb4] sm:$0xf] %v4737_v9  ;;  %v4683_v40 = vld [vmem:[#allocation2 + $0x56] sm:$0xff]  ;;  %v9884_v21 = vld [vmem:[#allocation3 + $0xc4] sm:$0xf0]  ;;  %v4656_v35 = vpack.c.bf16 %v4642_v28, %v4642_v28  ;;  %v4696_v4 = vpack.c.bf16 %v4682_v41, %v4682_v41  ;;  %v4861_v28 = vpack.c.bf16 %v13619_v63, %v13619_v63 }
 0x46a   : > { %5794 = vmatmul.bf16.gmra.mxu3 %v9867_v36  ;;  %v4725_v14 = vld [vmem:[#allocation2 + $0x5b] sm:$0xff]  ;;  %4874 = vst [vmem:[#allocation3 + $0x6c] sm:$0xf] %v4860_v61  ;;  %v9887_v2 = vor.u32 %v11464_v17, %v9884_v21  ;;  %v4724_v27 = vld [vmem:[#allocation2 + $0x53] sm:$0xff]  ;;  %v11474_v32 = vld [vmem:[#allocation3 + $0xf8] sm:$0xf0]  ;;  %v4697_v23 = vpack.c.bf16 %v4683_v40, %v4683_v40 }
 0x46b   : > { %v6331_v58 = vld [vmem:[#allocation2 + $0x42] sm:$0xff]  ;;  %v13628_v1 = vld [vmem:[#allocation2 + $0x58] sm:$0xff]  ;;  %v4738_v44 = vpack.c.bf16 %v4724_v27, %v4724_v27  ;;  %4670 = vst [vmem:[#allocation3 + $0x100] sm:$0xf] %v4656_v35  ;;  %v9911_v11 = vor.u32 %v11474_v32, %v9910_v48  ;;  %v4739_v47 = vpack.c.bf16 %v4725_v14, %v4725_v14  ;;  %v4806_v37 = vld [vmem:[#allocation2 + $0x4d] sm:$0xff] }
 0x46c   : > { %v6340_v43 = vpack.c.bf16 %v6331_v58, %v6331_v58  ;;  %v13630_v49 = vld [vmem:[#allocation2 + $0x55] sm:$0xff]  ;;  %5711 = vmatmul.bf16.gmra.mxu1 %v9887_v2  ;;  %4710 = vst [vmem:[#allocation3 + $0xcc] sm:$0xf] %v4696_v4  ;;  %v4820_v50 = vpack.c.bf16 %v4806_v37, %v4806_v37  ;;  %v9938_v12 = vld [vmem:[#allocation3 + $0x118] sm:$0xf]  ;;  %v11541_v61 = vld [vmem:[%s14328_s1 + $0x508] sm:$0xff]  ;;  %v4780_v13 = vpack.c.bf16 %v13628_v1, %v13628_v1 }
 0x46d   : > { %v13632_v20 = vld [vmem:[#allocation2 + $0x5a] sm:$0xff]  ;;  %v4641_v52 = vld [vmem:[#allocation2 + $0x51] sm:$0xff]  ;;  %4752 = vst [vmem:[#allocation3 + $0xd0] sm:$0xf] %v4738_v44  ;;  %5672 = vmatmul.bf16.gmra.mxu0 %v9911_v11  ;;  %v11525_v58 = vld [vmem:[%s14328_s1 + $0x488] sm:$0xff]  ;;  %v9939_v40 = vor.u32 %v11481_v51, %v9938_v12  ;;  %5914 = vmatpush.bf16.msrb.mxu2 %v11541_v61  ;;  %v4821_v35 = vpack.c.bf16 %v13630_v49, %v13630_v49 }
 0x46e   : > { %6349 = vst [vmem:[#allocation3 + $0x74] sm:$0xf] %v6340_v43  ;;  %v4655_v55 = vpack.c.bf16 %v4641_v52, %v4641_v52  ;;  %v9890_v60 = vld [vmem:[#allocation3 + $0xb0] sm:$0xf]  ;;  %v6389_v54 = vld [vmem:[#allocation2 + $0x70] sm:$0x3f]  ;;  %5826 = vmatpush.bf16.msrb.mxu0 %v11525_v58  ;;  %v4863_v63 = vpack.c.bf16 %v13632_v20, %v13632_v20 }
 0x46f   : > { %6294 = vst [vmem:[#allocation2 + $0x5b] sm:$0xff] %v13536_v34  ;;  %v4765_v42 = vld [vmem:[#allocation2 + $0x50] sm:$0xff]  ;;  %v6398_v31 = vpack.c.bf16 %v6389_v54, %v6389_v54  ;;  %v11533_v21 = vld [vmem:[%s14328_s1 + $0x4c8] sm:$0xff]  ;;  %v11524_v1 = vld [vmem:[%s14328_s1 + $0x480] sm:$0xff] }
 0x470   : > { %v4338_v6 = vpop.f32.mrf.mxu3  ;;  %4669 = vst [vmem:[#allocation3 + $0xe4] sm:$0xf] %v4655_v55  ;;  %v11465_v19 = vld [vmem:[#allocation3 + $0xb4] sm:$0xf]  ;;  %v4779_v36 = vpack.c.bf16 %v4765_v42, %v4765_v42  ;;  %v4848_v9 = vld [vmem:[#allocation2 + $0x52] sm:$0xff]  ;;  %5870 = vmatpush.bf16.msrb.mxu1 %v11533_v21 }
 0x471   : > { %4711 = vst [vmem:[#allocation3 + $0xe8] sm:$0xf] %v4697_v23  ;;  %v4862_v14 = vpack.c.bf16 %v4848_v9, %v4848_v9  ;;  %v11475_v41 = vld [vmem:[#allocation3 + $0x100] sm:$0xf0]  ;;  %v9920_v27 = vld [vmem:[#allocation3 + $0x104] sm:$0xf0] }
 0x472   : > { %4753 = vst [vmem:[#allocation3 + $0xec] sm:$0xf] %v4739_v47  ;;  %v9912_v33 = vld [vmem:[#allocation3 + $0xfc] sm:$0xf0]  ;;  %5827 = vmatpush.bf16.msrb.mxu0 %v11524_v1  ;;  %v11478_v4 = vld [vmem:[#allocation3 + $0x11c] sm:$0xf] }
 0x473   : > { %4833 = vst [vmem:[#allocation3 + $0x84] sm:$0xf] %v4819_v56  ;;  %v11468_v30 = vld [vmem:[#allocation3 + $0xc8] sm:$0xf0]  ;;  %v9940_v44 = vld [vmem:[#allocation3 + $0x134] sm:$0xf0] }
 0x474   : > { %4834 = vst [vmem:[#allocation3 + $0xa0] sm:$0xf] %v4820_v50  ;;  %v9891_v57 = vor.u32 %v11468_v30, %v9890_v60  ;;  %v9892_v29 = vld [vmem:[#allocation3 + $0xcc] sm:$0xf0]  ;;  %v9943_v55 = vor.u32 %v11478_v4, %v9940_v44  ;;  %v11488_v23 = vld [vmem:[#allocation3 + $0x168] sm:$0xf0] }
 0x475   : > { %v9895_v15 = vor.u32 %v11465_v19, %v9892_v29  ;;  %6406 = vst [vmem:[#allocation3 + $0xd0] sm:$0xf] %v6397_v62  ;;  %v6408_v32 = vld [vmem:[#allocation2 + $0x37] sm:$0xff]  ;;  %v6409_v8 = vld [vmem:[#allocation2 + $0x3f] sm:$0xff]  ;;  %v11479_v60 = vld [vmem:[#allocation3 + $0x124] sm:$0xf]  ;;  %v5697_v29 = vpop.f32.mrf.mxu1 }
 0x476   : > { %v6308_v3 = vld [vmem:[#allocation2 + $0x5b] sm:$0x3f]  ;;  %v6361_v5 = vld [vmem:[#allocation2 + $0x61] sm:$0xff]  ;;  %5755 = vmatmul.bf16.gmra.mxu2 %v9891_v57  ;;  %4793 = vst [vmem:[#allocation3 + $0xb8] sm:$0xf] %v4779_v36  ;;  %v6417_v10 = vpack.c.bf16 %v6408_v32, %v6408_v32  ;;  %v6418_v47 = vpack.c.bf16 %v6409_v8, %v6409_v8 }
 0x477   : > { %v6387_v25 = vld [vmem:[#allocation2 + $0x60] sm:$0xff]  ;;  %v6317_v26 = vpack.c.bf16 %v6308_v3, %v6308_v3  ;;  %v6370_v0 = vpack.c.bf16 %v6361_v5, %v6361_v5  ;;  %v11471_v22 = vld [vmem:[#allocation3 + $0xe4] sm:$0xf]  ;;  %4794 = vst [vmem:[#allocation3 + $0xd4] sm:$0xf] %v4780_v13  ;;  %v5741_v12 = vpop.f32.mrf.mxu2 }
 0x478   : > { %v6396_v16 = vpack.c.bf16 %v6387_v25, %v6387_v25  ;;  %v6335_v24 = vld [vmem:[#allocation2 + $0x62] sm:$0x3f]  ;;  %v4340_v53 = vpop.f32.mrf.mxu3  ;;  %v9918_v18 = vld [vmem:[#allocation3 + $0xe8] sm:$0xf]  ;;  %v9915_v17 = vor.u32 %v11471_v22, %v9912_v33  ;;  %4875 = vst [vmem:[#allocation3 + $0x88] sm:$0xf] %v4861_v28 }
 0x479   : > { %6326 = vst [vmem:[#allocation3 + $0xe0] sm:$0x7] %v6317_v26  ;;  %v6344_v39 = vpack.c.bf16 %v6335_v24, %v6335_v24  ;;  %v11472_v43 = vld [vmem:[#allocation3 + $0xec] sm:$0xf]  ;;  %v9919_v48 = vor.u32 %v11475_v41, %v9918_v18  ;;  %v9966_v20 = vld [vmem:[#allocation3 + $0x150] sm:$0xf] }
 0x47a   : > { %6379 = vst [vmem:[#allocation3 + $0xcc] sm:$0xf] %v6370_v0  ;;  %5799 = vmatmul.bf16.gmra.mxu3 %v9895_v15  ;;  %v9923_v52 = vor.u32 %v11472_v43, %v9920_v27  ;;  %v9814_v11 = vld [vmem:[#allocation3 + $0x10] sm:$0xf]  ;;  %v11540_v56 = vld [vmem:[%s14328_s1 + $0x500] sm:$0xff]  ;;  %v9967_v37 = vor.u32 %v11488_v23, %v9966_v20 }
 0x47b   : > { %6405 = vst [vmem:[#allocation3 + $0xb4] sm:$0xf] %v6396_v16  ;;  %v11532_v6 = vld [vmem:[%s14328_s1 + $0x4c0] sm:$0xff]  ;;  %5915 = vmatpush.bf16.msrb.mxu2 %v11540_v56  ;;  %v11445_v46 = vld [vmem:[#allocation3 + $0x14] sm:$0xf]  ;;  %v9815_v15 = vor.u32 %v11448_v7, %v9814_v11 }
 0x47c   : > { %6353 = vst [vmem:[#allocation3 + $0xe4] sm:$0x7] %v6344_v39  ;;  %5716 = vmatmul.bf16.gmra.mxu1 %v9915_v17  ;;  %v6435_v50 = vld [vmem:[#allocation2 + $0x3e] sm:$0xff]  ;;  %v9946_v5 = vld [vmem:[#allocation3 + $0x120] sm:$0xf] }
 0x47d   : > { %6380 = vst [vmem:[#allocation3 + $0xe8] sm:$0x7] %v6371_v45  ;;  %5677 = vmatmul.bf16.gmra.mxu0 %v9939_v40  ;;  %5871 = vmatpush.bf16.msrb.mxu1 %v11532_v6  ;;  %v6444_v59 = vpack.c.bf16 %v6435_v50, %v6435_v50  ;;  %v11482_v25 = vld [vmem:[#allocation3 + $0x138] sm:$0xf0]  ;;  %v13676_v26 = vld [vmem:[%s14329_s2 + $0x2] ss:$0 sm:$0xff]  ;;  %v13687_v27 = vpop.f32.mrf.mxu1 }
 0x47e   : > { %6407 = vst [vmem:[#allocation3 + $0xec] sm:$0x7] %v6398_v31  ;;  %v9948_v0 = vld [vmem:[#allocation3 + $0x13c] sm:$0xf0]  ;;  %v9947_v16 = vor.u32 %v11482_v25, %v9946_v5  ;;  %v11485_v19 = vld [vmem:[#allocation3 + $0x154] sm:$0xf] }
 0x47f   : > { %4876 = vst [vmem:[#allocation3 + $0xa4] sm:$0xf] %v4862_v14  ;;  %v9951_v54 = vor.u32 %v11479_v60, %v9948_v0  ;;  %v9968_v62 = vld [vmem:[#allocation3 + $0x16c] sm:$0xf0]  ;;  %v6413_v45 = vld [vmem:[#allocation2 + $0x5f] sm:$0xff]  ;;  %v6414_v44 = vld [vmem:[#allocation2 + $0x67] sm:$0xff] }
 0x480   : > { %v4343_v2 = vpop.f32.mrf.mxu3  ;;  %4835 = vst [vmem:[#allocation3 + $0xbc] sm:$0xf] %v4821_v35  ;;  %v9971_v39 = vor.u32 %v11485_v19, %v9968_v62  ;;  %v9974_v53 = vld [vmem:[#allocation3 + $0x158] sm:$0xf]  ;;  %v11489_v22 = vld [vmem:[#allocation3 + $0x170] sm:$0xf0]  ;;  %v6422_v31 = vpack.c.bf16 %v6413_v45, %v6413_v45 }
 0x481   : > { %4877 = vst [vmem:[#allocation3 + $0xc0] sm:$0xf] %v4863_v63  ;;  %v11486_v51 = vld [vmem:[#allocation3 + $0x15c] sm:$0xf]  ;;  %v9976_v36 = vld [vmem:[#allocation3 + $0x174] sm:$0xf0]  ;;  %v9975_v18 = vor.u32 %v11489_v22, %v9974_v53 }
 0x482   : > { %7622 = vst [vmem:[#allocation2 + $0x30] sm:$0xff] %v13536_v34  ;;  %v13681_v9 = vld [vmem:[#allocation3 + $0x98] sm:$0xf0]  ;;  %v9979_v61 = vor.u32 %v11486_v51, %v9976_v36  ;;  %v9816_v58 = vld [vmem:[#allocation3 + $0x2c] sm:$0xf0] }
 0x483   : > { %6426 = vst [vmem:[#allocation3 + $0x10] sm:$0xf] %v6417_v10  ;;  %v6465_v17 = vld [vmem:[#allocation2 + $0x5d] sm:$0xff]  ;;  %v9819_v43 = vor.u32 %v11445_v46, %v9816_v58  ;;  %v9842_v28 = vld [vmem:[#allocation3 + $0x48] sm:$0xf]  ;;  %v6440_v63 = vld [vmem:[#allocation2 + $0x66] sm:$0xff] }
 0x484   : > { %6427 = vst [vmem:[#allocation3 + $0x2c] sm:$0xf] %v6418_v47  ;;  %v11455_v40 = vld [vmem:[#allocation3 + $0x60] sm:$0xf0]  ;;  %v6474_v14 = vpack.c.bf16 %v6465_v17, %v6465_v17  ;;  %v13685_v21 = vld [vmem:[#allocation3 + $0x68] sm:$0xf0]  ;;  %v6449_v41 = vpack.c.bf16 %v6440_v63, %v6440_v63 }
 0x485   : > { %6453 = vst [vmem:[#allocation3 + $0x14] sm:$0xf] %v6444_v59  ;;  %v9843_v1 = vor.u32 %v11455_v40, %v9842_v28  ;;  %v6439_v35 = vld [vmem:[#allocation2 + $0x5e] sm:$0xff]  ;;  %v13691_v4 = vld [vmem:[#allocation3 + $0x9c] sm:$0xf0]  ;;  %v5702_v59 = vpop.f32.mrf.mxu1 }
 0x486   : > { %5760 = vmatmul.bf16.gmra.mxu2 %v9919_v48  ;;  %6431 = vst [vmem:[#allocation3 + $0x9c] sm:$0xf] %v6422_v31  ;;  %v6448_v2 = vpack.c.bf16 %v6439_v35, %v6439_v35  ;;  %v13689_v48 = vld [vmem:[#allocation3 + $0x84] sm:$0xf]  ;;  %v11449_v32 = vld [vmem:[#allocation3 + $0x30] sm:$0xf0] }
 0x487   : > { %6483 = vst [vmem:[#allocation3 + $0x6c] sm:$0xf] %v6474_v14  ;;  %v13693_v8 = vld [vmem:[#allocation3 + $0xb8] sm:$0xf]  ;;  %v13695_v10 = vld [vmem:[#allocation3 + $0xd0] sm:$0xf0] }
 0x488   : > { %v4345_v49 = vpop.f32.mrf.mxu3  ;;  %6457 = vst [vmem:[#allocation3 + $0x84] sm:$0xf] %v6448_v2  ;;  %v11452_v56 = vld [vmem:[#allocation3 + $0x4c] sm:$0xf]  ;;  %v9844_v6 = vld [vmem:[#allocation3 + $0x64] sm:$0xf0]  ;;  %v9899_v2 = vor.u32 %v13695_v10, %v13693_v8 }
 0x489   : > { %v5653_v24 = vpop.f32.mrf.mxu0  ;;  %v9822_v49 = vld [vmem:[#allocation3 + $0x18] sm:$0xf]  ;;  %6458 = vst [vmem:[#allocation3 + $0xa0] sm:$0xf] %v6449_v41  ;;  %v6466_v7 = vld [vmem:[#allocation2 + $0x65] sm:$0xff]  ;;  %v11555_v50 = vld [vmem:[%s14330_s3 + $0xb8] sm:$0xff]  ;;  %v9847_v60 = vor.u32 %v11452_v56, %v9844_v6 }
 0x48a   : > { %5804 = vmatmul.bf16.gmra.mxu3 %v9923_v52  ;;  %v5654_v30 = vadd.f32 %v13676_v26, %v5653_v24  ;;  %v6415_v52 = vld [vmem:[#allocation2 + $0x6f] sm:$0xff]  ;;  %v9823_v11 = vor.u32 %v11449_v32, %v9822_v49  ;;  %v6475_v46 = vpack.c.bf16 %v6466_v7, %v6466_v7  ;;  %v9870_v24 = vld [vmem:[#allocation3 + $0x80] sm:$0xf]  ;;  %v9926_v53 = vld [vmem:[#allocation3 + $0xf0] sm:$0xf] }
 0x48b   : > { %v6424_v20 = vpack.c.bf16 %v6415_v52, %v6415_v52  ;;  %v9878_v25 = vld [vmem:[#allocation3 + $0x88] sm:$0xf]  ;;  %6070 = vmatpush.bf16.msrb.mxu3 %v11555_v50  ;;  %v11463_v0 = vld [vmem:[#allocation3 + $0xa0] sm:$0xf0]  ;;  %v9871_v19 = vor.u32 %v13681_v9, %v9870_v24  ;;  %v9850_v22 = vld [vmem:[#allocation3 + $0x50] sm:$0xf] }
 0x48c   : > { %5721 = vmatmul.bf16.gmra.mxu1 %v9943_v55  ;;  %v5698_v42 = vadd.f32 %v5697_v29, %v5654_v30  ;;  %v6423_v55 = vpack.c.bf16 %v6414_v44, %v6414_v44  ;;  %6484 = vst [vmem:[#allocation3 + $0x88] sm:$0xf] %v6475_v46  ;;  %v6442_v30 = vld [vmem:[#allocation2 + $0x76] sm:$0xff]  ;;  %v11466_v29 = vld [vmem:[#allocation3 + $0xbc] sm:$0xf]  ;;  %v9851_v31 = vor.u32 %v13685_v21, %v9850_v22 }
 0x48d   : > { %5682 = vmatmul.bf16.gmra.mxu0 %v9967_v37  ;;  %6433 = vst [vmem:[#allocation3 + $0xd4] sm:$0xf] %v6424_v20  ;;  %v6467_v37 = vld [vmem:[#allocation2 + $0x6d] sm:$0xff]  ;;  %v6468_v9 = vld [vmem:[#allocation2 + $0x75] sm:$0xff]  ;;  %v9906_v14 = vld [vmem:[#allocation3 + $0xc0] sm:$0xf]  ;;  %v9875_v21 = vor.u32 %v13689_v48, %v13691_v4  ;;  %v9879_v4 = vor.u32 %v11463_v0, %v9878_v25 }
 0x48e   : > { %v13679_v33 = vadd.f32 %v5741_v12, %v5698_v42  ;;  %6432 = vst [vmem:[#allocation3 + $0xb8] sm:$0xf] %v6423_v55  ;;  %v9900_v42 = vld [vmem:[#allocation3 + $0xd4] sm:$0xf0]  ;;  %v13707_v12 = vpop.f32.mrf.mxu1  ;;  %v6477_v17 = vpack.c.bf16 %v6468_v9, %v6468_v9  ;;  %v11470_v35 = vld [vmem:[#allocation3 + $0xd8] sm:$0xf0] }
 0x48f   : > { %v6443_v63 = vld [vmem:[#allocation2 + $0x7e] sm:$0x3f]  ;;  %v11553_v48 = vld [vmem:[%s14330_s3 + $0xa8] sm:$0xff]  ;;  %v11476_v49 = vld [vmem:[#allocation3 + $0x108] sm:$0xf0]  ;;  %v9907_v56 = vor.u32 %v11470_v35, %v9906_v14 }
 0x490   : > { %v4348_v3 = vpop.f32.mrf.mxu3  ;;  %6486 = vst [vmem:[#allocation3 + $0xc0] sm:$0xf] %v6477_v17  ;;  %v6452_v41 = vpack.c.bf16 %v6443_v63, %v6443_v63  ;;  %v11473_v44 = vld [vmem:[#allocation3 + $0xf4] sm:$0xf]  ;;  %v6470_v52 = vld [vmem:[#allocation2 + $0x85] sm:$0x3f]  ;;  %v9927_v8 = vor.u32 %v11476_v49, %v9926_v53 }
 0x491   : > { %v13683_v13 = vpop.f32.mrf.mxu0  ;;  %v6476_v3 = vpack.c.bf16 %v6467_v37, %v6467_v37  ;;  %v6479_v32 = vpack.c.bf16 %v6470_v52, %v6470_v52  ;;  %v9934_v20 = vld [vmem:[#allocation3 + $0xf8] sm:$0xf]  ;;  %v9928_v6 = vld [vmem:[#allocation3 + $0x10c] sm:$0xf0]  ;;  %v9982_v22 = vld [vmem:[#allocation3 + $0x160] sm:$0xf] }
 0x492   : > { %6461 = vst [vmem:[#allocation3 + $0xf4] sm:$0x7] %v6452_v41  ;;  %v11552_v7 = vld [vmem:[%s14330_s3 + $0xa0] sm:$0xff]  ;;  %v9931_v46 = vor.u32 %v11473_v44, %v9928_v6  ;;  %v11550_v17 = vld [vmem:[%s14330_s3 + $0x90] sm:$0xff]  ;;  %v11487_v63 = vld [vmem:[#allocation3 + $0x164] sm:$0xf] }
 0x493   : > { %6485 = vst [vmem:[#allocation3 + $0xa4] sm:$0xf] %v6476_v3  ;;  %v9954_v3 = vld [vmem:[#allocation3 + $0x128] sm:$0xf] }
 0x494   : > { %6488 = vst [vmem:[#allocation3 + $0xf8] sm:$0x7] %v6479_v32 }
 0x496   : > { %5765 = vmatmul.bf16.gmra.mxu2 %v9947_v16  ;;  %v5707_v58 = vpop.f32.mrf.mxu1 }
 0x498   : > { %v4350_v57 = vpop.f32.mrf.mxu3 }
 0x499   : > { %v5658_v23 = vpop.f32.mrf.mxu0  ;;  %v6451_v57 = vpack.c.bf16 %v6442_v30, %v6442_v30  ;;  %v11477_v30 = vld [vmem:[#allocation3 + $0x110] sm:$0xf0] }
 0x49a   : > { %5809 = vmatmul.bf16.gmra.mxu3 %v9951_v54  ;;  %v5659_v47 = vadd.f32 %v13676_v26, %v5658_v23  ;;  %v6441_v54 = vld [vmem:[#allocation2 + $0x6e] sm:$0xff]  ;;  %v9903_v23 = vor.u32 %v11466_v29, %v9900_v42 }
 0x49b   : > { %v6450_v62 = vpack.c.bf16 %v6441_v54, %v6441_v54  ;;  %7629 = vst [vmem:[#allocation2 + $0x68] sm:$0xff] %v13536_v34  ;;  %v11480_v29 = vld [vmem:[#allocation3 + $0x12c] sm:$0xf]  ;;  %v9956_v42 = vld [vmem:[#allocation3 + $0x144] sm:$0xf0] }
 0x49c   : > { %5726 = vmatmul.bf16.gmra.mxu1 %v9971_v39  ;;  %v5703_v5 = vadd.f32 %v5702_v59, %v5659_v47  ;;  %v13705_v39 = vpop.f32.mrf.mxu2  ;;  %6460 = vst [vmem:[#allocation3 + $0xd8] sm:$0xf] %v6451_v57  ;;  %v9959_v53 = vor.u32 %v11480_v29, %v9956_v42 }
 0x49d   : > { %5828 = vmatmul.bf16.vlgmr.msrb.gmra.mxu0 %v9815_v15  ;;  %6459 = vst [vmem:[#allocation3 + $0xbc] sm:$0xf] %v6450_v62  ;;  %v6416_v15 = vld [vmem:[#allocation2 + $0x77] sm:$0x3f]  ;;  %v9935_v62 = vor.u32 %v11477_v30, %v9934_v20  ;;  %v9990_v20 = vld [vmem:[#allocation3 + $0x168] sm:$0xf] }
 0x49e   : > { %v6425_v45 = vpack.c.bf16 %v6416_v15, %v6416_v15  ;;  %7630 = vst [vmem:[#allocation2 + $0x70] sm:$0x3f] %v13536_v34  ;;  %v11551_v15 = vld [vmem:[%s14330_s3 + $0x98] sm:$0xff] }
 0x4a0   : > { %6434 = vst [vmem:[#allocation3 + $0xf0] sm:$0x7] %v6425_v45 }
 0x4a1   : > { %v13701_v16 = vpop.f32.mrf.mxu0 }
 0x4a4   : > { %v5746_v28 = vpop.f32.mrf.mxu2 }
 0x4a6   : > { %5770 = vmatmul.bf16.gmra.mxu2 %v9975_v18  ;;  %v6469_v18 = vld [vmem:[#allocation2 + $0x7d] sm:$0xff] }
 0x4a9   : > { %v5663_v51 = vpop.f32.mrf.mxu0 }
 0x4aa   : > { %5814 = vmatmul.bf16.gmra.mxu3 %v9979_v61  ;;  %v5664_v36 = vadd.f32 %v13676_v26, %v5663_v51  ;;  %v11554_v61 = vld [vmem:[%s14330_s3 + $0xb0] sm:$0xff] }
 0x4ab   : > { %6071 = vmatpush.bf16.msrb.mxu3 %v11554_v61 }
 0x4ac   : > { %5872 = vmatmul.bf16.vlgmr.msrb.gmra.mxu1 %v9819_v43  ;;  %v6478_v43 = vpack.c.bf16 %v6469_v18, %v6469_v18  ;;  %v5708_v40 = vadd.f32 %v5707_v58, %v5664_v36  ;;  %v13726_v10 = vpop.f32.mrf.mxu2 }
 0x4ad   : > { %5833 = vmatmul.bf16.gmra.mxu0 %v9843_v1  ;;  %v13717_v1 = vadd.f32 %v5746_v28, %v5703_v5  ;;  %v11483_v5 = vld [vmem:[#allocation3 + $0x140] sm:$0xf0]  ;;  %v11484_v28 = vld [vmem:[#allocation3 + $0x148] sm:$0xf0] }
 0x4ae   : > { %6487 = vst [vmem:[#allocation3 + $0xdc] sm:$0xf] %v6478_v43  ;;  %v9955_v0 = vor.u32 %v11483_v5, %v9954_v3  ;;  %v9962_v43 = vld [vmem:[#allocation3 + $0x130] sm:$0xf]  ;;  %v5785_v5 = vpop.f32.mrf.mxu3 }
 0x4af   : > { %6072 = vmatpush.bf16.msrb.mxu3 %v11553_v48 }
 0x4b1   : > { %v13721_v34 = vpop.f32.mrf.mxu0 }
 0x4b3   : > { %6073 = vmatpush.bf16.msrb.mxu3 %v11552_v7 }
 0x4b6   : > { %5916 = vmatmul.bf16.vlgmr.msrb.gmra.mxu2 %v9823_v11  ;;  %v13728_v11 = vpop.f32.mrf.mxu1  ;;  %v5787_v29 = vpop.f32.mrf.mxu3 }
 0x4b7   : > { %6074 = vmatpush.bf16.msrb.mxu3 %v11551_v15 }
 0x4bb   : > { %6075 = vmatpush.bf16.msrb.mxu3 %v11550_v17 }
 0x4bc   : > { %5877 = vmatmul.bf16.gmra.mxu1 %v9847_v60 }
 0x4bd   : > { %5838 = vmatmul.bf16.gmra.mxu0 %v9871_v19 }
 0x4c6   : > { %5921 = vmatmul.bf16.gmra.mxu2 %v9851_v31  ;;  %v11490_v31 = vld [vmem:[#allocation3 + $0x178] sm:$0xf0] }
 0x4c7   : > { %v9983_v61 = vor.u32 %v11490_v31, %v9982_v22  ;;  %v5790_v22 = vpop.f32.mrf.mxu3  ;;  %v5656_v31 = vadd.f32 %v13676_v26, %v13683_v13  ;;  %v13790_v13 = vstv %s10216_s29 }
 0x4cc   : > { %5882 = vmatmul.bf16.gmra.mxu1 %v9875_v21  ;;  %v9963_v21 = vor.u32 %v11484_v28, %v9962_v43 }
 0x4cd   : > { %5843 = vmatmul.bf16.gmra.mxu0 %v9899_v2  ;;  %v9984_v2 = vld [vmem:[#allocation3 + $0x17c] sm:$0xf0] }
 0x4ce   : > { %v9987_v44 = vor.u32 %v11487_v63, %v9984_v2 }
 0x4cf   : > { %v5792_v43 = vpop.f32.mrf.mxu3 }
 0x4d6   : > { %5926 = vmatmul.bf16.gmra.mxu2 %v9879_v4 }
 0x4da   : > { %v5668_v55 = vpop.f32.mrf.mxu0 }
 0x4db   : > { %v5669_v50 = vadd.f32 %v13676_v26, %v5668_v55  ;;  %v11549_v55 = vld [vmem:[%s14330_s3 + $0x88] sm:$0xff] }
 0x4dc   : > { %5887 = vmatmul.bf16.gmra.mxu1 %v9903_v23  ;;  %6076 = vmatpush.bf16.msrb.mxu3 %v11549_v55  ;;  %v11491_v23 = vld [vmem:[#allocation3 + $0x180] sm:$0xf0] }
 0x4dd   : > { %5848 = vmatmul.bf16.gmra.mxu0 %v9927_v8  ;;  %v9991_v6 = vor.u32 %v11491_v23, %v9990_v20 }
 0x4e2   : > { %v13730_v47 = vpop.f32.mrf.mxu0 }
 0x4e6   : > { %5931 = vmatmul.bf16.gmra.mxu2 %v9907_v56 }
 0x4e9   : > { %v5751_v37 = vpop.f32.mrf.mxu2  ;;  %v5712_v25 = vpop.f32.mrf.mxu1 }
 0x4ea   : > { %v13736_v59 = vadd.f32 %v5751_v37, %v5708_v40  ;;  %v5713_v60 = vadd.f32 %v5712_v25, %v5669_v50  ;;  %v5673_v24 = vpop.f32.mrf.mxu0 }
 0x4eb   : > { %v5674_v45 = vadd.f32 %v13676_v26, %v5673_v24 }
 0x4ec   : > { %5892 = vmatmul.bf16.gmra.mxu1 %v9931_v46 }
 0x4ed   : > { %5853 = vmatmul.bf16.gmra.mxu0 %v9955_v0  ;;  %v11548_v0 = vld [vmem:[%s14330_s3 + $0x80] sm:$0xff] }
 0x4ee   : > { %6077 = vmatpush.bf16.msrb.mxu3 %v11548_v0 }
 0x4f1   : > { %v13738_v54 = vpop.f32.mrf.mxu2  ;;  %v13740_v19 = vpop.f32.mrf.mxu1 }
 0x4f2   : > { %v13742_v57 = vpop.f32.mrf.mxu0 }
 0x4f6   : > { %5936 = vmatmul.bf16.gmra.mxu2 %v9935_v62 }
 0x4f9   : > { %v5717_v51 = vpop.f32.mrf.mxu1  ;;  %v5756_v36 = vpop.f32.mrf.mxu2 }
 0x4fa   : > { %v5718_v9 = vadd.f32 %v5717_v51, %v5674_v45  ;;  %v13748_v18 = vadd.f32 %v5756_v36, %v5713_v60  ;;  %v5678_v58 = vpop.f32.mrf.mxu0 }
 0x4fb   : > { %v5679_v41 = vadd.f32 %v13676_v26, %v5678_v58  ;;  %v5786_v58 = vadd.f32 %v5785_v5, %v13679_v33 }
 0x4fc   : > { %5897 = vmatmul.bf16.gmra.mxu1 %v9959_v53 }
 0x4fd   : > { %5858 = vmatmul.bf16.gmra.mxu0 %v9983_v61 }
 0x501   : > { %v13753_v40 = vpop.f32.mrf.mxu1  ;;  %v13755_v14 = vpop.f32.mrf.mxu2 }
 0x502   : > { %v13757_v35 = vpop.f32.mrf.mxu0 }
 0x506   : > { %5941 = vmatmul.bf16.gmra.mxu2 %v9963_v21 }
 0x509   : > { %v5722_v48 = vpop.f32.mrf.mxu1  ;;  %v5761_v4 = vpop.f32.mrf.mxu2 }
 0x50a   : > { %v5723_v52 = vadd.f32 %v5722_v48, %v5679_v41  ;;  %v13760_v49 = vadd.f32 %v5761_v4, %v5718_v9  ;;  %v5683_v32 = vpop.f32.mrf.mxu0  ;;  %v5700_v9 = vadd.f32 %v13687_v27, %v5656_v31  ;;  %v5661_v4 = vadd.f32 %v13676_v26, %v13701_v16  ;;  %v5795_v27 = vpop.f32.mrf.mxu3 }
 0x50b   : > { %v5684_v37 = vadd.f32 %v13676_v26, %v5683_v32 }
 0x50c   : > { %5902 = vmatmul.bf16.gmra.mxu1 %v9987_v44  ;;  %v5744_v17 = vadd.f32 %v13705_v39, %v5700_v9  ;;  %v5705_v23 = vadd.f32 %v13707_v12, %v5661_v4 }
 0x50e   : > { %v5788_v2 = vadd.f32 %v5787_v29, %v5744_v17  ;;  %v5749_v16 = vadd.f32 %v13726_v10, %v5705_v23  ;;  %v5666_v17 = vadd.f32 %v13676_v26, %v13721_v34 }
 0x511   : > { %v13765_v8 = vpop.f32.mrf.mxu1  ;;  %v13767_v56 = vpop.f32.mrf.mxu2 }
 0x512   : > { %v13769_v7 = vpop.f32.mrf.mxu0  ;;  %v5797_v0 = vpop.f32.mrf.mxu3 }
 0x516   : > { %5946 = vmatmul.bf16.gmra.mxu2 %v9991_v6 }
 0x519   : > { %v5727_v50 = vpop.f32.mrf.mxu1  ;;  %v5766_v46 = vpop.f32.mrf.mxu2 }
 0x51a   : > { %v5728_v3 = vadd.f32 %v5727_v50, %v5684_v37  ;;  %v13772_v25 = vadd.f32 %v5766_v46, %v5723_v52  ;;  %v5829_v60 = vpop.f32.mrf.mxu0  ;;  %v5800_v10 = vpop.f32.mrf.mxu3 }
 0x51b   : > { %v5830_v63 = vadd.f32 %v5829_v60, %v5786_v58 }
 0x521   : > { %v13777_v24 = vpop.f32.mrf.mxu1  ;;  %v13779_v30 = vpop.f32.mrf.mxu2 }
 0x522   : > { %v5831_v62 = vpop.f32.mrf.mxu0 }
 0x523   : > { %v5832_v44 = vadd.f32 %v5831_v62, %v5788_v2  ;;  %v5796_v2 = vadd.f32 %v5795_v27, %v13736_v59  ;;  %v5671_v59 = vadd.f32 %v13676_v26, %v13730_v47 }
 0x525   : > { %v5715_v27 = vadd.f32 %v13740_v19, %v5671_v59 }
 0x529   : > { %v5873_v42 = vpop.f32.mrf.mxu1  ;;  %v5771_v15 = vpop.f32.mrf.mxu2 }
 0x52a   : > { %v13781_v45 = vadd.f32 %v5771_v15, %v5728_v3  ;;  %v5834_v53 = vpop.f32.mrf.mxu0  ;;  %v5874_v41 = vadd.f32 %v5873_v42, %v5830_v63  ;;  %v5791_v3 = vadd.f32 %v5790_v22, %v13717_v1  ;;  %v5793_v42 = vadd.f32 %v5792_v43, %v5749_v16 }
 0x52b   : > { %v5710_v43 = vadd.f32 %v13728_v11, %v5666_v17  ;;  %v5801_v16 = vadd.f32 %v5800_v10, %v13748_v18  ;;  %v11591_v10 = vld [vmem:[%s14328_s1 + $0x578] sm:$0xff] }
 0x52c   : > { %v5835_v62 = vadd.f32 %v5834_v53, %v5791_v3  ;;  %7145 = vmatpush.bf16.msra.mxu0 %v11591_v10 }
 0x531   : > { %v5875_v51 = vpop.f32.mrf.mxu1  ;;  %v13785_v36 = vpop.f32.mrf.mxu2 }
 0x532   : > { %v5836_v61 = vpop.f32.mrf.mxu0  ;;  %v5876_v52 = vadd.f32 %v5875_v51, %v5832_v44 }
 0x533   : > { %v5837_v31 = vadd.f32 %v5836_v61, %v5793_v42 }
 0x539   : > { %v5878_v28 = vpop.f32.mrf.mxu1  ;;  %v5917_v21 = vpop.f32.mrf.mxu2 }
 0x53a   : > { %v5918_v48 = vadd.f32 %v5917_v21, %v5874_v41  ;;  %v5839_v33 = vpop.f32.mrf.mxu0  ;;  %v5879_v15 = vadd.f32 %v5878_v28, %v5835_v62  ;;  %v5754_v41 = vadd.f32 %v13738_v54, %v5710_v43 }
 0x53c   : > { %v5968_v39 = vmul.f32 %v13790_v13, %v5918_v48  ;;  %vm5953_vm13 = vcmp.gt.f32.partialorder %v5918_v48, 0.0  ;;  %v5798_v4 = vadd.f32 %v5797_v0, %v5754_v41 }
 0x53e   : > { %v5982_v37 = vsel %vm5953_vm13, %v5918_v48, %v5968_v39  ;;  %v5840_v48 = vadd.f32 %v5839_v33, %v5796_v2 }
 0x541   : > { %v5880_v32 = vpop.f32.mrf.mxu1  ;;  %v5919_v55 = vpop.f32.mrf.mxu2 }
 0x542   : > { %v5920_v20 = vadd.f32 %v5919_v55, %v5876_v52  ;;  %v5841_v29 = vpop.f32.mrf.mxu0  ;;  %v5881_v51 = vadd.f32 %v5880_v32, %v5837_v31  ;;  %v5802_v32 = vpop.f32.mrf.mxu3  ;;  %v11607_v31 = vld [vmem:[%s14328_s1 + $0x5f8] sm:$0xff] }
 0x543   : > { %v5842_v55 = vadd.f32 %v5841_v29, %v5798_v4  ;;  %7211 = vmatpush.bf16.msra.mxu2 %v11607_v31 }
 0x544   : > { %vm5954_vm14 = vcmp.gt.f32.partialorder %v5920_v20, 0.0  ;;  %v5969_v6 = vmul.f32 %v13790_v13, %v5920_v20 }
 0x546   : > { %v5983_v50 = vsel %vm5954_vm14, %v5920_v20, %v5969_v6 }
 0x547   : > { %v5996_v46 = vpack.c.bf16 %v5983_v50, %v5982_v37 }
 0x549   : > { %v5883_v5 = vpop.f32.mrf.mxu1  ;;  %v5922_v60 = vpop.f32.mrf.mxu2  ;;  %6078 = vmatmul.bf16.vlgmr.msrb.gmra.mxu3 %v5996_v46 }
 0x54a   : > { %v5923_v12 = vadd.f32 %v5922_v60, %v5879_v15  ;;  %v5844_v53 = vpop.f32.mrf.mxu0  ;;  %v5884_v52 = vadd.f32 %v5883_v5, %v5840_v48  ;;  %v5759_v5 = vadd.f32 %v13755_v14, %v5715_v27  ;;  %v5805_v60 = vpop.f32.mrf.mxu3 }
 0x54b   : > { %v5845_v29 = vadd.f32 %v5844_v53, %v5801_v16 }
 0x54c   : > { %v5970_v1 = vmul.f32 %v13790_v13, %v5923_v12  ;;  %vm5955_vm15 = vcmp.gt.f32.partialorder %v5923_v12, 0.0  ;;  %v5803_v15 = vadd.f32 %v5802_v32, %v5759_v5 }
 0x54e   : > { %v5984_v28 = vsel %vm5955_vm15, %v5923_v12, %v5970_v1  ;;  %v5676_v1 = vadd.f32 %v13676_v26, %v13742_v57  ;;  %v5806_v57 = vadd.f32 %v5805_v60, %v13760_v49 }
 0x550   : > { %v5720_v43 = vadd.f32 %v13753_v40, %v5676_v1  ;;  %v11590_v40 = vld [vmem:[%s14328_s1 + $0x570] sm:$0xff] }
 0x551   : > { %v5885_v9 = vpop.f32.mrf.mxu1  ;;  %v5924_v58 = vpop.f32.mrf.mxu2  ;;  %7146 = vmatpush.bf16.msra.mxu0 %v11590_v40 }
 0x552   : > { %v5925_v22 = vadd.f32 %v5924_v58, %v5881_v51  ;;  %v5846_v20 = vpop.f32.mrf.mxu0  ;;  %v5886_v23 = vadd.f32 %v5885_v9, %v5842_v55  ;;  %v5807_v58 = vpop.f32.mrf.mxu3  ;;  %v5764_v2 = vadd.f32 %v13767_v56, %v5720_v43 }
 0x553   : > { %v5847_v19 = vadd.f32 %v5846_v20, %v5803_v15 }
 0x554   : > { %vm5956_vm0 = vcmp.gt.f32.partialorder %v5925_v22, 0.0  ;;  %v5971_v21 = vmul.f32 %v13790_v13, %v5925_v22  ;;  %v5808_v48 = vadd.f32 %v5807_v58, %v5764_v2 }
 0x556   : > { %v5985_v61 = vsel %vm5956_vm0, %v5925_v22, %v5971_v21  ;;  %v11599_v21 = vld [vmem:[%s14328_s1 + $0x5b8] sm:$0xff] }
 0x557   : > { %v5997_v63 = vpack.c.bf16 %v5985_v61, %v5984_v28  ;;  %7178 = vmatpush.bf16.msra.mxu1 %v11599_v21 }
 0x559   : > { %v5888_v44 = vpop.f32.mrf.mxu1  ;;  %v5927_v34 = vpop.f32.mrf.mxu2  ;;  %6083 = vmatmul.bf16.gmra.mxu3 %v5997_v63 }
 0x55a   : > { %v5928_v39 = vadd.f32 %v5927_v34, %v5884_v52  ;;  %v5849_v0 = vpop.f32.mrf.mxu0  ;;  %v5889_v47 = vadd.f32 %v5888_v44, %v5845_v29  ;;  %v5810_v34 = vpop.f32.mrf.mxu3  ;;  %v11606_v52 = vld [vmem:[%s14328_s1 + $0x5f0] sm:$0xff] }
 0x55b   : > { %v5850_v44 = vadd.f32 %v5849_v0, %v5806_v57  ;;  %7212 = vmatpush.bf16.msra.mxu2 %v11606_v52  ;;  %v11605_v0 = vld [vmem:[%s14328_s1 + $0x5e8] sm:$0xff] }
 0x55c   : > { %v5972_v37 = vmul.f32 %v13790_v13, %v5928_v39  ;;  %vm5957_vm1 = vcmp.gt.f32.partialorder %v5928_v39, 0.0 }
 0x55e   : > { %v5986_v33 = vsel %vm5957_vm1, %v5928_v39, %v5972_v37 }
 0x55f   : > { %7213 = vmatpush.bf16.msra.mxu2 %v11605_v0  ;;  %v10380_v0 = vld [vmem:[#allocation3] sm:$0xf] }
 0x561   : > { %v5929_v6 = vpop.f32.mrf.mxu2  ;;  %v5890_v11 = vpop.f32.mrf.mxu1 }
 0x562   : > { %v5930_v50 = vadd.f32 %v5929_v6, %v5886_v23  ;;  %v5891_v51 = vadd.f32 %v5890_v11, %v5847_v19  ;;  %v5851_v17 = vpop.f32.mrf.mxu0  ;;  %v5681_v23 = vadd.f32 %v13676_v26, %v13757_v35  ;;  %v5812_v59 = vpop.f32.mrf.mxu3  ;;  %v5811_v35 = vadd.f32 %v5810_v34, %v13772_v25  ;;  %v11604_v25 = vld [vmem:[%s14328_s1 + $0x5e0] sm:$0xff] }
 0x563   : > { %v5852_v55 = vadd.f32 %v5851_v17, %v5808_v48  ;;  %7214 = vmatpush.bf16.msra.mxu2 %v11604_v25  ;;  %v5686_v17 = vadd.f32 %v13676_v26, %v13769_v7  ;;  %v11609_v25 = vld [vmem:[%s14328_s1 + $0x608] sm:$0xff] }
 0x564   : > { %vm5958_vm2 = vcmp.gt.f32.partialorder %v5930_v50, 0.0  ;;  %v5973_v54 = vmul.f32 %v13790_v13, %v5930_v50 }
 0x566   : > { %v5987_v46 = vsel %vm5958_vm2, %v5930_v50, %v5973_v54  ;;  %v11598_v50 = vld [vmem:[%s14328_s1 + $0x5b0] sm:$0xff]  ;;  %v5725_v54 = vadd.f32 %v13765_v8, %v5681_v23  ;;  %v11589_v8 = vld [vmem:[%s14328_s1 + $0x568] sm:$0xff] }
 0x567   : > { %v5998_v3 = vpack.c.bf16 %v5987_v46, %v5986_v33  ;;  %7179 = vmatpush.bf16.msra.mxu1 %v11598_v50  ;;  %7147 = vmatpush.bf16.msra.mxu0 %v11589_v8  ;;  %v11586_v23 = vld [vmem:[%s14328_s1 + $0x550] sm:$0xff]  ;;  %v11601_v50 = vld [vmem:[%s14328_s1 + $0x5c8] sm:$0xff]  ;;  %v11559_v8 = vld [vmem:[#allocation3 + $0x18] sm:$0xf0] }
 0x568   : > { %v5769_v16 = vadd.f32 %v13779_v30, %v5725_v54  ;;  %v11588_v30 = vld [vmem:[%s14328_s1 + $0x560] sm:$0xff] }
 0x569   : > { %v5932_v62 = vpop.f32.mrf.mxu2  ;;  %6088 = vmatmul.bf16.gmra.mxu3 %v5998_v3  ;;  %v5893_v42 = vpop.f32.mrf.mxu1  ;;  %v11612_v54 = vld [vmem:[%s14328_s1 + $0x620] sm:$0xff] }
 0x56a   : > { %v5933_v12 = vadd.f32 %v5932_v62, %v5889_v47  ;;  %v5894_v4 = vadd.f32 %v5893_v42, %v5850_v44  ;;  %v5854_v32 = vpop.f32.mrf.mxu0  ;;  %v11597_v62 = vld [vmem:[%s14328_s1 + $0x5a8] sm:$0xff]  ;;  %v5813_v42 = vadd.f32 %v5812_v59, %v5769_v16  ;;  %v11596_v47 = vld [vmem:[%s14328_s1 + $0x5a0] sm:$0xff]  ;;  %v6382_v16 = vld [vmem:[#allocation2 + $0x38] sm:$0xff] }
 0x56b   : > { %v5855_v29 = vadd.f32 %v5854_v32, %v5811_v35  ;;  %7180 = vmatpush.bf16.msra.mxu1 %v11597_v62  ;;  %7148 = vmatpush.bf16.msra.mxu0 %v11588_v30  ;;  %v11585_v59 = vld [vmem:[%s14328_s1 + $0x548] sm:$0xff]  ;;  %v11610_v35 = vld [vmem:[%s14328_s1 + $0x610] sm:$0xff]  ;;  %v11600_v62 = vld [vmem:[%s14328_s1 + $0x5c0] sm:$0xff] }
 0x56c   : > { %v5974_v18 = vmul.f32 %v13790_v13, %v5933_v12  ;;  %vm5959_vm3 = vcmp.gt.f32.partialorder %v5933_v12, 0.0 }
 0x56e   : > { %v5988_v28 = vsel %vm5959_vm3, %v5933_v12, %v5974_v18  ;;  %v5815_v12 = vpop.f32.mrf.mxu3 }
 0x56f   : > { %7181 = vmatpush.bf16.msra.mxu1 %v11596_v47  ;;  %v11556_v47 = vld [vmem:[#allocation3 + $0x4] sm:$0xf] }
 0x571   : > { %v5934_v9 = vpop.f32.mrf.mxu2  ;;  %v5895_v53 = vpop.f32.mrf.mxu1 }
 0x572   : > { %v5935_v14 = vadd.f32 %v5934_v9, %v5891_v51  ;;  %v5896_v56 = vadd.f32 %v5895_v53, %v5852_v55  ;;  %v5856_v46 = vpop.f32.mrf.mxu0  ;;  %v11603_v51 = vld [vmem:[%s14328_s1 + $0x5d8] sm:$0xff]  ;;  %v5730_v53 = vadd.f32 %v13777_v24, %v5686_v17 }
 0x573   : > { %v5857_v31 = vadd.f32 %v5856_v46, %v5813_v42  ;;  %v11587_v9 = vld [vmem:[%s14328_s1 + $0x558] sm:$0xff]  ;;  %7215 = vmatpush.bf16.msra.mxu2 %v11603_v51  ;;  %v11592_v42 = vld [vmem:[%s14328_s1 + $0x580] sm:$0xff]  ;;  %v11560_v51 = vld [vmem:[#allocation3 + $0x20] sm:$0xf0] }
 0x574   : > { %vm5960_vm4 = vcmp.gt.f32.partialorder %v5935_v14, 0.0  ;;  %v5975_v22 = vmul.f32 %v13790_v13, %v5935_v14  ;;  %7149 = vmatpush.bf16.msra.mxu0 %v11587_v9  ;;  %v5774_v57 = vadd.f32 %v13785_v36, %v5730_v53  ;;  %v11639_v53 = vld [vmem:[%s14328_s1 + $0x6f8] sm:$0xff] }
 0x576   : > { %v5989_v61 = vsel %vm5960_vm4, %v5935_v14, %v5975_v22  ;;  %v5817_v26 = vpop.f32.mrf.mxu3 }
 0x577   : > { %v5999_v63 = vpack.c.bf16 %v5989_v61, %v5988_v28  ;;  %v5818_v44 = vadd.f32 %v5817_v26, %v5774_v57  ;;  %v11563_v57 = vld [vmem:[#allocation3 + $0x3c] sm:$0xf]  ;;  %v10410_v26 = vld [vmem:[#allocation3 + $0x54] sm:$0xf0] }
 0x578   : > { %7150 = vmatpush.bf16.msra.mxu0 %v11586_v23  ;;  %v11629_v23 = vld [vmem:[%s14328_s1 + $0x6a8] sm:$0xff] }
 0x579   : > { %v5937_v41 = vpop.f32.mrf.mxu2  ;;  %6093 = vmatmul.bf16.gmra.mxu3 %v5999_v63  ;;  %v5898_v49 = vpop.f32.mrf.mxu1  ;;  %v5816_v63 = vadd.f32 %v5815_v12, %v13781_v45  ;;  %v10388_v12 = vld [vmem:[#allocation3 + $0x8] sm:$0xf] }
 0x57a   : > { %v5938_v39 = vadd.f32 %v5937_v41, %v5894_v4  ;;  %v5899_v15 = vadd.f32 %v5898_v49, %v5855_v29  ;;  %v5859_v14 = vpop.f32.mrf.mxu0  ;;  %v10381_v29 = vor.u32 %v11559_v8, %v10380_v0  ;;  %v6165_v8 = vld [vmem:[#allocation2 + $0x53] sm:$0xff] }
 0x57b   : > { %v5860_v2 = vadd.f32 %v5859_v14, %v5816_v63  ;;  %v11557_v14 = vld [vmem:[#allocation3 + $0xc] sm:$0xf]  ;;  %v11631_v63 = vld [vmem:[%s14328_s1 + $0x6b8] sm:$0xff] }
 0x57c   : > { %v5976_v6 = vmul.f32 %v13790_v13, %v5938_v39  ;;  %vm5961_vm5 = vcmp.gt.f32.partialorder %v5938_v39, 0.0  ;;  %7151 = vmatpush.bf16.msra.mxu0 %v11585_v59  ;;  %v11620_v59 = vld [vmem:[%s14328_s1 + $0x660] sm:$0xff] }
 0x57e   : > { %v5990_v27 = vsel %vm5961_vm5, %v5938_v39, %v5976_v6  ;;  %v11615_v6 = vld [vmem:[%s14328_s1 + $0x638] sm:$0xff] }
 0x57f   : > { %7244 = vmatpush.bf16.msra.mxu3 %v11615_v6  ;;  %v6129_v6 = vstv %s13955_s30  ;;  %s10714_s30 = sld [smem:[#allocation5 + $0x3]] }
 0x581   : > { %v5939_v20 = vpop.f32.mrf.mxu2  ;;  %v5900_v5 = vpop.f32.mrf.mxu1 }
 0x582   : > { %v5940_v11 = vadd.f32 %v5939_v20, %v5896_v56  ;;  %v5901_v18 = vadd.f32 %v5900_v5, %v5857_v31  ;;  %v5861_v41 = vpop.f32.mrf.mxu0  ;;  %v11595_v56 = vld [vmem:[%s14328_s1 + $0x598] sm:$0xff]  ;;  %v11602_v20 = vld [vmem:[%s14328_s1 + $0x5d0] sm:$0xff]  ;;  %v13920_v5 = vld [vmem:[#allocation2 + $0x3] sm:$0xff]  ;;  %v6391_v31 = vpack.c.bf16 %v6382_v16, %v6382_v16 }
 0x583   : > { %v5862_v4 = vadd.f32 %v5861_v41, %v5818_v44  ;;  %7182 = vmatpush.bf16.msra.mxu1 %v11595_v56  ;;  %7216 = vmatpush.bf16.msra.mxu2 %v11602_v20  ;;  %7623 = vst [vmem:[#allocation2 + $0x38] sm:$0xff] %v13920_v5  ;;  %v11638_v41 = vld [vmem:[%s14328_s1 + $0x6f0] sm:$0xff]  ;;  %v11770_v56 = vld [vmem:[%s14331_s4 + $0x2] ss:$0 sm:$0xff] }
 0x584   : > { %vm5962_vm6 = vcmp.gt.f32.partialorder %v5940_v11, 0.0  ;;  %v5977_v37 = vmul.f32 %v13790_v13, %v5940_v11  ;;  %6400 = vst [vmem:[#allocation3 + $0x28] sm:$0xf] %v6391_v31 }
 0x586   : > { %v5991_v33 = vsel %vm5962_vm6, %v5940_v11, %v5977_v37  ;;  %v11614_v11 = vld [vmem:[%s14328_s1 + $0x630] sm:$0xff]  ;;  %v11613_v37 = vld [vmem:[%s14328_s1 + $0x628] sm:$0xff] }
 0x587   : > { %v6000_v3 = vpack.c.bf16 %v5991_v33, %v5990_v27  ;;  %7245 = vmatpush.bf16.msra.mxu3 %v11614_v11  ;;  %v11593_v27 = vld [vmem:[%s14328_s1 + $0x588] sm:$0xff]  ;;  %7217 = vmatpush.bf16.msra.mxu2 %v11601_v50  ;;  %v11611_v33 = vld [vmem:[%s14328_s1 + $0x618] sm:$0xff]  ;;  %v11636_v11 = vld [vmem:[%s14328_s1 + $0x6e0] sm:$0xff] }
 0x589   : > { %v5942_v60 = vpop.f32.mrf.mxu2  ;;  %6098 = vmatmul.bf16.gmra.mxu3 %v6000_v3  ;;  %v5903_v10 = vpop.f32.mrf.mxu1  ;;  %v11584_v3 = vld [vmem:[%s14328_s1 + $0x540] sm:$0xff] }
 0x58a   : > { %v5943_v19 = vadd.f32 %v5942_v60, %v5899_v15  ;;  %v5904_v34 = vadd.f32 %v5903_v10, %v5860_v2  ;;  %v7633_v60 = vpack.c.bf16 %v13920_v5, %v13920_v5  ;;  %7152 = vmatpush.bf16.msra.mxu0 %v11584_v3  ;;  %v11608_v15 = vld [vmem:[%s14328_s1 + $0x600] sm:$0xff] }
 0x58b   : > { %7246 = vmatpush.bf16.msra.mxu3 %v11613_v37  ;;  %7218 = vmatpush.bf16.msra.mxu2 %v11600_v62  ;;  %v10390_v17 = vld [vmem:[#allocation3 + $0x24] sm:$0xf0]  ;;  %v10408_v10 = vld [vmem:[#allocation3 + $0x38] sm:$0xf]  ;;  %v11635_v62 = vld [vmem:[%s14328_s1 + $0x6d8] sm:$0xff] }
 0x58c   : > { %v5978_v1 = vmul.f32 %v13790_v13, %v5943_v19  ;;  %vm5963_vm7 = vcmp.gt.f32.partialorder %v5943_v19, 0.0  ;;  %7635 = vst [vmem:[#allocation3] sm:$0xf] %v7633_v60  ;;  %v6357_v2 = vld [vmem:[#allocation2 + $0x41] sm:$0xff] }
 0x58d   : > { %7636 = vst [vmem:[#allocation3 + $0x1c] sm:$0xf] %v7633_v60  ;;  %7153 = vmatmul.bf16.vlgmr.msra.gmra.mxu0 %v10381_v29  ;;  %v6366_v44 = vpack.c.bf16 %v6357_v2, %v6357_v2  ;;  %v11619_v29 = vld [vmem:[%s14328_s1 + $0x658] sm:$0xff] }
 0x58e   : > { %v5992_v43 = vsel %vm5963_vm7, %v5943_v19, %v5978_v1  ;;  %v10382_v19 = vld [vmem:[#allocation3 + $0x1c] sm:$0xf0]  ;;  %v10393_v1 = vor.u32 %v11557_v14, %v10390_v17 }
 0x58f   : > { %7247 = vmatpush.bf16.msra.mxu3 %v11612_v54  ;;  %v10385_v9 = vor.u32 %v11556_v47, %v10382_v19  ;;  %7343 = vmatpush.bf16.msrb.mxu2 %v11639_v53  ;;  %6375 = vst [vmem:[#allocation3 + $0x5c] sm:$0xf] %v6366_v44  ;;  %v11628_v54 = vld [vmem:[%s14328_s1 + $0x6a0] sm:$0xff] }
 0x591   : > { %v5944_v58 = vpop.f32.mrf.mxu2  ;;  %v5905_v48 = vpop.f32.mrf.mxu1 }
 0x592   : > { %v5945_v22 = vadd.f32 %v5944_v58, %v5901_v18  ;;  %v5906_v40 = vadd.f32 %v5905_v48, %v5862_v4  ;;  %v10389_v18 = vor.u32 %v11560_v51, %v10388_v12  ;;  %v11630_v48 = vld [vmem:[%s14328_s1 + $0x6b0] sm:$0xff]  ;;  %v10436_v4 = vld [vmem:[#allocation3 + $0x70] sm:$0xf] }
 0x593   : > { %7248 = vmatpush.bf16.msra.mxu3 %v11611_v33  ;;  %7344 = vmatpush.bf16.msrb.mxu2 %v11638_v41  ;;  %v6164_v33 = vld [vmem:[#allocation2 + $0x4b] sm:$0xff]  ;;  %v11627_v51 = vld [vmem:[%s14328_s1 + $0x698] sm:$0xff] }
 0x594   : > { %vm5964_vm8 = vcmp.gt.f32.partialorder %v5945_v22, 0.0  ;;  %v5979_v21 = vmul.f32 %v13790_v13, %v5945_v22  ;;  %7219 = vmatmul.bf16.vlgmr.msra.gmra.mxu2 %v10389_v18 }
 0x596   : > { %v5993_v28 = vsel %vm5964_vm8, %v5945_v22, %v5979_v21  ;;  %v11566_v21 = vld [vmem:[#allocation3 + $0x50] sm:$0xf0] }
 0x597   : > { %v6001_v61 = vpack.c.bf16 %v5993_v28, %v5992_v43  ;;  %7249 = vmatpush.bf16.msra.mxu3 %v11610_v35  ;;  %v10409_v43 = vor.u32 %v11566_v21, %v10408_v10  ;;  %v11623_v28 = vld [vmem:[%s14328_s1 + $0x678] sm:$0xff] }
 0x598   : > { %7277 = vmatpush.bf16.msrb.mxu0 %v11623_v28  ;;  %v11570_v21 = vld [vmem:[#allocation3 + $0x74] sm:$0xf] }
 0x599   : > { %v5947_v7 = vpop.f32.mrf.mxu2  ;;  %6103 = vmatmul.bf16.gmra.mxu3 %v6001_v61 }
 0x59a   : > { %v5948_v52 = vadd.f32 %v5947_v7, %v5904_v34  ;;  %v10413_v7 = vor.u32 %v11563_v57, %v10410_v26  ;;  %v11622_v34 = vld [vmem:[%s14328_s1 + $0x670] sm:$0xff] }
 0x59b   : > { %7250 = vmatpush.bf16.msra.mxu3 %v11609_v25 }
 0x59c   : > { %v5980_v24 = vmul.f32 %v13790_v13, %v5948_v52  ;;  %vm5965_vm9 = vcmp.gt.f32.partialorder %v5948_v52, 0.0  ;;  %7278 = vmatpush.bf16.msrb.mxu0 %v11622_v34 }
 0x59d   : > { %7158 = vmatmul.bf16.gmra.mxu0 %v10409_v43 }
 0x59e   : > { %v5994_v36 = vsel %vm5965_vm9, %v5948_v52, %v5980_v24  ;;  %v11573_v52 = vld [vmem:[#allocation3 + $0x88] sm:$0xf0]  ;;  %v11637_v24 = vld [vmem:[%s14328_s1 + $0x6e8] sm:$0xff] }
 0x59f   : > { %7251 = vmatpush.bf16.msra.mxu3 %v11608_v15  ;;  %7345 = vmatpush.bf16.msrb.mxu2 %v11637_v24 }
 0x5a1   : > { %v5949_v32 = vpop.f32.mrf.mxu2 }
 0x5a2   : > { %v5950_v55 = vadd.f32 %v5949_v32, %v5906_v40  ;;  %v10437_v40 = vor.u32 %v11573_v52, %v10436_v4  ;;  %v11618_v4 = vld [vmem:[%s14328_s1 + $0x650] sm:$0xff] }
 0x5a3   : > { %7346 = vmatpush.bf16.msrb.mxu2 %v11636_v11  ;;  %v11626_v52 = vld [vmem:[%s14328_s1 + $0x690] sm:$0xff]  ;;  %v11633_v11 = vld [vmem:[%s14328_s1 + $0x6c8] sm:$0xff] }
 0x5a4   : > { %vm5966_vm10 = vcmp.gt.f32.partialorder %v5950_v55, 0.0  ;;  %v5981_v45 = vmul.f32 %v13790_v13, %v5950_v55  ;;  %v11594_v13 = vld [vmem:[%s14328_s1 + $0x590] sm:$0xff] }
 0x5a5   : > { %7183 = vmatpush.bf16.msra.mxu1 %v11594_v13 }
 0x5a6   : > { %v5995_v39 = vsel %vm5966_vm10, %v5950_v55, %v5981_v45  ;;  %v11621_v55 = vld [vmem:[%s14328_s1 + $0x668] sm:$0xff] }
 0x5a7   : > { %v6002_v49 = vpack.c.bf16 %v5995_v39, %v5994_v36  ;;  %v10416_v45 = vld [vmem:[#allocation3 + $0x40] sm:$0xf]  ;;  %7279 = vmatpush.bf16.msrb.mxu0 %v11621_v55  ;;  %v11567_v36 = vld [vmem:[#allocation3 + $0x58] sm:$0xf0]  ;;  %7347 = vmatpush.bf16.msrb.mxu2 %v11635_v62 }
 0x5a8   : > { %v10417_v39 = vor.u32 %v11567_v36, %v10416_v45 }
 0x5a9   : > { %6108 = vmatmul.bf16.gmra.mxu3 %v6002_v49  ;;  %7184 = vmatpush.bf16.msra.mxu1 %v11593_v27  ;;  %v6383_v49 = vld [vmem:[#allocation2 + $0x40] sm:$0xff] }
 0x5aa   : > { %v6392_v20 = vpack.c.bf16 %v6383_v49, %v6383_v49  ;;  %7224 = vmatmul.bf16.gmra.mxu2 %v10417_v39 }
 0x5ab   : > { %7280 = vmatpush.bf16.msrb.mxu0 %v11620_v59  ;;  %v11616_v59 = vld [vmem:[%s14328_s1 + $0x640] sm:$0xff] }
 0x5ac   : > { %6401 = vst [vmem:[#allocation3 + $0x44] sm:$0xf] %v6392_v20 }
 0x5ad   : > { %7185 = vmatpush.bf16.msra.mxu1 %v11592_v42  ;;  %7163 = vmatmul.bf16.gmra.mxu0 %v10437_v40 }
 0x5af   : > { %7281 = vmatpush.bf16.msrb.mxu0 %v11619_v29  ;;  %v11625_v29 = vld [vmem:[%s14328_s1 + $0x688] sm:$0xff] }
 0x5b0   : > { %7186 = vmatmul.bf16.vlgmr.msra.gmra.mxu1 %v10385_v9 }
 0x5b1   : > { %7310 = vmatpush.bf16.msrb.mxu1 %v11631_v63 }
 0x5b3   : > { %v11564_v53 = vld [vmem:[#allocation3 + $0x44] sm:$0xf]  ;;  %7282 = vmatpush.bf16.msrb.mxu0 %v11618_v4 }
 0x5b5   : > { %7311 = vmatpush.bf16.msrb.mxu1 %v11630_v48 }
 0x5b9   : > { %7252 = vmatmul.bf16.vlgmr.msra.gmra.mxu3 %v10393_v1  ;;  %7312 = vmatpush.bf16.msrb.mxu1 %v11629_v23 }
 0x5bd   : > { %7313 = vmatpush.bf16.msrb.mxu1 %v11628_v54 }
 0x5c0   : > { %7191 = vmatmul.bf16.gmra.mxu1 %v10413_v7 }
 0x5c1   : > { %7314 = vmatpush.bf16.msrb.mxu1 %v11627_v51 }
 0x5c5   : > { %7315 = vmatpush.bf16.msrb.mxu1 %v11626_v52  ;;  %v6522_v52 = vld [vmem:[#allocation3 + $0xe8] sm:$0x77] }
 0x5c9   : > { %7316 = vmatpush.bf16.msrb.mxu1 %v11625_v29 }
 0x5cc   : > { %v6079_v46 = vpop.f32.mrf.mxu3 }
 0x5d4   : > { %v6081_v30 = vpop.f32.mrf.mxu3 }
 0x5dc   : > { %v6084_v58 = vpop.f32.mrf.mxu3 }
 0x5e4   : > { %v6086_v22 = vpop.f32.mrf.mxu3 }
 0x5e5   : > { %v11634_v22 = vld [vmem:[%s14328_s1 + $0x6d0] sm:$0xff] }
 0x5e6   : > { %7348 = vmatpush.bf16.msrb.mxu2 %v11634_v22 }
 0x5ea   : > { %7349 = vmatpush.bf16.msrb.mxu2 %v11633_v11 }
 0x5ec   : > { %v6089_v61 = vpop.f32.mrf.mxu3 }
 0x5f4   : > { %v6091_v32 = vpop.f32.mrf.mxu3 }
 0x5fc   : > { %v6094_v13 = vpop.f32.mrf.mxu3 }
 0x5fd   : > { %v6095_v37 = vadd.f32 %v11770_v56, %v6094_v13 }
 0x5ff   : > { %vm6121_vm11 = vcmp.gt.f32.partialorder %v6095_v37, 0.0  ;;  %v6136_v50 = vmul.f32 %v6129_v6, %v6095_v37 }
 0x601   : > { %v6150_v27 = vsel %vm6121_vm11, %v6095_v37, %v6136_v50 }
 0x602   : > { %v6178_v46 = vadd.f32 %v6164_v33, %v6150_v27 }
 0x604   : > { %6292 = vst [vmem:[#allocation2 + $0x4b] sm:$0xff] %v6178_v46  ;;  %v6096_v3 = vpop.f32.mrf.mxu3  ;;  %v6315_v35 = vpack.c.bf16 %v6178_v46, %v6178_v46 }
 0x605   : > { %v6097_v16 = vadd.f32 %v11770_v56, %v6096_v3 }
 0x606   : > { %6324 = vst [vmem:[#allocation3 + $0xa8] sm:$0xf] %v6315_v35 }
 0x607   : > { %vm6122_vm12 = vcmp.gt.f32.partialorder %v6097_v16, 0.0  ;;  %v6137_v60 = vmul.f32 %v6129_v6, %v6097_v16  ;;  %v11617_v6 = vld [vmem:[%s14328_s1 + $0x648] sm:$0xff] }
 0x608   : > { %7283 = vmatpush.bf16.msrb.mxu0 %v11617_v6 }
 0x609   : > { %v6151_v0 = vsel %vm6122_vm12, %v6097_v16, %v6137_v60 }
 0x60a   : > { %v6179_v25 = vadd.f32 %v6165_v8, %v6151_v0  ;;  %v6521_v8 = vld [vmem:[#allocation3 + $0xe0] sm:$0x77]  ;;  %v7154_v6 = vpop.f32.mrf.mxu0 }
 0x60b   : > { %v6332_v30 = vld [vmem:[#allocation2 + $0x4a] sm:$0xff] }
 0x60c   : > { %v6384_v42 = vld [vmem:[#allocation2 + $0x48] sm:$0xff]  ;;  %6293 = vst [vmem:[#allocation2 + $0x53] sm:$0xff] %v6179_v25  ;;  %v6099_v47 = vpop.f32.mrf.mxu3  ;;  %v6341_v31 = vpack.c.bf16 %v6332_v30, %v6332_v30  ;;  %v6316_v12 = vpack.c.bf16 %v6179_v25, %v6179_v25  ;;  %7284 = vmatpush.bf16.msrb.mxu0 %v11616_v59  ;;  %v6732_v30 = vunpack.c.l.b16 %v6521_v8 }
 0x60d   : > { %v6358_v15 = vld [vmem:[#allocation2 + $0x49] sm:$0xff]  ;;  %v6393_v19 = vpack.c.bf16 %v6384_v42, %v6384_v42  ;;  %v11632_v42 = vld [vmem:[%s14328_s1 + $0x6c0] sm:$0xff] }
 0x60e   : > { %v6367_v9 = vpack.c.bf16 %v6358_v15, %v6358_v15  ;;  %v6436_v18 = vld [vmem:[#allocation2 + $0x46] sm:$0xff]  ;;  %6350 = vst [vmem:[#allocation3 + $0x90] sm:$0xf] %v6341_v31  ;;  %v10464_v39 = vld [vmem:[#allocation3 + $0xa8] sm:$0xf]  ;;  %7350 = vmatpush.bf16.msrb.mxu2 %v11632_v42  ;;  %v6767_v51 = vpack.c.b16 %v6732_v30, %v6732_v30 }
 0x60f   : > { %v6410_v14 = vld [vmem:[#allocation2 + $0x47] sm:$0xff]  ;;  %v6445_v58 = vpack.c.bf16 %v6436_v18, %v6436_v18  ;;  %6402 = vst [vmem:[#allocation3 + $0x60] sm:$0xf] %v6393_v19 }
 0x610   : > { %v6462_v17 = vld [vmem:[#allocation2 + $0x45] sm:$0xff]  ;;  %v6419_v1 = vpack.c.bf16 %v6410_v14, %v6410_v14  ;;  %6325 = vst [vmem:[#allocation3 + $0xc4] sm:$0xf] %v6316_v12 }
 0x611   : > { %v6471_v10 = vpack.c.bf16 %v6462_v17, %v6462_v17  ;;  %6376 = vst [vmem:[#allocation3 + $0x78] sm:$0xf] %v6367_v9  ;;  %v11581_v17 = vld [vmem:[#allocation3 + $0xc8] sm:$0xf0]  ;;  %v11572_v42 = vld [vmem:[#allocation3 + $0x84] sm:$0xf] }
 0x612   : > { %6454 = vst [vmem:[#allocation3 + $0x30] sm:$0xf] %v6445_v58 }
 0x613   : > { %v6359_v43 = vld [vmem:[#allocation2 + $0x51] sm:$0xff]  ;;  %v6334_v61 = vld [vmem:[#allocation2 + $0x5a] sm:$0xff]  ;;  %6428 = vst [vmem:[#allocation3 + $0x48] sm:$0xf] %v6419_v1 }
 0x614   : > { %v6333_v28 = vld [vmem:[#allocation2 + $0x52] sm:$0xff]  ;;  %v6101_v63 = vpop.f32.mrf.mxu3  ;;  %v6368_v57 = vpack.c.bf16 %v6359_v43, %v6359_v43  ;;  %v6343_v7 = vpack.c.bf16 %v6334_v61, %v6334_v61  ;;  %6480 = vst [vmem:[#allocation3 + $0x18] sm:$0xf] %v6471_v10 }
 0x615   : > { %v6342_v26 = vpack.c.bf16 %v6333_v28, %v6333_v28  ;;  %v13991_v2 = vld [vmem:[#allocation2 + $0x50] sm:$0xff]  ;;  %v6386_v41 = vld [vmem:[#allocation2 + $0x58] sm:$0xff]  ;;  %7624 = vst [vmem:[#allocation2 + $0x40] sm:$0xff] %v13920_v5 }
 0x616   : > { %v6360_v44 = vld [vmem:[#allocation2 + $0x59] sm:$0xff]  ;;  %v6394_v48 = vpack.c.bf16 %v13991_v2, %v13991_v2  ;;  %v10418_v32 = vld [vmem:[#allocation3 + $0x5c] sm:$0xf0]  ;;  %6377 = vst [vmem:[#allocation3 + $0x94] sm:$0xf] %v6368_v57  ;;  %v6395_v24 = vpack.c.bf16 %v6386_v41, %v6386_v41  ;;  %v6411_v55 = vld [vmem:[#allocation2 + $0x4f] sm:$0xff] }
 0x617   : > { %v10438_v34 = vld [vmem:[#allocation3 + $0x8c] sm:$0xf0]  ;;  %7628 = vst [vmem:[#allocation2 + $0x60] sm:$0xff] %v13920_v5  ;;  %v6463_v45 = vld [vmem:[#allocation2 + $0x4d] sm:$0xff]  ;;  %v10421_v36 = vor.u32 %v11564_v53, %v10418_v32  ;;  %v6369_v56 = vpack.c.bf16 %v6360_v44, %v6360_v44  ;;  %v6420_v23 = vpack.c.bf16 %v6411_v55, %v6411_v55  ;;  %v11624_v5 = vld [vmem:[%s14328_s1 + $0x680] sm:$0xff]  ;;  %v6734_v32 = vunpack.c.l.b16 %v6522_v52 }
 0x618   : > { %v10441_v40 = vor.u32 %v11570_v21, %v10438_v34  ;;  %v11580_v49 = vld [vmem:[#allocation3 + $0xc0] sm:$0xf0]  ;;  %6351 = vst [vmem:[#allocation3 + $0xac] sm:$0xf] %v6342_v26  ;;  %v6472_v37 = vpack.c.bf16 %v6463_v45, %v6463_v45  ;;  %v6438_v50 = vld [vmem:[#allocation2 + $0x56] sm:$0xff]  ;;  %7317 = vmatpush.bf16.msrb.mxu1 %v11624_v5  ;;  %v6733_v21 = vunpack.c.h.b16 %v6521_v8  ;;  %v6735_v55 = vunpack.c.h.b16 %v6522_v52  ;;  %v7220_v8 = vpop.f32.mrf.mxu2 }
 0x619   : > { %v10465_v20 = vor.u32 %v11580_v49, %v10464_v39  ;;  %6352 = vst [vmem:[#allocation3 + $0xc8] sm:$0xf] %v6343_v7  ;;  %v6437_v13 = vld [vmem:[#allocation2 + $0x4e] sm:$0xff]  ;;  %7257 = vmatmul.bf16.gmra.mxu3 %v10421_v36  ;;  %v6412_v27 = vld [vmem:[#allocation2 + $0x57] sm:$0xff]  ;;  %v10444_v46 = vld [vmem:[#allocation3 + $0x78] sm:$0xf]  ;;  %v6447_v35 = vpack.c.bf16 %v6438_v50, %v6438_v50 }
 0x61a   : > { %7196 = vmatmul.bf16.gmra.mxu1 %v10441_v40  ;;  %6403 = vst [vmem:[#allocation3 + $0x7c] sm:$0xf] %v6394_v48  ;;  %v6446_v54 = vpack.c.bf16 %v6437_v13, %v6437_v13  ;;  %v6464_v16 = vld [vmem:[#allocation2 + $0x55] sm:$0xff]  ;;  %v6421_v0 = vpack.c.bf16 %v6412_v27, %v6412_v27  ;;  %v6768_v48 = vpack.c.b16 %v6733_v21, %v6733_v21  ;;  %v14024_v13 = vld [vmem:[%s14329_s2 + $0x3] ss:$0 sm:$0xff] }
 0x61b   : > { %7168 = vmatmul.bf16.gmra.mxu0 %v10465_v20  ;;  %6404 = vst [vmem:[#allocation3 + $0x98] sm:$0xf] %v6395_v24  ;;  %v6473_v62 = vpack.c.bf16 %v6464_v16, %v6464_v16  ;;  %v10398_v1 = vld [vmem:[#allocation3 + $0x2c] sm:$0xf0]  ;;  %v7668_v43 = vld [vmem:[#allocation2 + $0x6e] sm:$0xff]  ;;  %v6769_v24 = vpack.c.b16 %v6734_v32, %v6734_v32  ;;  %v6770_v36 = vpack.c.b16 %v6735_v55, %v6735_v55 }
 0x61c   : > { %6378 = vst [vmem:[#allocation3 + $0xb0] sm:$0xf] %v6369_v56  ;;  %v6104_v33 = vpop.f32.mrf.mxu3  ;;  %v11578_v28 = vld [vmem:[#allocation3 + $0xb4] sm:$0xf]  ;;  %v7670_v63 = vpack.c.bf16 %v7668_v43, %v7668_v43  ;;  %v10474_v57 = vld [vmem:[#allocation3 + $0xcc] sm:$0xf0]  ;;  %v7155_v50 = vadd.f32 %v14024_v13, %v7154_v6 }
 0x61d   : > { %6429 = vst [vmem:[#allocation3 + $0x64] sm:$0xf] %v6420_v23  ;;  %v11574_v3 = vld [vmem:[#allocation3 + $0x90] sm:$0xf0]  ;;  %v10396_v26 = vld [vmem:[#allocation3 + $0x10] sm:$0xf]  ;;  %v10477_v4 = vor.u32 %v11578_v28, %v10474_v57 }
 0x61e   : > { %6481 = vst [vmem:[#allocation3 + $0x34] sm:$0xf] %v6472_v37  ;;  %v10445_v60 = vor.u32 %v11574_v3, %v10444_v46  ;;  %v7662_v18 = vld [vmem:[#allocation2 + $0x65] sm:$0xff]  ;;  %v10404_v7 = vld [vmem:[#allocation3 + $0x18] sm:$0xf] }
 0x61f   : > { %6455 = vst [vmem:[#allocation3 + $0x4c] sm:$0xf] %v6446_v54  ;;  %v11577_v25 = vld [vmem:[#allocation3 + $0xac] sm:$0xf]  ;;  %v7664_v14 = vpack.c.bf16 %v7662_v18, %v7662_v18  ;;  %v7667_v53 = vld [vmem:[#allocation2 + $0x66] sm:$0xff] }
 0x620   : > { %7229 = vmatmul.bf16.gmra.mxu2 %v10445_v60  ;;  %6456 = vst [vmem:[#allocation3 + $0x68] sm:$0xf] %v6447_v35  ;;  %v10466_v15 = vld [vmem:[#allocation3 + $0xc4] sm:$0xf0]  ;;  %v7669_v61 = vpack.c.bf16 %v7667_v53, %v7667_v53  ;;  %v11561_v41 = vld [vmem:[#allocation3 + $0x28] sm:$0xf0]  ;;  %v7156_v35 = vpop.f32.mrf.mxu0 }
 0x621   : > { %6430 = vst [vmem:[#allocation3 + $0x80] sm:$0xf] %v6421_v0  ;;  %v11571_v31 = vld [vmem:[#allocation3 + $0x7c] sm:$0xf]  ;;  %v10469_v12 = vor.u32 %v11577_v25, %v10466_v15  ;;  %v10397_v40 = vor.u32 %v11561_v41, %v10396_v26  ;;  %v11558_v45 = vld [vmem:[#allocation3 + $0x14] sm:$0xf]  ;;  %v7157_v0 = vadd.f32 %v14024_v13, %v7156_v35 }
 0x622   : > { %6482 = vst [vmem:[#allocation3 + $0x50] sm:$0xf] %v6473_v62  ;;  %v10446_v19 = vld [vmem:[#allocation3 + $0x94] sm:$0xf0]  ;;  %v10401_v49 = vor.u32 %v11558_v45, %v10398_v1  ;;  %v10424_v56 = vld [vmem:[#allocation3 + $0x48] sm:$0xf] }
 0x623   : > { %v10449_v9 = vor.u32 %v11571_v31, %v10446_v19  ;;  %v10472_v58 = vld [vmem:[#allocation3 + $0xb0] sm:$0xf]  ;;  %7666 = vst [vmem:[#allocation3 + $0x30] sm:$0xf] %v7664_v14  ;;  %v11575_v54 = vld [vmem:[#allocation3 + $0x98] sm:$0xf0]  ;;  %v7222_v19 = vpop.f32.mrf.mxu2 }
 0x624   : > { %v6106_v47 = vpop.f32.mrf.mxu3  ;;  %v10473_v10 = vor.u32 %v11581_v17, %v10472_v58  ;;  %7671 = vst [vmem:[#allocation3 + $0x18] sm:$0xf] %v7669_v61  ;;  %v11568_v39 = vld [vmem:[#allocation3 + $0x60] sm:$0xf0]  ;;  %v11569_v60 = vld [vmem:[#allocation3 + $0x68] sm:$0xf0] }
 0x625   : > { %v11562_v44 = vld [vmem:[#allocation3 + $0x30] sm:$0xf0]  ;;  %v10425_v20 = vor.u32 %v11568_v39, %v10424_v56  ;;  %v10454_v15 = vld [vmem:[#allocation3 + $0x9c] sm:$0xf0]  ;;  %v10480_v5 = vld [vmem:[#allocation3 + $0xb8] sm:$0xf] }
 0x626   : > { %7672 = vst [vmem:[#allocation3 + $0x34] sm:$0xf] %v7670_v63  ;;  %v10405_v23 = vor.u32 %v11562_v44, %v10404_v7  ;;  %v11565_v11 = vld [vmem:[#allocation3 + $0x4c] sm:$0xf]  ;;  %v11582_v47 = vld [vmem:[#allocation3 + $0xd0] sm:$0xf0] }
 0x627   : > { %v10426_v37 = vld [vmem:[#allocation3 + $0x64] sm:$0xf0]  ;;  %v10481_v18 = vor.u32 %v11582_v47, %v10480_v5  ;;  %v11576_v17 = vld [vmem:[#allocation3 + $0xa0] sm:$0xf0]  ;;  %v6523_v28 = vld [vmem:[#allocation3 + $0xf0] sm:$0x77] }
 0x628   : > { %v10452_v59 = vld [vmem:[#allocation3 + $0x80] sm:$0xf]  ;;  %v10429_v27 = vor.u32 %v11565_v11, %v10426_v37  ;;  %v7159_v14 = vpop.f32.mrf.mxu0  ;;  %v10460_v58 = vld [vmem:[#allocation3 + $0x88] sm:$0xf]  ;;  %v11647_v63 = vld [vmem:[%s14330_s3 + $0xf8] sm:$0xff]  ;;  %v6736_v41 = vunpack.c.l.b16 %v6523_v28 }
 0x629   : > { %7262 = vmatmul.bf16.gmra.mxu3 %v10449_v9  ;;  %v10453_v3 = vor.u32 %v11575_v54, %v10452_v59  ;;  %v10432_v16 = vld [vmem:[#allocation3 + $0x50] sm:$0xf]  ;;  %v7160_v1 = vadd.f32 %v14024_v13, %v7159_v14  ;;  %v11579_v57 = vld [vmem:[#allocation3 + $0xbc] sm:$0xf]  ;;  %v10482_v26 = vld [vmem:[#allocation3 + $0xd4] sm:$0xf0] }
 0x62a   : > { %7201 = vmatmul.bf16.gmra.mxu1 %v10469_v12  ;;  %v10433_v29 = vor.u32 %v11569_v60, %v10432_v16  ;;  %v10457_v12 = vor.u32 %v11572_v42, %v10454_v15  ;;  %7477 = vmatpush.bf16.msrb.mxu3 %v11647_v63  ;;  %v10485_v44 = vor.u32 %v11579_v57, %v10482_v26  ;;  %v10488_v52 = vld [vmem:[#allocation3 + $0xc0] sm:$0xf]  ;;  %v11646_v45 = vld [vmem:[%s14330_s3 + $0xf0] sm:$0xff]  ;;  %v6524_v56 = vld [vmem:[#allocation3 + $0xf8] sm:$0x7] }
 0x62b   : > { %7173 = vmatmul.bf16.gmra.mxu0 %v6767_v51  ;;  %v11645_v6 = vld [vmem:[%s14330_s3 + $0xe8] sm:$0xff]  ;;  %v6738_v11 = vunpack.c.l.b16 %v6524_v56  ;;  %v11644_v59 = vld [vmem:[%s14330_s3 + $0xe0] sm:$0xff] }
 0x62c   : > { %v6109_v22 = vpop.f32.mrf.mxu3 }
 0x62d   : > { %v7187_v33 = vpop.f32.mrf.mxu1  ;;  %v6773_v37 = vpack.c.b16 %v6738_v11, %v6738_v11 }
 0x62e   : > { %v7188_v46 = vadd.f32 %v7187_v33, %v7155_v50  ;;  %7478 = vmatpush.bf16.msrb.mxu3 %v11646_v45 }
 0x630   : > { %7234 = vmatmul.bf16.gmra.mxu2 %v10473_v10  ;;  %v7221_v62 = vadd.f32 %v7220_v8, %v7188_v46  ;;  %v10461_v10 = vor.u32 %v11576_v17, %v10460_v58  ;;  %v7161_v61 = vpop.f32.mrf.mxu0 }
 0x631   : > { %v7162_v7 = vadd.f32 %v14024_v13, %v7161_v61 }
 0x632   : > { %7479 = vmatpush.bf16.msrb.mxu3 %v11645_v6 }
 0x634   : > { %v6111_v34 = vpop.f32.mrf.mxu3 }
 0x635   : > { %v7189_v25 = vpop.f32.mrf.mxu1 }
 0x636   : > { %v7190_v30 = vadd.f32 %v7189_v25, %v7157_v0  ;;  %7480 = vmatpush.bf16.msrb.mxu3 %v11644_v59  ;;  %v11643_v0 = vld [vmem:[%s14330_s3 + $0xd8] sm:$0xff] }
 0x638   : > { %v7223_v9 = vadd.f32 %v7222_v19, %v7190_v30  ;;  %v7164_v39 = vpop.f32.mrf.mxu0 }
 0x639   : > { %7267 = vmatmul.bf16.gmra.mxu3 %v10477_v4  ;;  %v6771_v4 = vpack.c.b16 %v6736_v41, %v6736_v41  ;;  %v7165_v54 = vadd.f32 %v14024_v13, %v7164_v39 }
 0x63a   : > { %7206 = vmatmul.bf16.gmra.mxu1 %v6768_v48  ;;  %7481 = vmatpush.bf16.msrb.mxu3 %v11643_v0 }
 0x63b   : > { %7285 = vmatmul.bf16.vlgmr.msrb.gmra.mxu0 %v10397_v40  ;;  %v11583_v40 = vld [vmem:[#allocation3 + $0xd8] sm:$0xf0] }
 0x63c   : > { %v7253_v31 = vpop.f32.mrf.mxu3  ;;  %v10489_v32 = vor.u32 %v11583_v40, %v10488_v52 }
 0x63d   : > { %v14028_v51 = vadd.f32 %v7253_v31, %v7221_v62  ;;  %v7192_v21 = vpop.f32.mrf.mxu1  ;;  %v11642_v31 = vld [vmem:[%s14330_s3 + $0xd0] sm:$0xff] }
 0x63e   : > { %v7193_v43 = vadd.f32 %v7192_v21, %v7160_v1  ;;  %7482 = vmatpush.bf16.msrb.mxu3 %v11642_v31 }
 0x640   : > { %7239 = vmatmul.bf16.gmra.mxu2 %v6769_v24  ;;  %v7225_v24 = vpop.f32.mrf.mxu2  ;;  %v7166_v50 = vpop.f32.mrf.mxu0 }
 0x641   : > { %v7226_v55 = vadd.f32 %v7225_v24, %v7193_v43 }
 0x644   : > { %v7255_v22 = vpop.f32.mrf.mxu3 }
 0x645   : > { %v14031_v53 = vadd.f32 %v7255_v22, %v7223_v9  ;;  %v7194_v34 = vpop.f32.mrf.mxu1 }
 0x646   : > { %v7195_v48 = vadd.f32 %v7194_v34, %v7162_v7  ;;  %v11640_v7 = vld [vmem:[%s14330_s3 + $0xc0] sm:$0xff] }
 0x649   : > { %7272 = vmatmul.bf16.gmra.mxu3 %v6770_v36  ;;  %v6737_v36 = vunpack.c.h.b16 %v6523_v28 }
 0x64a   : > { %7318 = vmatmul.bf16.vlgmr.msrb.gmra.mxu1 %v10401_v49 }
 0x64b   : > { %7290 = vmatmul.bf16.gmra.mxu0 %v10425_v20  ;;  %v6772_v49 = vpack.c.b16 %v6737_v36, %v6737_v36  ;;  %v7227_v20 = vpop.f32.mrf.mxu2 }
 0x650   : > { %7351 = vmatmul.bf16.vlgmr.msrb.gmra.mxu2 %v10405_v23  ;;  %v7228_v23 = vadd.f32 %v7227_v20, %v7195_v48 }
 0x65a   : > { %7323 = vmatmul.bf16.gmra.mxu1 %v10429_v27 }
 0x65b   : > { %7295 = vmatmul.bf16.gmra.mxu0 %v10453_v3  ;;  %v7167_v3 = vadd.f32 %v14024_v13, %v7166_v50 }
 0x660   : > { %7356 = vmatmul.bf16.gmra.mxu2 %v10433_v29 }
 0x66a   : > { %7328 = vmatmul.bf16.gmra.mxu1 %v10457_v12 }
 0x66b   : > { %7300 = vmatmul.bf16.gmra.mxu0 %v10481_v18 }
 0x670   : > { %7361 = vmatmul.bf16.gmra.mxu2 %v10461_v10  ;;  %v11641_v10 = vld [vmem:[%s14330_s3 + $0xc8] sm:$0xff] }
 0x671   : > { %7483 = vmatpush.bf16.msrb.mxu3 %v11641_v10 }
 0x675   : > { %7484 = vmatpush.bf16.msrb.mxu3 %v11640_v7 }
 0x67a   : > { %7333 = vmatmul.bf16.gmra.mxu1 %v10485_v44 }
 0x67b   : > { %7305 = vmatmul.bf16.gmra.mxu0 %v6771_v4 }
 0x680   : > { %7366 = vmatmul.bf16.gmra.mxu2 %v10489_v32 }
 0x68a   : > { %7338 = vmatmul.bf16.gmra.mxu1 %v6772_v49 }
 0x690   : > { %7371 = vmatmul.bf16.gmra.mxu2 %v6773_v37 }
 0x697   : > { %v7197_v27 = vpop.f32.mrf.mxu1 }
 0x698   : > { %v7198_v33 = vadd.f32 %v7197_v27, %v7165_v54  ;;  %v7169_v46 = vpop.f32.mrf.mxu0 }
 0x699   : > { %v7170_v25 = vadd.f32 %v14024_v13, %v7169_v46  ;;  %v14079_v46 = vstv %s10714_s30 }
 0x69c   : > { %v7258_v35 = vpop.f32.mrf.mxu3 }
 0x69d   : > { %v14048_v16 = vadd.f32 %v7258_v35, %v7226_v55 }
 0x69f   : > { %v7199_v60 = vpop.f32.mrf.mxu1 }
 0x6a0   : > { %v7200_v8 = vadd.f32 %v7199_v60, %v7167_v3  ;;  %v7171_v62 = vpop.f32.mrf.mxu0 }
 0x6a1   : > { %v7172_v18 = vadd.f32 %v14024_v13, %v7171_v62 }
 0x6a3   : > { %v7230_v29 = vpop.f32.mrf.mxu2 }
 0x6a4   : > { %v7231_v30 = vadd.f32 %v7230_v29, %v7198_v33  ;;  %v7260_v42 = vpop.f32.mrf.mxu3 }
 0x6a5   : > { %v14054_v15 = vadd.f32 %v7260_v42, %v7228_v23 }
 0x6a7   : > { %v7202_v5 = vpop.f32.mrf.mxu1 }
 0x6a8   : > { %v7203_v47 = vadd.f32 %v7202_v5, %v7170_v25  ;;  %v7174_v19 = vpop.f32.mrf.mxu0 }
 0x6a9   : > { %v7175_v12 = vadd.f32 %v14024_v13, %v7174_v19 }
 0x6ab   : > { %v7232_v9 = vpop.f32.mrf.mxu2 }
 0x6ac   : > { %v7233_v14 = vadd.f32 %v7232_v9, %v7200_v8  ;;  %v7263_v58 = vpop.f32.mrf.mxu3 }
 0x6ad   : > { %v14061_v17 = vadd.f32 %v7263_v58, %v7231_v30 }
 0x6af   : > { %v7204_v1 = vpop.f32.mrf.mxu1 }
 0x6b0   : > { %v7205_v22 = vadd.f32 %v7204_v1, %v7172_v18  ;;  %v7176_v21 = vpop.f32.mrf.mxu0 }
 0x6b3   : > { %v7235_v43 = vpop.f32.mrf.mxu2 }
 0x6b4   : > { %v7236_v28 = vadd.f32 %v7235_v43, %v7203_v47  ;;  %v7265_v61 = vpop.f32.mrf.mxu3 }
 0x6b5   : > { %v14066_v63 = vadd.f32 %v7265_v61, %v7233_v14 }
 0x6b7   : > { %v7207_v57 = vpop.f32.mrf.mxu1 }
 0x6b8   : > { %v7208_v26 = vadd.f32 %v7207_v57, %v7175_v12  ;;  %v7286_v13 = vpop.f32.mrf.mxu0 }
 0x6b9   : > { %v7287_v11 = vadd.f32 %v7286_v13, %v14028_v51 }
 0x6bb   : > { %v7237_v41 = vpop.f32.mrf.mxu2 }
 0x6bc   : > { %v7238_v44 = vadd.f32 %v7237_v41, %v7205_v22  ;;  %v7268_v34 = vpop.f32.mrf.mxu3 }
 0x6bd   : > { %v14071_v48 = vadd.f32 %v7268_v34, %v7236_v28 }
 0x6bf   : > { %v7209_v4 = vpop.f32.mrf.mxu1 }
 0x6c0   : > { %v7288_v52 = vpop.f32.mrf.mxu0 }
 0x6c1   : > { %v7289_v27 = vadd.f32 %v7288_v52, %v14031_v53 }
 0x6c3   : > { %v7240_v40 = vpop.f32.mrf.mxu2 }
 0x6c4   : > { %v7241_v32 = vadd.f32 %v7240_v40, %v7208_v26  ;;  %v7270_v24 = vpop.f32.mrf.mxu3 }
 0x6c5   : > { %v14073_v55 = vadd.f32 %v7270_v24, %v7238_v44 }
 0x6c7   : > { %v7319_v45 = vpop.f32.mrf.mxu1 }
 0x6c8   : > { %v7291_v36 = vpop.f32.mrf.mxu0  ;;  %v7320_v59 = vadd.f32 %v7319_v45, %v7287_v11  ;;  %v11677_v11 = vld [vmem:[%s14328_s1 + $0x7b0] sm:$0xff] }
 0x6c9   : > { %v7292_v53 = vadd.f32 %v7291_v36, %v14048_v16 }
 0x6cb   : > { %v7242_v39 = vpop.f32.mrf.mxu2 }
 0x6cc   : > { %v7273_v49 = vpop.f32.mrf.mxu3  ;;  %v11662_v39 = vld [vmem:[%s14328_s1 + $0x738] sm:$0xff] }
 0x6cd   : > { %v14075_v56 = vadd.f32 %v7273_v49, %v7241_v32  ;;  %v11670_v49 = vld [vmem:[%s14328_s1 + $0x778] sm:$0xff]  ;;  %8168 = vmatpush.bf16.msra.mxu0 %v11662_v39  ;;  %v11680_v39 = vld [vmem:[%s14328_s1 + $0x7c8] sm:$0xff] }
 0x6ce   : > { %8182 = vmatpush.bf16.msra.mxu1 %v11670_v49  ;;  %v2386_v49 = vadd.s32 24, %v13567_v38 }
 0x6cf   : > { %v7321_v20 = vpop.f32.mrf.mxu1 }
 0x6d0   : > { %v7293_v23 = vpop.f32.mrf.mxu0  ;;  %v7322_v3 = vadd.f32 %v7321_v20, %v7289_v27 }
 0x6d1   : > { %v7294_v19 = vadd.f32 %v7293_v23, %v14054_v15  ;;  %v11686_v23 = vld [vmem:[%s14328_s1 + $0x7f8] sm:$0xff] }
 0x6d2   : > { %8210 = vmatpush.bf16.msra.mxu3 %v11686_v23  ;;  %v11651_v23 = vld [vmem:[#allocation3 + $0x18] sm:$0xf0] }
 0x6d3   : > { %v7352_v6 = vpop.f32.mrf.mxu2 }
 0x6d4   : > { %v7275_v37 = vpop.f32.mrf.mxu3  ;;  %v7353_v33 = vadd.f32 %v7352_v6, %v7320_v59 }
 0x6d5   : > { %v11661_v37 = vld [vmem:[%s14328_s1 + $0x730] sm:$0xff] }
 0x6d6   : > { %v7387_v60 = vmul.f32 %v14079_v46, %v7353_v33  ;;  %vm7377_vm13 = vcmp.gt.f32.partialorder %v7353_v33, 0.0  ;;  %8169 = vmatpush.bf16.msra.mxu0 %v11661_v37 }
 0x6d7   : > { %v7324_v50 = vpop.f32.mrf.mxu1 }
 0x6d8   : > { %v7296_v54 = vpop.f32.mrf.mxu0  ;;  %v7396_v29 = vsel %vm7377_vm13, %v7353_v33, %v7387_v60  ;;  %v7325_v47 = vadd.f32 %v7324_v50, %v7292_v53 }
 0x6d9   : > { %v7297_v61 = vadd.f32 %v7296_v54, %v14061_v17 }
 0x6db   : > { %v7354_v35 = vpop.f32.mrf.mxu2 }
 0x6dc   : > { %v7355_v0 = vadd.f32 %v7354_v35, %v7322_v3 }
 0x6de   : > { %vm7378_vm14 = vcmp.gt.f32.partialorder %v7355_v0, 0.0  ;;  %v7388_v62 = vmul.f32 %v14079_v46, %v7355_v0 }
 0x6df   : > { %v7326_v8 = vpop.f32.mrf.mxu1 }
 0x6e0   : > { %v7298_v51 = vpop.f32.mrf.mxu0  ;;  %v7397_v25 = vsel %vm7378_vm14, %v7355_v0, %v7388_v62  ;;  %v7327_v9 = vadd.f32 %v7326_v8, %v7294_v19  ;;  %v11660_v19 = vld [vmem:[%s14328_s1 + $0x728] sm:$0xff] }
 0x6e1   : > { %v7405_v30 = vpack.c.bf16 %v7397_v25, %v7396_v29  ;;  %v7299_v13 = vadd.f32 %v7298_v51, %v14066_v63  ;;  %v11678_v63 = vld [vmem:[%s14328_s1 + $0x7b8] sm:$0xff]  ;;  %8170 = vmatpush.bf16.msra.mxu0 %v11660_v19  ;;  %v11688_v19 = vld [vmem:[%s14328_s1 + $0x808] sm:$0xff] }
 0x6e2   : > { %8196 = vmatpush.bf16.msra.mxu2 %v11678_v63  ;;  %v11700_v63 = vld [vmem:[%s14328_s1 + $0x868] sm:$0xff] }
 0x6e3   : > { %v7357_v42 = vpop.f32.mrf.mxu2  ;;  %7485 = vmatmul.bf16.vlgmr.msrb.gmra.mxu3 %v7405_v30 }
 0x6e4   : > { %v7358_v12 = vadd.f32 %v7357_v42, %v7325_v47 }
 0x6e6   : > { %v7389_v14 = vmul.f32 %v14079_v46, %v7358_v12  ;;  %vm7379_vm15 = vcmp.gt.f32.partialorder %v7358_v12, 0.0  ;;  %8197 = vmatpush.bf16.msra.mxu2 %v11677_v11 }
 0x6e7   : > { %v7329_v5 = vpop.f32.mrf.mxu1 }
 0x6e8   : > { %v7301_v31 = vpop.f32.mrf.mxu0  ;;  %v7398_v21 = vsel %vm7379_vm15, %v7358_v12, %v7389_v14  ;;  %v7330_v57 = vadd.f32 %v7329_v5, %v7297_v61  ;;  %v11675_v12 = vld [vmem:[%s14328_s1 + $0x7a0] sm:$0xff]  ;;  %v11665_v61 = vld [vmem:[%s14328_s1 + $0x750] sm:$0xff] }
 0x6e9   : > { %v7302_v20 = vadd.f32 %v7301_v31, %v14071_v48  ;;  %v11669_v48 = vld [vmem:[%s14328_s1 + $0x770] sm:$0xff]  ;;  %v11676_v31 = vld [vmem:[%s14328_s1 + $0x7a8] sm:$0xff]  ;;  %v11667_v14 = vld [vmem:[%s14328_s1 + $0x760] sm:$0xff] }
 0x6ea   : > { %8183 = vmatpush.bf16.msra.mxu1 %v11669_v48  ;;  %8198 = vmatpush.bf16.msra.mxu2 %v11676_v31  ;;  %v7520_v48 = vstv %s10763_s9 }
 0x6eb   : > { %v7359_v18 = vpop.f32.mrf.mxu2 }
 0x6ec   : > { %v7360_v58 = vadd.f32 %v7359_v18, %v7327_v9  ;;  %v11684_v9 = vld [vmem:[%s14328_s1 + $0x7e8] sm:$0xff]  ;;  %v11659_v18 = vld [vmem:[%s14328_s1 + $0x720] sm:$0xff] }
 0x6ed   : > { %8171 = vmatpush.bf16.msra.mxu0 %v11659_v18 }
 0x6ee   : > { %vm7380_vm0 = vcmp.gt.f32.partialorder %v7360_v58, 0.0  ;;  %v7390_v22 = vmul.f32 %v14079_v46, %v7360_v58  ;;  %8199 = vmatpush.bf16.msra.mxu2 %v11675_v12  ;;  %v2388_v12 = vadd.s32 40, %v13567_v38  ;;  %v11687_v38 = vld [vmem:[%s14328_s1 + $0x800] sm:$0xff] }
 0x6ef   : > { %v7331_v1 = vpop.f32.mrf.mxu1 }
 0x6f0   : > { %v7303_v10 = vpop.f32.mrf.mxu0  ;;  %v7399_v43 = vsel %vm7380_vm0, %v7360_v58, %v7390_v22  ;;  %v7332_v41 = vadd.f32 %v7331_v1, %v7299_v13  ;;  %v11674_v58 = vld [vmem:[%s14328_s1 + $0x798] sm:$0xff]  ;;  %v11683_v1 = vld [vmem:[%s14328_s1 + $0x7e0] sm:$0xff] }
 0x6f1   : > { %v7406_v16 = vpack.c.bf16 %v7399_v43, %v7398_v21  ;;  %v7304_v59 = vadd.f32 %v7303_v10, %v14073_v55  ;;  %v11658_v22 = vld [vmem:[%s14328_s1 + $0x718] sm:$0xff]  ;;  %v11657_v43 = vld [vmem:[%s14328_s1 + $0x710] sm:$0xff]  ;;  %v11655_v13 = vld [vmem:[%s14328_s1 + $0x700] sm:$0xff] }
 0x6f2   : > { %8200 = vmatpush.bf16.msra.mxu2 %v11674_v58  ;;  %8172 = vmatpush.bf16.msra.mxu0 %v11658_v22  ;;  %v11666_v21 = vld [vmem:[%s14328_s1 + $0x758] sm:$0xff] }
 0x6f3   : > { %v7362_v28 = vpop.f32.mrf.mxu2  ;;  %7490 = vmatmul.bf16.gmra.mxu3 %v7406_v16  ;;  %v11673_v16 = vld [vmem:[%s14328_s1 + $0x790] sm:$0xff] }
 0x6f4   : > { %v7363_v7 = vadd.f32 %v7362_v28, %v7330_v57  ;;  %v11682_v28 = vld [vmem:[%s14328_s1 + $0x7d8] sm:$0xff]  ;;  %v11656_v57 = vld [vmem:[%s14328_s1 + $0x708] sm:$0xff] }
 0x6f6   : > { %v7391_v34 = vmul.f32 %v14079_v46, %v7363_v7  ;;  %vm7381_vm1 = vcmp.gt.f32.partialorder %v7363_v7, 0.0  ;;  %8173 = vmatpush.bf16.msra.mxu0 %v11657_v43  ;;  %8201 = vmatpush.bf16.msra.mxu2 %v11673_v16 }
 0x6f7   : > { %v7334_v15 = vpop.f32.mrf.mxu1 }
 0x6f8   : > { %v7306_v26 = vpop.f32.mrf.mxu0  ;;  %v7400_v24 = vsel %vm7381_vm1, %v7363_v7, %v7391_v34  ;;  %v7335_v50 = vadd.f32 %v7334_v15, %v7302_v20  ;;  %v11663_v7 = vld [vmem:[%s14328_s1 + $0x740] sm:$0xff]  ;;  %v10878_v20 = vld [vmem:[#allocation3] sm:$0xf] }
 0x6f9   : > { %v7307_v8 = vadd.f32 %v7306_v26, %v14075_v56  ;;  %v11685_v56 = vld [vmem:[%s14328_s1 + $0x7f0] sm:$0xff]  ;;  %v11664_v26 = vld [vmem:[%s14328_s1 + $0x748] sm:$0xff]  ;;  %v10879_v11 = vor.u32 %v11651_v23, %v10878_v20 }
 0x6fa   : > { %8211 = vmatpush.bf16.msra.mxu3 %v11685_v56  ;;  %8174 = vmatpush.bf16.msra.mxu0 %v11656_v57  ;;  %v11706_v56 = vld [vmem:[%s14328_s1 + $0x898] sm:$0xff] }
 0x6fb   : > { %v7364_v44 = vpop.f32.mrf.mxu2  ;;  %v7544_v57 = vld [vmem:[#allocation2 + $0x58] sm:$0xff] }
 0x6fc   : > { %v7365_v4 = vadd.f32 %v7364_v44, %v7332_v41  ;;  %v11694_v41 = vld [vmem:[%s14328_s1 + $0x838] sm:$0xff] }
 0x6fd   : > { %v11702_v44 = vld [vmem:[%s14328_s1 + $0x878] sm:$0xff] }
 0x6fe   : > { %vm7382_vm2 = vcmp.gt.f32.partialorder %v7365_v4, 0.0  ;;  %v7392_v40 = vmul.f32 %v14079_v46, %v7365_v4  ;;  %8212 = vmatpush.bf16.msra.mxu3 %v11684_v9  ;;  %8175 = vmatpush.bf16.msra.mxu0 %v11655_v13  ;;  %v11696_v9 = vld [vmem:[%s14328_s1 + $0x848] sm:$0xff] }
 0x6ff   : > { %v7336_v52 = vpop.f32.mrf.mxu1 }
 0x700   : > { %v7308_v32 = vpop.f32.mrf.mxu0  ;;  %v7401_v45 = vsel %vm7382_vm2, %v7365_v4, %v7392_v40  ;;  %v7337_v27 = vadd.f32 %v7336_v52, %v7304_v59  ;;  %v11672_v4 = vld [vmem:[%s14328_s1 + $0x788] sm:$0xff]  ;;  %v11681_v52 = vld [vmem:[%s14328_s1 + $0x7d0] sm:$0xff] }
 0x701   : > { %v7407_v17 = vpack.c.bf16 %v7401_v45, %v7400_v24  ;;  %v11693_v40 = vld [vmem:[%s14328_s1 + $0x830] sm:$0xff]  ;;  %v14199_v24 = vld [vmem:[%s14331_s4 + $0x3] ss:$0 sm:$0xff]  ;;  %8202 = vmatpush.bf16.msra.mxu2 %v11672_v4  ;;  %8176 = vmatmul.bf16.vlgmr.msra.gmra.mxu0 %v10879_v11 }
 0x702   : > { %8213 = vmatpush.bf16.msra.mxu3 %v11683_v1  ;;  %8224 = vmatpush.bf16.msrb.mxu0 %v11694_v41  ;;  %v11701_v32 = vld [vmem:[%s14328_s1 + $0x870] sm:$0xff]  ;;  %v11671_v45 = vld [vmem:[%s14328_s1 + $0x780] sm:$0xff] }
 0x703   : > { %v7367_v36 = vpop.f32.mrf.mxu2  ;;  %7495 = vmatmul.bf16.gmra.mxu3 %v7407_v17  ;;  %v11710_v17 = vld [vmem:[%s14328_s1 + $0x8b8] sm:$0xff]  ;;  %v11709_v59 = vld [vmem:[%s14328_s1 + $0x8b0] sm:$0xff] }
 0x704   : > { %v7368_v54 = vadd.f32 %v7367_v36, %v7335_v50  ;;  %v11692_v36 = vld [vmem:[%s14328_s1 + $0x828] sm:$0xff] }
 0x705   : > { %8203 = vmatpush.bf16.msra.mxu2 %v11671_v45 }
 0x706   : > { %v7393_v3 = vmul.f32 %v14079_v46, %v7368_v54  ;;  %vm7383_vm3 = vcmp.gt.f32.partialorder %v7368_v54, 0.0  ;;  %8214 = vmatpush.bf16.msra.mxu3 %v11682_v28  ;;  %8225 = vmatpush.bf16.msrb.mxu0 %v11693_v40  ;;  %v11703_v40 = vld [vmem:[%s14328_s1 + $0x880] sm:$0xff] }
 0x707   : > { %v7339_v6 = vpop.f32.mrf.mxu1 }
 0x708   : > { %v7402_v62 = vsel %vm7383_vm3, %v7368_v54, %v7393_v3  ;;  %v7340_v55 = vadd.f32 %v7339_v6, %v7307_v8  ;;  %v7637_v6 = vld [vmem:[#allocation2 + $0x39] sm:$0xff] }
 0x709   : > { %v7639_v37 = vpack.c.bf16 %v7637_v6, %v7637_v6  ;;  %8252 = vmatpush.bf16.msrb.mxu2 %v11710_v17  ;;  %v11691_v54 = vld [vmem:[%s14328_s1 + $0x820] sm:$0xff] }
 0x70a   : > { %8215 = vmatpush.bf16.msra.mxu3 %v11681_v52  ;;  %8226 = vmatpush.bf16.msrb.mxu0 %v11692_v36  ;;  %v11699_v3 = vld [vmem:[%s14328_s1 + $0x860] sm:$0xff] }
 0x70b   : > { %v7369_v33 = vpop.f32.mrf.mxu2  ;;  %7641 = vst [vmem:[#allocation3 + $0x4] sm:$0xf] %v7639_v37  ;;  %v11679_v8 = vld [vmem:[%s14328_s1 + $0x7c0] sm:$0xff] }
 0x70c   : > { %v7370_v35 = vadd.f32 %v7369_v33, %v7337_v27  ;;  %v7562_v33 = vadd.s32 48, %v2386_v49 }
 0x70d   : > { %8253 = vmatpush.bf16.msrb.mxu2 %v11709_v59 }
 0x70e   : > { %vm7384_vm4 = vcmp.gt.f32.partialorder %v7370_v35, 0.0  ;;  %v7394_v0 = vmul.f32 %v14079_v46, %v7370_v35  ;;  %8216 = vmatpush.bf16.msra.mxu3 %v11680_v39  ;;  %8227 = vmatpush.bf16.msrb.mxu0 %v11691_v54  ;;  %vm7571_vm7 = vcmp.ge.s32.totalorder %v7562_v33, 75 }
 0x70f   : > { %v7341_v60 = vpop.f32.mrf.mxu1 }
 0x710   : > { %v7403_v51 = vsel %vm7384_vm4, %v7370_v35, %v7394_v0  ;;  %v11708_v60 = vld [vmem:[%s14328_s1 + $0x8a8] sm:$0xff]  ;;  %v11690_v0 = vld [vmem:[%s14328_s1 + $0x818] sm:$0xff] }
 0x711   : > { %v7408_v29 = vpack.c.bf16 %v7403_v51, %v7402_v62  ;;  %v7542_v51 = vld [vmem:[#allocation2 + $0x48] sm:$0xff]  ;;  %8254 = vmatpush.bf16.msrb.mxu2 %v11708_v60 }
 0x712   : > { %8217 = vmatpush.bf16.msra.mxu3 %v11679_v8  ;;  %8228 = vmatpush.bf16.msrb.mxu0 %v11690_v0  ;;  %v10902_v8 = vld [vmem:[#allocation3 + $0x18] sm:$0xf] }
 0x713   : > { %v7372_v25 = vpop.f32.mrf.mxu2  ;;  %7500 = vmatmul.bf16.gmra.mxu3 %v7408_v29  ;;  %v11698_v29 = vld [vmem:[%s14328_s1 + $0x858] sm:$0xff] }
 0x714   : > { %v7373_v30 = vadd.f32 %v7372_v25, %v7340_v55 }
 0x716   : > { %vm7385_vm5 = vcmp.gt.f32.partialorder %v7373_v30, 0.0  ;;  %v7395_v42 = vmul.f32 %v14079_v46, %v7373_v30  ;;  %v11668_v46 = vld [vmem:[%s14328_s1 + $0x768] sm:$0xff] }
 0x717   : > { %8184 = vmatpush.bf16.msra.mxu1 %v11668_v46 }
 0x718   : > { %v7404_v53 = vsel %vm7385_vm5, %v7373_v30, %v7395_v42  ;;  %v11707_v42 = vld [vmem:[%s14328_s1 + $0x8a0] sm:$0xff] }
 0x719   : > { %v7409_v47 = vpack.c.bf16 %v7404_v53, %v7404_v53  ;;  %v11689_v53 = vld [vmem:[%s14328_s1 + $0x810] sm:$0xff]  ;;  %8255 = vmatpush.bf16.msrb.mxu2 %v11707_v42  ;;  %v11716_v42 = vld [vmem:[%s14330_s3 + $0x128] sm:$0xff] }
 0x71a   : > { %8229 = vmatpush.bf16.msrb.mxu0 %v11689_v53  ;;  %v11715_v53 = vld [vmem:[%s14330_s3 + $0x120] sm:$0xff] }
 0x71b   : > { %v7374_v5 = vpop.f32.mrf.mxu2  ;;  %8185 = vmatpush.bf16.msra.mxu1 %v11667_v14  ;;  %v11705_v14 = vld [vmem:[%s14328_s1 + $0x890] sm:$0xff] }
 0x71d   : > { %8256 = vmatpush.bf16.msrb.mxu2 %v11706_v56  ;;  %v11713_v56 = vld [vmem:[%s14330_s3 + $0x110] sm:$0xff] }
 0x71e   : > { %8230 = vmatpush.bf16.msrb.mxu0 %v11688_v19  ;;  %v11773_v19 = vld [vmem:[%s14329_s2 + $0x4] ss:$0 sm:$0xff] }
 0x71f   : > { %8186 = vmatpush.bf16.msra.mxu1 %v11666_v21  ;;  %v7564_v21 = vadd.s32 48, %v2388_v12 }
 0x721   : > { %8257 = vmatpush.bf16.msrb.mxu2 %v11705_v14  ;;  %vm7582_vm10 = vcmp.lt.s32.totalorder %v7564_v21, 91 }
 0x722   : > { %8231 = vmatpush.bf16.msrb.mxu0 %v11687_v38 }
 0x723   : > { %7505 = vmatmul.bf16.gmra.mxu3 %v7409_v47  ;;  %8187 = vmatpush.bf16.msra.mxu1 %v11665_v61  ;;  %v11697_v47 = vld [vmem:[%s14328_s1 + $0x850] sm:$0xff]  ;;  %v11704_v61 = vld [vmem:[%s14328_s1 + $0x888] sm:$0xff] }
 0x725   : > { %8258 = vmatpush.bf16.msrb.mxu2 %v11704_v61 }
 0x727   : > { %8188 = vmatpush.bf16.msra.mxu1 %v11664_v26 }
 0x729   : > { %8259 = vmatpush.bf16.msrb.mxu2 %v11703_v40  ;;  %v8269_v40 = vstv %s11128_s8 }
 0x72b   : > { %8189 = vmatpush.bf16.msra.mxu1 %v11663_v7 }
 0x72f   : > { %8238 = vmatpush.bf16.msrb.mxu1 %v11702_v44 }
 0x733   : > { %8239 = vmatpush.bf16.msrb.mxu1 %v11701_v32 }
 0x737   : > { %8240 = vmatpush.bf16.msrb.mxu1 %v11700_v63 }
 0x73b   : > { %8241 = vmatpush.bf16.msrb.mxu1 %v11699_v3  ;;  %v10896_v3 = vld [vmem:[#allocation3 + $0x2c] sm:$0xf0] }
 0x73f   : > { %8242 = vmatpush.bf16.msrb.mxu1 %v11698_v29 }
 0x743   : > { %8243 = vmatpush.bf16.msrb.mxu1 %v11697_v47 }
 0x747   : > { %8244 = vmatpush.bf16.msrb.mxu1 %v11696_v9  ;;  %v11711_v9 = vld [vmem:[%s14330_s3 + $0x100] sm:$0xff] }
 0x766   : > { %v7486_v10 = vpop.f32.mrf.mxu3 }
 0x76e   : > { %v7488_v15 = vpop.f32.mrf.mxu3 }
 0x776   : > { %v7491_v34 = vpop.f32.mrf.mxu3 }
 0x777   : > { %v11648_v34 = vld [vmem:[#allocation3 + $0x4] sm:$0xf] }
 0x77e   : > { %v7493_v50 = vpop.f32.mrf.mxu3  ;;  %v8177_v47 = vpop.f32.mrf.mxu0 }
 0x77f   : > { %v7494_v27 = vadd.f32 %v14199_v24, %v7493_v50 }
 0x781   : > { %vm7514_vm6 = vcmp.gt.f32.partialorder %v7494_v27, 0.0  ;;  %v7524_v35 = vmul.f32 %v7520_v48, %v7494_v27 }
 0x783   : > { %v7533_v62 = vsel %vm7514_vm6, %v7494_v27, %v7524_v35 }
 0x784   : > { %v7551_v55 = vadd.f32 %v7542_v51, %v7533_v62  ;;  %v11654_v62 = vld [vmem:[#allocation3 + $0x30] sm:$0xf0] }
 0x786   : > { %v7616_v25 = vsel %vm7571_vm7, %v7551_v55, 0.0  ;;  %v7496_v30 = vpop.f32.mrf.mxu3  ;;  %v10903_v55 = vor.u32 %v11654_v62, %v10902_v8 }
 0x787   : > { %7625 = vst [vmem:[#allocation2 + $0x48] sm:$0xff] %v7616_v25  ;;  %v7497_v5 = vadd.f32 %v14199_v24, %v7496_v30  ;;  %v11718_v25 = vld [vmem:[%s14330_s3 + $0x138] sm:$0xff]  ;;  %v11717_v30 = vld [vmem:[%s14330_s3 + $0x130] sm:$0xff] }
 0x788   : > { %8342 = vmatpush.bf16.msrb.mxu3 %v11718_v25 }
 0x789   : > { %vm7515_vm8 = vcmp.gt.f32.partialorder %v7497_v5, 0.0  ;;  %v7525_v31 = vmul.f32 %v7520_v48, %v7497_v5 }
 0x78b   : > { %v7534_v46 = vsel %vm7515_vm8, %v7497_v5, %v7525_v31  ;;  %v11714_v5 = vld [vmem:[%s14330_s3 + $0x118] sm:$0xff] }
 0x78c   : > { %v7552_v18 = vadd.f32 %v7534_v46, %v13991_v2  ;;  %v11695_v2 = vld [vmem:[%s14328_s1 + $0x840] sm:$0xff]  ;;  %8343 = vmatpush.bf16.msrb.mxu3 %v11717_v30  ;;  %v11712_v46 = vld [vmem:[%s14330_s3 + $0x108] sm:$0xff] }
 0x78d   : > { %8245 = vmatpush.bf16.msrb.mxu1 %v11695_v2 }
 0x78e   : > { %7626 = vst [vmem:[#allocation2 + $0x50] sm:$0xff] %v7552_v18  ;;  %v7498_v58 = vpop.f32.mrf.mxu3  ;;  %v7638_v1 = vld [vmem:[#allocation2 + $0x41] sm:$0xff]  ;;  %v8179_v18 = vpop.f32.mrf.mxu0 }
 0x78f   : > { %v7643_v22 = vld [vmem:[#allocation2 + $0x42] sm:$0xff]  ;;  %v7499_v10 = vadd.f32 %v14199_v24, %v7498_v58  ;;  %v7640_v43 = vpack.c.bf16 %v7638_v1, %v7638_v1  ;;  %v8178_v58 = vadd.f32 %v11773_v19, %v8177_v47 }
 0x790   : > { %v7645_v16 = vpack.c.bf16 %v7643_v22, %v7643_v22  ;;  %8344 = vmatpush.bf16.msrb.mxu3 %v11716_v42 }
 0x791   : > { %vm7516_vm9 = vcmp.gt.f32.partialorder %v7499_v10, 0.0  ;;  %v7526_v28 = vmul.f32 %v7520_v48, %v7499_v10  ;;  %7642 = vst [vmem:[#allocation3 + $0x20] sm:$0xf] %v7640_v43  ;;  %v8180_v43 = vadd.f32 %v11773_v19, %v8179_v18 }
 0x792   : > { %7647 = vst [vmem:[#allocation3 + $0x8] sm:$0xf] %v7645_v16 }
 0x793   : > { %v7535_v15 = vsel %vm7516_vm9, %v7499_v10, %v7526_v28 }
 0x794   : > { %v7553_v26 = vadd.f32 %v7544_v57, %v7535_v15  ;;  %8345 = vmatpush.bf16.msrb.mxu3 %v11715_v53 }
 0x795   : > { %v7644_v13 = vld [vmem:[#allocation2 + $0x4a] sm:$0xff] }
 0x796   : > { %v14273_v7 = vld [vmem:[#allocation2 + $0x4b] sm:$0xff]  ;;  %v7618_v41 = vsel %vm7582_vm10, %v7553_v26, 0.0  ;;  %v7501_v44 = vpop.f32.mrf.mxu3  ;;  %v7646_v4 = vpack.c.bf16 %v7644_v13, %v7644_v13 }
 0x797   : > { %v7651_v52 = vpack.c.bf16 %v14273_v7, %v14273_v7  ;;  %7627 = vst [vmem:[#allocation2 + $0x58] sm:$0xff] %v7618_v41 }
 0x798   : > { %v10880_v32 = vld [vmem:[#allocation3 + $0x1c] sm:$0xf0]  ;;  %7648 = vst [vmem:[#allocation3 + $0x24] sm:$0xf] %v7646_v4  ;;  %8346 = vmatpush.bf16.msrb.mxu3 %v11714_v5 }
 0x799   : > { %v10883_v24 = vor.u32 %v11648_v34, %v10880_v32  ;;  %7653 = vst [vmem:[#allocation3 + $0xc] sm:$0xf] %v7651_v52  ;;  %v10886_v39 = vld [vmem:[#allocation3 + $0x8] sm:$0xf] }
 0x79b   : > { %8190 = vmatmul.bf16.vlgmr.msra.gmra.mxu1 %v10883_v24 }
 0x79c   : > { %8347 = vmatpush.bf16.msrb.mxu3 %v11713_v56 }
 0x79e   : > { %v7503_v45 = vpop.f32.mrf.mxu3  ;;  %v14280_v17 = vld [vmem:[#allocation2 + $0x53] sm:$0xff]  ;;  %v7656_v63 = vld [vmem:[#allocation2 + $0x5c] sm:$0xff] }
 0x79f   : > { %v7655_v36 = vld [vmem:[#allocation2 + $0x54] sm:$0xff]  ;;  %v11652_v49 = vld [vmem:[#allocation3 + $0x20] sm:$0xf0]  ;;  %v7652_v20 = vpack.c.bf16 %v14280_v17, %v14280_v17  ;;  %v7658_v6 = vpack.c.bf16 %v7656_v63, %v7656_v63  ;;  %v7661_v11 = vld [vmem:[#allocation2 + $0x5d] sm:$0xff] }
 0x7a0   : > { %v7657_v23 = vpack.c.bf16 %v7655_v36, %v7655_v36  ;;  %v10887_v37 = vor.u32 %v11652_v49, %v10886_v39  ;;  %v7663_v50 = vpack.c.bf16 %v7661_v11, %v7661_v11  ;;  %v11649_v59 = vld [vmem:[#allocation3 + $0xc] sm:$0xf]  ;;  %8348 = vmatpush.bf16.msrb.mxu3 %v11712_v46  ;;  %v8359_v11 = vstv %s11177_s10 }
 0x7a1   : > { %7654 = vst [vmem:[#allocation3 + $0x28] sm:$0xf] %v7652_v20 }
 0x7a2   : > { %8204 = vmatmul.bf16.vlgmr.msra.gmra.mxu2 %v10887_v37  ;;  %7659 = vst [vmem:[#allocation3 + $0x10] sm:$0xf] %v7657_v23  ;;  %v11774_v23 = vld [vmem:[%s14331_s4 + $0x4] ss:$0 sm:$0xff] }
 0x7a3   : > { %7660 = vst [vmem:[#allocation3 + $0x2c] sm:$0xf] %v7658_v6 }
 0x7a4   : > { %7665 = vst [vmem:[#allocation3 + $0x14] sm:$0xf] %v7663_v50  ;;  %8349 = vmatpush.bf16.msrb.mxu3 %v11711_v9 }
 0x7a6   : > { %v7506_v48 = vpop.f32.mrf.mxu3 }
 0x7a8   : > { %v10888_v54 = vld [vmem:[#allocation3 + $0x24] sm:$0xf0] }
 0x7a9   : > { %v10891_v27 = vor.u32 %v11649_v59, %v10888_v54  ;;  %v10894_v33 = vld [vmem:[#allocation3 + $0x10] sm:$0xf] }
 0x7aa   : > { %v11653_v35 = vld [vmem:[#allocation3 + $0x28] sm:$0xf0] }
 0x7ab   : > { %8218 = vmatmul.bf16.vlgmr.msra.gmra.mxu3 %v10891_v27  ;;  %v10895_v60 = vor.u32 %v11653_v35, %v10894_v33  ;;  %v11650_v0 = vld [vmem:[#allocation3 + $0x14] sm:$0xf] }
 0x7ac   : > { %v10899_v51 = vor.u32 %v11650_v0, %v10896_v3 }
 0x7ad   : > { %8232 = vmatmul.bf16.vlgmr.msrb.gmra.mxu0 %v10895_v60 }
 0x7ae   : > { %8246 = vmatmul.bf16.vlgmr.msrb.gmra.mxu1 %v10899_v51  ;;  %v7508_v29 = vpop.f32.mrf.mxu3 }
 0x7b2   : > { %8260 = vmatmul.bf16.vlgmr.msrb.gmra.mxu2 %v10903_v55 }
 0x818   : > { %v8191_v31 = vpop.f32.mrf.mxu1 }
 0x819   : > { %v8192_v1 = vadd.f32 %v8191_v31, %v8178_v58 }
 0x820   : > { %v8193_v14 = vpop.f32.mrf.mxu1 }
 0x821   : > { %v8194_v61 = vadd.f32 %v8193_v14, %v8180_v43 }
 0x825   : > { %v8205_v12 = vpop.f32.mrf.mxu2 }
 0x826   : > { %v8206_v22 = vadd.f32 %v8205_v12, %v8192_v1 }
 0x82a   : > { %v8233_v10 = vpop.f32.mrf.mxu0 }
 0x82b   : > { %v8247_v2 = vpop.f32.mrf.mxu1 }
 0x82d   : > { %v8207_v38 = vpop.f32.mrf.mxu2 }
 0x82e   : > { %v8219_v21 = vpop.f32.mrf.mxu3  ;;  %v8208_v15 = vadd.f32 %v8207_v38, %v8194_v61 }
 0x82f   : > { %v8220_v16 = vadd.f32 %v8219_v21, %v8206_v22 }
 0x831   : > { %v8234_v28 = vadd.f32 %v8233_v10, %v8220_v16 }
 0x832   : > { %v8235_v44 = vpop.f32.mrf.mxu0 }
 0x833   : > { %v8248_v26 = vadd.f32 %v8247_v2, %v8234_v28  ;;  %v8249_v4 = vpop.f32.mrf.mxu1 }
 0x835   : > { %v8261_v57 = vpop.f32.mrf.mxu2 }
 0x836   : > { %v8221_v13 = vpop.f32.mrf.mxu3  ;;  %v8262_v52 = vadd.f32 %v8261_v57, %v8248_v26 }
 0x837   : > { %v8222_v41 = vadd.f32 %v8221_v13, %v8208_v15 }
 0x838   : > { %v8270_v45 = vmul.f32 %v8269_v40, %v8262_v52  ;;  %vm8267_vm11 = vcmp.gt.f32.partialorder %v8262_v52, 0.0 }
 0x839   : > { %v8236_v34 = vadd.f32 %v8235_v44, %v8222_v41 }
 0x83a   : > { %v8272_v39 = vsel %vm8267_vm11, %v8262_v52, %v8270_v45 }
 0x83b   : > { %v8250_v32 = vadd.f32 %v8249_v4, %v8236_v34 }
 0x83d   : > { %v8263_v24 = vpop.f32.mrf.mxu2 }
 0x83e   : > { %v8264_v36 = vadd.f32 %v8263_v24, %v8250_v32 }
 0x840   : > { %vm8268_vm12 = vcmp.gt.f32.partialorder %v8264_v36, 0.0  ;;  %v8271_v63 = vmul.f32 %v8269_v40, %v8264_v36 }
 0x842   : > { %v8273_v49 = vsel %vm8268_vm12, %v8264_v36, %v8271_v63 }
 0x843   : > { %v8274_v20 = vpack.c.bf16 %v8273_v49, %v8272_v39 }
 0x845   : > { %8350 = vmatmul.bf16.vlgmr.msrb.gmra.mxu3 %v8274_v20 }
 0x8c8   : > { %v8351_v6 = vpop.f32.mrf.mxu3 }
 0x8c9   : > { %v8352_v37 = vadd.f32 %v11774_v23, %v8351_v6 }
 0x8cb   : > { %vm8357_vm13 = vcmp.gt.f32.partialorder %v8352_v37, 0.0  ;;  %v8360_v50 = vmul.f32 %v8359_v11, %v8352_v37 }
 0x8cd   : > { %v8362_v48 = vsel %vm8357_vm13, %v8352_v37, %v8360_v50 }
 0x8ce   : > { %v8366_v59 = vadd.f32 %v8362_v48, %v14273_v7 }
 0x8d0   : > { %8384 = vst [vmem:[#allocation2 + $0x4b] sm:$0xff] %v8366_v59  ;;  %v8353_v54 = vpop.f32.mrf.mxu3 }
 0x8d1   : > { %8388 = vst [vmem:[%s11945_s22] sm:$0xff] %v8366_v59  ;;  %v8354_v27 = vadd.f32 %v11774_v23, %v8353_v54 }
 0x8d3   : > { %vm8358_vm14 = vcmp.gt.f32.partialorder %v8354_v27, 0.0  ;;  %v8361_v33 = vmul.f32 %v8359_v11, %v8354_v27 }
 0x8d5   : > { %v8363_v3 = vsel %vm8358_vm14, %v8354_v27, %v8361_v33 }
 0x8d6   : > { %v8367_v35 = vadd.f32 %v8363_v3, %v14280_v17 }
 0x8d8   : > { %8385 = vst [vmem:[#allocation2 + $0x53] sm:$0xff] %v8367_v35 }
 0x8d9   : > { %8389 = vst [vmem:[%s11945_s22 + $0x8] sm:$0xff] %v8367_v35 }
 0x8da PF: > { %s19_s26 = sadd.s32 1, %s11844_s26   ;;  %s14422_s24 = smov %s11840_s25 }
 0x8db   : > { %p16_p8 = scmp.ge.s32.totalorder %s19_s26, 4   ;;  %s14423_s25 = smov %s14425_s28 }
 0x8dd   :  { %18 = sbr.rel (!%p16_p8) target bundleno = 3 (0x3), region = 121 }
 0x8e2   :  { %8420 = vsyncpa [#allocation6], 1 }
 0x8e3   :  { %8422 = vsyncpa [#allocation6 + $0x1], 1 }
 0x8e4   :  { %8423 = vsyncpa [#allocation8], 1 }
 0x8e5   :  { %8424 = vsyncmov [#allocation4] }
 0x8e8   :  { %s8425_s13 = vpop.sfrf %8424 }
 0x8e9   :  { %p11180_p9 = scmp.ne.s32.totalorder %s8425_s13, 0 }
 0x8eb   :  { %8429 = shalt.err (%p11180_p9)  }

</bundles_post_ra>
